<compile_context>
chip_gen: v5e
topology: v5e:2x2
jax: 0.10.0
libtpu: 0.0.40
codegen_flags: <defaults>
</compile_context>

<pallas_src>
import math
import functools

import jax
import jax.numpy as jnp
from jax.experimental import pallas as pl
from jax.experimental.pallas import tpu as pltpu


# ------------------------------ small helpers --------------------------------

def _erf_f32(x):
    # Abramowitz & Stegun 7.1.26 (|abs err| <= 1.5e-7): erf built only from
    # Mosaic-supported elementwise ops (exp goes to the EUP slot).
    sign = jnp.where(x >= 0.0, 1.0, -1.0)
    z = jnp.abs(x)
    t = 1.0 / (1.0 + 0.3275911 * z)
    poly = t * (0.254829592 + t * (-0.284496736 + t * (1.421413741
               + t * (-1.453152027 + t * 1.061405429))))
    return sign * (1.0 - poly * jnp.exp(-z * z))


def _gelu_exact(x):
    # Matches torch.nn.GELU() (exact erf form) to f32 precision.
    return 0.5 * x * (1.0 + _erf_f32(x * (1.0 / math.sqrt(2.0))))


def _layernorm(x, g, b, eps=1e-5):
    mu = jnp.mean(x, axis=-1, keepdims=True)
    var = jnp.mean((x - mu) ** 2, axis=-1, keepdims=True)
    return (x - mu) * jax.lax.rsqrt(var + eps) * g + b


# ------------------------------ Pallas kernels --------------------------------

def _block_kernel(x_ref, wqkv_ref, bqkv_ref, ln1g_ref, ln1b_ref,
                  wo_ref, bo_ref, wfc_ref, bfc_ref, wpr_ref, bpr_ref,
                  ln2g_ref, ln2b_ref, o_ref, *, n_head, head_dim, prefix_width):
    """One full transformer block for one batch element (grid=(B,))."""
    x = x_ref[...]                                  # (T, C) f32 residual stream
    seq, c = x.shape
    scale = 1.0 / math.sqrt(head_dim)

    # ---- LN1 fused into the batched QKV projection (single N tile) ----
    h1 = _layernorm(x, ln1g_ref[...], ln1b_ref[...]).astype(jnp.bfloat16)
    qkv = jnp.dot(h1, wqkv_ref[...],
                  preferred_element_type=jnp.float32) + bqkv_ref[...]   # (T, 3C)

    # ---- multi-head prefix-LM attention, all heads in this grid step ----
    # allowed where causal (col <= row) OR inside the bidirectional prefix
    # (col < T - t + 1), matching (tril == 0) & (context == 0) -> -inf.
    row = jax.lax.broadcasted_iota(jnp.int32, (seq, seq), 0)
    col = jax.lax.broadcasted_iota(jnp.int32, (seq, seq), 1)
    allowed = (col <= row) | (col < prefix_width)
    head_outs = []
    for h in range(n_head):                         # static loop; lane-aligned slices
        q = (qkv[:, h * head_dim:(h + 1) * head_dim] * scale).astype(jnp.bfloat16)
        k = qkv[:, c + h * head_dim: c + (h + 1) * head_dim].astype(jnp.bfloat16)
        v = qkv[:, 2 * c + h * head_dim: 2 * c + (h + 1) * head_dim].astype(jnp.bfloat16)
        s = jax.lax.dot_general(q, k, (((1,), (1,)), ((), ())),
                                preferred_element_type=jnp.float32)      # (T, T)
        s = jnp.where(allowed, s, jnp.float32(-1e30))
        m = jnp.max(s, axis=-1, keepdims=True)
        p = jnp.exp(s - m)
        p = p / jnp.sum(p, axis=-1, keepdims=True)   # exact softmax (parity w/ ref)
        head_outs.append(jnp.dot(p.astype(jnp.bfloat16), v,
                                 preferred_element_type=jnp.float32))
    y = jnp.concatenate(head_outs, axis=-1)          # (T, C)
    # TODO(synk): for long sequences, tile attention over KV with an online
    # softmax (flash-style); unnecessary at T=8.

    # ---- output projection + residual (stays f32) ----
    x = x + jnp.dot(y.astype(jnp.bfloat16), wo_ref[...],
                    preferred_element_type=jnp.float32) + bo_ref[...]

    # ---- LN2 + MLP (fc -> exact GELU -> proj) + residual ----
    h2 = _layernorm(x, ln2g_ref[...], ln2b_ref[...]).astype(jnp.bfloat16)
    mid = jnp.dot(h2, wfc_ref[...],
                  preferred_element_type=jnp.float32) + bfc_ref[...]
    mid = _gelu_exact(mid).astype(jnp.bfloat16)
    x = x + jnp.dot(mid, wpr_ref[...],
                    preferred_element_type=jnp.float32) + bpr_ref[...]

    o_ref[...] = x.astype(o_ref.dtype)


def _head_kernel(x_ref, lng_ref, lnb_ref, w_ref, o_ref):
    """Final LayerNorm fused into the bias-free LM head matmul."""
    h = _layernorm(x_ref[...], lng_ref[...], lnb_ref[...]).astype(jnp.bfloat16)
    o_ref[...] = jnp.dot(h, w_ref[...], preferred_element_type=jnp.float32)


# ------------------------------ Pallas wrappers --------------------------------

def _full_spec(a):
    # Full-array block; constant block index across the grid so weights are
    # DMA'd into VMEM once and stay resident.
    return pl.BlockSpec(a.shape, lambda b: (0,) * a.ndim)


def transformer_block(x, blk, *, batch, seq, n_head, head_dim, prefix_width):
    m, c = x.shape
    assert m == batch * seq and seq % 8 == 0 and c % 128 == 0

    kernel = functools.partial(_block_kernel, n_head=n_head, head_dim=head_dim,
                               prefix_width=prefix_width)
    args = (x, blk["Wqkv"], blk["bqkv"], blk["ln1_g"], blk["ln1_b"],
            blk["Wo"], blk["bo"], blk["Wfc"], blk["bfc"],
            blk["Wpr"], blk["bpr"], blk["ln2_g"], blk["ln2_b"])
    in_specs = [pl.BlockSpec((seq, c), lambda b: (b, 0))] + \
               [_full_spec(a) for a in args[1:]]

    flops = 2 * m * c * (3 * c + c + 4 * c + 4 * c) \
            + 4 * batch * n_head * seq * seq * head_dim
    bytes_w = sum(int(a.size) * a.dtype.itemsize for a in args[1:])
    cost = pl.CostEstimate(flops=flops,
                           transcendentals=m * 4 * c + batch * n_head * seq * seq,
                           bytes_accessed=bytes_w + 2 * m * c * 4)

    return pl.pallas_call(
        kernel,
        out_shape=jax.ShapeDtypeStruct((m, c), jnp.float32),
        grid=(batch,),
        in_specs=in_specs,
        out_specs=pl.BlockSpec((seq, c), lambda b: (b, 0)),
        input_output_aliases={0: 0},     # residual stream written in place
        compiler_params=pltpu.CompilerParams(
            dimension_semantics=("parallel",)),
        cost_estimate=cost,
    )(*args)


def lm_head(x, ln_g, ln_b, w, *, batch, seq):
    m, c = x.shape
    v = w.shape[1]
    cost = pl.CostEstimate(
        flops=2 * m * c * v, transcendentals=0,
        bytes_accessed=int(w.size) * w.dtype.itemsize + m * c * 4 + m * v * 4)
    return pl.pallas_call(
        _head_kernel,
        out_shape=jax.ShapeDtypeStruct((m, v), jnp.float32),
        grid=(batch,),
        in_specs=[pl.BlockSpec((seq, c), lambda b: (b, 0)),
                  _full_spec(ln_g), _full_spec(ln_b), _full_spec(w)],
        out_specs=pl.BlockSpec((seq, v), lambda b: (b, 0)),
        compiler_params=pltpu.CompilerParams(
            dimension_semantics=("parallel",)),
        cost_estimate=cost,
    )(x, ln_g, ln_b, w)


# ------------------------------- parameter init --------------------------------

def init_gpt_params(key, cfg):
    C, V, L = cfg["n_embd"], cfg["vocab_size"], cfg["n_layer"]
    keys = jax.random.split(key, 2 + L)

    def normal(k, shape, dtype=jnp.bfloat16):
        return (0.02 * jax.random.normal(k, shape, jnp.float32)).astype(dtype)

    tok_emb = normal(keys[0], (V, C), jnp.float32)
    tok_emb = tok_emb.at[cfg["pad_token"]].set(0.0)     # nn.Embedding padding_idx row

    params = {
        "tok_emb": tok_emb,
        "head_w": normal(keys[1], (C, V)),              # head.weight.T (no bias), bf16
        "ln_f_g": jnp.ones((1, C), jnp.float32),
        "ln_f_b": jnp.zeros((1, C), jnp.float32),
        "blocks": [],
    }
    for layer in range(L):
        ks = jax.random.split(keys[2 + layer], 4)
        params["blocks"].append({
            "ln1_g": jnp.ones((1, C), jnp.float32),
            "ln1_b": jnp.zeros((1, C), jnp.float32),
            "ln2_g": jnp.ones((1, C), jnp.float32),
            "ln2_b": jnp.zeros((1, C), jnp.float32),
            # query/key/value projections batched into one (C, 3C) matmul
            "Wqkv": normal(ks[0], (C, 3 * C)),
            "bqkv": jnp.zeros((1, 3 * C), jnp.float32),
            "Wo": normal(ks[1], (C, C)), "bo": jnp.zeros((1, C), jnp.float32),
            "Wfc": normal(ks[2], (C, 4 * C)), "bfc": jnp.zeros((1, 4 * C), jnp.float32),
            "Wpr": normal(ks[3], (4 * C, C)), "bpr": jnp.zeros((1, C), jnp.float32),
        })
    return params


# ---------------------------------- forward ------------------------------------

def gpt_forward(params, idx, cfg, targets=None):
    B, T = idx.shape
    C, H, V = cfg["n_embd"], cfg["n_head"], cfg["vocab_size"]
    D = C // H

    # Token embedding (add_positions=False path); the gather stays in plain JAX.
    x = jnp.take(params["tok_emb"], idx, axis=0).reshape(B * T, C)
    # embedding / attention / residual dropouts are identities at inference.

    t = targets.shape[-1] if targets is not None else cfg["target_length"]
    prefix_width = T - t + 1    # allowed: col <= row (causal) OR col < prefix_width

    for blk in params["blocks"]:
        x = transformer_block(x, blk, batch=B, seq=T, n_head=H, head_dim=D,
                              prefix_width=prefix_width)

    logits = lm_head(x, params["ln_f_g"], params["ln_f_b"], params["head_w"],
                     batch=B, seq=T)
    logits = logits.reshape(B, T, V)

    # TODO(synk): cross-entropy loss branch (targets is not None) not exercised;
    # as in the reference, loss is None when targets is None.
    loss = None
    return logits, loss


# ------------------------------------ main --------------------------------------

if __name__ == "__main__":
    # Small but lane-aligned config: C=256 (2x128 lanes), H=2 -> D=128, vocab=128.
    cfg = dict(
        vocab_size=128,
        n_embd=256,
        n_head=2,
        n_layer=2,
        n_context=8,
        target_length=4,
        pad_token=0,
        add_positions=False,
        add_segment_positions=False,
    )

    key = jax.random.PRNGKey(0)
    pkey, dkey = jax.random.split(key)
    params = init_gpt_params(pkey, cfg)

    B, T = 2, 8
    idx = jax.random.randint(dkey, (B, T), 1, cfg["vocab_size"], dtype=jnp.int32)

    fwd = jax.jit(functools.partial(gpt_forward, cfg=cfg))
    logits, loss = fwd(params, idx)
    logits = jax.block_until_ready(logits)

    assert logits.shape == (B, T, cfg["vocab_size"]), logits.shape
    assert bool(jnp.isfinite(logits).all())
    assert loss is None
    print("KERNEL_OK")
</pallas_src>

<mosaic_0001>
module attributes {stable_mosaic.version = 11 : i64} {
  func.func @_head_kernel(%arg0: i32, %arg1: memref<8x256xf32, #tpu.memory_space<vmem>>, %arg2: memref<1x256xf32, #tpu.memory_space<vmem>>, %arg3: memref<1x256xf32, #tpu.memory_space<vmem>>, %arg4: memref<256x128xbf16, #tpu.memory_space<vmem>>, %arg5: memref<8x128xf32, #tpu.memory_space<vmem>>) attributes {dimension_semantics = [#tpu.dimension_semantics<parallel>], iteration_bounds = array<i64: 2>, scalar_prefetch = 0 : i64, scratch_operands = 0 : i64, tpu.core_type = #tpu.core_type<tc>, window_params = [{transform_indices = @transform_0, window_bounds = array<i64: 8, 256>}, {pipeline_mode = #tpu.pipeline_mode<synchronous>, transform_indices = @transform_1, window_bounds = array<i64: 1, 256>}, {pipeline_mode = #tpu.pipeline_mode<synchronous>, transform_indices = @transform_2, window_bounds = array<i64: 1, 256>}, {pipeline_mode = #tpu.pipeline_mode<synchronous>, transform_indices = @transform_3, window_bounds = array<i64: 256, 128>}, {transform_indices = @transform_4, window_bounds = array<i64: 8, 128>}]} {
    %c0 = arith.constant 0 : index
    %c0_0 = arith.constant 0 : index
    %0 = vector.load %arg1[%c0, %c0_0] : memref<8x256xf32, #tpu.memory_space<vmem>>, vector<8x256xf32>
    %c0_1 = arith.constant 0 : index
    %c0_2 = arith.constant 0 : index
    %1 = vector.load %arg2[%c0_1, %c0_2] : memref<1x256xf32, #tpu.memory_space<vmem>>, vector<1x256xf32>
    %c0_3 = arith.constant 0 : index
    %c0_4 = arith.constant 0 : index
    %2 = vector.load %arg3[%c0_3, %c0_4] : memref<1x256xf32, #tpu.memory_space<vmem>>, vector<1x256xf32>
    %cst = arith.constant dense<0.000000e+00> : vector<8xf32>
    %3 = vector.multi_reduction <add>, %0, %cst [1] : vector<8x256xf32> to vector<8xf32>
    %4 = vector.shape_cast %3 : vector<8xf32> to vector<8x1xf32>
    %cst_5 = arith.constant 2.560000e+02 : f32
    %5 = vector.broadcast %cst_5 : f32 to vector<8x1xf32>
    %6 = arith.divf %4, %5 : vector<8x1xf32>
    %7 = vector.broadcast %6 : vector<8x1xf32> to vector<8x256xf32>
    %8 = arith.subf %0, %7 : vector<8x256xf32>
    %9 = arith.mulf %8, %8 : vector<8x256xf32>
    %cst_6 = arith.constant dense<0.000000e+00> : vector<8xf32>
    %10 = vector.multi_reduction <add>, %9, %cst_6 [1] : vector<8x256xf32> to vector<8xf32>
    %11 = vector.shape_cast %10 : vector<8xf32> to vector<8x1xf32>
    %cst_7 = arith.constant 2.560000e+02 : f32
    %12 = vector.broadcast %cst_7 : f32 to vector<8x1xf32>
    %13 = arith.divf %11, %12 : vector<8x1xf32>
    %14 = vector.broadcast %6 : vector<8x1xf32> to vector<8x256xf32>
    %15 = arith.subf %0, %14 : vector<8x256xf32>
    %cst_8 = arith.constant 9.99999974E-6 : f32
    %16 = vector.broadcast %cst_8 : f32 to vector<8x1xf32>
    %17 = arith.addf %13, %16 : vector<8x1xf32>
    %18 = math.rsqrt %17 : vector<8x1xf32>
    %19 = vector.broadcast %18 : vector<8x1xf32> to vector<8x256xf32>
    %20 = arith.mulf %15, %19 : vector<8x256xf32>
    %21 = vector.broadcast %1 : vector<1x256xf32> to vector<8x256xf32>
    %22 = arith.mulf %20, %21 : vector<8x256xf32>
    %23 = vector.broadcast %2 : vector<1x256xf32> to vector<8x256xf32>
    %24 = arith.addf %22, %23 : vector<8x256xf32>
    %25 = arith.truncf %24 : vector<8x256xf32> to vector<8x256xbf16>
    %c0_9 = arith.constant 0 : index
    %c0_10 = arith.constant 0 : index
    %26 = vector.load %arg4[%c0_9, %c0_10] : memref<256x128xbf16, #tpu.memory_space<vmem>>, vector<256x128xbf16>
    %cst_11 = arith.constant dense<0.000000e+00> : vector<8x128xf32>
    %27 = tpu.matmul %25, %26, %cst_11 {dimension_numbers = #tpu.dot_dimension_numbers<[1], [0], [0], [1], [0, 0, 1, 1], [], []>} : vector<8x256xbf16>, vector<256x128xbf16>, vector<8x128xf32> -> vector<8x128xf32>
    %c0_12 = arith.constant 0 : index
    %c0_13 = arith.constant 0 : index
    %28 = vector.load %arg5[%c0_12, %c0_13] : memref<8x128xf32, #tpu.memory_space<vmem>>, vector<8x128xf32>
    tpu.vector_store %arg5[%c0_12, %c0_13], %27 {strides = array<i32>} : memref<8x128xf32, #tpu.memory_space<vmem>>, vector<8x128xf32>,
    return
  }
  func.func @transform_0(%arg0: i32) -> (i32, i32) {
    %c0_i32 = arith.constant 0 : i32
    %c0_i32_0 = arith.constant 0 : i32
    return %arg0, %c0_i32 : i32, i32
  }
  func.func @transform_1(%arg0: i32) -> (i32, i32) {
    %c0_i32 = arith.constant 0 : i32
    %c0_i32_0 = arith.constant 0 : i32
    %c0_i32_1 = arith.constant 0 : i32
    return %c0_i32, %c0_i32_0 : i32, i32
  }
  func.func @transform_2(%arg0: i32) -> (i32, i32) {
    %c0_i32 = arith.constant 0 : i32
    %c0_i32_0 = arith.constant 0 : i32
    %c0_i32_1 = arith.constant 0 : i32
    return %c0_i32, %c0_i32_0 : i32, i32
  }
  func.func @transform_3(%arg0: i32) -> (i32, i32) {
    %c0_i32 = arith.constant 0 : i32
    %c0_i32_0 = arith.constant 0 : i32
    %c0_i32_1 = arith.constant 0 : i32
    return %c0_i32, %c0_i32_0 : i32, i32
  }
  func.func @transform_4(%arg0: i32) -> (i32, i32) {
    %c0_i32 = arith.constant 0 : i32
    %c0_i32_0 = arith.constant 0 : i32
    return %arg0, %c0_i32 : i32, i32
  }
}

module attributes {stable_mosaic.version = 11 : i64} {
  func.func @_block_kernel(%arg0: i32, %arg1: memref<8x256xf32, #tpu.memory_space<vmem>>, %arg2: memref<256x768xbf16, #tpu.memory_space<vmem>>, %arg3: memref<1x768xf32, #tpu.memory_space<vmem>>, %arg4: memref<1x256xf32, #tpu.memory_space<vmem>>, %arg5: memref<1x256xf32, #tpu.memory_space<vmem>>, %arg6: memref<256x256xbf16, #tpu.memory_space<vmem>>, %arg7: memref<1x256xf32, #tpu.memory_space<vmem>>, %arg8: memref<256x1024xbf16, #tpu.memory_space<vmem>>, %arg9: memref<1x1024xf32, #tpu.memory_space<vmem>>, %arg10: memref<1024x256xbf16, #tpu.memory_space<vmem>>, %arg11: memref<1x256xf32, #tpu.memory_space<vmem>>, %arg12: memref<1x256xf32, #tpu.memory_space<vmem>>, %arg13: memref<1x256xf32, #tpu.memory_space<vmem>>, %arg14: memref<8x256xf32, #tpu.memory_space<vmem>>) attributes {dimension_semantics = [#tpu.dimension_semantics<parallel>], iteration_bounds = array<i64: 2>, scalar_prefetch = 0 : i64, scratch_operands = 0 : i64, tpu.core_type = #tpu.core_type<tc>, window_params = [{transform_indices = @transform_0, window_bounds = array<i64: 8, 256>}, {pipeline_mode = #tpu.pipeline_mode<synchronous>, transform_indices = @transform_1, window_bounds = array<i64: 256, 768>}, {pipeline_mode = #tpu.pipeline_mode<synchronous>, transform_indices = @transform_2, window_bounds = array<i64: 1, 768>}, {pipeline_mode = #tpu.pipeline_mode<synchronous>, transform_indices = @transform_3, window_bounds = array<i64: 1, 256>}, {pipeline_mode = #tpu.pipeline_mode<synchronous>, transform_indices = @transform_4, window_bounds = array<i64: 1, 256>}, {pipeline_mode = #tpu.pipeline_mode<synchronous>, transform_indices = @transform_5, window_bounds = array<i64: 256, 256>}, {pipeline_mode = #tpu.pipeline_mode<synchronous>, transform_indices = @transform_6, window_bounds = array<i64: 1, 256>}, {pipeline_mode = #tpu.pipeline_mode<synchronous>, transform_indices = @transform_7, window_bounds = array<i64: 256, 1024>}, {pipeline_mode = #tpu.pipeline_mode<synchronous>, transform_indices = @transform_8, window_bounds = array<i64: 1, 1024>}, {pipeline_mode = #tpu.pipeline_mode<synchronous>, transform_indices = @transform_9, window_bounds = array<i64: 1024, 256>}, {pipeline_mode = #tpu.pipeline_mode<synchronous>, transform_indices = @transform_10, window_bounds = array<i64: 1, 256>}, {pipeline_mode = #tpu.pipeline_mode<synchronous>, transform_indices = @transform_11, window_bounds = array<i64: 1, 256>}, {pipeline_mode = #tpu.pipeline_mode<synchronous>, transform_indices = @transform_12, window_bounds = array<i64: 1, 256>}, {transform_indices = @transform_13, window_bounds = array<i64: 8, 256>}]} {
    %c0 = arith.constant 0 : index
    %c0_0 = arith.constant 0 : index
    %0 = vector.load %arg1[%c0, %c0_0] : memref<8x256xf32, #tpu.memory_space<vmem>>, vector<8x256xf32>
    %c0_1 = arith.constant 0 : index
    %c0_2 = arith.constant 0 : index
    %1 = vector.load %arg4[%c0_1, %c0_2] : memref<1x256xf32, #tpu.memory_space<vmem>>, vector<1x256xf32>
    %c0_3 = arith.constant 0 : index
    %c0_4 = arith.constant 0 : index
    %2 = vector.load %arg5[%c0_3, %c0_4] : memref<1x256xf32, #tpu.memory_space<vmem>>, vector<1x256xf32>
    %cst = arith.constant dense<0.000000e+00> : vector<8xf32>
    %3 = vector.multi_reduction <add>, %0, %cst [1] : vector<8x256xf32> to vector<8xf32>
    %4 = vector.shape_cast %3 : vector<8xf32> to vector<8x1xf32>
    %cst_5 = arith.constant 2.560000e+02 : f32
    %5 = vector.broadcast %cst_5 : f32 to vector<8x1xf32>
    %6 = arith.divf %4, %5 : vector<8x1xf32>
    %7 = vector.broadcast %6 : vector<8x1xf32> to vector<8x256xf32>
    %8 = arith.subf %0, %7 : vector<8x256xf32>
    %9 = arith.mulf %8, %8 : vector<8x256xf32>
    %cst_6 = arith.constant dense<0.000000e+00> : vector<8xf32>
    %10 = vector.multi_reduction <add>, %9, %cst_6 [1] : vector<8x256xf32> to vector<8xf32>
    %11 = vector.shape_cast %10 : vector<8xf32> to vector<8x1xf32>
    %cst_7 = arith.constant 2.560000e+02 : f32
    %12 = vector.broadcast %cst_7 : f32 to vector<8x1xf32>
    %13 = arith.divf %11, %12 : vector<8x1xf32>
    %14 = vector.broadcast %6 : vector<8x1xf32> to vector<8x256xf32>
    %15 = arith.subf %0, %14 : vector<8x256xf32>
    %cst_8 = arith.constant 9.99999974E-6 : f32
    %16 = vector.broadcast %cst_8 : f32 to vector<8x1xf32>
    %17 = arith.addf %13, %16 : vector<8x1xf32>
    %18 = math.rsqrt %17 : vector<8x1xf32>
    %19 = vector.broadcast %18 : vector<8x1xf32> to vector<8x256xf32>
    %20 = arith.mulf %15, %19 : vector<8x256xf32>
    %21 = vector.broadcast %1 : vector<1x256xf32> to vector<8x256xf32>
    %22 = arith.mulf %20, %21 : vector<8x256xf32>
    %23 = vector.broadcast %2 : vector<1x256xf32> to vector<8x256xf32>
    %24 = arith.addf %22, %23 : vector<8x256xf32>
    %25 = arith.truncf %24 : vector<8x256xf32> to vector<8x256xbf16>
    %c0_9 = arith.constant 0 : index
    %c0_10 = arith.constant 0 : index
    %26 = vector.load %arg2[%c0_9, %c0_10] : memref<256x768xbf16, #tpu.memory_space<vmem>>, vector<256x768xbf16>
    %cst_11 = arith.constant dense<0.000000e+00> : vector<8x768xf32>
    %27 = tpu.matmul %25, %26, %cst_11 {dimension_numbers = #tpu.dot_dimension_numbers<[1], [0], [0], [1], [0, 0, 1, 1], [], []>} : vector<8x256xbf16>, vector<256x768xbf16>, vector<8x768xf32> -> vector<8x768xf32>
    %c0_12 = arith.constant 0 : index
    %c0_13 = arith.constant 0 : index
    %28 = vector.load %arg3[%c0_12, %c0_13] : memref<1x768xf32, #tpu.memory_space<vmem>>, vector<1x768xf32>
    %29 = vector.broadcast %28 : vector<1x768xf32> to vector<8x768xf32>
    %30 = arith.addf %27, %29 : vector<8x768xf32>
    %31 = tpu.iota {dimensions = array<i32: 0>} : vector<8x8xi32>
    %32 = tpu.iota {dimensions = array<i32: 1>} : vector<8x8xi32>
    %33 = arith.cmpi sle, %32, %31 : vector<8x8xi32>
    %c5_i32 = arith.constant 5 : i32
    %34 = vector.broadcast %c5_i32 : i32 to vector<8x8xi32>
    %35 = arith.cmpi slt, %32, %34 : vector<8x8xi32>
    %36 = arith.ori %33, %35 : vector<8x8xi1>
    %37 = vector.extract_strided_slice %30 {offsets = [0, 0], sizes = [8, 128], strides = [1, 1]} : vector<8x768xf32> to vector<8x128xf32>
    %cst_14 = arith.constant 0.0883883461 : f32
    %38 = vector.broadcast %cst_14 : f32 to vector<8x128xf32>
    %39 = arith.mulf %37, %38 : vector<8x128xf32>
    %40 = arith.truncf %39 : vector<8x128xf32> to vector<8x128xbf16>
    %41 = vector.extract_strided_slice %30 {offsets = [0, 256], sizes = [8, 128], strides = [1, 1]} : vector<8x768xf32> to vector<8x128xf32>
    %42 = arith.truncf %41 : vector<8x128xf32> to vector<8x128xbf16>
    %43 = vector.extract_strided_slice %30 {offsets = [0, 512], sizes = [8, 128], strides = [1, 1]} : vector<8x768xf32> to vector<8x128xf32>
    %44 = arith.truncf %43 : vector<8x128xf32> to vector<8x128xbf16>
    %cst_15 = arith.constant dense<0.000000e+00> : vector<8x8xf32>
    %45 = tpu.matmul %40, %42, %cst_15 {dimension_numbers = #tpu.dot_dimension_numbers<[1], [1], [0], [0], [0, 0, 1, 0], [], []>} : vector<8x128xbf16>, vector<8x128xbf16>, vector<8x8xf32> -> vector<8x8xf32>
    %cst_16 = arith.constant -1.000000e+30 : f32
    %46 = vector.broadcast %cst_16 : f32 to vector<8x8xf32>
    %47 = arith.select %36, %45, %46 : vector<8x8xi1>, vector<8x8xf32>
    %cst_17 = arith.constant dense<0xFF800000> : vector<8xf32>
    %48 = vector.multi_reduction <maximumf>, %47, %cst_17 [1] : vector<8x8xf32> to vector<8xf32>
    %49 = vector.shape_cast %48 : vector<8xf32> to vector<8x1xf32>
    %50 = vector.broadcast %49 : vector<8x1xf32> to vector<8x8xf32>
    %51 = arith.subf %47, %50 : vector<8x8xf32>
    %52 = math.exp %51 : vector<8x8xf32>
    %cst_18 = arith.constant dense<0.000000e+00> : vector<8xf32>
    %53 = vector.multi_reduction <add>, %52, %cst_18 [1] : vector<8x8xf32> to vector<8xf32>
    %54 = vector.shape_cast %53 : vector<8xf32> to vector<8x1xf32>
    %55 = vector.broadcast %54 : vector<8x1xf32> to vector<8x8xf32>
    %56 = arith.divf %52, %55 : vector<8x8xf32>
    %57 = arith.truncf %56 : vector<8x8xf32> to vector<8x8xbf16>
    %cst_19 = arith.constant dense<0.000000e+00> : vector<8x128xf32>
    %58 = tpu.matmul %57, %44, %cst_19 {dimension_numbers = #tpu.dot_dimension_numbers<[1], [0], [0], [1], [0, 0, 1, 1], [], []>} : vector<8x8xbf16>, vector<8x128xbf16>, vector<8x128xf32> -> vector<8x128xf32>
    %59 = vector.extract_strided_slice %30 {offsets = [0, 128], sizes = [8, 128], strides = [1, 1]} : vector<8x768xf32> to vector<8x128xf32>
    %cst_20 = arith.constant 0.0883883461 : f32
    %60 = vector.broadcast %cst_20 : f32 to vector<8x128xf32>
    %61 = arith.mulf %59, %60 : vector<8x128xf32>
    %62 = arith.truncf %61 : vector<8x128xf32> to vector<8x128xbf16>
    %63 = vector.extract_strided_slice %30 {offsets = [0, 384], sizes = [8, 128], strides = [1, 1]} : vector<8x768xf32> to vector<8x128xf32>
    %64 = arith.truncf %63 : vector<8x128xf32> to vector<8x128xbf16>
    %65 = vector.extract_strided_slice %30 {offsets = [0, 640], sizes = [8, 128], strides = [1, 1]} : vector<8x768xf32> to vector<8x128xf32>
    %66 = arith.truncf %65 : vector<8x128xf32> to vector<8x128xbf16>
    %cst_21 = arith.constant dense<0.000000e+00> : vector<8x8xf32>
    %67 = tpu.matmul %62, %64, %cst_21 {dimension_numbers = #tpu.dot_dimension_numbers<[1], [1], [0], [0], [0, 0, 1, 0], [], []>} : vector<8x128xbf16>, vector<8x128xbf16>, vector<8x8xf32> -> vector<8x8xf32>
    %cst_22 = arith.constant -1.000000e+30 : f32
    %68 = vector.broadcast %cst_22 : f32 to vector<8x8xf32>
    %69 = arith.select %36, %67, %68 : vector<8x8xi1>, vector<8x8xf32>
    %cst_23 = arith.constant dense<0xFF800000> : vector<8xf32>
    %70 = vector.multi_reduction <maximumf>, %69, %cst_23 [1] : vector<8x8xf32> to vector<8xf32>
    %71 = vector.shape_cast %70 : vector<8xf32> to vector<8x1xf32>
    %72 = vector.broadcast %71 : vector<8x1xf32> to vector<8x8xf32>
    %73 = arith.subf %69, %72 : vector<8x8xf32>
    %74 = math.exp %73 : vector<8x8xf32>
    %cst_24 = arith.constant dense<0.000000e+00> : vector<8xf32>
    %75 = vector.multi_reduction <add>, %74, %cst_24 [1] : vector<8x8xf32> to vector<8xf32>
    %76 = vector.shape_cast %75 : vector<8xf32> to vector<8x1xf32>
    %77 = vector.broadcast %76 : vector<8x1xf32> to vector<8x8xf32>
    %78 = arith.divf %74, %77 : vector<8x8xf32>
    %79 = arith.truncf %78 : vector<8x8xf32> to vector<8x8xbf16>
    %cst_25 = arith.constant dense<0.000000e+00> : vector<8x128xf32>
    %80 = tpu.matmul %79, %66, %cst_25 {dimension_numbers = #tpu.dot_dimension_numbers<[1], [0], [0], [1], [0, 0, 1, 1], [], []>} : vector<8x8xbf16>, vector<8x128xbf16>, vector<8x128xf32> -> vector<8x128xf32>
    %81 = tpu.concatenate %58, %80 in 1 : vector<8x128xf32>, vector<8x128xf32> -> vector<8x256xf32>
    %82 = arith.truncf %81 : vector<8x256xf32> to vector<8x256xbf16>
    %c0_26 = arith.constant 0 : index
    %c0_27 = arith.constant 0 : index
    %83 = vector.load %arg6[%c0_26, %c0_27] : memref<256x256xbf16, #tpu.memory_space<vmem>>, vector<256x256xbf16>
    %cst_28 = arith.constant dense<0.000000e+00> : vector<8x256xf32>
    %84 = tpu.matmul %82, %83, %cst_28 {dimension_numbers = #tpu.dot_dimension_numbers<[1], [0], [0], [1], [0, 0, 1, 1], [], []>} : vector<8x256xbf16>, vector<256x256xbf16>, vector<8x256xf32> -> vector<8x256xf32>
    %85 = arith.addf %0, %84 : vector<8x256xf32>
    %c0_29 = arith.constant 0 : index
    %c0_30 = arith.constant 0 : index
    %86 = vector.load %arg7[%c0_29, %c0_30] : memref<1x256xf32, #tpu.memory_space<vmem>>, vector<1x256xf32>
    %87 = vector.broadcast %86 : vector<1x256xf32> to vector<8x256xf32>
    %88 = arith.addf %85, %87 : vector<8x256xf32>
    %c0_31 = arith.constant 0 : index
    %c0_32 = arith.constant 0 : index
    %89 = vector.load %arg12[%c0_31, %c0_32] : memref<1x256xf32, #tpu.memory_space<vmem>>, vector<1x256xf32>
    %c0_33 = arith.constant 0 : index
    %c0_34 = arith.constant 0 : index
    %90 = vector.load %arg13[%c0_33, %c0_34] : memref<1x256xf32, #tpu.memory_space<vmem>>, vector<1x256xf32>
    %cst_35 = arith.constant dense<0.000000e+00> : vector<8xf32>
    %91 = vector.multi_reduction <add>, %88, %cst_35 [1] : vector<8x256xf32> to vector<8xf32>
    %92 = vector.shape_cast %91 : vector<8xf32> to vector<8x1xf32>
    %cst_36 = arith.constant 2.560000e+02 : f32
    %93 = vector.broadcast %cst_36 : f32 to vector<8x1xf32>
    %94 = arith.divf %92, %93 : vector<8x1xf32>
    %95 = vector.broadcast %94 : vector<8x1xf32> to vector<8x256xf32>
    %96 = arith.subf %88, %95 : vector<8x256xf32>
    %97 = arith.mulf %96, %96 : vector<8x256xf32>
    %cst_37 = arith.constant dense<0.000000e+00> : vector<8xf32>
    %98 = vector.multi_reduction <add>, %97, %cst_37 [1] : vector<8x256xf32> to vector<8xf32>
    %99 = vector.shape_cast %98 : vector<8xf32> to vector<8x1xf32>
    %cst_38 = arith.constant 2.560000e+02 : f32
    %100 = vector.broadcast %cst_38 : f32 to vector<8x1xf32>
    %101 = arith.divf %99, %100 : vector<8x1xf32>
    %102 = vector.broadcast %94 : vector<8x1xf32> to vector<8x256xf32>
    %103 = arith.subf %88, %102 : vector<8x256xf32>
    %cst_39 = arith.constant 9.99999974E-6 : f32
    %104 = vector.broadcast %cst_39 : f32 to vector<8x1xf32>
    %105 = arith.addf %101, %104 : vector<8x1xf32>
    %106 = math.rsqrt %105 : vector<8x1xf32>
    %107 = vector.broadcast %106 : vector<8x1xf32> to vector<8x256xf32>
    %108 = arith.mulf %103, %107 : vector<8x256xf32>
    %109 = vector.broadcast %89 : vector<1x256xf32> to vector<8x256xf32>
    %110 = arith.mulf %108, %109 : vector<8x256xf32>
    %111 = vector.broadcast %90 : vector<1x256xf32> to vector<8x256xf32>
    %112 = arith.addf %110, %111 : vector<8x256xf32>
    %113 = arith.truncf %112 : vector<8x256xf32> to vector<8x256xbf16>
    %c0_40 = arith.constant 0 : index
    %c0_41 = arith.constant 0 : index
    %114 = vector.load %arg8[%c0_40, %c0_41] : memref<256x1024xbf16, #tpu.memory_space<vmem>>, vector<256x1024xbf16>
    %cst_42 = arith.constant dense<0.000000e+00> : vector<8x1024xf32>
    %115 = tpu.matmul %113, %114, %cst_42 {dimension_numbers = #tpu.dot_dimension_numbers<[1], [0], [0], [1], [0, 0, 1, 1], [], []>} : vector<8x256xbf16>, vector<256x1024xbf16>, vector<8x1024xf32> -> vector<8x1024xf32>
    %c0_43 = arith.constant 0 : index
    %c0_44 = arith.constant 0 : index
    %116 = vector.load %arg9[%c0_43, %c0_44] : memref<1x1024xf32, #tpu.memory_space<vmem>>, vector<1x1024xf32>
    %117 = vector.broadcast %116 : vector<1x1024xf32> to vector<8x1024xf32>
    %118 = arith.addf %115, %117 : vector<8x1024xf32>
    %cst_45 = arith.constant 5.000000e-01 : f32
    %119 = vector.broadcast %cst_45 : f32 to vector<8x1024xf32>
    %120 = arith.mulf %119, %118 : vector<8x1024xf32>
    %cst_46 = arith.constant 0.707106769 : f32
    %121 = vector.broadcast %cst_46 : f32 to vector<8x1024xf32>
    %122 = arith.mulf %118, %121 : vector<8x1024xf32>
    %cst_47 = arith.constant 0.000000e+00 : f32
    %123 = vector.broadcast %cst_47 : f32 to vector<8x1024xf32>
    %124 = arith.cmpf oge, %122, %123 : vector<8x1024xf32>
    %cst_48 = arith.constant 1.000000e+00 : f32
    %cst_49 = arith.constant -1.000000e+00 : f32
    %125 = vector.broadcast %cst_48 : f32 to vector<8x1024xf32>
    %126 = vector.broadcast %cst_49 : f32 to vector<8x1024xf32>
    %127 = arith.select %124, %125, %126 : vector<8x1024xi1>, vector<8x1024xf32>
    %128 = math.absf %122 : vector<8x1024xf32>
    %cst_50 = arith.constant 0.327591091 : f32
    %129 = vector.broadcast %cst_50 : f32 to vector<8x1024xf32>
    %130 = arith.mulf %129, %128 : vector<8x1024xf32>
    %cst_51 = arith.constant 1.000000e+00 : f32
    %131 = vector.broadcast %cst_51 : f32 to vector<8x1024xf32>
    %132 = arith.addf %131, %130 : vector<8x1024xf32>
    %cst_52 = arith.constant 1.000000e+00 : f32
    %133 = vector.broadcast %cst_52 : f32 to vector<8x1024xf32>
    %134 = arith.divf %133, %132 : vector<8x1024xf32>
    %cst_53 = arith.constant 1.06140542 : f32
    %135 = vector.broadcast %cst_53 : f32 to vector<8x1024xf32>
    %136 = arith.mulf %134, %135 : vector<8x1024xf32>
    %cst_54 = arith.constant -1.45315206 : f32
    %137 = vector.broadcast %cst_54 : f32 to vector<8x1024xf32>
    %138 = arith.addf %137, %136 : vector<8x1024xf32>
    %139 = arith.mulf %134, %138 : vector<8x1024xf32>
    %cst_55 = arith.constant 1.42141378 : f32
    %140 = vector.broadcast %cst_55 : f32 to vector<8x1024xf32>
    %141 = arith.addf %140, %139 : vector<8x1024xf32>
    %142 = arith.mulf %134, %141 : vector<8x1024xf32>
    %cst_56 = arith.constant -0.284496725 : f32
    %143 = vector.broadcast %cst_56 : f32 to vector<8x1024xf32>
    %144 = arith.addf %143, %142 : vector<8x1024xf32>
    %145 = arith.mulf %134, %144 : vector<8x1024xf32>
    %cst_57 = arith.constant 0.254829586 : f32
    %146 = vector.broadcast %cst_57 : f32 to vector<8x1024xf32>
    %147 = arith.addf %146, %145 : vector<8x1024xf32>
    %148 = arith.mulf %134, %147 : vector<8x1024xf32>
    %cst_58 = arith.constant 0.000000e+00 : f32
    %149 = vector.broadcast %cst_58 : f32 to vector<8x1024xf32>
    %150 = arith.subf %149, %128 : vector<8x1024xf32>
    %151 = arith.mulf %150, %128 : vector<8x1024xf32>
    %152 = math.exp %151 : vector<8x1024xf32>
    %153 = arith.mulf %148, %152 : vector<8x1024xf32>
    %cst_59 = arith.constant 1.000000e+00 : f32
    %154 = vector.broadcast %cst_59 : f32 to vector<8x1024xf32>
    %155 = arith.subf %154, %153 : vector<8x1024xf32>
    %156 = arith.mulf %127, %155 : vector<8x1024xf32>
    %cst_60 = arith.constant 1.000000e+00 : f32
    %157 = vector.broadcast %cst_60 : f32 to vector<8x1024xf32>
    %158 = arith.addf %157, %156 : vector<8x1024xf32>
    %159 = arith.mulf %120, %158 : vector<8x1024xf32>
    %160 = arith.truncf %159 : vector<8x1024xf32> to vector<8x1024xbf16>
    %c0_61 = arith.constant 0 : index
    %c0_62 = arith.constant 0 : index
    %161 = vector.load %arg10[%c0_61, %c0_62] : memref<1024x256xbf16, #tpu.memory_space<vmem>>, vector<1024x256xbf16>
    %cst_63 = arith.constant dense<0.000000e+00> : vector<8x256xf32>
    %162 = tpu.matmul %160, %161, %cst_63 {dimension_numbers = #tpu.dot_dimension_numbers<[1], [0], [0], [1], [0, 0, 1, 1], [], []>} : vector<8x1024xbf16>, vector<1024x256xbf16>, vector<8x256xf32> -> vector<8x256xf32>
    %163 = arith.addf %88, %162 : vector<8x256xf32>
    %c0_64 = arith.constant 0 : index
    %c0_65 = arith.constant 0 : index
    %164 = vector.load %arg11[%c0_64, %c0_65] : memref<1x256xf32, #tpu.memory_space<vmem>>, vector<1x256xf32>
    %165 = vector.broadcast %164 : vector<1x256xf32> to vector<8x256xf32>
    %166 = arith.addf %163, %165 : vector<8x256xf32>
    %c0_66 = arith.constant 0 : index
    %c0_67 = arith.constant 0 : index
    %167 = vector.load %arg14[%c0_66, %c0_67] : memref<8x256xf32, #tpu.memory_space<vmem>>, vector<8x256xf32>
    tpu.vector_store %arg14[%c0_66, %c0_67], %166 {strides = array<i32>} : memref<8x256xf32, #tpu.memory_space<vmem>>, vector<8x256xf32>,
    return
  }
  func.func @transform_0(%arg0: i32) -> (i32, i32) {
    %c0_i32 = arith.constant 0 : i32
    %c0_i32_0 = arith.constant 0 : i32
    return %arg0, %c0_i32 : i32, i32
  }
  func.func @transform_1(%arg0: i32) -> (i32, i32) {
    %c0_i32 = arith.constant 0 : i32
    %c0_i32_0 = arith.constant 0 : i32
    %c0_i32_1 = arith.constant 0 : i32
    return %c0_i32, %c0_i32_0 : i32, i32
  }
  func.func @transform_2(%arg0: i32) -> (i32, i32) {
    %c0_i32 = arith.constant 0 : i32
    %c0_i32_0 = arith.constant 0 : i32
    %c0_i32_1 = arith.constant 0 : i32
    return %c0_i32, %c0_i32_0 : i32, i32
  }
  func.func @transform_3(%arg0: i32) -> (i32, i32) {
    %c0_i32 = arith.constant 0 : i32
    %c0_i32_0 = arith.constant 0 : i32
    %c0_i32_1 = arith.constant 0 : i32
    return %c0_i32, %c0_i32_0 : i32, i32
  }
  func.func @transform_4(%arg0: i32) -> (i32, i32) {
    %c0_i32 = arith.constant 0 : i32
    %c0_i32_0 = arith.constant 0 : i32
    %c0_i32_1 = arith.constant 0 : i32
    return %c0_i32, %c0_i32_0 : i32, i32
  }
  func.func @transform_5(%arg0: i32) -> (i32, i32) {
    %c0_i32 = arith.constant 0 : i32
    %c0_i32_0 = arith.constant 0 : i32
    %c0_i32_1 = arith.constant 0 : i32
    return %c0_i32, %c0_i32_0 : i32, i32
  }
  func.func @transform_6(%arg0: i32) -> (i32, i32) {
    %c0_i32 = arith.constant 0 : i32
    %c0_i32_0 = arith.constant 0 : i32
    %c0_i32_1 = arith.constant 0 : i32
    return %c0_i32, %c0_i32_0 : i32, i32
  }
  func.func @transform_7(%arg0: i32) -> (i32, i32) {
    %c0_i32 = arith.constant 0 : i32
    %c0_i32_0 = arith.constant 0 : i32
    %c0_i32_1 = arith.constant 0 : i32
    return %c0_i32, %c0_i32_0 : i32, i32
  }
  func.func @transform_8(%arg0: i32) -> (i32, i32) {
    %c0_i32 = arith.constant 0 : i32
    %c0_i32_0 = arith.constant 0 : i32
    %c0_i32_1 = arith.constant 0 : i32
    return %c0_i32, %c0_i32_0 : i32, i32
  }
  func.func @transform_9(%arg0: i32) -> (i32, i32) {
    %c0_i32 = arith.constant 0 : i32
    %c0_i32_0 = arith.constant 0 : i32
    %c0_i32_1 = arith.constant 0 : i32
    return %c0_i32, %c0_i32_0 : i32, i32
  }
  func.func @transform_10(%arg0: i32) -> (i32, i32) {
    %c0_i32 = arith.constant 0 : i32
    %c0_i32_0 = arith.constant 0 : i32
    %c0_i32_1 = arith.constant 0 : i32
    return %c0_i32, %c0_i32_0 : i32, i32
  }
  func.func @transform_11(%arg0: i32) -> (i32, i32) {
    %c0_i32 = arith.constant 0 : i32
    %c0_i32_0 = arith.constant 0 : i32
    %c0_i32_1 = arith.constant 0 : i32
    return %c0_i32, %c0_i32_0 : i32, i32
  }
  func.func @transform_12(%arg0: i32) -> (i32, i32) {
    %c0_i32 = arith.constant 0 : i32
    %c0_i32_0 = arith.constant 0 : i32
    %c0_i32_1 = arith.constant 0 : i32
    return %c0_i32, %c0_i32_0 : i32, i32
  }
  func.func @transform_13(%arg0: i32) -> (i32, i32) {
    %c0_i32 = arith.constant 0 : i32
    %c0_i32_0 = arith.constant 0 : i32
    return %arg0, %c0_i32 : i32, i32
  }
}

module attributes {stable_mosaic.version = 11 : i64} {
  func.func @_block_kernel(%arg0: i32, %arg1: memref<8x256xf32, #tpu.memory_space<vmem>>, %arg2: memref<256x768xbf16, #tpu.memory_space<vmem>>, %arg3: memref<1x768xf32, #tpu.memory_space<vmem>>, %arg4: memref<1x256xf32, #tpu.memory_space<vmem>>, %arg5: memref<1x256xf32, #tpu.memory_space<vmem>>, %arg6: memref<256x256xbf16, #tpu.memory_space<vmem>>, %arg7: memref<1x256xf32, #tpu.memory_space<vmem>>, %arg8: memref<256x1024xbf16, #tpu.memory_space<vmem>>, %arg9: memref<1x1024xf32, #tpu.memory_space<vmem>>, %arg10: memref<1024x256xbf16, #tpu.memory_space<vmem>>, %arg11: memref<1x256xf32, #tpu.memory_space<vmem>>, %arg12: memref<1x256xf32, #tpu.memory_space<vmem>>, %arg13: memref<1x256xf32, #tpu.memory_space<vmem>>, %arg14: memref<8x256xf32, #tpu.memory_space<vmem>>) attributes {dimension_semantics = [#tpu.dimension_semantics<parallel>], iteration_bounds = array<i64: 2>, scalar_prefetch = 0 : i64, scratch_operands = 0 : i64, tpu.core_type = #tpu.core_type<tc>, window_params = [{transform_indices = @transform_0, window_bounds = array<i64: 8, 256>}, {pipeline_mode = #tpu.pipeline_mode<synchronous>, transform_indices = @transform_1, window_bounds = array<i64: 256, 768>}, {pipeline_mode = #tpu.pipeline_mode<synchronous>, transform_indices = @transform_2, window_bounds = array<i64: 1, 768>}, {pipeline_mode = #tpu.pipeline_mode<synchronous>, transform_indices = @transform_3, window_bounds = array<i64: 1, 256>}, {pipeline_mode = #tpu.pipeline_mode<synchronous>, transform_indices = @transform_4, window_bounds = array<i64: 1, 256>}, {pipeline_mode = #tpu.pipeline_mode<synchronous>, transform_indices = @transform_5, window_bounds = array<i64: 256, 256>}, {pipeline_mode = #tpu.pipeline_mode<synchronous>, transform_indices = @transform_6, window_bounds = array<i64: 1, 256>}, {pipeline_mode = #tpu.pipeline_mode<synchronous>, transform_indices = @transform_7, window_bounds = array<i64: 256, 1024>}, {pipeline_mode = #tpu.pipeline_mode<synchronous>, transform_indices = @transform_8, window_bounds = array<i64: 1, 1024>}, {pipeline_mode = #tpu.pipeline_mode<synchronous>, transform_indices = @transform_9, window_bounds = array<i64: 1024, 256>}, {pipeline_mode = #tpu.pipeline_mode<synchronous>, transform_indices = @transform_10, window_bounds = array<i64: 1, 256>}, {pipeline_mode = #tpu.pipeline_mode<synchronous>, transform_indices = @transform_11, window_bounds = array<i64: 1, 256>}, {pipeline_mode = #tpu.pipeline_mode<synchronous>, transform_indices = @transform_12, window_bounds = array<i64: 1, 256>}, {transform_indices = @transform_13, window_bounds = array<i64: 8, 256>}]} {
    %c0 = arith.constant 0 : index
    %c0_0 = arith.constant 0 : index
    %0 = vector.load %arg1[%c0, %c0_0] : memref<8x256xf32, #tpu.memory_space<vmem>>, vector<8x256xf32>
    %c0_1 = arith.constant 0 : index
    %c0_2 = arith.constant 0 : index
    %1 = vector.load %arg4[%c0_1, %c0_2] : memref<1x256xf32, #tpu.memory_space<vmem>>, vector<1x256xf32>
    %c0_3 = arith.constant 0 : index
    %c0_4 = arith.constant 0 : index
    %2 = vector.load %arg5[%c0_3, %c0_4] : memref<1x256xf32, #tpu.memory_space<vmem>>, vector<1x256xf32>
    %cst = arith.constant dense<0.000000e+00> : vector<8xf32>
    %3 = vector.multi_reduction <add>, %0, %cst [1] : vector<8x256xf32> to vector<8xf32>
    %4 = vector.shape_cast %3 : vector<8xf32> to vector<8x1xf32>
    %cst_5 = arith.constant 2.560000e+02 : f32
    %5 = vector.broadcast %cst_5 : f32 to vector<8x1xf32>
    %6 = arith.divf %4, %5 : vector<8x1xf32>
    %7 = vector.broadcast %6 : vector<8x1xf32> to vector<8x256xf32>
    %8 = arith.subf %0, %7 : vector<8x256xf32>
    %9 = arith.mulf %8, %8 : vector<8x256xf32>
    %cst_6 = arith.constant dense<0.000000e+00> : vector<8xf32>
    %10 = vector.multi_reduction <add>, %9, %cst_6 [1] : vector<8x256xf32> to vector<8xf32>
    %11 = vector.shape_cast %10 : vector<8xf32> to vector<8x1xf32>
    %cst_7 = arith.constant 2.560000e+02 : f32
    %12 = vector.broadcast %cst_7 : f32 to vector<8x1xf32>
    %13 = arith.divf %11, %12 : vector<8x1xf32>
    %14 = vector.broadcast %6 : vector<8x1xf32> to vector<8x256xf32>
    %15 = arith.subf %0, %14 : vector<8x256xf32>
    %cst_8 = arith.constant 9.99999974E-6 : f32
    %16 = vector.broadcast %cst_8 : f32 to vector<8x1xf32>
    %17 = arith.addf %13, %16 : vector<8x1xf32>
    %18 = math.rsqrt %17 : vector<8x1xf32>
    %19 = vector.broadcast %18 : vector<8x1xf32> to vector<8x256xf32>
    %20 = arith.mulf %15, %19 : vector<8x256xf32>
    %21 = vector.broadcast %1 : vector<1x256xf32> to vector<8x256xf32>
    %22 = arith.mulf %20, %21 : vector<8x256xf32>
    %23 = vector.broadcast %2 : vector<1x256xf32> to vector<8x256xf32>
    %24 = arith.addf %22, %23 : vector<8x256xf32>
    %25 = arith.truncf %24 : vector<8x256xf32> to vector<8x256xbf16>
    %c0_9 = arith.constant 0 : index
    %c0_10 = arith.constant 0 : index
    %26 = vector.load %arg2[%c0_9, %c0_10] : memref<256x768xbf16, #tpu.memory_space<vmem>>, vector<256x768xbf16>
    %cst_11 = arith.constant dense<0.000000e+00> : vector<8x768xf32>
    %27 = tpu.matmul %25, %26, %cst_11 {dimension_numbers = #tpu.dot_dimension_numbers<[1], [0], [0], [1], [0, 0, 1, 1], [], []>} : vector<8x256xbf16>, vector<256x768xbf16>, vector<8x768xf32> -> vector<8x768xf32>
    %c0_12 = arith.constant 0 : index
    %c0_13 = arith.constant 0 : index
    %28 = vector.load %arg3[%c0_12, %c0_13] : memref<1x768xf32, #tpu.memory_space<vmem>>, vector<1x768xf32>
    %29 = vector.broadcast %28 : vector<1x768xf32> to vector<8x768xf32>
    %30 = arith.addf %27, %29 : vector<8x768xf32>
    %31 = tpu.iota {dimensions = array<i32: 0>} : vector<8x8xi32>
    %32 = tpu.iota {dimensions = array<i32: 1>} : vector<8x8xi32>
    %33 = arith.cmpi sle, %32, %31 : vector<8x8xi32>
    %c5_i32 = arith.constant 5 : i32
    %34 = vector.broadcast %c5_i32 : i32 to vector<8x8xi32>
    %35 = arith.cmpi slt, %32, %34 : vector<8x8xi32>
    %36 = arith.ori %33, %35 : vector<8x8xi1>
    %37 = vector.extract_strided_slice %30 {offsets = [0, 0], sizes = [8, 128], strides = [1, 1]} : vector<8x768xf32> to vector<8x128xf32>
    %cst_14 = arith.constant 0.0883883461 : f32
    %38 = vector.broadcast %cst_14 : f32 to vector<8x128xf32>
    %39 = arith.mulf %37, %38 : vector<8x128xf32>
    %40 = arith.truncf %39 : vector<8x128xf32> to vector<8x128xbf16>
    %41 = vector.extract_strided_slice %30 {offsets = [0, 256], sizes = [8, 128], strides = [1, 1]} : vector<8x768xf32> to vector<8x128xf32>
    %42 = arith.truncf %41 : vector<8x128xf32> to vector<8x128xbf16>
    %43 = vector.extract_strided_slice %30 {offsets = [0, 512], sizes = [8, 128], strides = [1, 1]} : vector<8x768xf32> to vector<8x128xf32>
    %44 = arith.truncf %43 : vector<8x128xf32> to vector<8x128xbf16>
    %cst_15 = arith.constant dense<0.000000e+00> : vector<8x8xf32>
    %45 = tpu.matmul %40, %42, %cst_15 {dimension_numbers = #tpu.dot_dimension_numbers<[1], [1], [0], [0], [0, 0, 1, 0], [], []>} : vector<8x128xbf16>, vector<8x128xbf16>, vector<8x8xf32> -> vector<8x8xf32>
    %cst_16 = arith.constant -1.000000e+30 : f32
    %46 = vector.broadcast %cst_16 : f32 to vector<8x8xf32>
    %47 = arith.select %36, %45, %46 : vector<8x8xi1>, vector<8x8xf32>
    %cst_17 = arith.constant dense<0xFF800000> : vector<8xf32>
    %48 = vector.multi_reduction <maximumf>, %47, %cst_17 [1] : vector<8x8xf32> to vector<8xf32>
    %49 = vector.shape_cast %48 : vector<8xf32> to vector<8x1xf32>
    %50 = vector.broadcast %49 : vector<8x1xf32> to vector<8x8xf32>
    %51 = arith.subf %47, %50 : vector<8x8xf32>
    %52 = math.exp %51 : vector<8x8xf32>
    %cst_18 = arith.constant dense<0.000000e+00> : vector<8xf32>
    %53 = vector.multi_reduction <add>, %52, %cst_18 [1] : vector<8x8xf32> to vector<8xf32>
    %54 = vector.shape_cast %53 : vector<8xf32> to vector<8x1xf32>
    %55 = vector.broadcast %54 : vector<8x1xf32> to vector<8x8xf32>
    %56 = arith.divf %52, %55 : vector<8x8xf32>
    %57 = arith.truncf %56 : vector<8x8xf32> to vector<8x8xbf16>
    %cst_19 = arith.constant dense<0.000000e+00> : vector<8x128xf32>
    %58 = tpu.matmul %57, %44, %cst_19 {dimension_numbers = #tpu.dot_dimension_numbers<[1], [0], [0], [1], [0, 0, 1, 1], [], []>} : vector<8x8xbf16>, vector<8x128xbf16>, vector<8x128xf32> -> vector<8x128xf32>
    %59 = vector.extract_strided_slice %30 {offsets = [0, 128], sizes = [8, 128], strides = [1, 1]} : vector<8x768xf32> to vector<8x128xf32>
    %cst_20 = arith.constant 0.0883883461 : f32
    %60 = vector.broadcast %cst_20 : f32 to vector<8x128xf32>
    %61 = arith.mulf %59, %60 : vector<8x128xf32>
    %62 = arith.truncf %61 : vector<8x128xf32> to vector<8x128xbf16>
    %63 = vector.extract_strided_slice %30 {offsets = [0, 384], sizes = [8, 128], strides = [1, 1]} : vector<8x768xf32> to vector<8x128xf32>
    %64 = arith.truncf %63 : vector<8x128xf32> to vector<8x128xbf16>
    %65 = vector.extract_strided_slice %30 {offsets = [0, 640], sizes = [8, 128], strides = [1, 1]} : vector<8x768xf32> to vector<8x128xf32>
    %66 = arith.truncf %65 : vector<8x128xf32> to vector<8x128xbf16>
    %cst_21 = arith.constant dense<0.000000e+00> : vector<8x8xf32>
    %67 = tpu.matmul %62, %64, %cst_21 {dimension_numbers = #tpu.dot_dimension_numbers<[1], [1], [0], [0], [0, 0, 1, 0], [], []>} : vector<8x128xbf16>, vector<8x128xbf16>, vector<8x8xf32> -> vector<8x8xf32>
    %cst_22 = arith.constant -1.000000e+30 : f32
    %68 = vector.broadcast %cst_22 : f32 to vector<8x8xf32>
    %69 = arith.select %36, %67, %68 : vector<8x8xi1>, vector<8x8xf32>
    %cst_23 = arith.constant dense<0xFF800000> : vector<8xf32>
    %70 = vector.multi_reduction <maximumf>, %69, %cst_23 [1] : vector<8x8xf32> to vector<8xf32>
    %71 = vector.shape_cast %70 : vector<8xf32> to vector<8x1xf32>
    %72 = vector.broadcast %71 : vector<8x1xf32> to vector<8x8xf32>
    %73 = arith.subf %69, %72 : vector<8x8xf32>
    %74 = math.exp %73 : vector<8x8xf32>
    %cst_24 = arith.constant dense<0.000000e+00> : vector<8xf32>
    %75 = vector.multi_reduction <add>, %74, %cst_24 [1] : vector<8x8xf32> to vector<8xf32>
    %76 = vector.shape_cast %75 : vector<8xf32> to vector<8x1xf32>
    %77 = vector.broadcast %76 : vector<8x1xf32> to vector<8x8xf32>
    %78 = arith.divf %74, %77 : vector<8x8xf32>
    %79 = arith.truncf %78 : vector<8x8xf32> to vector<8x8xbf16>
    %cst_25 = arith.constant dense<0.000000e+00> : vector<8x128xf32>
    %80 = tpu.matmul %79, %66, %cst_25 {dimension_numbers = #tpu.dot_dimension_numbers<[1], [0], [0], [1], [0, 0, 1, 1], [], []>} : vector<8x8xbf16>, vector<8x128xbf16>, vector<8x128xf32> -> vector<8x128xf32>
    %81 = tpu.concatenate %58, %80 in 1 : vector<8x128xf32>, vector<8x128xf32> -> vector<8x256xf32>
    %82 = arith.truncf %81 : vector<8x256xf32> to vector<8x256xbf16>
    %c0_26 = arith.constant 0 : index
    %c0_27 = arith.constant 0 : index
    %83 = vector.load %arg6[%c0_26, %c0_27] : memref<256x256xbf16, #tpu.memory_space<vmem>>, vector<256x256xbf16>
    %cst_28 = arith.constant dense<0.000000e+00> : vector<8x256xf32>
    %84 = tpu.matmul %82, %83, %cst_28 {dimension_numbers = #tpu.dot_dimension_numbers<[1], [0], [0], [1], [0, 0, 1, 1], [], []>} : vector<8x256xbf16>, vector<256x256xbf16>, vector<8x256xf32> -> vector<8x256xf32>
    %85 = arith.addf %0, %84 : vector<8x256xf32>
    %c0_29 = arith.constant 0 : index
    %c0_30 = arith.constant 0 : index
    %86 = vector.load %arg7[%c0_29, %c0_30] : memref<1x256xf32, #tpu.memory_space<vmem>>, vector<1x256xf32>
    %87 = vector.broadcast %86 : vector<1x256xf32> to vector<8x256xf32>
    %88 = arith.addf %85, %87 : vector<8x256xf32>
    %c0_31 = arith.constant 0 : index
    %c0_32 = arith.constant 0 : index
    %89 = vector.load %arg12[%c0_31, %c0_32] : memref<1x256xf32, #tpu.memory_space<vmem>>, vector<1x256xf32>
    %c0_33 = arith.constant 0 : index
    %c0_34 = arith.constant 0 : index
    %90 = vector.load %arg13[%c0_33, %c0_34] : memref<1x256xf32, #tpu.memory_space<vmem>>, vector<1x256xf32>
    %cst_35 = arith.constant dense<0.000000e+00> : vector<8xf32>
    %91 = vector.multi_reduction <add>, %88, %cst_35 [1] : vector<8x256xf32> to vector<8xf32>
    %92 = vector.shape_cast %91 : vector<8xf32> to vector<8x1xf32>
    %cst_36 = arith.constant 2.560000e+02 : f32
    %93 = vector.broadcast %cst_36 : f32 to vector<8x1xf32>
    %94 = arith.divf %92, %93 : vector<8x1xf32>
    %95 = vector.broadcast %94 : vector<8x1xf32> to vector<8x256xf32>
    %96 = arith.subf %88, %95 : vector<8x256xf32>
    %97 = arith.mulf %96, %96 : vector<8x256xf32>
    %cst_37 = arith.constant dense<0.000000e+00> : vector<8xf32>
    %98 = vector.multi_reduction <add>, %97, %cst_37 [1] : vector<8x256xf32> to vector<8xf32>
    %99 = vector.shape_cast %98 : vector<8xf32> to vector<8x1xf32>
    %cst_38 = arith.constant 2.560000e+02 : f32
    %100 = vector.broadcast %cst_38 : f32 to vector<8x1xf32>
    %101 = arith.divf %99, %100 : vector<8x1xf32>
    %102 = vector.broadcast %94 : vector<8x1xf32> to vector<8x256xf32>
    %103 = arith.subf %88, %102 : vector<8x256xf32>
    %cst_39 = arith.constant 9.99999974E-6 : f32
    %104 = vector.broadcast %cst_39 : f32 to vector<8x1xf32>
    %105 = arith.addf %101, %104 : vector<8x1xf32>
    %106 = math.rsqrt %105 : vector<8x1xf32>
    %107 = vector.broadcast %106 : vector<8x1xf32> to vector<8x256xf32>
    %108 = arith.mulf %103, %107 : vector<8x256xf32>
    %109 = vector.broadcast %89 : vector<1x256xf32> to vector<8x256xf32>
    %110 = arith.mulf %108, %109 : vector<8x256xf32>
    %111 = vector.broadcast %90 : vector<1x256xf32> to vector<8x256xf32>
    %112 = arith.addf %110, %111 : vector<8x256xf32>
    %113 = arith.truncf %112 : vector<8x256xf32> to vector<8x256xbf16>
    %c0_40 = arith.constant 0 : index
    %c0_41 = arith.constant 0 : index
    %114 = vector.load %arg8[%c0_40, %c0_41] : memref<256x1024xbf16, #tpu.memory_space<vmem>>, vector<256x1024xbf16>
    %cst_42 = arith.constant dense<0.000000e+00> : vector<8x1024xf32>
    %115 = tpu.matmul %113, %114, %cst_42 {dimension_numbers = #tpu.dot_dimension_numbers<[1], [0], [0], [1], [0, 0, 1, 1], [], []>} : vector<8x256xbf16>, vector<256x1024xbf16>, vector<8x1024xf32> -> vector<8x1024xf32>
    %c0_43 = arith.constant 0 : index
    %c0_44 = arith.constant 0 : index
    %116 = vector.load %arg9[%c0_43, %c0_44] : memref<1x1024xf32, #tpu.memory_space<vmem>>, vector<1x1024xf32>
    %117 = vector.broadcast %116 : vector<1x1024xf32> to vector<8x1024xf32>
    %118 = arith.addf %115, %117 : vector<8x1024xf32>
    %cst_45 = arith.constant 5.000000e-01 : f32
    %119 = vector.broadcast %cst_45 : f32 to vector<8x1024xf32>
    %120 = arith.mulf %119, %118 : vector<8x1024xf32>
    %cst_46 = arith.constant 0.707106769 : f32
    %121 = vector.broadcast %cst_46 : f32 to vector<8x1024xf32>
    %122 = arith.mulf %118, %121 : vector<8x1024xf32>
    %cst_47 = arith.constant 0.000000e+00 : f32
    %123 = vector.broadcast %cst_47 : f32 to vector<8x1024xf32>
    %124 = arith.cmpf oge, %122, %123 : vector<8x1024xf32>
    %cst_48 = arith.constant 1.000000e+00 : f32
    %cst_49 = arith.constant -1.000000e+00 : f32
    %125 = vector.broadcast %cst_48 : f32 to vector<8x1024xf32>
    %126 = vector.broadcast %cst_49 : f32 to vector<8x1024xf32>
    %127 = arith.select %124, %125, %126 : vector<8x1024xi1>, vector<8x1024xf32>
    %128 = math.absf %122 : vector<8x1024xf32>
    %cst_50 = arith.constant 0.327591091 : f32
    %129 = vector.broadcast %cst_50 : f32 to vector<8x1024xf32>
    %130 = arith.mulf %129, %128 : vector<8x1024xf32>
    %cst_51 = arith.constant 1.000000e+00 : f32
    %131 = vector.broadcast %cst_51 : f32 to vector<8x1024xf32>
    %132 = arith.addf %131, %130 : vector<8x1024xf32>
    %cst_52 = arith.constant 1.000000e+00 : f32
    %133 = vector.broadcast %cst_52 : f32 to vector<8x1024xf32>
    %134 = arith.divf %133, %132 : vector<8x1024xf32>
    %cst_53 = arith.constant 1.06140542 : f32
    %135 = vector.broadcast %cst_53 : f32 to vector<8x1024xf32>
    %136 = arith.mulf %134, %135 : vector<8x1024xf32>
    %cst_54 = arith.constant -1.45315206 : f32
    %137 = vector.broadcast %cst_54 : f32 to vector<8x1024xf32>
    %138 = arith.addf %137, %136 : vector<8x1024xf32>
    %139 = arith.mulf %134, %138 : vector<8x1024xf32>
    %cst_55 = arith.constant 1.42141378 : f32
    %140 = vector.broadcast %cst_55 : f32 to vector<8x1024xf32>
    %141 = arith.addf %140, %139 : vector<8x1024xf32>
    %142 = arith.mulf %134, %141 : vector<8x1024xf32>
    %cst_56 = arith.constant -0.284496725 : f32
    %143 = vector.broadcast %cst_56 : f32 to vector<8x1024xf32>
    %144 = arith.addf %143, %142 : vector<8x1024xf32>
    %145 = arith.mulf %134, %144 : vector<8x1024xf32>
    %cst_57 = arith.constant 0.254829586 : f32
    %146 = vector.broadcast %cst_57 : f32 to vector<8x1024xf32>
    %147 = arith.addf %146, %145 : vector<8x1024xf32>
    %148 = arith.mulf %134, %147 : vector<8x1024xf32>
    %cst_58 = arith.constant 0.000000e+00 : f32
    %149 = vector.broadcast %cst_58 : f32 to vector<8x1024xf32>
    %150 = arith.subf %149, %128 : vector<8x1024xf32>
    %151 = arith.mulf %150, %128 : vector<8x1024xf32>
    %152 = math.exp %151 : vector<8x1024xf32>
    %153 = arith.mulf %148, %152 : vector<8x1024xf32>
    %cst_59 = arith.constant 1.000000e+00 : f32
    %154 = vector.broadcast %cst_59 : f32 to vector<8x1024xf32>
    %155 = arith.subf %154, %153 : vector<8x1024xf32>
    %156 = arith.mulf %127, %155 : vector<8x1024xf32>
    %cst_60 = arith.constant 1.000000e+00 : f32
    %157 = vector.broadcast %cst_60 : f32 to vector<8x1024xf32>
    %158 = arith.addf %157, %156 : vector<8x1024xf32>
    %159 = arith.mulf %120, %158 : vector<8x1024xf32>
    %160 = arith.truncf %159 : vector<8x1024xf32> to vector<8x1024xbf16>
    %c0_61 = arith.constant 0 : index
    %c0_62 = arith.constant 0 : index
    %161 = vector.load %arg10[%c0_61, %c0_62] : memref<1024x256xbf16, #tpu.memory_space<vmem>>, vector<1024x256xbf16>
    %cst_63 = arith.constant dense<0.000000e+00> : vector<8x256xf32>
    %162 = tpu.matmul %160, %161, %cst_63 {dimension_numbers = #tpu.dot_dimension_numbers<[1], [0], [0], [1], [0, 0, 1, 1], [], []>} : vector<8x1024xbf16>, vector<1024x256xbf16>, vector<8x256xf32> -> vector<8x256xf32>
    %163 = arith.addf %88, %162 : vector<8x256xf32>
    %c0_64 = arith.constant 0 : index
    %c0_65 = arith.constant 0 : index
    %164 = vector.load %arg11[%c0_64, %c0_65] : memref<1x256xf32, #tpu.memory_space<vmem>>, vector<1x256xf32>
    %165 = vector.broadcast %164 : vector<1x256xf32> to vector<8x256xf32>
    %166 = arith.addf %163, %165 : vector<8x256xf32>
    %c0_66 = arith.constant 0 : index
    %c0_67 = arith.constant 0 : index
    %167 = vector.load %arg14[%c0_66, %c0_67] : memref<8x256xf32, #tpu.memory_space<vmem>>, vector<8x256xf32>
    tpu.vector_store %arg14[%c0_66, %c0_67], %166 {strides = array<i32>} : memref<8x256xf32, #tpu.memory_space<vmem>>, vector<8x256xf32>,
    return
  }
  func.func @transform_0(%arg0: i32) -> (i32, i32) {
    %c0_i32 = arith.constant 0 : i32
    %c0_i32_0 = arith.constant 0 : i32
    return %arg0, %c0_i32 : i32, i32
  }
  func.func @transform_1(%arg0: i32) -> (i32, i32) {
    %c0_i32 = arith.constant 0 : i32
    %c0_i32_0 = arith.constant 0 : i32
    %c0_i32_1 = arith.constant 0 : i32
    return %c0_i32, %c0_i32_0 : i32, i32
  }
  func.func @transform_2(%arg0: i32) -> (i32, i32) {
    %c0_i32 = arith.constant 0 : i32
    %c0_i32_0 = arith.constant 0 : i32
    %c0_i32_1 = arith.constant 0 : i32
    return %c0_i32, %c0_i32_0 : i32, i32
  }
  func.func @transform_3(%arg0: i32) -> (i32, i32) {
    %c0_i32 = arith.constant 0 : i32
    %c0_i32_0 = arith.constant 0 : i32
    %c0_i32_1 = arith.constant 0 : i32
    return %c0_i32, %c0_i32_0 : i32, i32
  }
  func.func @transform_4(%arg0: i32) -> (i32, i32) {
    %c0_i32 = arith.constant 0 : i32
    %c0_i32_0 = arith.constant 0 : i32
    %c0_i32_1 = arith.constant 0 : i32
    return %c0_i32, %c0_i32_0 : i32, i32
  }
  func.func @transform_5(%arg0: i32) -> (i32, i32) {
    %c0_i32 = arith.constant 0 : i32
    %c0_i32_0 = arith.constant 0 : i32
    %c0_i32_1 = arith.constant 0 : i32
    return %c0_i32, %c0_i32_0 : i32, i32
  }
  func.func @transform_6(%arg0: i32) -> (i32, i32) {
    %c0_i32 = arith.constant 0 : i32
    %c0_i32_0 = arith.constant 0 : i32
    %c0_i32_1 = arith.constant 0 : i32
    return %c0_i32, %c0_i32_0 : i32, i32
  }
  func.func @transform_7(%arg0: i32) -> (i32, i32) {
    %c0_i32 = arith.constant 0 : i32
    %c0_i32_0 = arith.constant 0 : i32
    %c0_i32_1 = arith.constant 0 : i32
    return %c0_i32, %c0_i32_0 : i32, i32
  }
  func.func @transform_8(%arg0: i32) -> (i32, i32) {
    %c0_i32 = arith.constant 0 : i32
    %c0_i32_0 = arith.constant 0 : i32
    %c0_i32_1 = arith.constant 0 : i32
    return %c0_i32, %c0_i32_0 : i32, i32
  }
  func.func @transform_9(%arg0: i32) -> (i32, i32) {
    %c0_i32 = arith.constant 0 : i32
    %c0_i32_0 = arith.constant 0 : i32
    %c0_i32_1 = arith.constant 0 : i32
    return %c0_i32, %c0_i32_0 : i32, i32
  }
  func.func @transform_10(%arg0: i32) -> (i32, i32) {
    %c0_i32 = arith.constant 0 : i32
    %c0_i32_0 = arith.constant 0 : i32
    %c0_i32_1 = arith.constant 0 : i32
    return %c0_i32, %c0_i32_0 : i32, i32
  }
  func.func @transform_11(%arg0: i32) -> (i32, i32) {
    %c0_i32 = arith.constant 0 : i32
    %c0_i32_0 = arith.constant 0 : i32
    %c0_i32_1 = arith.constant 0 : i32
    return %c0_i32, %c0_i32_0 : i32, i32
  }
  func.func @transform_12(%arg0: i32) -> (i32, i32) {
    %c0_i32 = arith.constant 0 : i32
    %c0_i32_0 = arith.constant 0 : i32
    %c0_i32_1 = arith.constant 0 : i32
    return %c0_i32, %c0_i32_0 : i32, i32
  }
  func.func @transform_13(%arg0: i32) -> (i32, i32) {
    %c0_i32 = arith.constant 0 : i32
    %c0_i32_0 = arith.constant 0 : i32
    return %arg0, %c0_i32 : i32, i32
  }
}

</mosaic_0001>

<bundles_post_ra>
// kernel: gpt_forward.5
= control target key start
LH: loop header
LB: loop body
LE: loop exit
PB: predicated region body
PF: predicated region fallthrough
CT: control target
= control target key end

     0   :  { %9 = vsyncpa [#allocation3], 0  ;;  %s843_s0 = inlined_call_operand.vmem [shape: f32[16,256], index: 0, kind: input, shape index: {}]   ;;  %s844_s1 = inlined_call_operand.vmem [shape: f32[1,256], index: 1, kind: input, shape index: {}]   ;;  %s845_s2 = inlined_call_operand.vmem [shape: f32[1,256], index: 2, kind: input, shape index: {}]   ;;  %s846_s3 = inlined_call_operand.vmem [shape: bf16[256,128], index: 3, kind: input, shape index: {}]   ;;  %s847_s4 = inlined_call_operand.hbm [shape: f32[16,128], index: 4, kind: output, shape index: {}]  }
   0x1   :  { %11 = vsyncpa [#allocation3 + $0x1], 0  ;;  %s704_s15 = smov 0   ;;  %s706_s16 = smov 0  }
   0x2   :  { %s708_s17 = smov 0   ;;  %s710_s18 = smov 0  }
   0x3 LB: > { %s725_s19 = sadd.s32 4294967295, %s676_s18   ;;  %s478_s20 = sadd.s32 4294967294, %s676_s18   ;;  %s676_s18 = sphi %s710_s18, %s853_s18   ;;  %s672_s17 = sphi %s708_s17, %s852_s17   ;;  %s668_s16 = sphi %s706_s16, %s851_s16   ;;  %s664_s15 = sphi %s704_s15, %s850_s15  }
   0x4   : > { %s729_s21 = sadd.s32 1, %s676_s18   ;;  %s113_s22 = sadd.s32 1, %s672_s17 }
   0x5   : > { %s110_s23 = ssub.s32 %s676_s18, %s729_s21  ;;  %p123_p0 = scmp.ne.s32.totalorder %s672_s17, %s668_s16 }
   0x6   : > { %p111_p1 = scmp.eq.s32.totalorder %s110_s23, 0  ;;  %p124_p2 = scmp.eq.s32.totalorder %s725_s19, 1 }
   0x7   : > { %p129_p3 = scmp.ne.s32.totalorder %s668_s16, %s664_s15  ;;  %p130_p4 = scmp.eq.s32.totalorder %s478_s20, 1 }
   0x8   : > { %s740_s24 = scalar_select %p111_p1, %s672_s17, %s113_s22  }
   0x9   : > { %p742_p5 = por %p124_p2, %p123_p0  ;;  %p746_p6 = por %p130_p4, %p129_p3 }
   0xa   : > { %p481_p7 = scmp.ge.s32.totalorder %s676_s18, 1  ;;  %p165_p8 = scmp.lt.s32.totalorder %s676_s18, 3 }
   0xc   : > { %p166_p9 = pnand %p481_p7, %p165_p8 }
   0xd   : > { %p191_p10 = scmp.lt.s32.totalorder (!%p166_p9), %s725_s19, 1  ;;  %s188_s8 = sand.u32 (!%p166_p9), 1, %s668_s16  }
   0xe   : > { %169 = sbr.rel (%p166_p9) target bundleno = 430 (0x1ae), region = 36  ;;  %s550_s9 = sshll.u32 (!%p166_p9), %s725_s19, 3 }
   0xf   : > { %s482_s10 = sshll.u32 (!%p166_p9), %s188_s8, 3  ;;  %s414_s13 = scalar_lea.hbm (!%p166_p9), %s847_s4, %s550_s9 }
  0x10   : > { %s190_s14 = scalar_lea.vmem (!%p166_p9), [#allocation2], %s482_s10  ;;  %s418_s22 = sshll.u32 (!%p166_p9), %s414_s13, 4  ;;  %s419_s22 = int_to_ptr.hbm [resolvable:$true] %s418_s22 }
  0x11   : > { %s416_s20 = sshll.u32 (!%p166_p9), %s190_s14, 4  ;;  %s404_s23 = scalar_lea.sflag (!%p166_p9), [#allocation3], %s188_s8  ;;  %s417_s20 = int_to_ptr.vmem [resolvable:$true] %s416_s20 }
  0x12   : > { %s634_s30 = scalar_lea.hbm (!%p166_p9), %s847_s4, 16 }
  0x13   : > { %s192_s27 = scalar_select %p191_p10, %s725_s19, 1  ;;  %v678_v3 = vmov 256.0   ;;  %v561_v4 = vld [vmem:[%s846_s3 + $0x38] sm:$0xff]  ;;  %v560_v19 = vld [vmem:[%s846_s3 + $0x30] sm:$0xff]  ;;  %v559_v21 = vld [vmem:[%s846_s3 + $0x28] sm:$0xff] }
  0x14   : > { %610 = vrcp.f32 %v678_v3  ;;  %v569_v5 = vld [vmem:[%s846_s3 + $0x78] sm:$0xff]  ;;  %376 = vmatpush.bf16.msra.mxu0 %v561_v4  ;;  %v568_v20 = vld [vmem:[%s846_s3 + $0x70] sm:$0xff]  ;;  %v567_v22 = vld [vmem:[%s846_s3 + $0x68] sm:$0xff] }
  0x15   : > { %s553_s28 = sshll.u32 %s192_s27, 4  ;;  %389 = vmatpush.bf16.msra.mxu1 %v569_v5  ;;  %v558_v23 = vld [vmem:[%s846_s3 + $0x20] sm:$0xff]  ;;  %v557_v25 = vld [vmem:[%s846_s3 + $0x18] sm:$0xff]  ;;  %v556_v27 = vld [vmem:[%s846_s3 + $0x10] sm:$0xff]  ;;  %s628_s27 = sshra.s32 %s419_s22, 4  ;;  %s629_s27 = int_to_ptr.hbm [resolvable:$true] %s628_s27 }
  0x16   : > { %s195_s5 = scalar_lea.vmem %s843_s0, %s553_s28  ;;  %v566_v24 = vld [vmem:[%s846_s3 + $0x60] sm:$0xff]  ;;  %v565_v26 = vld [vmem:[%s846_s3 + $0x58] sm:$0xff]  ;;  %v564_v28 = vld [vmem:[%s846_s3 + $0x50] sm:$0xff]  ;;  %s630_s28 = scalar_lea.hbm %s629_s27, 8 }
  0x17   : > { %v196_v0 = vld [vmem:[%s195_s5] sm:$0xff]  ;;  %v197_v1 = vld [vmem:[%s195_s5 + $0x8] sm:$0xff]  ;;  %p631_p11 = scmp.ne.s32.totalorder %s629_s27, %s630_s28  ;;  %p635_p0 = scmp.lt.s32.totalorder %s629_s27, %s847_s4 }
  0x18   : > { %v200_v2 = vadd.f32 %v197_v1, %v196_v0  ;;  %377 = vmatpush.bf16.msra.mxu0 %v560_v19  ;;  %v555_v29 = vld [vmem:[%s846_s3 + $0x8] sm:$0xff]  ;;  %v554_v31 = vld [vmem:[%s846_s3] sm:$0xff]  ;;  %p636_p1 = scmp.lt.s32.totalorder %s634_s30, %s630_s28 }
  0x19   : > { %390 = vmatpush.bf16.msra.mxu1 %v568_v20  ;;  %v563_v30 = vld [vmem:[%s846_s3 + $0x48] sm:$0xff]  ;;  %v562_v32 = vld [vmem:[%s846_s3 + $0x40] sm:$0xff]  ;;  %p632_p12 = pnand %p631_p11, %p742_p5 }
  0x1a   : > { %201 = vadd.xlane.f32.xlu0 %v200_v2  ;;  %v611_v6 = vpop.eup %610  ;;  %v198_v41 = vld [vmem:[%s844_s1] sm:$0x3]  ;;  %p637_p2 = por %p636_p1, %p635_p0 }
  0x1b   : > { %v204_v7 = vmul.f32 256.0, %v611_v6  ;;  %vm208_vm0 = vweird.f32 %v611_v6  ;;  %v199_v43 = vld [vmem:[%s845_s2] sm:$0x3]  ;;  %v233_v44 = vperm.slane %v198_v41, 0  ;;  %v234_v45 = vperm.slane %v198_v41, 1  ;;  %p633_p13 = pneg %p632_p12 }
  0x1c   : > { %378 = vmatpush.bf16.msra.mxu0 %v559_v21  ;;  %v240_v48 = vperm.slane %v199_v43, 0  ;;  %v241_v50 = vperm.slane %v199_v43, 1 }
  0x1d   : > { %v205_v8 = vsub.f32 1.0, %v204_v7  ;;  %391 = vmatpush.bf16.msra.mxu1 %v567_v22  ;;  %p638_p3 = pnand %p637_p2, %p633_p13 }
  0x1f   : > { %v206_v9 = vmul.f32 %v611_v6, %v205_v8 }
  0x20   : > { %379 = vmatpush.bf16.msra.mxu0 %v558_v23 }
  0x21   : > { %v207_v10 = vadd.f32 %v611_v6, %v206_v9  ;;  %392 = vmatpush.bf16.msra.mxu1 %v566_v24 }
  0x23   : > { %v209_v11 = vsel %vm208_vm0, %v611_v6, %v207_v10 }
  0x24   : > { %380 = vmatpush.bf16.msra.mxu0 %v557_v25 }
  0x25   : > { %393 = vmatpush.bf16.msra.mxu1 %v565_v26 }
  0x28   : > { %381 = vmatpush.bf16.msra.mxu0 %v556_v27 }
  0x29   : > { %394 = vmatpush.bf16.msra.mxu1 %v564_v28 }
  0x2c   : > { %382 = vmatpush.bf16.msra.mxu0 %v555_v29 }
  0x2d   : > { %395 = vmatpush.bf16.msra.mxu1 %v563_v30 }
  0x30   : > { %383 = vmatpush.bf16.msra.mxu0 %v554_v31 }
  0x31   : > { %396 = vmatpush.bf16.msra.mxu1 %v562_v32 }
  0x8d   : > { %v202_v12 = vpop.xlane.xlu0 %201 }
  0x8e   : > { %v210_v13 = vmul.f32 %v209_v11, %v202_v12 }
  0x90   : > { %v211_v14 = vsub.f32 %v196_v0, %v210_v13  ;;  %v212_v15 = vsub.f32 %v197_v1, %v210_v13 }
  0x92   : > { %v213_v16 = vmul.f32 %v211_v14, %v211_v14  ;;  %v214_v17 = vmul.f32 %v212_v15, %v212_v15 }
  0x94   : > { %v215_v18 = vadd.f32 %v214_v17, %v213_v16 }
  0x96   : > { %216 = vadd.xlane.f32.xlu0 %v215_v18 }
 0x109   : > { %v217_v33 = vpop.xlane.xlu0 %216 }
 0x10a   : > { %v218_v34 = vmul.f32 %v217_v33, %v209_v11 }
 0x10c   : > { %v219_v35 = vadd.f32 1e-05, %v218_v34 }
 0x10e   : > { %612 = vrsqrt.f32 %v219_v35  ;;  %vm226_vm2 = vweird.f32 %v219_v35 }
 0x114   : > { %v613_v36 = vpop.eup %612 }
 0x115   : > { %v221_v37 = vmul.f32 %v613_v36, %v219_v35  ;;  %vm227_vm1 = vweird.f32 %v613_v36 }
 0x116   : > { %vm228_vm3 = vmor %vm226_vm2, %vm227_vm1 }
 0x117   : > { %v222_v38 = vmul.f32 %v613_v36, %v221_v37 }
 0x119   : > { %v223_v39 = vmul.f32 0.5, %v222_v38 }
 0x11b   : > { %v224_v40 = vsub.f32 1.5, %v223_v39 }
 0x11d   : > { %v225_v42 = vmul.f32 %v613_v36, %v224_v40 }
 0x11f   : > { %v229_v46 = vsel %vm228_vm3, %v613_v36, %v225_v42 }
 0x120   : > { %v230_v47 = vmul.f32 %v229_v46, %v211_v14  ;;  %v231_v49 = vmul.f32 %v229_v46, %v212_v15 }
 0x122   : > { %v237_v51 = vmul.f32 %v233_v44, %v230_v47  ;;  %v238_v52 = vmul.f32 %v234_v45, %v231_v49 }
 0x124   : > { %v244_v53 = vadd.f32 %v240_v48, %v237_v51  ;;  %v245_v54 = vadd.f32 %v241_v50, %v238_v52 }
 0x126   : > { %v246_v55 = vpack.c.bf16 %v244_v53, %v244_v53  ;;  %v247_v56 = vpack.c.bf16 %v245_v54, %v245_v54 }
 0x128   : > { %384 = vmatmul.bf16.vlgmr.msra.gmra.mxu0 %v246_v55  ;;  %397 = vmatmul.bf16.vlgmr.msra.gmra.mxu1 %v247_v56 }
 0x1a5   : > { %v385_v57 = vpop.f32.mrf.mxu0  ;;  %v398_v58 = vpop.f32.mrf.mxu1 }
 0x1a6   : > { %v399_v59 = vadd.f32 %v398_v58, %v385_v57 }
 0x1a8   : > { %402 = vst [vmem:[%s190_s14] sm:$0xff] %v399_v59 }
 0x1a9   : > { %641 = shalt.err (!%p638_p3)
}
 0x1aa   : > { %570 = dma.vmem_to_hbm [thread:$0]  (%p742_p5), %s417_s20, 128, %s419_s22, %s404_s23  }
 0x1ad   : > { %v387_v60 = vpop.f32.mrf.mxu0  ;;  %v400_v61 = vpop.f32.mrf.mxu1 }
 0x1ae PF: > { %p576_p4 = scmp.ge.s32.totalorder %s676_s18, 2  ;;  %s430_s7 = sand.u32 1, %s664_s15  }
 0x1af   : > { %s431_s8 = scalar_lea.sflag [#allocation3], %s430_s7 }
 0x1b0   : > { %p573_p7 = pnand %p576_p4, %p746_p6 }
 0x1b2   : > { %p574_p8 = pneg %p573_p7 }
 0x1b4   : > { %659 = dma.done.wait (%p574_p8), %s431_s8, 128  }
 0x1b5   : > { %661 = vsyncadd (%p574_p8), %s431_s8, 4294967168  ;;  %p14_p5 = scmp.ge.s32.totalorder %s729_s21, 4   ;;  %s850_s15 = smov %s668_s16 }
 0x1b6   : > { %s851_s16 = smov %s672_s17  ;;  %s852_s17 = smov %s740_s24 }
 0x1b7   : > { %s853_s18 = smov %s729_s21  ;;  %16 = sbr.rel (!%p14_p5) target bundleno = 3 (0x3), region = 71 }
 0x1bc   :  { %437 = vsyncpa [#allocation3], 1 }
 0x1bd   :  { %439 = vsyncpa [#allocation3 + $0x1], 1 }

// kernel: gpt_forward.4
= control target key start
LH: loop header
LB: loop body
LE: loop exit
PB: predicated region body
PF: predicated region fallthrough
CT: control target
= control target key end

     0   :  { %s6110_s25 = smov 0   ;;  %s9000_s0 = inlined_call_operand.vmem [shape: f32[16,256], index: 0, kind: input, shape index: {}, may-alias: {0,13}]   ;;  %s9001_s1 = inlined_call_operand.vmem [shape: bf16[256,768], index: 1, kind: input, shape index: {}]   ;;  %s9002_s2 = inlined_call_operand.vmem [shape: f32[1,768], index: 2, kind: input, shape index: {}]   ;;  %s9003_s3 = inlined_call_operand.vmem [shape: f32[1,256], index: 3, kind: input, shape index: {}]   ;;  %s9004_s4 = inlined_call_operand.vmem [shape: f32[1,256], index: 4, kind: input, shape index: {}]   ;;  %s9005_s5 = inlined_call_operand.vmem [shape: bf16[256,256], index: 5, kind: input, shape index: {}]   ;;  %s9006_s6 = inlined_call_operand.vmem [shape: f32[1,256], index: 6, kind: input, shape index: {}]   ;;  %s9007_s7 = inlined_call_operand.vmem [shape: bf16[256,1024], index: 7, kind: input, shape index: {}]   ;;  %s9008_s8 = inlined_call_operand.vmem [shape: f32[1,1024], index: 8, kind: input, shape index: {}]   ;;  %s9009_s9 = inlined_call_operand.vmem [shape: bf16[1024,256], index: 9, kind: input, shape index: {}]   ;;  %s9010_s10 = inlined_call_operand.vmem [shape: f32[1,256], index: 10, kind: input, shape index: {}]   ;;  %s9011_s11 = inlined_call_operand.vmem [shape: f32[1,256], index: 11, kind: input, shape index: {}]   ;;  %s9012_s12 = inlined_call_operand.vmem [shape: f32[1,256], index: 12, kind: input, shape index: {}]   ;;  %s9013_s13 = inlined_call_operand.vmem [shape: f32[16,256], index: 13, kind: output, shape index: {}, may-alias: {0,13}]  }
   0x1 LB: > { %s4037_s26 = sadd.s32 4294967295, %s6036_s25   ;;  %p4041_p0 = scmp.ge.s32.totalorder %s6036_s25, 1  ;;  %s6036_s25 = sphi %s6110_s25, %s23_s25  }
   0x2   : > { %p387_p1 = scmp.lt.s32.totalorder %s6036_s25, 3 }
   0x4   : > { %p388_p2 = pnand %p4041_p0, %p387_p1 }
   0x5   : > { %p431_p3 = scmp.lt.s32.totalorder (!%p388_p2), %s4037_s26, 1 }
   0x6   : > { %391 = sbr.rel (%p388_p2) target bundleno = 1835 (0x72b), region = 72 }
   0xb   : > { %s9037_s26 = smov (!%p431_p3, %s4037_s26), 1  ;;  %v6038_v3 = vmov 256.0   ;;  %v4216_v7 = vld [vmem:[%s9001_s1 + $0x150] sm:$0xf]  ;;  %v5633_v8 = vld [vmem:[%s9001_s1 + $0x164] sm:$0xf0] }
   0xc   : > { %s5586_s27 = sshll.u32 %s9037_s26, 4  ;;  %5982 = vrcp.f32 %v6038_v3  ;;  %v4408_v9 = vld [vmem:[%s9001_s1 + $0x2d0] sm:$0xf]  ;;  %v4217_v10 = vor.u32 %v5633_v8, %v4216_v7  ;;  %v5681_v11 = vld [vmem:[%s9001_s1 + $0x2e4] sm:$0xf0]  ;;  %vm1294_vm4 = vcmask 1043456  }
   0xd   : > { %s6126_s30 = scalar_lea.vmem %s9000_s0, %s5586_s27  ;;  %v5630_v12 = vld [vmem:[%s9001_s1 + $0x154] sm:$0xf]  ;;  %v4218_v13 = vld [vmem:[%s9001_s1 + $0x168] sm:$0xf0]  ;;  %v4409_v14 = vor.u32 %v5681_v11, %v4408_v9  ;;  %v4192_v18 = vld [vmem:[%s9001_s1 + $0x120] sm:$0xf]  ;;  %s440_s28 = scalar_lea.vmem %s9013_s13, %s5586_s27 }
   0xe   : > { %v6129_v0 = vld [vmem:[%s6126_s30] sm:$0xff]  ;;  %v6132_v1 = vld [vmem:[%s6126_s30 + $0x8] sm:$0xff]  ;;  %v4221_v15 = vor.u32 %v5630_v12, %v4218_v13  ;;  %v5678_v16 = vld [vmem:[%s9001_s1 + $0x2d4] sm:$0xf]  ;;  %1084 = vmatpush.bf16.msra.mxu0 %v4217_v10  ;;  %vm1265_vm8 = vcmask 64512  }
   0xf   : > { %v446_v2 = vadd.f32 %v6132_v1, %v6129_v0  ;;  %v4410_v17 = vld [vmem:[%s9001_s1 + $0x2e8] sm:$0xf0]  ;;  %v5627_v20 = vld [vmem:[%s9001_s1 + $0x134] sm:$0xf0]  ;;  %v4384_v21 = vld [vmem:[%s9001_s1 + $0x2a0] sm:$0xf]  ;;  %1097 = vmatpush.bf16.msra.mxu1 %v4409_v14 }
  0x10   : > { %v4413_v19 = vor.u32 %v5678_v16, %v4410_v17  ;;  %v5675_v22 = vld [vmem:[%s9001_s1 + $0x2b4] sm:$0xf0]  ;;  %1110 = vmatpush.bf16.msra.mxu2 %v4221_v15  ;;  %v4193_v23 = vor.u32 %v5627_v20, %v4192_v18  ;;  %v5624_v25 = vld [vmem:[%s9001_s1 + $0x124] sm:$0xf]  ;;  %v4194_v26 = vld [vmem:[%s9001_s1 + $0x138] sm:$0xf0] }
  0x11   : > { %447 = vadd.xlane.f32.xlu0 %v446_v2  ;;  %v4385_v24 = vor.u32 %v5675_v22, %v4384_v21  ;;  %v5672_v27 = vld [vmem:[%s9001_s1 + $0x2a4] sm:$0xf]  ;;  %v4197_v28 = vor.u32 %v5624_v25, %v4194_v26  ;;  %v4386_v29 = vld [vmem:[%s9001_s1 + $0x2b8] sm:$0xf0]  ;;  %v4168_v30 = vld [vmem:[%s9001_s1 + $0xf0] sm:$0xf] }
  0x12   : > { %v6136_v4 = vpop.eup %5982  ;;  %1123 = vmatpush.bf16.msra.mxu3 %v4413_v19  ;;  %v5621_v31 = vld [vmem:[%s9001_s1 + $0x104] sm:$0xf0]  ;;  %v4389_v32 = vor.u32 %v5672_v27, %v4386_v29  ;;  %v4360_v33 = vld [vmem:[%s9001_s1 + $0x270] sm:$0xf]  ;;  %v5618_v35 = vld [vmem:[%s9001_s1 + $0xf4] sm:$0xf]  ;;  %1085 = vmatpush.bf16.msra.mxu0 %v4193_v23 }
  0x13   : > { %v6139_v5 = vmul.f32 256.0, %v6136_v4  ;;  %v5669_v34 = vld [vmem:[%s9001_s1 + $0x284] sm:$0xf0]  ;;  %v4169_v36 = vor.u32 %v5621_v31, %v4168_v30  ;;  %v4170_v37 = vld [vmem:[%s9001_s1 + $0x108] sm:$0xf0]  ;;  %1098 = vmatpush.bf16.msra.mxu1 %v4385_v24  ;;  %vm454_vm0 = vweird.f32 %v6136_v4 }
  0x14   : > { %v5666_v38 = vld [vmem:[%s9001_s1 + $0x274] sm:$0xf]  ;;  %v4362_v39 = vld [vmem:[%s9001_s1 + $0x288] sm:$0xf0]  ;;  %1111 = vmatpush.bf16.msra.mxu2 %v4197_v28  ;;  %v4361_v40 = vor.u32 %v5669_v34, %v4360_v33  ;;  %v4173_v41 = vor.u32 %v5618_v35, %v4170_v37  ;;  %v4144_v42 = vld [vmem:[%s9001_s1 + $0xc0] sm:$0xf] }
  0x15   : > { %v451_v6 = vsub.f32 1.0, %v6139_v5  ;;  %v5615_v43 = vld [vmem:[%s9001_s1 + $0xd4] sm:$0xf0]  ;;  %v4336_v44 = vld [vmem:[%s9001_s1 + $0x240] sm:$0xf]  ;;  %v4365_v45 = vor.u32 %v5666_v38, %v4362_v39 }
  0x16   : > { %1124 = vmatpush.bf16.msra.mxu3 %v4389_v32  ;;  %v5663_v46 = vld [vmem:[%s9001_s1 + $0x254] sm:$0xf0]  ;;  %v5612_v47 = vld [vmem:[%s9001_s1 + $0xc4] sm:$0xf]  ;;  %v4146_v48 = vld [vmem:[%s9001_s1 + $0xd8] sm:$0xf0]  ;;  %1086 = vmatpush.bf16.msra.mxu0 %v4169_v36  ;;  %v4145_v51 = vor.u32 %v5615_v43, %v4144_v42 }
  0x17   : > { %v5660_v49 = vld [vmem:[%s9001_s1 + $0x244] sm:$0xf]  ;;  %v4338_v50 = vld [vmem:[%s9001_s1 + $0x258] sm:$0xf0]  ;;  %1099 = vmatpush.bf16.msra.mxu1 %v4361_v40  ;;  %v4337_v52 = vor.u32 %v5663_v46, %v4336_v44  ;;  %v4149_v53 = vor.u32 %v5612_v47, %v4146_v48  ;;  %v4120_v54 = vld [vmem:[%s9001_s1 + $0x90] sm:$0xf]  ;;  %v452_v57 = vmul.f32 %v6136_v4, %v451_v6 }
  0x18   : > { %1112 = vmatpush.bf16.msra.mxu2 %v4173_v41  ;;  %v5609_v55 = vld [vmem:[%s9001_s1 + $0xa4] sm:$0xf0]  ;;  %v4312_v56 = vld [vmem:[%s9001_s1 + $0x210] sm:$0xf]  ;;  %v4341_v58 = vor.u32 %v5660_v49, %v4338_v50  ;;  %v5606_v60 = vld [vmem:[%s9001_s1 + $0x94] sm:$0xf] }
  0x19   : > { %v5657_v59 = vld [vmem:[%s9001_s1 + $0x224] sm:$0xf0]  ;;  %v4122_v61 = vld [vmem:[%s9001_s1 + $0xa8] sm:$0xf0]  ;;  %v5654_v62 = vld [vmem:[%s9001_s1 + $0x214] sm:$0xf]  ;;  %v4121_v2 = vor.u32 %v5609_v55, %v4120_v54  ;;  %v453_v9 = vadd.f32 %v6136_v4, %v452_v57 }
  0x1a   : > { %1125 = vmatpush.bf16.msra.mxu3 %v4365_v45  ;;  %v4314_v63 = vld [vmem:[%s9001_s1 + $0x228] sm:$0xf0]  ;;  %1087 = vmatpush.bf16.msra.mxu0 %v4145_v51  ;;  %v4313_v3 = vor.u32 %v5657_v59, %v4312_v56  ;;  %v4125_v5 = vor.u32 %v5606_v60, %v4122_v61  ;;  %v4096_v6 = vld [vmem:[%s9001_s1 + $0x60] sm:$0xf]  ;;  %v5603_v7 = vld [vmem:[%s9001_s1 + $0x74] sm:$0xf0] }
  0x1b   : > { %1100 = vmatpush.bf16.msra.mxu1 %v4337_v52  ;;  %v4288_v8 = vld [vmem:[%s9001_s1 + $0x1e0] sm:$0xf]  ;;  %v4317_v10 = vor.u32 %v5654_v62, %v4314_v63  ;;  %v5651_v11 = vld [vmem:[%s9001_s1 + $0x1f4] sm:$0xf0]  ;;  %v5600_v12 = vld [vmem:[%s9001_s1 + $0x64] sm:$0xf]  ;;  %v4097_v16 = vor.u32 %v5603_v7, %v4096_v6  ;;  %v6299_v22 = vsel %vm454_vm0, %v6136_v4, %v453_v9 }
  0x1c   : > { %1113 = vmatpush.bf16.msra.mxu2 %v4149_v53  ;;  %v4098_v13 = vld [vmem:[%s9001_s1 + $0x78] sm:$0xf0]  ;;  %v5648_v14 = vld [vmem:[%s9001_s1 + $0x1e4] sm:$0xf]  ;;  %v4289_v17 = vor.u32 %v5651_v11, %v4288_v8  ;;  %v4072_v19 = vld [vmem:[%s9001_s1 + $0x30] sm:$0xf] }
  0x1d   : > { %v4290_v15 = vld [vmem:[%s9001_s1 + $0x1f8] sm:$0xf0]  ;;  %v4101_v18 = vor.u32 %v5600_v12, %v4098_v13  ;;  %v5597_v20 = vld [vmem:[%s9001_s1 + $0x44] sm:$0xf0]  ;;  %v4264_v21 = vld [vmem:[%s9001_s1 + $0x1b0] sm:$0xf] }
  0x1e   : > { %1126 = vmatpush.bf16.msra.mxu3 %v4341_v58  ;;  %1088 = vmatpush.bf16.msra.mxu0 %v4121_v2  ;;  %v4293_v23 = vor.u32 %v5648_v14, %v4290_v15  ;;  %v5645_v24 = vld [vmem:[%s9001_s1 + $0x1c4] sm:$0xf0]  ;;  %v5594_v25 = vld [vmem:[%s9001_s1 + $0x34] sm:$0xf]  ;;  %v4074_v26 = vld [vmem:[%s9001_s1 + $0x48] sm:$0xf0]  ;;  %v4073_v29 = vor.u32 %v5597_v20, %v4072_v19 }
  0x1f   : > { %1101 = vmatpush.bf16.msra.mxu1 %v4313_v3  ;;  %v5642_v27 = vld [vmem:[%s9001_s1 + $0x1b4] sm:$0xf]  ;;  %v4266_v4 = vld [vmem:[%s9001_s1 + $0x1c8] sm:$0xf0]  ;;  %v4265_v31 = vor.u32 %v5645_v24, %v4264_v21  ;;  %v4077_v32 = vor.u32 %v5594_v25, %v4074_v26  ;;  %v4240_v39 = vld [vmem:[%s9001_s1 + $0x180] sm:$0xf] }
  0x20   : > { %1114 = vmatpush.bf16.msra.mxu2 %v4125_v5  ;;  %v4269_v33 = vor.u32 %v5642_v27, %v4266_v4  ;;  %v5639_v41 = vld [vmem:[%s9001_s1 + $0x194] sm:$0xf0]  ;;  %v5588_v42 = vld [vmem:[%s9001_s1 + $0x4] sm:$0xf]  ;;  %v4050_v43 = vld [vmem:[%s9001_s1 + $0x18] sm:$0xf0] }
  0x21   : > { %v4241_v44 = vor.u32 %v5639_v41, %v4240_v39  ;;  %v4053_v45 = vor.u32 %v5588_v42, %v4050_v43  ;;  %v5636_v46 = vld [vmem:[%s9001_s1 + $0x184] sm:$0xf]  ;;  %v4242_v47 = vld [vmem:[%s9001_s1 + $0x198] sm:$0xf0]  ;;  %v4224_v48 = vld [vmem:[%s9001_s1 + $0x158] sm:$0xf] }
  0x22   : > { %1127 = vmatpush.bf16.msra.mxu3 %v4317_v10  ;;  %1089 = vmatpush.bf16.msra.mxu0 %v4097_v16  ;;  %v4245_v49 = vor.u32 %v5636_v46, %v4242_v47  ;;  %v5634_v50 = vld [vmem:[%s9001_s1 + $0x16c] sm:$0xf0]  ;;  %v4416_v51 = vld [vmem:[%s9001_s1 + $0x2d8] sm:$0xf]  ;;  %v5631_v55 = vld [vmem:[%s9001_s1 + $0x15c] sm:$0xf] }
  0x23   : > { %1102 = vmatpush.bf16.msra.mxu1 %v4289_v17  ;;  %v5682_v52 = vld [vmem:[%s9001_s1 + $0x2ec] sm:$0xf0]  ;;  %v4225_v53 = vor.u32 %v5634_v50, %v4224_v48  ;;  %v4226_v56 = vld [vmem:[%s9001_s1 + $0x170] sm:$0xf0]  ;;  %v5679_v57 = vld [vmem:[%s9001_s1 + $0x2dc] sm:$0xf] }
  0x24   : > { %1115 = vmatpush.bf16.msra.mxu2 %v4101_v18  ;;  %v4417_v54 = vor.u32 %v5682_v52, %v4416_v51  ;;  %v4229_v58 = vor.u32 %v5631_v55, %v4226_v56  ;;  %v4418_v59 = vld [vmem:[%s9001_s1 + $0x2f0] sm:$0xf0]  ;;  %v4200_v60 = vld [vmem:[%s9001_s1 + $0x128] sm:$0xf]  ;;  %v5628_v61 = vld [vmem:[%s9001_s1 + $0x13c] sm:$0xf0] }
  0x25   : > { %v4421_v62 = vor.u32 %v5679_v57, %v4418_v59  ;;  %v4201_v63 = vor.u32 %v5628_v61, %v4200_v60  ;;  %v4392_v2 = vld [vmem:[%s9001_s1 + $0x2a8] sm:$0xf]  ;;  %v5676_v3 = vld [vmem:[%s9001_s1 + $0x2bc] sm:$0xf0]  ;;  %v5625_v5 = vld [vmem:[%s9001_s1 + $0x12c] sm:$0xf] }
  0x26   : > { %1128 = vmatpush.bf16.msra.mxu3 %v4293_v23  ;;  %1090 = vmatpush.bf16.msra.mxu0 %v4073_v29  ;;  %v4393_v6 = vor.u32 %v5676_v3, %v4392_v2  ;;  %v4202_v7 = vld [vmem:[%s9001_s1 + $0x140] sm:$0xf0]  ;;  %v5673_v8 = vld [vmem:[%s9001_s1 + $0x2ac] sm:$0xf]  ;;  %v4176_v12 = vld [vmem:[%s9001_s1 + $0xf8] sm:$0xf] }
  0x27   : > { %1103 = vmatpush.bf16.msra.mxu1 %v4265_v31  ;;  %v4394_v9 = vld [vmem:[%s9001_s1 + $0x2c0] sm:$0xf0]  ;;  %v4205_v10 = vor.u32 %v5625_v5, %v4202_v7  ;;  %v5622_v13 = vld [vmem:[%s9001_s1 + $0x10c] sm:$0xf0]  ;;  %v4368_v14 = vld [vmem:[%s9001_s1 + $0x278] sm:$0xf] }
  0x28   : > { %1116 = vmatpush.bf16.msra.mxu2 %v4077_v32  ;;  %v4397_v11 = vor.u32 %v5673_v8, %v4394_v9  ;;  %v4177_v15 = vor.u32 %v5622_v13, %v4176_v12  ;;  %v5670_v16 = vld [vmem:[%s9001_s1 + $0x28c] sm:$0xf0]  ;;  %v5619_v17 = vld [vmem:[%s9001_s1 + $0xfc] sm:$0xf]  ;;  %v4178_v18 = vld [vmem:[%s9001_s1 + $0x110] sm:$0xf0] }
  0x29   : > { %v4369_v19 = vor.u32 %v5670_v16, %v4368_v14  ;;  %v4181_v20 = vor.u32 %v5619_v17, %v4178_v18  ;;  %v5667_v21 = vld [vmem:[%s9001_s1 + $0x27c] sm:$0xf]  ;;  %v4370_v23 = vld [vmem:[%s9001_s1 + $0x290] sm:$0xf0]  ;;  %v4152_v25 = vld [vmem:[%s9001_s1 + $0xc8] sm:$0xf] }
  0x2a   : > { %1129 = vmatpush.bf16.msra.mxu3 %v4269_v33  ;;  %v4373_v24 = vor.u32 %v5667_v21, %v4370_v23  ;;  %v5616_v26 = vld [vmem:[%s9001_s1 + $0xdc] sm:$0xf0]  ;;  %v4344_v27 = vld [vmem:[%s9001_s1 + $0x248] sm:$0xf]  ;;  %v5613_v29 = vld [vmem:[%s9001_s1 + $0xcc] sm:$0xf] }
  0x2b   : > { %1104 = vmatpush.bf16.msra.mxu1 %v4241_v44  ;;  %v4153_v4 = vor.u32 %v5616_v26, %v4152_v25  ;;  %v5661_v33 = vld [vmem:[%s9001_s1 + $0x24c] sm:$0xf]  ;;  %v5607_v41 = vld [vmem:[%s9001_s1 + $0x9c] sm:$0xf]  ;;  %v4130_v42 = vld [vmem:[%s9001_s1 + $0xb0] sm:$0xf0] }
  0x2c   : > { %1117 = vmatpush.bf16.msra.mxu2 %v4053_v45  ;;  %v4133_v44 = vor.u32 %v5607_v41, %v4130_v42  ;;  %v5655_v45 = vld [vmem:[%s9001_s1 + $0x21c] sm:$0xf]  ;;  %v4322_v46 = vld [vmem:[%s9001_s1 + $0x230] sm:$0xf0]  ;;  %v4104_v48 = vld [vmem:[%s9001_s1 + $0x68] sm:$0xf] }
  0x2d   : > { %v4325_v47 = vor.u32 %v5655_v45, %v4322_v46  ;;  %v4296_v50 = vld [vmem:[%s9001_s1 + $0x1e8] sm:$0xf]  ;;  %v5652_v52 = vld [vmem:[%s9001_s1 + $0x1fc] sm:$0xf0]  ;;  %v5649_v57 = vld [vmem:[%s9001_s1 + $0x1ec] sm:$0xf] }
  0x2e   : > { %1130 = vmatpush.bf16.msra.mxu3 %v4245_v49  ;;  %v5604_v49 = vld [vmem:[%s9001_s1 + $0x7c] sm:$0xf0]  ;;  %v4297_v55 = vor.u32 %v5652_v52, %v4296_v50  ;;  %v4080_v60 = vld [vmem:[%s9001_s1 + $0x38] sm:$0xf]  ;;  %v5598_v61 = vld [vmem:[%s9001_s1 + $0x4c] sm:$0xf0] }
  0x2f   : > { %1149 = vmatpush.bf16.msrb.mxu1 %v4417_v54  ;;  %v4105_v51 = vor.u32 %v5604_v49, %v4104_v48  ;;  %v4106_v54 = vld [vmem:[%s9001_s1 + $0x80] sm:$0xf0]  ;;  %v5646_v2 = vld [vmem:[%s9001_s1 + $0x1cc] sm:$0xf0]  ;;  %v5595_v3 = vld [vmem:[%s9001_s1 + $0x3c] sm:$0xf] }
  0x30   : > { %1162 = vmatpush.bf16.msrb.mxu2 %v4229_v58  ;;  %v4298_v58 = vld [vmem:[%s9001_s1 + $0x200] sm:$0xf0]  ;;  %v4082_v5 = vld [vmem:[%s9001_s1 + $0x50] sm:$0xf0]  ;;  %v5643_v8 = vld [vmem:[%s9001_s1 + $0x1bc] sm:$0xf] }
  0x31   : > { %v4301_v59 = vor.u32 %v5649_v57, %v4298_v58  ;;  %v4085_v7 = vor.u32 %v5595_v3, %v4082_v5  ;;  %v4274_v9 = vld [vmem:[%s9001_s1 + $0x1d0] sm:$0xf0]  ;;  %v5592_v12 = vld [vmem:[%s9001_s1 + $0x1c] sm:$0xf0]  ;;  %v4248_v13 = vld [vmem:[%s9001_s1 + $0x188] sm:$0xf] }
  0x32   : > { %1175 = vmatpush.bf16.msrb.mxu3 %v4421_v62  ;;  %v4272_v62 = vld [vmem:[%s9001_s1 + $0x1b8] sm:$0xf]  ;;  %v5589_v16 = vld [vmem:[%s9001_s1 + $0xc] sm:$0xf]  ;;  %v4058_v17 = vld [vmem:[%s9001_s1 + $0x20] sm:$0xf0] }
  0x33   : > { %1150 = vmatpush.bf16.msrb.mxu1 %v4393_v6  ;;  %v4273_v6 = vor.u32 %v5646_v2, %v4272_v62  ;;  %v4250_v21 = vld [vmem:[%s9001_s1 + $0x1a0] sm:$0xf0]  ;;  %v4424_v45 = vld [vmem:[%s9001_s1 + $0x2e0] sm:$0xf]  ;;  %v4234_v48 = vld [vmem:[%s9001_s1 + $0x178] sm:$0xf0] }
  0x34   : > { %1163 = vmatpush.bf16.msrb.mxu2 %v4205_v10  ;;  %v4277_v10 = vor.u32 %v5643_v8, %v4274_v9  ;;  %v5680_v49 = vld [vmem:[%s9001_s1 + $0x2e4] sm:$0xf]  ;;  %v4426_v50 = vld [vmem:[%s9001_s1 + $0x2f8] sm:$0xf0]  ;;  %v4210_v62 = vld [vmem:[%s9001_s1 + $0x148] sm:$0xf0] }
  0x35   : > { %v4429_v58 = vor.u32 %v5680_v49, %v4426_v50  ;;  %v4402_v2 = vld [vmem:[%s9001_s1 + $0x2c8] sm:$0xf0] }
  0x36   : > { %1176 = vmatpush.bf16.msrb.mxu3 %v4397_v11  ;;  %v4056_v11 = vld [vmem:[%s9001_s1 + $0x8] sm:$0xf]  ;;  %v4306_v49 = vld [vmem:[%s9001_s1 + $0x208] sm:$0xf0] }
  0x37   : > { %1151 = vmatpush.bf16.msrb.mxu1 %v4369_v19  ;;  %v4057_v14 = vor.u32 %v5592_v12, %v4056_v11  ;;  %v4061_v19 = vor.u32 %v5589_v16, %v4058_v17  ;;  %v5671_v11 = vld [vmem:[%s9001_s1 + $0x294] sm:$0xf0]  ;;  %v5620_v12 = vld [vmem:[%s9001_s1 + $0x104] sm:$0xf] }
  0x38   : > { %1164 = vmatpush.bf16.msrb.mxu2 %v4181_v20  ;;  %v5637_v20 = vld [vmem:[%s9001_s1 + $0x18c] sm:$0xf] }
  0x3a   : > { %1177 = vmatpush.bf16.msrb.mxu3 %v4373_v24  ;;  %v4253_v24 = vor.u32 %v5637_v20, %v4250_v21 }
  0x84   : > { %v448_v28 = vpop.xlane.xlu0 %447 }
  0x85   : > { %v456_v30 = vmul.f32 %v6299_v22, %v448_v28  ;;  %v5664_v28 = vld [vmem:[%s9001_s1 + $0x25c] sm:$0xf0] }
  0x86   : > { %v4345_v31 = vor.u32 %v5664_v28, %v4344_v27 }
  0x87   : > { %v6318_v34 = vsub.f32 %v6129_v0, %v456_v30  ;;  %v6321_v35 = vsub.f32 %v6132_v1, %v456_v30  ;;  %v4048_v0 = vld [vmem:[%s9001_s1] sm:$0xf]  ;;  %v5591_v1 = vld [vmem:[%s9001_s1 + $0x14] sm:$0xf0]  ;;  %v4154_v30 = vld [vmem:[%s9001_s1 + $0xe0] sm:$0xf0] }
  0x88   : > { %v4049_v40 = vor.u32 %v5591_v1, %v4048_v0  ;;  %v4157_v32 = vor.u32 %v5613_v29, %v4154_v30  ;;  %v5610_v0 = vld [vmem:[%s9001_s1 + $0xac] sm:$0xf0]  ;;  %v4320_v1 = vld [vmem:[%s9001_s1 + $0x218] sm:$0xf]  ;;  %1152 = vmatpush.bf16.msrb.mxu1 %v4345_v31  ;;  %v444_v30 = vld [vmem:[%s9003_s3] sm:$0x3] }
  0x89   : > { %v459_v36 = vmul.f32 %v6318_v34, %v6318_v34  ;;  %v460_v37 = vmul.f32 %v6321_v35, %v6321_v35 }
  0x8a   : > { %1091 = vmatpush.bf16.msra.mxu0 %v4049_v40  ;;  %v5658_v40 = vld [vmem:[%s9001_s1 + $0x22c] sm:$0xf0]  ;;  %1165 = vmatpush.bf16.msrb.mxu2 %v4157_v32  ;;  %v445_v32 = vld [vmem:[%s9004_s4] sm:$0x3] }
  0x8b   : > { %v461_v38 = vadd.f32 %v460_v37, %v459_v36  ;;  %v4346_v36 = vld [vmem:[%s9001_s1 + $0x260] sm:$0xf0]  ;;  %v4321_v43 = vor.u32 %v5658_v40, %v4320_v1  ;;  %v487_v1 = vperm.slane %v445_v32, 1 }
  0x8c   : > { %v4349_v37 = vor.u32 %v5661_v33, %v4346_v36  ;;  %v479_v36 = vperm.slane %v444_v30, 0 }
  0x8d   : > { %462 = vadd.xlane.f32.xlu0 %v461_v38  ;;  %v4128_v38 = vld [vmem:[%s9001_s1 + $0x98] sm:$0xf]  ;;  %1153 = vmatpush.bf16.msrb.mxu1 %v4321_v43  ;;  %v4232_v43 = vld [vmem:[%s9001_s1 + $0x160] sm:$0xf] }
  0x8e   : > { %1136 = vmatpush.bf16.msrb.mxu0 %v4225_v53  ;;  %v4129_v39 = vor.u32 %v5610_v0, %v4128_v38  ;;  %1178 = vmatpush.bf16.msrb.mxu3 %v4349_v37  ;;  %v5601_v53 = vld [vmem:[%s9001_s1 + $0x6c] sm:$0xf]  ;;  %v480_v37 = vperm.slane %v444_v30, 1  ;;  %v486_v0 = vperm.slane %v445_v32, 0  ;;  %v4136_v30 = vld [vmem:[%s9001_s1 + $0xa0] sm:$0xf] }
  0x8f   : > { %1166 = vmatpush.bf16.msrb.mxu2 %v4133_v44  ;;  %v4109_v56 = vor.u32 %v5601_v53, %v4106_v54  ;;  %v5635_v44 = vld [vmem:[%s9001_s1 + $0x174] sm:$0xf0] }
  0x90   : > { %v4233_v53 = vor.u32 %v5635_v44, %v4232_v43  ;;  %v5605_v43 = vld [vmem:[%s9001_s1 + $0x84] sm:$0xf0] }
  0x91   : > { %1154 = vmatpush.bf16.msrb.mxu1 %v4297_v55  ;;  %v4208_v55 = vld [vmem:[%s9001_s1 + $0x130] sm:$0xf] }
  0x92   : > { %1137 = vmatpush.bf16.msrb.mxu0 %v4201_v63  ;;  %1179 = vmatpush.bf16.msrb.mxu3 %v4325_v47  ;;  %v4081_v63 = vor.u32 %v5598_v61, %v4080_v60  ;;  %v5677_v60 = vld [vmem:[%s9001_s1 + $0x2c4] sm:$0xf0]  ;;  %v5626_v61 = vld [vmem:[%s9001_s1 + $0x134] sm:$0xf] }
  0x93   : > { %1167 = vmatpush.bf16.msrb.mxu2 %v4109_v56  ;;  %v5629_v56 = vld [vmem:[%s9001_s1 + $0x144] sm:$0xf0]  ;;  %v4213_v8 = vor.u32 %v5626_v61, %v4210_v62  ;;  %v4090_v61 = vld [vmem:[%s9001_s1 + $0x58] sm:$0xf0]  ;;  %v5644_v62 = vld [vmem:[%s9001_s1 + $0x1c4] sm:$0xf] }
  0x94   : > { %v4209_v3 = vor.u32 %v5629_v56, %v4208_v55  ;;  %v5599_v55 = vld [vmem:[%s9001_s1 + $0x54] sm:$0xf0] }
  0x95   : > { %1155 = vmatpush.bf16.msrb.mxu1 %v4273_v6  ;;  %v4184_v6 = vld [vmem:[%s9001_s1 + $0x100] sm:$0xf] }
  0x96   : > { %1138 = vmatpush.bf16.msrb.mxu0 %v4177_v15  ;;  %1180 = vmatpush.bf16.msrb.mxu3 %v4301_v59  ;;  %v5640_v15 = vld [vmem:[%s9001_s1 + $0x19c] sm:$0xf0]  ;;  %v4400_v59 = vld [vmem:[%s9001_s1 + $0x2b0] sm:$0xf] }
  0x97   : > { %1168 = vmatpush.bf16.msrb.mxu2 %v4085_v7  ;;  %v4249_v18 = vor.u32 %v5640_v15, %v4248_v13  ;;  %v4401_v5 = vor.u32 %v5677_v60, %v4400_v59  ;;  %v5623_v7 = vld [vmem:[%s9001_s1 + $0x114] sm:$0xf0]  ;;  %v4186_v13 = vld [vmem:[%s9001_s1 + $0x118] sm:$0xf0]  ;;  %v5596_v60 = vld [vmem:[%s9001_s1 + $0x44] sm:$0xf] }
  0x98   : > { %v4378_v15 = vld [vmem:[%s9001_s1 + $0x298] sm:$0xf0]  ;;  %v4185_v16 = vor.u32 %v5623_v7, %v4184_v6  ;;  %v4189_v20 = vor.u32 %v5620_v12, %v4186_v13  ;;  %v5647_v59 = vld [vmem:[%s9001_s1 + $0x1d4] sm:$0xf0]  ;;  %v5593_v6 = vld [vmem:[%s9001_s1 + $0x24] sm:$0xf0]  ;;  %v4093_v7 = vor.u32 %v5596_v60, %v4090_v61 }
  0x99   : > { %1156 = vmatpush.bf16.msrb.mxu1 %v4249_v18  ;;  %v4160_v18 = vld [vmem:[%s9001_s1 + $0xd0] sm:$0xf]  ;;  %v4066_v12 = vld [vmem:[%s9001_s1 + $0x28] sm:$0xf0]  ;;  %v5638_v13 = vld [vmem:[%s9001_s1 + $0x194] sm:$0xf] }
  0x9a   : > { %1139 = vmatpush.bf16.msrb.mxu0 %v4153_v4  ;;  %1181 = vmatpush.bf16.msrb.mxu3 %v4277_v10  ;;  %v4376_v10 = vld [vmem:[%s9001_s1 + $0x280] sm:$0xf] }
  0x9b   : > { %1169 = vmatpush.bf16.msrb.mxu2 %v4061_v19  ;;  %v4377_v17 = vor.u32 %v5671_v11, %v4376_v10  ;;  %v5617_v19 = vld [vmem:[%s9001_s1 + $0xe4] sm:$0xf0]  ;;  %v5590_v11 = vld [vmem:[%s9001_s1 + $0x14] sm:$0xf] }
  0x9c   : > { %v5641_v10 = vld [vmem:[%s9001_s1 + $0x1a4] sm:$0xf0] }
  0x9e   : > { %1140 = vmatpush.bf16.msrb.mxu0 %v4129_v39  ;;  %1182 = vmatpush.bf16.msrb.mxu3 %v4253_v24  ;;  %v5665_v24 = vld [vmem:[%s9001_s1 + $0x264] sm:$0xf0] }
  0xa2   : > { %1141 = vmatpush.bf16.msrb.mxu0 %v4105_v51 }
  0xa6   : > { %1142 = vmatpush.bf16.msrb.mxu0 %v4081_v63  ;;  %v5674_v63 = vld [vmem:[%s9001_s1 + $0x2b4] sm:$0xf] }
  0xa7   : > { %v4405_v9 = vor.u32 %v5674_v63, %v4402_v2  ;;  %v4282_v63 = vld [vmem:[%s9001_s1 + $0x1d8] sm:$0xf0] }
  0xaa   : > { %1143 = vmatpush.bf16.msrb.mxu0 %v4057_v14  ;;  %v5668_v14 = vld [vmem:[%s9001_s1 + $0x284] sm:$0xf] }
  0xab   : > { %v4381_v21 = vor.u32 %v5668_v14, %v4378_v15  ;;  %v4258_v14 = vld [vmem:[%s9001_s1 + $0x1a8] sm:$0xf0] }
 0x100   : > { %v463_v23 = vpop.xlane.xlu0 %462 }
 0x101   : > { %v464_v25 = vmul.f32 %v463_v23, %v6299_v22  ;;  %v4352_v23 = vld [vmem:[%s9001_s1 + $0x250] sm:$0xf] }
 0x103   : > { %v465_v26 = vadd.f32 1e-05, %v464_v25  ;;  %v5614_v25 = vld [vmem:[%s9001_s1 + $0xd4] sm:$0xf] }
 0x105   : > { %5984 = vrsqrt.f32 %v465_v26  ;;  %vm472_vm2 = vweird.f32 %v465_v26 }
 0x10b   : > { %v5985_v27 = vpop.eup %5984 }
 0x10c   : > { %v467_v4 = vmul.f32 %v5985_v27, %v465_v26  ;;  %vm473_vm1 = vweird.f32 %v5985_v27  ;;  %v4162_v26 = vld [vmem:[%s9001_s1 + $0xe8] sm:$0xf0] }
 0x10d   : > { %vm474_vm3 = vmor %vm472_vm2, %vm473_vm1  ;;  %v4165_v32 = vor.u32 %v5614_v25, %v4162_v26  ;;  %v590_v26 = vld [vmem:[%s9002_s2] sm:$0x3f] }
 0x10e   : > { %v468_v28 = vmul.f32 %v5985_v27, %v467_v4  ;;  %v4354_v4 = vld [vmem:[%s9001_s1 + $0x268] sm:$0xf0] }
 0x110   : > { %v469_v29 = vmul.f32 0.5, %v468_v28  ;;  %v4161_v28 = vor.u32 %v5617_v19, %v4160_v18  ;;  %v4261_v18 = vor.u32 %v5638_v13, %v4258_v14 }
 0x112   : > { %v470_v31 = vsub.f32 1.5, %v469_v29  ;;  %v4353_v29 = vor.u32 %v5665_v24, %v4352_v23 }
 0x114   : > { %v471_v33 = vmul.f32 %v5985_v27, %v470_v31  ;;  %v5611_v31 = vld [vmem:[%s9001_s1 + $0xb4] sm:$0xf0] }
 0x116   : > { %v475_v38 = vsel %vm474_vm3, %v5985_v27, %v471_v33  ;;  %v5662_v27 = vld [vmem:[%s9001_s1 + $0x254] sm:$0xf] }
 0x117   : > { %v476_v39 = vmul.f32 %v475_v38, %v6318_v34  ;;  %v477_v40 = vmul.f32 %v475_v38, %v6321_v35  ;;  %v5683_v34 = vld [vmem:[%s9001_s1 + $0x2f4] sm:$0xf0]  ;;  %v5632_v35 = vld [vmem:[%s9001_s1 + $0x164] sm:$0xf]  ;;  %v4357_v33 = vor.u32 %v5662_v27, %v4354_v4  ;;  %v592_v27 = vperm.slane %v590_v26, 0 }
 0x118   : > { %v4425_v54 = vor.u32 %v5683_v34, %v4424_v45  ;;  %v4237_v57 = vor.u32 %v5632_v35, %v4234_v48  ;;  %v5608_v38 = vld [vmem:[%s9001_s1 + $0xa4] sm:$0xf]  ;;  %v4304_v34 = vld [vmem:[%s9001_s1 + $0x1f0] sm:$0xf]  ;;  %v5653_v35 = vld [vmem:[%s9001_s1 + $0x204] sm:$0xf0] }
 0x119   : > { %v483_v41 = vmul.f32 %v479_v36, %v476_v39  ;;  %v484_v42 = vmul.f32 %v480_v37, %v477_v40  ;;  %v4328_v36 = vld [vmem:[%s9001_s1 + $0x220] sm:$0xf]  ;;  %v5659_v37 = vld [vmem:[%s9001_s1 + $0x234] sm:$0xf0]  ;;  %v4330_v39 = vld [vmem:[%s9001_s1 + $0x238] sm:$0xf0]  ;;  %v4137_v40 = vor.u32 %v5611_v31, %v4136_v30 }
 0x11a   : > { %v5650_v48 = vld [vmem:[%s9001_s1 + $0x1f4] sm:$0xf]  ;;  %v594_v4 = vperm.slane %v590_v26, 2 }
 0x11b   : > { %v490_v46 = vadd.f32 %v486_v0, %v483_v41  ;;  %v491_v47 = vadd.f32 %v487_v1, %v484_v42  ;;  %v4138_v0 = vld [vmem:[%s9001_s1 + $0xb8] sm:$0xf0]  ;;  %v5656_v1 = vld [vmem:[%s9001_s1 + $0x224] sm:$0xf]  ;;  %v4329_v41 = vor.u32 %v5659_v37, %v4328_v36  ;;  %v4112_v42 = vld [vmem:[%s9001_s1 + $0x70] sm:$0xf] }
 0x11c   : > { %v4141_v44 = vor.u32 %v5608_v38, %v4138_v0  ;;  %v4333_v45 = vor.u32 %v5656_v1, %v4330_v39  ;;  %v4113_v50 = vor.u32 %v5605_v43, %v4112_v42  ;;  %v595_v37 = vperm.slane %v590_v26, 3 }
 0x11d   : > { %v6576_v51 = vpack.c.bf16 %v490_v46, %v490_v46  ;;  %v6578_v52 = vpack.c.bf16 %v491_v47, %v491_v47  ;;  %v5602_v46 = vld [vmem:[%s9001_s1 + $0x74] sm:$0xf]  ;;  %v4114_v47 = vld [vmem:[%s9001_s1 + $0x88] sm:$0xf0] }
 0x11e   : > { %v4117_v56 = vor.u32 %v5602_v46, %v4114_v47  ;;  %v596_v46 = vperm.slane %v590_v26, 4 }
 0x11f   : > { %1092 = vmatmul.bf16.vlgmr.msra.gmra.mxu0 %v6576_v51  ;;  %1105 = vmatmul.bf16.vlgmr.msra.gmra.mxu1 %v6578_v52 }
 0x120   : > { %1118 = vmatmul.bf16.vlgmr.msra.gmra.mxu2 %v6576_v51  ;;  %1131 = vmatmul.bf16.vlgmr.msra.gmra.mxu3 %v6578_v52 }
 0x121   : > { %1188 = vmatpush.bf16.msra.mxu0 %v4233_v53  ;;  %1201 = vmatpush.bf16.msra.mxu1 %v4425_v54  ;;  %v4305_v53 = vor.u32 %v5653_v35, %v4304_v34  ;;  %v4088_v54 = vld [vmem:[%s9001_s1 + $0x40] sm:$0xf] }
 0x122   : > { %1214 = vmatpush.bf16.msra.mxu2 %v4237_v57  ;;  %1227 = vmatpush.bf16.msra.mxu3 %v4429_v58  ;;  %v4309_v57 = vor.u32 %v5650_v48, %v4306_v49  ;;  %v4280_v58 = vld [vmem:[%s9001_s1 + $0x1c0] sm:$0xf]  ;;  %v4089_v2 = vor.u32 %v5599_v55, %v4088_v54 }
 0x125   : > { %1189 = vmatpush.bf16.msra.mxu0 %v4209_v3  ;;  %1202 = vmatpush.bf16.msra.mxu1 %v4401_v5  ;;  %v4281_v3 = vor.u32 %v5647_v59, %v4280_v58  ;;  %v4064_v5 = vld [vmem:[%s9001_s1 + $0x10] sm:$0xf] }
 0x126   : > { %1215 = vmatpush.bf16.msra.mxu2 %v4213_v8  ;;  %1228 = vmatpush.bf16.msra.mxu3 %v4405_v9  ;;  %v4285_v8 = vor.u32 %v5644_v62, %v4282_v63  ;;  %v4256_v9 = vld [vmem:[%s9001_s1 + $0x190] sm:$0xf]  ;;  %v4065_v15 = vor.u32 %v5593_v6, %v4064_v5 }
 0x129   : > { %1190 = vmatpush.bf16.msra.mxu0 %v4185_v16  ;;  %1203 = vmatpush.bf16.msra.mxu1 %v4377_v17  ;;  %v4257_v16 = vor.u32 %v5641_v10, %v4256_v9  ;;  %v4069_v17 = vor.u32 %v5590_v11, %v4066_v12  ;;  %v1240_v10 = vlaneseq }
 0x12a   : > { %1216 = vmatpush.bf16.msra.mxu2 %v4189_v20  ;;  %1229 = vmatpush.bf16.msra.mxu3 %v4381_v21 }
 0x12b   : > { %v1241_v11 = vshrl.u32 %v1240_v10, 7  ;;  %v1243_v12 = vand.u32 127, %v1240_v10  ;;  %v4532_v10 = vld [vmem:[%s9005_s5 + $0xc8] sm:$0xf0] }
 0x12d   : > { %1191 = vmatpush.bf16.msra.mxu0 %v4161_v28  ;;  %1204 = vmatpush.bf16.msra.mxu1 %v4353_v29  ;;  %vm1244_vm5 = vcmp.le.s32.totalorder %v1243_v12, %v1241_v11  ;;  %vm1245_vm6 = vcmp.lt.s32.totalorder %v1243_v12, 5  ;;  %v4466_v11 = vld [vmem:[%s9005_s5 + $0x40] sm:$0xf]  ;;  %v5693_v12 = vld [vmem:[%s9005_s5 + $0x44] sm:$0xf0] }
 0x12e   : > { %1217 = vmatpush.bf16.msra.mxu2 %v4165_v32  ;;  %1230 = vmatpush.bf16.msra.mxu3 %v4357_v33  ;;  %v593_v33 = vperm.slane %v590_v26, 1  ;;  %vm1246_vm7 = vmor %vm1244_vm5, %vm1245_vm6 }
 0x12f   : > { %1144 = vmatmul.bf16.vlgmr.msrb.gmra.mxu0 %v6576_v51  ;;  %1157 = vmatmul.bf16.vlgmr.msrb.gmra.mxu1 %v6578_v52 }
 0x130   : > { %1170 = vmatmul.bf16.vlgmr.msrb.gmra.mxu2 %v6576_v51  ;;  %1183 = vmatmul.bf16.vlgmr.msrb.gmra.mxu3 %v6578_v52 }
 0x131   : > { %1192 = vmatpush.bf16.msra.mxu0 %v4137_v40  ;;  %1205 = vmatpush.bf16.msra.mxu1 %v4329_v41 }
 0x132   : > { %1218 = vmatpush.bf16.msra.mxu2 %v4141_v44  ;;  %1231 = vmatpush.bf16.msra.mxu3 %v4333_v45 }
 0x135   : > { %1193 = vmatpush.bf16.msra.mxu0 %v4113_v50  ;;  %1206 = vmatpush.bf16.msra.mxu1 %v4305_v53 }
 0x136   : > { %1219 = vmatpush.bf16.msra.mxu2 %v4117_v56  ;;  %1232 = vmatpush.bf16.msra.mxu3 %v4309_v57  ;;  %v597_v57 = vperm.slane %v590_v26, 5 }
 0x139   : > { %1194 = vmatpush.bf16.msra.mxu0 %v4089_v2  ;;  %1207 = vmatpush.bf16.msra.mxu1 %v4281_v3 }
 0x13a   : > { %1220 = vmatpush.bf16.msra.mxu2 %v4093_v7  ;;  %1233 = vmatpush.bf16.msra.mxu3 %v4285_v8 }
 0x13d   : > { %1195 = vmatpush.bf16.msra.mxu0 %v4065_v15  ;;  %1208 = vmatpush.bf16.msra.mxu1 %v4257_v16 }
 0x13e   : > { %1221 = vmatpush.bf16.msra.mxu2 %v4069_v17  ;;  %1234 = vmatpush.bf16.msra.mxu3 %v4261_v18 }
 0x140   : > { %1196 = vmatmul.bf16.vlgmr.msra.gmra.mxu0 %v6576_v51  ;;  %1209 = vmatmul.bf16.vlgmr.msra.gmra.mxu1 %v6578_v52 }
 0x141   : > { %1222 = vmatmul.bf16.vlgmr.msra.gmra.mxu2 %v6576_v51  ;;  %1235 = vmatmul.bf16.vlgmr.msra.gmra.mxu3 %v6578_v52 }
 0x19c   : > { %v1093_v19 = vpop.f32.mrf.mxu0  ;;  %v1106_v20 = vpop.f32.mrf.mxu1 }
 0x19d   : > { %v1094_v30 = vadd.f32 %v1093_v19, %v592_v27 }
 0x19f   : > { %v1107_v36 = vadd.f32 %v1106_v20, %v1094_v30  ;;  %v4554_v30 = vld [vmem:[%s9005_s5 + $0xf0] sm:$0xf] }
 0x1a1   : > { %v1247_v40 = vmul.f32 0.088388346, %v1107_v36  ;;  %v5699_v36 = vld [vmem:[%s9005_s5 + $0x74] sm:$0xf0] }
 0x1a3   : > { %v1119_v21 = vpop.f32.mrf.mxu2  ;;  %v1132_v23 = vpop.f32.mrf.mxu3  ;;  %v1248_v34 = vpack.c.bf16 %v1247_v40, %v1247_v40  ;;  %v4546_v40 = vld [vmem:[%s9005_s5 + $0xe0] sm:$0xf] }
 0x1a4   : > { %v1095_v24 = vpop.f32.mrf.mxu0  ;;  %v1108_v25 = vpop.f32.mrf.mxu1  ;;  %v1120_v0 = vadd.f32 %v1119_v21, %v593_v33  ;;  %v4556_v33 = vld [vmem:[%s9005_s5 + $0xf8] sm:$0xf0] }
 0x1a6   : > { %v1133_v45 = vadd.f32 %v1132_v23, %v1120_v0 }
 0x1a8   : > { %v1311_v47 = vmul.f32 0.088388346, %v1133_v45  ;;  %v4548_v45 = vld [vmem:[%s9005_s5 + $0xe8] sm:$0xf0] }
 0x1aa   : > { %v1312_v55 = vpack.c.bf16 %v1311_v47, %v1311_v47  ;;  %v5696_v47 = vld [vmem:[%s9005_s5 + $0x64] sm:$0xf] }
 0x1ab   : > { %v1121_v28 = vpop.f32.mrf.mxu2  ;;  %v1134_v29 = vpop.f32.mrf.mxu3 }
 0x1ac   : > { %v1145_v31 = vpop.f32.mrf.mxu0  ;;  %v1158_v32 = vpop.f32.mrf.mxu1 }
 0x1ad   : > { %v1146_v51 = vadd.f32 %v1145_v31, %v594_v4  ;;  %v5715_v31 = vld [vmem:[%s9005_s5 + $0xf4] sm:$0xf0] }
 0x1af   : > { %v1159_v52 = vadd.f32 %v1158_v32, %v1146_v51  ;;  %v5714_v32 = vld [vmem:[%s9005_s5 + $0xf4] sm:$0xf]  ;;  %v4555_v51 = vor.u32 %v5715_v31, %v4554_v30  ;;  %v5691_v30 = vld [vmem:[%s9005_s5 + $0x34] sm:$0xf0] }
 0x1b1   : > { %v1249_v38 = vpack.c.bf16 %v1159_v52, %v1159_v52  ;;  %v4490_v52 = vld [vmem:[%s9005_s5 + $0x70] sm:$0xf] }
 0x1b2   : > { %v4491_v0 = vor.u32 %v5699_v36, %v4490_v52 }
 0x1b3   : > { %v1171_v1 = vpop.f32.mrf.mxu2  ;;  %v1184_v39 = vpop.f32.mrf.mxu3  ;;  %1258 = vmatpush.bf16.xpose.msrb.mxu0 %v1249_v38  ;;  %v4559_v38 = vor.u32 %v5714_v32, %v4556_v33  ;;  %v5690_v32 = vld [vmem:[%s9005_s5 + $0x34] sm:$0xf] }
 0x1b4   : > { %v1172_v41 = vadd.f32 %v1171_v1, %v595_v37  ;;  %v1147_v42 = vpop.f32.mrf.mxu0  ;;  %v1160_v43 = vpop.f32.mrf.mxu1  ;;  %v5698_v1 = vld [vmem:[%s9005_s5 + $0x74] sm:$0xf] }
 0x1b6   : > { %v1185_v44 = vadd.f32 %v1184_v39, %v1172_v41  ;;  %v4492_v39 = vld [vmem:[%s9005_s5 + $0x78] sm:$0xf0]  ;;  %v5713_v41 = vld [vmem:[%s9005_s5 + $0xe4] sm:$0xf0] }
 0x1b7   : > { %v4495_v42 = vor.u32 %v5698_v1, %v4492_v39  ;;  %v4547_v43 = vor.u32 %v5713_v41, %v4546_v40  ;;  %v5689_v40 = vld [vmem:[%s9005_s5 + $0x24] sm:$0xf0] }
 0x1b8   : > { %v1313_v35 = vpack.c.bf16 %v1185_v44, %v1185_v44  ;;  %v5712_v44 = vld [vmem:[%s9005_s5 + $0xe4] sm:$0xf] }
 0x1ba   : > { %1322 = vmatpush.bf16.xpose.msrb.mxu2 %v1313_v35  ;;  %1259 = vmatmul.bf16.vlgmr.msrb.gmra.mxu0 %v1248_v34  ;;  %v4482_v34 = vld [vmem:[%s9005_s5 + $0x60] sm:$0xf]  ;;  %v4551_v35 = vor.u32 %v5712_v44, %v4548_v45  ;;  %v5704_v44 = vld [vmem:[%s9005_s5 + $0xa4] sm:$0xf]  ;;  %v4516_v45 = vld [vmem:[%s9005_s5 + $0xa8] sm:$0xf0] }
 0x1bb   : > { %v1173_v48 = vpop.f32.mrf.mxu2  ;;  %v1186_v49 = vpop.f32.mrf.mxu3  ;;  %1567 = vmatpush.bf16.msra.mxu0 %v4491_v0  ;;  %v5705_v0 = vld [vmem:[%s9005_s5 + $0xa4] sm:$0xf0] }
 0x1bc   : > { %v4484_v49 = vld [vmem:[%s9005_s5 + $0x68] sm:$0xf0] }
 0x1bd   : > { %v1197_v50 = vpop.f32.mrf.mxu0  ;;  %v1210_v53 = vpop.f32.mrf.mxu1 }
 0x1be   : > { %v1198_v54 = vadd.f32 %v1197_v50, %v596_v46  ;;  %v5697_v46 = vld [vmem:[%s9005_s5 + $0x64] sm:$0xf0]  ;;  %v4538_v50 = vld [vmem:[%s9005_s5 + $0xd0] sm:$0xf] }
 0x1bf   : > { %v4483_v48 = vor.u32 %v5697_v46, %v4482_v34 }
 0x1c0   : > { %v1211_v56 = vadd.f32 %v1210_v53, %v1198_v54  ;;  %v5711_v53 = vld [vmem:[%s9005_s5 + $0xd4] sm:$0xf0]  ;;  %v4487_v54 = vor.u32 %v5696_v47, %v4484_v49  ;;  %v5688_v47 = vld [vmem:[%s9005_s5 + $0x24] sm:$0xf] }
 0x1c1   : > { %1323 = vmatmul.bf16.vlgmr.msrb.gmra.mxu2 %v1312_v55  ;;  %v4539_v55 = vor.u32 %v5711_v53, %v4538_v50  ;;  %1568 = vmatpush.bf16.msra.mxu0 %v4483_v48  ;;  %v4452_v48 = vld [vmem:[%s9005_s5 + $0x28] sm:$0xf0] }
 0x1c2   : > { %v1250_v58 = vpack.c.bf16 %v1211_v56, %v1211_v56  ;;  %1593 = vmatpush.bf16.msra.mxu2 %v4495_v42  ;;  %v5710_v56 = vld [vmem:[%s9005_s5 + $0xd4] sm:$0xf] }
 0x1c4   : > { %v1296_v59 = vsel %vm1294_vm4, %v1250_v58, 0  ;;  %v1223_v60 = vpop.f32.mrf.mxu2  ;;  %v1236_v61 = vpop.f32.mrf.mxu3  ;;  %v4474_v58 = vld [vmem:[%s9005_s5 + $0x50] sm:$0xf] }
 0x1c5   : > { %v1224_v62 = vadd.f32 %v1223_v60, %v597_v57  ;;  %v1199_v63 = vpop.f32.mrf.mxu0  ;;  %v1212_v2 = vpop.f32.mrf.mxu1  ;;  %1305 = vmatpush.bf16.msrb.mxu1 %v1296_v59  ;;  %v4540_v57 = vld [vmem:[%s9005_s5 + $0xd8] sm:$0xf0]  ;;  %v5695_v60 = vld [vmem:[%s9005_s5 + $0x54] sm:$0xf0] }
 0x1c6   : > { %v4543_v59 = vor.u32 %v5710_v56, %v4540_v57  ;;  %v4475_v2 = vor.u32 %v5695_v60, %v4474_v58  ;;  %1594 = vmatpush.bf16.msra.mxu2 %v4487_v54  ;;  %v4506_v54 = vld [vmem:[%s9005_s5 + $0x90] sm:$0xf]  ;;  %v4519_v57 = vor.u32 %v5704_v44, %v4516_v45  ;;  %v6029_v45 = vld [vmem:[%s6126_s30 + $0x8] sm:$0xff] }
 0x1c7   : > { %v1237_v3 = vadd.f32 %v1236_v61, %v1224_v62  ;;  %v5694_v61 = vld [vmem:[%s9005_s5 + $0x54] sm:$0xf]  ;;  %v4476_v62 = vld [vmem:[%s9005_s5 + $0x58] sm:$0xf0]  ;;  %v4442_v58 = vld [vmem:[%s9005_s5 + $0x10] sm:$0xf] }
 0x1c8   : > { %1569 = vmatpush.bf16.msra.mxu0 %v4475_v2 }
 0x1c9   : > { %v1314_v5 = vpack.c.bf16 %v1237_v3, %v1237_v3  ;;  %1580 = vmatpush.bf16.msra.mxu1 %v4555_v51  ;;  %v4530_v3 = vld [vmem:[%s9005_s5 + $0xc0] sm:$0xf]  ;;  %v4460_v51 = vld [vmem:[%s9005_s5 + $0x38] sm:$0xf0] }
 0x1cb   : > { %v1358_v6 = vsel %vm1294_vm4, %v1314_v5, 0  ;;  %v5709_v5 = vld [vmem:[%s9005_s5 + $0xc4] sm:$0xf0] }
 0x1cc   : > { %v1225_v7 = vpop.f32.mrf.mxu2  ;;  %v1238_v8 = vpop.f32.mrf.mxu3  ;;  %1367 = vmatpush.bf16.msrb.mxu3 %v1358_v6  ;;  %v5708_v6 = vld [vmem:[%s9005_s5 + $0xc4] sm:$0xf] }
 0x1cd   : > { %1581 = vmatpush.bf16.msra.mxu1 %v4547_v43  ;;  %v4463_v43 = vor.u32 %v5690_v32, %v4460_v51 }
 0x1d0   : > { %1606 = vmatpush.bf16.msra.mxu3 %v4559_v38  ;;  %v4514_v38 = vld [vmem:[%s9005_s5 + $0xa0] sm:$0xf] }
 0x1d1   : > { %1582 = vmatpush.bf16.msra.mxu1 %v4539_v55  ;;  %v4515_v46 = vor.u32 %v5705_v0, %v4514_v38  ;;  %v5703_v55 = vld [vmem:[%s9005_s5 + $0x94] sm:$0xf0]  ;;  %v1621_v38 = vld [vmem:[%s9006_s6] sm:$0x3] }
 0x1d2   : > { %v4507_v2 = vor.u32 %v5703_v55, %v4506_v54  ;;  %v5042_v54 = vld [vmem:[%s9007_s7 + $0x3c0] sm:$0xf] }
 0x1d4   : > { %1607 = vmatpush.bf16.msra.mxu3 %v4551_v35 }
 0x1d8   : > { %1608 = vmatpush.bf16.msra.mxu3 %v4543_v59 }
 0x237   : > { %v1260_v9 = vpop.f32.mrf.mxu0 }
 0x238   : > { %v1264_v17 = vsel %vm1246_vm7, %v1260_v9, -1e+30  ;;  %v4479_v9 = vor.u32 %v5694_v61, %v4476_v62  ;;  %v4455_v61 = vor.u32 %v5688_v47, %v4452_v48  ;;  %v5702_v62 = vld [vmem:[%s9005_s5 + $0x94] sm:$0xf] }
 0x239   : > { %v1266_v19 = vsel %vm1265_vm8, %v1264_v17, -inf }
 0x23a   : > { %1595 = vmatpush.bf16.msra.mxu2 %v4479_v9 }
 0x23f   : > { %v1262_v13 = vpop.f32.mrf.mxu0 }
 0x244   : > { %v1324_v14 = vpop.f32.mrf.mxu2 }
 0x245   : > { %v1328_v15 = vsel %vm1246_vm7, %v1324_v14, -1e+30  ;;  %v4531_v14 = vor.u32 %v5709_v5, %v4530_v3  ;;  %v5686_v3 = vld [vmem:[%s9005_s5 + $0x14] sm:$0xf]  ;;  %v4444_v5 = vld [vmem:[%s9005_s5 + $0x18] sm:$0xf0] }
 0x246   : > { %v1329_v16 = vsel %vm1265_vm8, %v1328_v15, -inf }
 0x247   : > { %1330 = vmax.xlane.f32.xlu1 %v1329_v16  ;;  %1583 = vmatpush.bf16.msra.mxu1 %v4531_v14 }
 0x24c   : > { %v1326_v18 = vpop.f32.mrf.mxu2 }
 0x24d   : > { %v4467_v18 = vor.u32 %v5693_v12, %v4466_v11  ;;  %v4447_v12 = vor.u32 %v5686_v3, %v4444_v5  ;;  %v5010_v3 = vld [vmem:[%s9007_s7 + $0x380] sm:$0xf] }
 0x24e   : > { %v5832_v5 = vld [vmem:[%s9007_s7 + $0x39c] sm:$0xf0] }
 0x24f   : > { %1267 = vmax.xlane.f32.xlu1 %v1266_v19  ;;  %v4468_v19 = vld [vmem:[%s9005_s5 + $0x48] sm:$0xf0]  ;;  %1570 = vmatpush.bf16.msra.mxu0 %v4467_v18 }
 0x2ba   : > { %v1331_v20 = vpop.xlane.xlu1 %1330 }
 0x2bb   : > { %v1332_v21 = vsub.f32 %v1328_v15, %v1331_v20  ;;  %v5692_v15 = vld [vmem:[%s9005_s5 + $0x44] sm:$0xf]  ;;  %v4522_v20 = vld [vmem:[%s9005_s5 + $0xb0] sm:$0xf] }
 0x2bd   : > { %v1333_v23 = vmul.f32 1.442695, %v1332_v21 }
 0x2bf   : > { %5986 = vpow2.f32 %v1333_v23  ;;  %v5707_v23 = vld [vmem:[%s9005_s5 + $0xb4] sm:$0xf0] }
 0x2c0   : > { %v4523_v31 = vor.u32 %v5707_v23, %v4522_v20  ;;  %v4434_v20 = vld [vmem:[%s9005_s5] sm:$0xf]  ;;  %v5684_v23 = vld [vmem:[%s9005_s5 + $0x4] sm:$0xf] }
 0x2c2   : > { %v1268_v24 = vpop.xlane.xlu1 %1267  ;;  %1584 = vmatpush.bf16.msra.mxu1 %v4523_v31 }
 0x2c3   : > { %v1269_v25 = vsub.f32 %v1264_v17, %v1268_v24  ;;  %v4535_v17 = vor.u32 %v5708_v6, %v4532_v10  ;;  %v5706_v24 = vld [vmem:[%s9005_s5 + $0xb4] sm:$0xf] }
 0x2c5   : > { %v6765_v26 = vpop.eup %5986  ;;  %v1270_v27 = vmul.f32 1.442695, %v1269_v25  ;;  %1609 = vmatpush.bf16.msra.mxu3 %v4535_v17  ;;  %v5700_v17 = vld [vmem:[%s9005_s5 + $0x84] sm:$0xf] }
 0x2c6   : > { %v1335_v4 = vsel %vm1265_vm8, %v6765_v26, 0.0  ;;  %1585 = vmatpush.bf16.msra.mxu1 %v4515_v46 }
 0x2c7   : > { %5988 = vpow2.f32 %v1270_v27  ;;  %1336 = vadd.xlane.f32.xlu2 %v1335_v4  ;;  %v4471_v27 = vor.u32 %v5692_v15, %v4468_v19  ;;  %v4524_v4 = vld [vmem:[%s9005_s5 + $0xb8] sm:$0xf0]  ;;  %v4498_v15 = vld [vmem:[%s9005_s5 + $0x80] sm:$0xf] }
 0x2c8   : > { %v4527_v52 = vor.u32 %v5706_v24, %v4524_v4 }
 0x2c9   : > { %1596 = vmatpush.bf16.msra.mxu2 %v4471_v27 }
 0x2ca   : > { %1610 = vmatpush.bf16.msra.mxu3 %v4527_v52  ;;  %1586 = vmatpush.bf16.msra.mxu1 %v4507_v2  ;;  %v5768_v2 = vld [vmem:[%s9007_s7 + $0x19c] sm:$0xf0] }
 0x2cd   : > { %v6769_v28 = vpop.eup %5988  ;;  %1597 = vmatpush.bf16.msra.mxu2 %v4463_v43  ;;  %v1624_v43 = vperm.slane %v1621_v38, 1 }
 0x2ce   : > { %v1272_v29 = vsel %vm1265_vm8, %v6769_v28, 0.0  ;;  %1611 = vmatpush.bf16.msra.mxu3 %v4519_v57  ;;  %v5772_v57 = vld [vmem:[%s9007_s7 + $0x1c4] sm:$0xf] }
 0x2cf   : > { %1273 = vadd.xlane.f32.xlu2 %v1272_v29  ;;  %v4458_v29 = vld [vmem:[%s9005_s5 + $0x30] sm:$0xf] }
 0x2d0   : > { %v4459_v36 = vor.u32 %v5691_v30, %v4458_v29 }
 0x2d1   : > { %1598 = vmatpush.bf16.msra.mxu2 %v4455_v61  ;;  %v5044_v61 = vld [vmem:[%s9007_s7 + $0x3e0] sm:$0xf0] }
 0x2d2   : > { %1571 = vmatpush.bf16.msra.mxu0 %v4459_v36 }
 0x2d5   : > { %1599 = vmatpush.bf16.msra.mxu2 %v4447_v12 }
 0x33a   : > { %v6791_v37 = vpop.xlane.xlu2 %1336 }
 0x33b   : > { %5990 = vrcp.f32 %v6791_v37  ;;  %v1347_v13 = vand.u32 2147483647, %v6791_v37  ;;  %v1349_v21 = vand.u32 2147483648, %v6791_v37  ;;  %vm1343_vm10 = vweird.f32 %v6791_v37 }
 0x33d   : > { %v1350_v39 = vor.u32 1.1754944e-38, %v1349_v21  ;;  %vm1348_vm12 = vcmp.eq.f32.partialorder %v1347_v13, 8.507059e+37  ;;  %v5685_v21 = vld [vmem:[%s9005_s5 + $0x4] sm:$0xf0] }
 0x33e   : > { %v4435_v24 = vor.u32 %v5685_v21, %v4434_v20  ;;  %v5820_v20 = vld [vmem:[%s9007_s7 + $0x344] sm:$0xf] }
 0x33f   : > { %v4980_v21 = vld [vmem:[%s9007_s7 + $0x360] sm:$0xf0] }
 0x341   : > { %v5991_v63 = vpop.eup %5990 }
 0x342   : > { %v1339_v7 = vmul.f32 %v5991_v63, %v6791_v37  ;;  %v6858_v8 = vpop.xlane.xlu2 %1273  ;;  %vm1344_vm9 = vweird.f32 %v5991_v63  ;;  %v4450_v37 = vld [vmem:[%s9005_s5 + $0x20] sm:$0xf] }
 0x343   : > { %5992 = vrcp.f32 %v6858_v8  ;;  %vm1345_vm11 = vmor %vm1343_vm10, %vm1344_vm9  ;;  %v1284_v35 = vand.u32 2147483647, %v6858_v8  ;;  %v4451_v53 = vor.u32 %v5689_v40, %v4450_v37  ;;  %v1286_v56 = vand.u32 2147483648, %v6858_v8  ;;  %v6028_v37 = vld [vmem:[%s6126_s30] sm:$0xff] }
 0x344   : > { %v1340_v16 = vsub.f32 1.0, %v1339_v7  ;;  %vm1280_vm14 = vweird.f32 %v6858_v8 }
 0x345   : > { %1572 = vmatpush.bf16.msra.mxu0 %v4451_v53  ;;  %v1287_v9 = vor.u32 1.1754944e-38, %v1286_v56  ;;  %vm1285_vm0 = vcmp.eq.f32.partialorder %v1284_v35, 8.507059e+37  ;;  %v5776_v53 = vld [vmem:[%s9007_s7 + $0x1dc] sm:$0xf0] }
 0x346   : > { %v1341_v25 = vmul.f32 %v5991_v63, %v1340_v16  ;;  %v5701_v16 = vld [vmem:[%s9005_s5 + $0x84] sm:$0xf0]  ;;  %v5840_v56 = vld [vmem:[%s9007_s7 + $0x3dc] sm:$0xf0] }
 0x347   : > { %v4499_v18 = vor.u32 %v5701_v16, %v4498_v15  ;;  %v4978_v16 = vld [vmem:[%s9007_s7 + $0x340] sm:$0xf] }
 0x348   : > { %v1342_v33 = vadd.f32 %v5991_v63, %v1341_v25  ;;  %v4436_v25 = vld [vmem:[%s9005_s5 + $0x8] sm:$0xf0] }
 0x349   : > { %v5993_v1 = vpop.eup %5992  ;;  %1587 = vmatpush.bf16.msra.mxu1 %v4499_v18  ;;  %v4439_v27 = vor.u32 %v5684_v23, %v4436_v25  ;;  %v5756_v18 = vld [vmem:[%s9007_s7 + $0x144] sm:$0xf]  ;;  %v4690_v25 = vld [vmem:[%s9007_s7 + $0x100] sm:$0xf] }
 0x34a   : > { %v1346_v41 = vsel %vm1345_vm11, %v5991_v63, %v1342_v33  ;;  %v1276_v42 = vmul.f32 %v5993_v1, %v6858_v8  ;;  %vm1281_vm13 = vweird.f32 %v5993_v1  ;;  %v4508_v63 = vld [vmem:[%s9005_s5 + $0x98] sm:$0xf0] }
 0x34b   : > { %v1351_v34 = vsel %vm1348_vm12, %v1350_v39, %v1346_v41  ;;  %vm1282_vm15 = vmor %vm1280_vm14, %vm1281_vm13  ;;  %v4511_v10 = vor.u32 %v5702_v62, %v4508_v63  ;;  %1600 = vmatpush.bf16.msra.mxu2 %v4439_v27  ;;  %v1623_v41 = vperm.slane %v1621_v38, 0  ;;  %v4754_v62 = vld [vmem:[%s9007_s7 + $0x180] sm:$0xf] }
 0x34c   : > { %v1352_v49 = vmul.f32 %v6765_v26, %v1351_v34  ;;  %v1277_v50 = vsub.f32 1.0, %v1276_v42  ;;  %v5687_v26 = vld [vmem:[%s9005_s5 + $0x14] sm:$0xf0]  ;;  %v5752_v27 = vld [vmem:[%s9007_s7 + $0x11c] sm:$0xf0] }
 0x34d   : > { %v4443_v7 = vor.u32 %v5687_v26, %v4442_v58  ;;  %1612 = vmatpush.bf16.msra.mxu3 %v4511_v10  ;;  %v4788_v58 = vld [vmem:[%s9007_s7 + $0x1e0] sm:$0xf0]  ;;  %v5043_v26 = vor.u32 %v5840_v56, %v5042_v54  ;;  %v5800_v54 = vld [vmem:[%s9007_s7 + $0x29c] sm:$0xf0] }
 0x34e   : > { %v1278_v59 = vmul.f32 %v5993_v1, %v1277_v50  ;;  %v1353_v60 = vpack.c.bf16 %v1352_v49, %v1352_v49  ;;  %v4786_v50 = vld [vmem:[%s9007_s7 + $0x1c0] sm:$0xf]  ;;  %v4756_v10 = vld [vmem:[%s9007_s7 + $0x1a0] sm:$0xf0] }
 0x34f   : > { %1573 = vmatpush.bf16.msra.mxu0 %v4443_v7  ;;  %v4787_v55 = vor.u32 %v5776_v53, %v4786_v50  ;;  %v5011_v7 = vor.u32 %v5832_v5, %v5010_v3  ;;  %v4882_v50 = vld [vmem:[%s9007_s7 + $0x280] sm:$0xf]  ;;  %v4628_v56 = vld [vmem:[%s9007_s7 + $0xa0] sm:$0xf0] }
 0x350   : > { %v1279_v6 = vadd.f32 %v5993_v1, %v1278_v59  ;;  %4431 = vmatmul.msk.bf16.vlgmr.msrb.gmra.mxu3 %vm1265_vm8, %v1353_v60  ;;  %v4791_v59 = vor.u32 %v5772_v57, %v4788_v58  ;;  %v5836_v60 = vld [vmem:[%s9007_s7 + $0x3c4] sm:$0xf]  ;;  %v5792_v3 = vld [vmem:[%s9007_s7 + $0x25c] sm:$0xf0] }
 0x351   : > { %v5047_v63 = vor.u32 %v5836_v60, %v5044_v61  ;;  %v5796_v57 = vld [vmem:[%s9007_s7 + $0x284] sm:$0xf]  ;;  %v4594_v61 = vld [vmem:[%s9007_s7 + $0x40] sm:$0xf] }
 0x352   : > { %v1283_v11 = vsel %vm1282_vm15, %v5993_v1, %v1279_v6  ;;  %2484 = vmatpush.bf16.msrb.mxu2 %v4791_v59  ;;  %v4755_v6 = vor.u32 %v5768_v2, %v4754_v62  ;;  %v4884_v58 = vld [vmem:[%s9007_s7 + $0x2a0] sm:$0xf0]  ;;  %v4883_v59 = vor.u32 %v5800_v54, %v4882_v50  ;;  %v5728_v62 = vld [vmem:[%s9007_s7 + $0x5c] sm:$0xf0]  ;;  %v4764_v50 = vld [vmem:[%s9007_s7 + $0x1a8] sm:$0xf0] }
 0x353   : > { %v1288_v13 = vsel %vm1285_vm0, %v1287_v9, %v1283_v11  ;;  %1574 = vmatpush.bf16.msra.mxu0 %v4435_v24  ;;  %v5764_v9 = vld [vmem:[%s9007_s7 + $0x184] sm:$0xf]  ;;  %v4887_v2 = vor.u32 %v5796_v57, %v4884_v58  ;;  %v5020_v54 = vld [vmem:[%s9007_s7 + $0x3a8] sm:$0xf0]  ;;  %v4730_v57 = vld [vmem:[%s9007_s7 + $0x148] sm:$0xf] }
 0x354   : > { %v1289_v14 = vmul.f32 %v6769_v28, %v1288_v13  ;;  %v4500_v28 = vld [vmem:[%s9005_s5 + $0x88] sm:$0xf0]  ;;  %v5828_v11 = vld [vmem:[%s9007_s7 + $0x384] sm:$0xf]  ;;  %v4759_v12 = vor.u32 %v5764_v9, %v4756_v10  ;;  %v5761_v58 = vld [vmem:[%s9007_s7 + $0x164] sm:$0xf0] }
 0x355   : > { %v4503_v19 = vor.u32 %v5700_v17, %v4500_v28  ;;  %v5012_v13 = vld [vmem:[%s9007_s7 + $0x3a0] sm:$0xf0]  ;;  %v5824_v17 = vld [vmem:[%s9007_s7 + $0x35c] sm:$0xf0] }
 0x356   : > { %v1290_v8 = vpack.c.bf16 %v1289_v14, %v1289_v14  ;;  %v4722_v14 = vld [vmem:[%s9007_s7 + $0x140] sm:$0xf]  ;;  %v5015_v15 = vor.u32 %v5828_v11, %v5012_v13  ;;  %2485 = vmatpush.bf16.msrb.mxu2 %v4759_v12  ;;  %v4979_v23 = vor.u32 %v5824_v17, %v4978_v16  ;;  %v5724_v5 = vld [vmem:[%s9007_s7 + $0x44] sm:$0xf]  ;;  %v4595_v11 = vor.u32 %v5728_v62, %v4594_v61  ;;  %v5757_v61 = vld [vmem:[%s9007_s7 + $0x14c] sm:$0xf] }
 0x357   : > { %1613 = vmatpush.bf16.msra.mxu3 %v4503_v19  ;;  %2458 = vmatpush.bf16.msrb.mxu0 %v4787_v55  ;;  %v4724_v19 = vld [vmem:[%s9007_s7 + $0x160] sm:$0xf0]  ;;  %v4732_v62 = vld [vmem:[%s9007_s7 + $0x168] sm:$0xf0] }
 0x358   : > { %4430 = vmatmul.msk.bf16.vlgmr.msrb.gmra.mxu1 %vm1265_vm8, %v1290_v8  ;;  %v5760_v8 = vld [vmem:[%s9007_s7 + $0x15c] sm:$0xf0]  ;;  %v4727_v24 = vor.u32 %v5756_v18, %v4724_v19  ;;  %v5732_v55 = vld [vmem:[%s9007_s7 + $0x84] sm:$0xf] }
 0x359   : > { %2471 = vmatpush.bf16.msrb.mxu1 %v5043_v26  ;;  %v4723_v28 = vor.u32 %v5760_v8, %v4722_v14  ;;  %v4631_v60 = vor.u32 %v5732_v55, %v4628_v56  ;;  %v4852_v9 = vld [vmem:[%s9007_s7 + $0x260] sm:$0xf0]  ;;  %v4562_v19 = vld [vmem:[%s9007_s7] sm:$0xf] }
 0x35a   : > { %2486 = vmatpush.bf16.msrb.mxu2 %v4727_v24  ;;  %v5784_v24 = vld [vmem:[%s9007_s7 + $0x21c] sm:$0xf0] }
 0x35b   : > { %2497 = vmatpush.bf16.msrb.mxu3 %v5047_v63  ;;  %2459 = vmatpush.bf16.msrb.mxu0 %v4755_v6  ;;  %v4850_v63 = vld [vmem:[%s9007_s7 + $0x240] sm:$0xf]  ;;  %v4596_v6 = vld [vmem:[%s9007_s7 + $0x60] sm:$0xf0] }
 0x35c   : > { %v4851_v13 = vor.u32 %v5792_v3, %v4850_v63  ;;  %v4599_v14 = vor.u32 %v5724_v5, %v4596_v6  ;;  %v5821_v3 = vld [vmem:[%s9007_s7 + $0x34c] sm:$0xf] }
 0x35d   : > { %2472 = vmatpush.bf16.msrb.mxu1 %v5011_v7  ;;  %v5788_v7 = vld [vmem:[%s9007_s7 + $0x244] sm:$0xf]  ;;  %v4988_v5 = vld [vmem:[%s9007_s7 + $0x368] sm:$0xf0] }
 0x35e   : > { %v4855_v8 = vor.u32 %v5788_v7, %v4852_v9  ;;  %v4991_v6 = vor.u32 %v5821_v3, %v4988_v5  ;;  %v4698_v7 = vld [vmem:[%s9007_s7 + $0x108] sm:$0xf]  ;;  %v5781_v5 = vld [vmem:[%s9007_s7 + $0x20c] sm:$0xf] }
 0x35f   : > { %2498 = vmatpush.bf16.msrb.mxu3 %v5015_v15  ;;  %2460 = vmatpush.bf16.msrb.mxu0 %v4723_v28  ;;  %v5753_v9 = vld [vmem:[%s9007_s7 + $0x124] sm:$0xf0] }
 0x361   : > { %2473 = vmatpush.bf16.msrb.mxu1 %v4979_v23 }
 0x3d3   : > { %v1369_v4 = vpop.f32.mrf.mxu3 }
 0x3d4   : > { %v1374_v29 = vpack.c.bf16 %v1369_v4, %v1369_v4  ;;  %v4946_v4 = vld [vmem:[%s9007_s7 + $0x300] sm:$0xf] }
 0x3d5   : > { %v1307_v30 = vpop.f32.mrf.mxu1 }
 0x3d6   : > { %v1373_v31 = vpack.c.bf16 %v1307_v30, %v1307_v30  ;;  %1588 = vmatmul.bf16.vlgmr.msra.gmra.mxu1 %v1374_v29  ;;  %1614 = vmatmul.bf16.vlgmr.msra.gmra.mxu3 %v1374_v29  ;;  %v4983_v29 = vor.u32 %v5820_v20, %v4980_v21  ;;  %v5816_v30 = vld [vmem:[%s9007_s7 + $0x31c] sm:$0xf0] }
 0x3d7   : > { %v5720_v20 = vld [vmem:[%s9007_s7 + $0x1c] sm:$0xf0] }
 0x3d8   : > { %1575 = vmatmul.bf16.vlgmr.msra.gmra.mxu0 %v1373_v31  ;;  %1601 = vmatmul.bf16.vlgmr.msra.gmra.mxu2 %v1373_v31  ;;  %v5748_v31 = vld [vmem:[%s9007_s7 + $0x104] sm:$0xf]  ;;  %v4818_v21 = vld [vmem:[%s9007_s7 + $0x200] sm:$0xf]  ;;  %v4563_v23 = vor.u32 %v5720_v20, %v4562_v19  ;;  %v4666_v20 = vld [vmem:[%s9007_s7 + $0xc8] sm:$0xf] }
 0x3d9   : > { %2499 = vmatpush.bf16.msrb.mxu3 %v4983_v29 }
 0x3db   : > { %v1371_v32 = vpop.f32.mrf.mxu3 }
 0x3dc   : > { %v4692_v32 = vld [vmem:[%s9007_s7 + $0x120] sm:$0xf0] }
 0x3dd   : > { %v1309_v51 = vpop.f32.mrf.mxu1  ;;  %v4695_v38 = vor.u32 %v5748_v31, %v4692_v32  ;;  %v4820_v31 = vld [vmem:[%s9007_s7 + $0x220] sm:$0xf0]  ;;  %v4794_v32 = vld [vmem:[%s9007_s7 + $0x1c8] sm:$0xf] }
 0x3de   : > { %v5812_v51 = vld [vmem:[%s9007_s7 + $0x304] sm:$0xf] }
 0x3df   : > { %2487 = vmatpush.bf16.msrb.mxu2 %v4695_v38 }
 0x453   : > { %v1589_v33 = vpop.f32.mrf.mxu1 }
 0x455   : > { %v1576_v52 = vpop.f32.mrf.mxu0 }
 0x456   : > { %v1590_v36 = vadd.f32 %v1589_v33, %v1576_v52  ;;  %v4948_v33 = vld [vmem:[%s9007_s7 + $0x320] sm:$0xf0]  ;;  %v4691_v52 = vor.u32 %v5752_v27, %v4690_v25 }
 0x457   : > { %v5716_v25 = vld [vmem:[%s9007_s7 + $0x4] sm:$0xf] }
 0x458   : > { %v1619_v40 = vadd.f32 %v6028_v37, %v1590_v36  ;;  %v4947_v36 = vor.u32 %v5816_v30, %v4946_v4  ;;  %v4951_v37 = vor.u32 %v5812_v51, %v4948_v33  ;;  %2461 = vmatpush.bf16.msrb.mxu0 %v4691_v52  ;;  %v4564_v27 = vld [vmem:[%s9007_s7 + $0x20] sm:$0xf0]  ;;  %v4819_v4 = vor.u32 %v5784_v24, %v4818_v21  ;;  %v5777_v33 = vld [vmem:[%s9007_s7 + $0x1e4] sm:$0xf0] }
 0x459   : > { %v1615_v0 = vpop.f32.mrf.mxu3  ;;  %v4567_v29 = vor.u32 %v5716_v25, %v4564_v27  ;;  %v5780_v30 = vld [vmem:[%s9007_s7 + $0x204] sm:$0xf]  ;;  %v5050_v52 = vld [vmem:[%s9007_s7 + $0x3c8] sm:$0xf]  ;;  %v4795_v38 = vor.u32 %v5777_v33, %v4794_v32  ;;  %v5741_v27 = vld [vmem:[%s9007_s7 + $0xcc] sm:$0xf] }
 0x45a   : > { %v6990_v35 = vadd.f32 %v1623_v41, %v1619_v40  ;;  %v5808_v40 = vld [vmem:[%s9007_s7 + $0x2dc] sm:$0xf0]  ;;  %v5740_v41 = vld [vmem:[%s9007_s7 + $0xc4] sm:$0xf]  ;;  %2474 = vmatpush.bf16.msrb.mxu1 %v4947_v36  ;;  %2500 = vmatpush.bf16.msrb.mxu3 %v4951_v37  ;;  %v4823_v51 = vor.u32 %v5780_v30, %v4820_v31  ;;  %v5841_v36 = vld [vmem:[%s9007_s7 + $0x3e4] sm:$0xf0] }
 0x45b   : > { %v1591_v1 = vpop.f32.mrf.mxu1  ;;  %v1602_v39 = vpop.f32.mrf.mxu2  ;;  %v5837_v37 = vld [vmem:[%s9007_s7 + $0x3cc] sm:$0xf]  ;;  %v5745_v21 = vld [vmem:[%s9007_s7 + $0xe4] sm:$0xf0] }
 0x45c   : > { %v1616_v42 = vadd.f32 %v1615_v0, %v1602_v39  ;;  %v4658_v0 = vld [vmem:[%s9007_s7 + $0xc0] sm:$0xf]  ;;  %v4667_v24 = vor.u32 %v5745_v21, %v4666_v20  ;;  %v5809_v25 = vld [vmem:[%s9007_s7 + $0x2e4] sm:$0xf0]  ;;  %v5805_v31 = vld [vmem:[%s9007_s7 + $0x2cc] sm:$0xf] }
 0x45d   : > { %v1578_v44 = vpop.f32.mrf.mxu0  ;;  %v5744_v1 = vld [vmem:[%s9007_s7 + $0xdc] sm:$0xf0]  ;;  %v4924_v32 = vld [vmem:[%s9007_s7 + $0x2e8] sm:$0xf0]  ;;  %v4634_v33 = vld [vmem:[%s9007_s7 + $0x88] sm:$0xf] }
 0x45e   : > { %v1620_v34 = vadd.f32 %v6029_v45, %v1616_v42  ;;  %v4914_v39 = vld [vmem:[%s9007_s7 + $0x2c0] sm:$0xf]  ;;  %v4660_v42 = vld [vmem:[%s9007_s7 + $0xe0] sm:$0xf0]  ;;  %v4659_v45 = vor.u32 %v5744_v1, %v4658_v0  ;;  %v5051_v0 = vor.u32 %v5841_v36, %v5050_v52  ;;  %v5773_v1 = vld [vmem:[%s9007_s7 + $0x1cc] sm:$0xf] }
 0x45f   : > { %v4916_v44 = vld [vmem:[%s9007_s7 + $0x2e0] sm:$0xf0]  ;;  %v5737_v52 = vld [vmem:[%s9007_s7 + $0xa4] sm:$0xf0] }
 0x460   : > { %v6992_v46 = vadd.f32 %v1624_v43, %v1620_v34  ;;  %v5804_v43 = vld [vmem:[%s9007_s7 + $0x2c4] sm:$0xf]  ;;  %v4915_v34 = vor.u32 %v5808_v40, %v4914_v39  ;;  %2462 = vmatpush.bf16.msrb.mxu0 %v4659_v45  ;;  %v4796_v39 = vld [vmem:[%s9007_s7 + $0x1e8] sm:$0xf0]  ;;  %v4890_v36 = vld [vmem:[%s9007_s7 + $0x288] sm:$0xf] }
 0x461   : > { %v1617_v47 = vpop.f32.mrf.mxu3  ;;  %v4919_v53 = vor.u32 %v5804_v43, %v4916_v44  ;;  %v4799_v40 = vor.u32 %v5773_v1, %v4796_v39  ;;  %v5769_v43 = vld [vmem:[%s9007_s7 + $0x1a4] sm:$0xf0]  ;;  %v5733_v1 = vld [vmem:[%s9007_s7 + $0x8c] sm:$0xf] }
 0x462   : > { %v1631_v48 = vadd.f32 %v6992_v46, %v6990_v35  ;;  %v4663_v47 = vor.u32 %v5740_v41, %v4660_v42  ;;  %2475 = vmatpush.bf16.msrb.mxu1 %v4915_v34  ;;  %v5052_v41 = vld [vmem:[%s9007_s7 + $0x3e8] sm:$0xf0]  ;;  %v4762_v42 = vld [vmem:[%s9007_s7 + $0x188] sm:$0xf] }
 0x463   : > { %v1604_v49 = vpop.f32.mrf.mxu2  ;;  %2501 = vmatpush.bf16.msrb.mxu3 %v4919_v53  ;;  %v5055_v44 = vor.u32 %v5837_v37, %v5052_v41  ;;  %v4763_v45 = vor.u32 %v5769_v43, %v4762_v42  ;;  %v5018_v34 = vld [vmem:[%s9007_s7 + $0x388] sm:$0xf]  ;;  %v5829_v53 = vld [vmem:[%s9007_s7 + $0x38c] sm:$0xf] }
 0x464   : > { %1632 = vadd.xlane.f32.xlu0 %v1631_v48  ;;  %v4626_v48 = vld [vmem:[%s9007_s7 + $0x80] sm:$0xf]  ;;  %2488 = vmatpush.bf16.msrb.mxu2 %v4663_v47  ;;  %v5833_v47 = vld [vmem:[%s9007_s7 + $0x3a4] sm:$0xf0]  ;;  %v5023_v56 = vor.u32 %v5829_v53, %v5020_v54  ;;  %v4636_v39 = vld [vmem:[%s9007_s7 + $0xa8] sm:$0xf0] }
 0x465   : > { %v5736_v49 = vld [vmem:[%s9007_s7 + $0x9c] sm:$0xf0]  ;;  %v5797_v41 = vld [vmem:[%s9007_s7 + $0x28c] sm:$0xf] }
 0x466   : > { %v4627_v26 = vor.u32 %v5736_v49, %v4626_v48  ;;  %2476 = vmatpush.bf16.msrb.mxu1 %v4883_v59  ;;  %v5765_v48 = vld [vmem:[%s9007_s7 + $0x18c] sm:$0xf]  ;;  %v5019_v49 = vor.u32 %v5833_v47, %v5018_v34  ;;  %v4731_v59 = vor.u32 %v5761_v58, %v4730_v57  ;;  %v4858_v34 = vld [vmem:[%s9007_s7 + $0x248] sm:$0xf] }
 0x467   : > { %2502 = vmatpush.bf16.msrb.mxu3 %v4887_v2  ;;  %v4767_v55 = vor.u32 %v5765_v48, %v4764_v50  ;;  %v4735_v2 = vor.u32 %v5757_v61, %v4732_v62  ;;  %v4892_v42 = vld [vmem:[%s9007_s7 + $0x2a8] sm:$0xf0]  ;;  %v5793_v48 = vld [vmem:[%s9007_s7 + $0x264] sm:$0xf0] }
 0x468   : > { %2463 = vmatpush.bf16.msrb.mxu0 %v4627_v26  ;;  %2489 = vmatpush.bf16.msrb.mxu2 %v4631_v60  ;;  %v4986_v26 = vld [vmem:[%s9007_s7 + $0x348] sm:$0xf]  ;;  %v4895_v43 = vor.u32 %v5797_v41, %v4892_v42  ;;  %v4604_v50 = vld [vmem:[%s9007_s7 + $0x68] sm:$0xf0]  ;;  %v4859_v53 = vor.u32 %v5793_v48, %v4858_v34  ;;  %v5770_v41 = vld [vmem:[%s9007_s7 + $0x1ac] sm:$0xf0] }
 0x469   : > { %v5825_v60 = vld [vmem:[%s9007_s7 + $0x364] sm:$0xf0]  ;;  %v5717_v62 = vld [vmem:[%s9007_s7 + $0xc] sm:$0xf]  ;;  %v5766_v34 = vld [vmem:[%s9007_s7 + $0x194] sm:$0xf] }
 0x46a   : > { %2477 = vmatpush.bf16.msrb.mxu1 %v4851_v13  ;;  %v4987_v63 = vor.u32 %v5825_v60, %v4986_v26  ;;  %v5749_v13 = vld [vmem:[%s9007_s7 + $0x10c] sm:$0xf]  ;;  %v4570_v58 = vld [vmem:[%s9007_s7 + $0x8] sm:$0xf]  ;;  %v5830_v48 = vld [vmem:[%s9007_s7 + $0x394] sm:$0xf] }
 0x46b   : > { %2503 = vmatpush.bf16.msrb.mxu3 %v4855_v8  ;;  %v5721_v26 = vld [vmem:[%s9007_s7 + $0x24] sm:$0xf0] }
 0x46c   : > { %2464 = vmatpush.bf16.msrb.mxu0 %v4595_v11  ;;  %2490 = vmatpush.bf16.msrb.mxu2 %v4599_v14  ;;  %v4699_v11 = vor.u32 %v5753_v9, %v4698_v7  ;;  %v4700_v14 = vld [vmem:[%s9007_s7 + $0x128] sm:$0xf0]  ;;  %v4571_v60 = vor.u32 %v5721_v26, %v4570_v58  ;;  %v5785_v61 = vld [vmem:[%s9007_s7 + $0x224] sm:$0xf0]  ;;  %v4994_v58 = vld [vmem:[%s9007_s7 + $0x350] sm:$0xf] }
 0x46d   : > { %v5826_v26 = vld [vmem:[%s9007_s7 + $0x36c] sm:$0xf0] }
 0x46e   : > { %2478 = vmatpush.bf16.msrb.mxu1 %v4819_v4  ;;  %v4668_v4 = vld [vmem:[%s9007_s7 + $0xe8] sm:$0xf0] }
 0x46f   : > { %2504 = vmatpush.bf16.msrb.mxu3 %v4823_v51  ;;  %v4671_v30 = vor.u32 %v5741_v27, %v4668_v4  ;;  %v4927_v51 = vor.u32 %v5805_v31, %v4924_v32  ;;  %v5778_v31 = vld [vmem:[%s9007_s7 + $0x1ec] sm:$0xf0] }
 0x470   : > { %2465 = vmatpush.bf16.msrb.mxu0 %v4563_v23  ;;  %2491 = vmatpush.bf16.msrb.mxu2 %v4567_v29  ;;  %v4922_v23 = vld [vmem:[%s9007_s7 + $0x2c8] sm:$0xf]  ;;  %v5058_v32 = vld [vmem:[%s9007_s7 + $0x3d0] sm:$0xf] }
 0x471   : > { %v4923_v29 = vor.u32 %v5809_v25, %v4922_v23 }
 0x472   : > { %2523 = vmatpush.bf16.msra.mxu1 %v5051_v0  ;;  %v5801_v0 = vld [vmem:[%s9007_s7 + $0x2a4] sm:$0xf0] }
 0x473   : > { %2549 = vmatpush.bf16.msra.mxu3 %v5055_v44  ;;  %v4891_v37 = vor.u32 %v5801_v0, %v4890_v36  ;;  %v4602_v44 = vld [vmem:[%s9007_s7 + $0x48] sm:$0xf]  ;;  %v5838_v36 = vld [vmem:[%s9007_s7 + $0x3d4] sm:$0xf] }
 0x474   : > { %2510 = vmatpush.bf16.msra.mxu0 %v4795_v38  ;;  %2536 = vmatpush.bf16.msra.mxu2 %v4799_v40  ;;  %v4635_v38 = vor.u32 %v5737_v52, %v4634_v33  ;;  %v4639_v40 = vor.u32 %v5733_v1, %v4636_v39  ;;  %v4804_v52 = vld [vmem:[%s9007_s7 + $0x1f0] sm:$0xf0] }
 0x476   : > { %2524 = vmatpush.bf16.msra.mxu1 %v5019_v49  ;;  %v5725_v49 = vld [vmem:[%s9007_s7 + $0x4c] sm:$0xf] }
 0x477   : > { %2550 = vmatpush.bf16.msra.mxu3 %v5023_v56  ;;  %v4607_v54 = vor.u32 %v5725_v49, %v4604_v50  ;;  %v4860_v56 = vld [vmem:[%s9007_s7 + $0x268] sm:$0xf0]  ;;  %v5028_v49 = vld [vmem:[%s9007_s7 + $0x3b0] sm:$0xf0] }
 0x478   : > { %2511 = vmatpush.bf16.msra.mxu0 %v4763_v45  ;;  %2537 = vmatpush.bf16.msra.mxu2 %v4767_v55  ;;  %v5729_v45 = vld [vmem:[%s9007_s7 + $0x64] sm:$0xf0]  ;;  %v5789_v55 = vld [vmem:[%s9007_s7 + $0x24c] sm:$0xf] }
 0x479   : > { %v4603_v47 = vor.u32 %v5729_v45, %v4602_v44  ;;  %v4863_v57 = vor.u32 %v5789_v55, %v4860_v56  ;;  %v5026_v44 = vld [vmem:[%s9007_s7 + $0x390] sm:$0xf] }
 0x47a   : > { %2525 = vmatpush.bf16.msra.mxu1 %v4987_v63  ;;  %v4572_v63 = vld [vmem:[%s9007_s7 + $0x28] sm:$0xf0]  ;;  %v5834_v45 = vld [vmem:[%s9007_s7 + $0x3ac] sm:$0xf0] }
 0x47b   : > { %2551 = vmatpush.bf16.msra.mxu3 %v4991_v6  ;;  %v4575_v3 = vor.u32 %v5717_v62, %v4572_v63  ;;  %v4828_v6 = vld [vmem:[%s9007_s7 + $0x228] sm:$0xf0]  ;;  %v5762_v55 = vld [vmem:[%s9007_s7 + $0x16c] sm:$0xf0]  ;;  %v4996_v62 = vld [vmem:[%s9007_s7 + $0x370] sm:$0xf0] }
 0x47c   : > { %2512 = vmatpush.bf16.msra.mxu0 %v4731_v59  ;;  %2538 = vmatpush.bf16.msra.mxu2 %v4735_v2  ;;  %v4826_v59 = vld [vmem:[%s9007_s7 + $0x208] sm:$0xf]  ;;  %v4831_v7 = vor.u32 %v5781_v5, %v4828_v6  ;;  %v5754_v5 = vld [vmem:[%s9007_s7 + $0x12c] sm:$0xf0] }
 0x47d   : > { %v4827_v2 = vor.u32 %v5785_v61, %v4826_v59  ;;  %v5758_v59 = vld [vmem:[%s9007_s7 + $0x154] sm:$0xf] }
 0x47e   : > { %v5822_v61 = vld [vmem:[%s9007_s7 + $0x354] sm:$0xf] }
 0x480   : > { %2513 = vmatpush.bf16.msra.mxu0 %v4699_v11 }
 0x484   : > { %2514 = vmatpush.bf16.msra.mxu0 %v4667_v24 }
 0x488   : > { %2515 = vmatpush.bf16.msra.mxu0 %v4635_v38  ;;  %v5060_v38 = vld [vmem:[%s9007_s7 + $0x3f0] sm:$0xf0] }
 0x48c   : > { %2516 = vmatpush.bf16.msra.mxu0 %v4603_v47  ;;  %v4772_v47 = vld [vmem:[%s9007_s7 + $0x1b0] sm:$0xf0] }
 0x48d   : > { %v4775_v56 = vor.u32 %v5766_v34, %v4772_v47  ;;  %v5726_v34 = vld [vmem:[%s9007_s7 + $0x54] sm:$0xf] }
 0x48e   : > { %v4612_v47 = vld [vmem:[%s9007_s7 + $0x70] sm:$0xf0] }
 0x490   : > { %2517 = vmatpush.bf16.msra.mxu0 %v4571_v60  ;;  %v4740_v60 = vld [vmem:[%s9007_s7 + $0x170] sm:$0xf0] }
 0x491   : > { %v4743_v6 = vor.u32 %v5758_v59, %v4740_v60  ;;  %v5718_v59 = vld [vmem:[%s9007_s7 + $0x14] sm:$0xf] }
 0x492   : > { %v4580_v60 = vld [vmem:[%s9007_s7 + $0x30] sm:$0xf0] }
 0x4d7   : > { %v1633_v10 = vpop.xlane.xlu0 %1632 }
 0x4d8   : > { %v1634_v12 = vmul.f32 %v1633_v10, %v6299_v22  ;;  %v4954_v10 = vld [vmem:[%s9007_s7 + $0x308] sm:$0xf] }
 0x4da   : > { %v7166_v15 = vsub.f32 %v6990_v35, %v1634_v12  ;;  %v7169_v16 = vsub.f32 %v6992_v46, %v1634_v12  ;;  %v5817_v12 = vld [vmem:[%s9007_s7 + $0x324] sm:$0xf0] }
 0x4db   : > { %v4955_v8 = vor.u32 %v5817_v12, %v4954_v10 }
 0x4dc   : > { %v1637_v17 = vmul.f32 %v7166_v15, %v7166_v15  ;;  %v1638_v18 = vmul.f32 %v7169_v16, %v7169_v16 }
 0x4dd   : > { %2526 = vmatpush.bf16.msra.mxu1 %v4955_v8 }
 0x4de   : > { %v1639_v28 = vadd.f32 %v1638_v18, %v1637_v17  ;;  %v4703_v17 = vor.u32 %v5749_v13, %v4700_v14  ;;  %v5813_v18 = vld [vmem:[%s9007_s7 + $0x30c] sm:$0xf] }
 0x4e0   : > { %1640 = vadd.xlane.f32.xlu1 %v1639_v28  ;;  %v4956_v28 = vld [vmem:[%s9007_s7 + $0x328] sm:$0xf0]  ;;  %2539 = vmatpush.bf16.msra.mxu2 %v4703_v17  ;;  %v1629_v17 = vld [vmem:[%s9011_s11] sm:$0x3] }
 0x4e1   : > { %v4959_v19 = vor.u32 %v5813_v18, %v4956_v28  ;;  %2527 = vmatpush.bf16.msra.mxu1 %v4923_v29  ;;  %v1658_v20 = vperm.slane %v1629_v17, 1 }
 0x4e3   : > { %2552 = vmatpush.bf16.msra.mxu3 %v4959_v19  ;;  %v1657_v19 = vperm.slane %v1629_v17, 0 }
 0x4e4   : > { %2540 = vmatpush.bf16.msra.mxu2 %v4671_v30  ;;  %v4802_v30 = vld [vmem:[%s9007_s7 + $0x1d0] sm:$0xf] }
 0x4e5   : > { %2528 = vmatpush.bf16.msra.mxu1 %v4891_v37  ;;  %v4803_v39 = vor.u32 %v5778_v31, %v4802_v30  ;;  %v4642_v30 = vld [vmem:[%s9007_s7 + $0x90] sm:$0xf] }
 0x4e6   : > { %v5738_v31 = vld [vmem:[%s9007_s7 + $0xac] sm:$0xf0] }
 0x4e7   : > { %2553 = vmatpush.bf16.msra.mxu3 %v4927_v51 }
 0x4e8   : > { %2541 = vmatpush.bf16.msra.mxu2 %v4639_v40  ;;  %v4770_v40 = vld [vmem:[%s9007_s7 + $0x190] sm:$0xf] }
 0x4e9   : > { %2529 = vmatpush.bf16.msra.mxu1 %v4859_v53  ;;  %v4771_v50 = vor.u32 %v5770_v41, %v4770_v40  ;;  %v5027_v53 = vor.u32 %v5834_v45, %v5026_v44  ;;  %v4610_v40 = vld [vmem:[%s9007_s7 + $0x50] sm:$0xf] }
 0x4ea   : > { %v5730_v41 = vld [vmem:[%s9007_s7 + $0x6c] sm:$0xf0] }
 0x4eb   : > { %2554 = vmatpush.bf16.msra.mxu3 %v4895_v43  ;;  %v5063_v43 = vor.u32 %v5838_v36, %v5060_v38  ;;  %v5798_v36 = vld [vmem:[%s9007_s7 + $0x294] sm:$0xf]  ;;  %v4866_v44 = vld [vmem:[%s9007_s7 + $0x250] sm:$0xf] }
 0x4ec   : > { %2542 = vmatpush.bf16.msra.mxu2 %v4607_v54  ;;  %v4738_v54 = vld [vmem:[%s9007_s7 + $0x150] sm:$0xf]  ;;  %v4900_v38 = vld [vmem:[%s9007_s7 + $0x2b0] sm:$0xf0] }
 0x4ed   : > { %2530 = vmatpush.bf16.msra.mxu1 %v4827_v2  ;;  %v4739_v63 = vor.u32 %v5762_v55, %v4738_v54  ;;  %v4995_v2 = vor.u32 %v5826_v26, %v4994_v58  ;;  %v5794_v45 = vld [vmem:[%s9007_s7 + $0x26c] sm:$0xf0]  ;;  %v4615_v58 = vor.u32 %v5726_v34, %v4612_v47  ;;  %v5751_v34 = vld [vmem:[%s9007_s7 + $0x11c] sm:$0xf] }
 0x4ee   : > { %v4867_v54 = vor.u32 %v5794_v45, %v4866_v44  ;;  %v5722_v55 = vld [vmem:[%s9007_s7 + $0x2c] sm:$0xf0]  ;;  %v4970_v44 = vld [vmem:[%s9007_s7 + $0x318] sm:$0xf]  ;;  %v4716_v47 = vld [vmem:[%s9007_s7 + $0x138] sm:$0xf0] }
 0x4ef   : > { %2555 = vmatpush.bf16.msra.mxu3 %v4863_v57  ;;  %v5031_v57 = vor.u32 %v5830_v48, %v5028_v49  ;;  %v5790_v48 = vld [vmem:[%s9007_s7 + $0x254] sm:$0xf]  ;;  %v5819_v45 = vld [vmem:[%s9007_s7 + $0x334] sm:$0xf0] }
 0x4f0   : > { %2543 = vmatpush.bf16.msra.mxu2 %v4575_v3  ;;  %v4706_v3 = vld [vmem:[%s9007_s7 + $0x110] sm:$0xf]  ;;  %v4868_v49 = vld [vmem:[%s9007_s7 + $0x270] sm:$0xf0] }
 0x4f1   : > { %v4871_v26 = vor.u32 %v5790_v48, %v4868_v49  ;;  %v5815_v48 = vld [vmem:[%s9007_s7 + $0x31c] sm:$0xf] }
 0x4f2   : > { %v4972_v49 = vld [vmem:[%s9007_s7 + $0x338] sm:$0xf0] }
 0x4f3   : > { %2556 = vmatpush.bf16.msra.mxu3 %v4831_v7  ;;  %v4999_v7 = vor.u32 %v5822_v61, %v4996_v62  ;;  %v5782_v61 = vld [vmem:[%s9007_s7 + $0x214] sm:$0xf] }
 0x4f4   : > { %v4836_v62 = vld [vmem:[%s9007_s7 + $0x230] sm:$0xf0] }
 0x553   : > { %v1641_v9 = vpop.xlane.xlu1 %1640 }
 0x554   : > { %v1642_v10 = vmul.f32 %v1641_v9, %v6299_v22  ;;  %v1630_v22 = vld [vmem:[%s9012_s12] sm:$0x3]  ;;  %v4962_v9 = vld [vmem:[%s9007_s7 + $0x310] sm:$0xf] }
 0x555   : > { %v1664_v23 = vperm.slane %v1630_v22, 0  ;;  %v1665_v24 = vperm.slane %v1630_v22, 1  ;;  %v5746_v22 = vld [vmem:[%s9007_s7 + $0xec] sm:$0xf0] }
 0x556   : > { %v1643_v11 = vadd.f32 1e-05, %v1642_v10  ;;  %v5818_v10 = vld [vmem:[%s9007_s7 + $0x32c] sm:$0xf0] }
 0x557   : > { %v4963_v17 = vor.u32 %v5818_v10, %v4962_v9  ;;  %v4812_v10 = vld [vmem:[%s9007_s7 + $0x1f8] sm:$0xf0] }
 0x558   : > { %5994 = vrsqrt.f32 %v1643_v11  ;;  %vm1650_vm2 = vweird.f32 %v1643_v11 }
 0x55e   : > { %v5995_v12 = vpop.eup %5994 }
 0x55f   : > { %v1645_v13 = vmul.f32 %v5995_v12, %v1643_v11  ;;  %vm1651_vm1 = vweird.f32 %v5995_v12  ;;  %v5750_v11 = vld [vmem:[%s9007_s7 + $0x114] sm:$0xf] }
 0x560   : > { %vm1652_vm3 = vmor %vm1650_vm2, %vm1651_vm1 }
 0x561   : > { %v1646_v14 = vmul.f32 %v5995_v12, %v1645_v13  ;;  %v5814_v13 = vld [vmem:[%s9007_s7 + $0x314] sm:$0xf] }
 0x563   : > { %v1647_v8 = vmul.f32 0.5, %v1646_v14  ;;  %v4964_v14 = vld [vmem:[%s9007_s7 + $0x330] sm:$0xf0] }
 0x565   : > { %v1648_v18 = vsub.f32 1.5, %v1647_v8  ;;  %v4707_v8 = vor.u32 %v5754_v5, %v4706_v3  ;;  %v5066_v3 = vld [vmem:[%s9007_s7 + $0x3d8] sm:$0xf] }
 0x566   : > { %v5843_v5 = vld [vmem:[%s9007_s7 + $0x3f4] sm:$0xf0] }
 0x567   : > { %v1649_v28 = vmul.f32 %v5995_v12, %v1648_v18  ;;  %v4674_v18 = vld [vmem:[%s9007_s7 + $0xd0] sm:$0xf] }
 0x569   : > { %v1653_v21 = vsel %vm1652_vm3, %v5995_v12, %v1649_v28  ;;  %v4708_v12 = vld [vmem:[%s9007_s7 + $0x130] sm:$0xf0] }
 0x56a   : > { %v1654_v25 = vmul.f32 %v1653_v21, %v7166_v15  ;;  %v1655_v27 = vmul.f32 %v1653_v21, %v7169_v16  ;;  %v5842_v15 = vld [vmem:[%s9007_s7 + $0x3ec] sm:$0xf0]  ;;  %v5774_v16 = vld [vmem:[%s9007_s7 + $0x1d4] sm:$0xf]  ;;  %v4711_v28 = vor.u32 %v5750_v11, %v4708_v12  ;;  %v5839_v11 = vld [vmem:[%s9007_s7 + $0x3dc] sm:$0xf] }
 0x56b   : > { %v5059_v37 = vor.u32 %v5842_v15, %v5058_v32  ;;  %v4807_v42 = vor.u32 %v5774_v16, %v4804_v52  ;;  %v5810_v21 = vld [vmem:[%s9007_s7 + $0x2ec] sm:$0xf0]  ;;  %v4644_v52 = vld [vmem:[%s9007_s7 + $0xb0] sm:$0xf0]  ;;  %v5068_v12 = vld [vmem:[%s9007_s7 + $0x3f8] sm:$0xf0] }
 0x56c   : > { %v1661_v4 = vmul.f32 %v1657_v19, %v1654_v25  ;;  %v1662_v29 = vmul.f32 %v1658_v20, %v1655_v27  ;;  %v4967_v19 = vor.u32 %v5814_v13, %v4964_v14  ;;  %v4930_v20 = vld [vmem:[%s9007_s7 + $0x2d0] sm:$0xf]  ;;  %v5806_v25 = vld [vmem:[%s9007_s7 + $0x2d4] sm:$0xf]  ;;  %v4583_v13 = vor.u32 %v5718_v59, %v4580_v60  ;;  %v5743_v59 = vld [vmem:[%s9007_s7 + $0xdc] sm:$0xf] }
 0x56d   : > { %v4932_v27 = vld [vmem:[%s9007_s7 + $0x2f0] sm:$0xf0]  ;;  %v4898_v16 = vld [vmem:[%s9007_s7 + $0x290] sm:$0xf]  ;;  %v4839_v14 = vor.u32 %v5782_v61, %v4836_v62  ;;  %v4684_v60 = vld [vmem:[%s9007_s7 + $0xf8] sm:$0xf0] }
 0x56e   : > { %v1668_v51 = vadd.f32 %v1664_v23, %v1661_v4  ;;  %v1669_v33 = vadd.f32 %v1665_v24, %v1662_v29  ;;  %v5742_v23 = vld [vmem:[%s9007_s7 + $0xd4] sm:$0xf]  ;;  %v4675_v4 = vor.u32 %v5746_v22, %v4674_v18  ;;  %v4931_v29 = vor.u32 %v5810_v21, %v4930_v20  ;;  %v4778_v18 = vld [vmem:[%s9007_s7 + $0x198] sm:$0xf]  ;;  %v5807_v61 = vld [vmem:[%s9007_s7 + $0x2dc] sm:$0xf] }
 0x56f   : > { %v4676_v24 = vld [vmem:[%s9007_s7 + $0xf0] sm:$0xf0]  ;;  %v4935_v15 = vor.u32 %v5806_v25, %v4932_v27  ;;  %v5771_v22 = vld [vmem:[%s9007_s7 + $0x1b4] sm:$0xf0]  ;;  %v5831_v25 = vld [vmem:[%s9007_s7 + $0x39c] sm:$0xf] }
 0x570   : > { %v7424_v0 = vpack.c.bf16 %v1668_v51, %v1668_v51  ;;  %v7426_v1 = vpack.c.bf16 %v1669_v33, %v1669_v33  ;;  %v4679_v32 = vor.u32 %v5742_v23, %v4676_v24  ;;  %v5802_v51 = vld [vmem:[%s9007_s7 + $0x2ac] sm:$0xf0]  ;;  %v5734_v33 = vld [vmem:[%s9007_s7 + $0x94] sm:$0xf]  ;;  %v5034_v20 = vld [vmem:[%s9007_s7 + $0x398] sm:$0xf] }
 0x571   : > { %v5835_v21 = vld [vmem:[%s9007_s7 + $0x3b4] sm:$0xf0]  ;;  %v5767_v23 = vld [vmem:[%s9007_s7 + $0x19c] sm:$0xf] }
 0x572   : > { %2466 = vmatmul.bf16.vlgmr.msrb.gmra.mxu0 %v7424_v0  ;;  %2479 = vmatmul.bf16.vlgmr.msrb.gmra.mxu1 %v7426_v1  ;;  %v4780_v24 = vld [vmem:[%s9007_s7 + $0x1b8] sm:$0xf0] }
 0x573   : > { %2492 = vmatmul.bf16.vlgmr.msrb.gmra.mxu2 %v7424_v0  ;;  %2505 = vmatmul.bf16.vlgmr.msrb.gmra.mxu3 %v7426_v1  ;;  %v5036_v27 = vld [vmem:[%s9007_s7 + $0x3b8] sm:$0xf0] }
 0x574   : > { %2562 = vmatpush.bf16.msrb.mxu0 %v4803_v39  ;;  %2575 = vmatpush.bf16.msrb.mxu1 %v5059_v37  ;;  %v4643_v39 = vor.u32 %v5738_v31, %v4642_v30  ;;  %v4899_v37 = vor.u32 %v5802_v51, %v4898_v16  ;;  %v4746_v30 = vld [vmem:[%s9007_s7 + $0x158] sm:$0xf]  ;;  %v4940_v62 = vld [vmem:[%s9007_s7 + $0x2f8] sm:$0xf0] }
 0x575   : > { %2588 = vmatpush.bf16.msrb.mxu2 %v4807_v42  ;;  %2601 = vmatpush.bf16.msrb.mxu3 %v5063_v43  ;;  %v4647_v42 = vor.u32 %v5734_v33, %v4644_v52  ;;  %v4903_v43 = vor.u32 %v5798_v36, %v4900_v38  ;;  %v5763_v31 = vld [vmem:[%s9007_s7 + $0x174] sm:$0xf0]  ;;  %v5759_v33 = vld [vmem:[%s9007_s7 + $0x15c] sm:$0xf] }
 0x576   : > { %v5002_v16 = vld [vmem:[%s9007_s7 + $0x358] sm:$0xf]  ;;  %v4748_v52 = vld [vmem:[%s9007_s7 + $0x178] sm:$0xf0] }
 0x577   : > { %v5827_v51 = vld [vmem:[%s9007_s7 + $0x374] sm:$0xf0]  ;;  %v5823_v36 = vld [vmem:[%s9007_s7 + $0x35c] sm:$0xf] }
 0x578   : > { %2563 = vmatpush.bf16.msrb.mxu0 %v4771_v50  ;;  %2576 = vmatpush.bf16.msrb.mxu1 %v5027_v53  ;;  %v4578_v50 = vld [vmem:[%s9007_s7 + $0x10] sm:$0xf]  ;;  %v4611_v53 = vor.u32 %v5730_v41, %v4610_v40  ;;  %v5004_v38 = vld [vmem:[%s9007_s7 + $0x378] sm:$0xf0]  ;;  %v4714_v40 = vld [vmem:[%s9007_s7 + $0x118] sm:$0xf] }
 0x579   : > { %2589 = vmatpush.bf16.msrb.mxu2 %v4775_v56  ;;  %2602 = vmatpush.bf16.msrb.mxu3 %v5031_v57  ;;  %v4834_v56 = vld [vmem:[%s9007_s7 + $0x210] sm:$0xf]  ;;  %v5755_v41 = vld [vmem:[%s9007_s7 + $0x134] sm:$0xf0] }
 0x57a   : > { %v5786_v57 = vld [vmem:[%s9007_s7 + $0x22c] sm:$0xf0] }
 0x57b   : > { %v4835_v9 = vor.u32 %v5786_v57, %v4834_v56  ;;  %v4719_v56 = vor.u32 %v5751_v34, %v4716_v47  ;;  %v4975_v57 = vor.u32 %v5815_v48, %v4972_v49  ;;  %v5875_v47 = vld [vmem:[%s9009_s9 + $0xf4] sm:$0xf0]  ;;  %v5114_v49 = vld [vmem:[%s9009_s9 + $0x50] sm:$0xf] }
 0x57c   : > { %2564 = vmatpush.bf16.msrb.mxu0 %v4739_v63  ;;  %2577 = vmatpush.bf16.msrb.mxu1 %v4995_v2  ;;  %v4810_v63 = vld [vmem:[%s9007_s7 + $0x1d8] sm:$0xf] }
 0x57d   : > { %2590 = vmatpush.bf16.msrb.mxu2 %v4743_v6  ;;  %2603 = vmatpush.bf16.msrb.mxu3 %v4999_v7  ;;  %v5779_v2 = vld [vmem:[%s9007_s7 + $0x1f4] sm:$0xf0]  ;;  %v5775_v6 = vld [vmem:[%s9007_s7 + $0x1dc] sm:$0xf]  ;;  %v4579_v7 = vor.u32 %v5722_v55, %v4578_v50  ;;  %v4715_v50 = vor.u32 %v5755_v41, %v4714_v40 }
 0x57e   : > { %v5747_v55 = vld [vmem:[%s9007_s7 + $0xf4] sm:$0xf0] }
 0x580   : > { %2565 = vmatpush.bf16.msrb.mxu0 %v4707_v8  ;;  %2578 = vmatpush.bf16.msrb.mxu1 %v4963_v17  ;;  %v4811_v8 = vor.u32 %v5779_v2, %v4810_v63  ;;  %v5067_v17 = vor.u32 %v5843_v5, %v5066_v3  ;;  %v4650_v3 = vld [vmem:[%s9007_s7 + $0x98] sm:$0xf] }
 0x581   : > { %2591 = vmatpush.bf16.msrb.mxu2 %v4711_v28  ;;  %2604 = vmatpush.bf16.msrb.mxu3 %v4967_v19  ;;  %v4815_v28 = vor.u32 %v5775_v6, %v4812_v10  ;;  %v5071_v19 = vor.u32 %v5839_v11, %v5068_v12  ;;  %v5739_v5 = vld [vmem:[%s9007_s7 + $0xb4] sm:$0xf0]  ;;  %v4687_v6 = vor.u32 %v5743_v59, %v4684_v60  ;;  %v5735_v11 = vld [vmem:[%s9007_s7 + $0x9c] sm:$0xf]  ;;  %v5178_v59 = vld [vmem:[%s9009_s9 + $0xd0] sm:$0xf] }
 0x582   : > { %2518 = vmatmul.bf16.vlgmr.msra.gmra.mxu0 %v7424_v0  ;;  %2531 = vmatmul.bf16.vlgmr.msra.gmra.mxu1 %v7426_v1  ;;  %v5803_v10 = vld [vmem:[%s9007_s7 + $0x2b4] sm:$0xf0]  ;;  %v4652_v12 = vld [vmem:[%s9007_s7 + $0xb8] sm:$0xf0] }
 0x583   : > { %2544 = vmatmul.bf16.vlgmr.msra.gmra.mxu2 %v7424_v0  ;;  %2557 = vmatmul.bf16.vlgmr.msra.gmra.mxu3 %v7426_v1  ;;  %v5871_v60 = vld [vmem:[%s9009_s9 + $0xd4] sm:$0xf0] }
 0x584   : > { %2566 = vmatpush.bf16.msrb.mxu0 %v4675_v4  ;;  %2579 = vmatpush.bf16.msrb.mxu1 %v4931_v29  ;;  %v4779_v4 = vor.u32 %v5771_v22, %v4778_v18  ;;  %v5035_v29 = vor.u32 %v5835_v21, %v5034_v20  ;;  %v4618_v18 = vld [vmem:[%s9007_s7 + $0x58] sm:$0xf] }
 0x585   : > { %2592 = vmatpush.bf16.msrb.mxu2 %v4679_v32  ;;  %2605 = vmatpush.bf16.msrb.mxu3 %v4935_v15  ;;  %v4783_v32 = vor.u32 %v5767_v23, %v4780_v24  ;;  %v5039_v15 = vor.u32 %v5831_v25, %v5036_v27  ;;  %v5731_v22 = vld [vmem:[%s9007_s7 + $0x74] sm:$0xf0]  ;;  %v5727_v23 = vld [vmem:[%s9007_s7 + $0x5c] sm:$0xf] }
 0x586   : > { %v4874_v20 = vld [vmem:[%s9007_s7 + $0x258] sm:$0xf]  ;;  %v4620_v24 = vld [vmem:[%s9007_s7 + $0x78] sm:$0xf0] }
 0x587   : > { %v5795_v21 = vld [vmem:[%s9007_s7 + $0x274] sm:$0xf0]  ;;  %v5791_v25 = vld [vmem:[%s9007_s7 + $0x25c] sm:$0xf] }
 0x588   : > { %2567 = vmatpush.bf16.msrb.mxu0 %v4643_v39  ;;  %2580 = vmatpush.bf16.msrb.mxu1 %v4899_v37  ;;  %v4747_v39 = vor.u32 %v5763_v31, %v4746_v30  ;;  %v5003_v37 = vor.u32 %v5827_v51, %v5002_v16  ;;  %v4876_v27 = vld [vmem:[%s9007_s7 + $0x278] sm:$0xf0]  ;;  %v4586_v30 = vld [vmem:[%s9007_s7 + $0x18] sm:$0xf] }
 0x589   : > { %2593 = vmatpush.bf16.msrb.mxu2 %v4647_v42  ;;  %2606 = vmatpush.bf16.msrb.mxu3 %v4903_v43  ;;  %v4751_v42 = vor.u32 %v5759_v33, %v4748_v52  ;;  %v5007_v43 = vor.u32 %v5823_v36, %v5004_v38  ;;  %v5723_v31 = vld [vmem:[%s9007_s7 + $0x34] sm:$0xf0]  ;;  %v5719_v33 = vld [vmem:[%s9007_s7 + $0x1c] sm:$0xf] }
 0x58a   : > { %v4842_v16 = vld [vmem:[%s9007_s7 + $0x218] sm:$0xf]  ;;  %v4588_v52 = vld [vmem:[%s9007_s7 + $0x38] sm:$0xf0] }
 0x58b   : > { %v5787_v51 = vld [vmem:[%s9007_s7 + $0x234] sm:$0xf0]  ;;  %v5783_v36 = vld [vmem:[%s9007_s7 + $0x21c] sm:$0xf]  ;;  %v4591_v40 = vor.u32 %v5719_v33, %v4588_v52  ;;  %v5146_v52 = vld [vmem:[%s9009_s9 + $0x90] sm:$0xf] }
 0x58c   : > { %2568 = vmatpush.bf16.msrb.mxu0 %v4611_v53  ;;  %2581 = vmatpush.bf16.msrb.mxu1 %v4867_v54  ;;  %v4971_v53 = vor.u32 %v5819_v45, %v4970_v44  ;;  %v4682_v54 = vld [vmem:[%s9007_s7 + $0xd8] sm:$0xf]  ;;  %v4844_v38 = vld [vmem:[%s9007_s7 + $0x238] sm:$0xf0]  ;;  %v5122_v45 = vld [vmem:[%s9009_s9 + $0x60] sm:$0xf] }
 0x58d   : > { %2594 = vmatpush.bf16.msrb.mxu2 %v4615_v58  ;;  %2607 = vmatpush.bf16.msrb.mxu3 %v4871_v26  ;;  %v4938_v58 = vld [vmem:[%s9007_s7 + $0x2d8] sm:$0xf]  ;;  %v4683_v63 = vor.u32 %v5747_v55, %v4682_v54  ;;  %v4847_v41 = vor.u32 %v5783_v36, %v4844_v38  ;;  %v5186_v54 = vld [vmem:[%s9009_s9 + $0xe0] sm:$0xf]  ;;  %v5873_v55 = vld [vmem:[%s9009_s9 + $0xe4] sm:$0xf0] }
 0x58e   : > { %v5811_v26 = vld [vmem:[%s9007_s7 + $0x2f4] sm:$0xf0] }
 0x58f   : > { %v4939_v2 = vor.u32 %v5811_v26, %v4938_v58  ;;  %v5853_v58 = vld [vmem:[%s9009_s9 + $0x44] sm:$0xf0]  ;;  %v5923_v33 = vld [vmem:[%s9009_s9 + $0x274] sm:$0xf0] }
 0x590   : > { %2569 = vmatpush.bf16.msrb.mxu0 %v4579_v7  ;;  %2582 = vmatpush.bf16.msrb.mxu1 %v4835_v9  ;;  %v4943_v7 = vor.u32 %v5807_v61, %v4940_v62  ;;  %v4906_v9 = vld [vmem:[%s9007_s7 + $0x298] sm:$0xf]  ;;  %v5179_v61 = vor.u32 %v5871_v60, %v5178_v59  ;;  %v5098_v62 = vld [vmem:[%s9009_s9 + $0x30] sm:$0xf] }
 0x591   : > { %2595 = vmatpush.bf16.msrb.mxu2 %v4583_v13  ;;  %2608 = vmatpush.bf16.msrb.mxu3 %v4839_v14  ;;  %v5799_v13 = vld [vmem:[%s9007_s7 + $0x29c] sm:$0xf] }
 0x592   : > { %v4908_v14 = vld [vmem:[%s9007_s7 + $0x2b8] sm:$0xf0] }
 0x593   : > { %2570 = vmatmul.bf16.vlgmr.msrb.gmra.mxu0 %v7424_v0  ;;  %2583 = vmatmul.bf16.vlgmr.msrb.gmra.mxu1 %v7426_v1 }
 0x594   : > { %2614 = vmatpush.bf16.msra.mxu0 %v4811_v8  ;;  %2627 = vmatpush.bf16.msra.mxu1 %v5067_v17  ;;  %v4651_v8 = vor.u32 %v5739_v5, %v4650_v3  ;;  %v4907_v17 = vor.u32 %v5803_v10, %v4906_v9  ;;  %v5170_v3 = vld [vmem:[%s9009_s9 + $0xc0] sm:$0xf]  ;;  %v5869_v5 = vld [vmem:[%s9009_s9 + $0xc4] sm:$0xf0] }
 0x595   : > { %2640 = vmatpush.bf16.msra.mxu2 %v4815_v28  ;;  %2653 = vmatpush.bf16.msra.mxu3 %v5071_v19  ;;  %v4655_v28 = vor.u32 %v5735_v11, %v4652_v12  ;;  %v4911_v19 = vor.u32 %v5799_v13, %v4908_v14  ;;  %v5090_v9 = vld [vmem:[%s9009_s9 + $0x20] sm:$0xf]  ;;  %v5849_v10 = vld [vmem:[%s9009_s9 + $0x24] sm:$0xf0]  ;;  %v5162_v13 = vld [vmem:[%s9009_s9 + $0xb0] sm:$0xf] }
 0x596   : > { %2596 = vmatmul.bf16.vlgmr.msrb.gmra.mxu2 %v7424_v0  ;;  %2609 = vmatmul.bf16.vlgmr.msrb.gmra.mxu3 %v7426_v1  ;;  %v5091_v11 = vor.u32 %v5849_v10, %v5090_v9  ;;  %v5867_v14 = vld [vmem:[%s9009_s9 + $0xb4] sm:$0xf0] }
 0x598   : > { %2615 = vmatpush.bf16.msra.mxu0 %v4779_v4  ;;  %2628 = vmatpush.bf16.msra.mxu1 %v5035_v29  ;;  %v4619_v4 = vor.u32 %v5731_v22, %v4618_v18  ;;  %v4875_v29 = vor.u32 %v5795_v21, %v4874_v20  ;;  %v5847_v18 = vld [vmem:[%s9009_s9 + $0x14] sm:$0xf0]  ;;  %v5154_v21 = vld [vmem:[%s9009_s9 + $0xa0] sm:$0xf] }
 0x599   : > { %2641 = vmatpush.bf16.msra.mxu2 %v4783_v32  ;;  %2654 = vmatpush.bf16.msra.mxu3 %v5039_v15  ;;  %v4623_v32 = vor.u32 %v5727_v23, %v4620_v24  ;;  %v4879_v15 = vor.u32 %v5791_v25, %v4876_v27  ;;  %v5865_v23 = vld [vmem:[%s9009_s9 + $0xa4] sm:$0xf0] }
 0x59a   : > { %v5155_v27 = vor.u32 %v5865_v23, %v5154_v21 }
 0x59c   : > { %2616 = vmatpush.bf16.msra.mxu0 %v4747_v39  ;;  %2629 = vmatpush.bf16.msra.mxu1 %v5003_v37  ;;  %v4587_v39 = vor.u32 %v5723_v31, %v4586_v30  ;;  %v4843_v37 = vor.u32 %v5787_v51, %v4842_v16  ;;  %v5258_v30 = vld [vmem:[%s9009_s9 + $0x170] sm:$0xf] }
 0x59d   : > { %2642 = vmatpush.bf16.msra.mxu2 %v4751_v42  ;;  %2655 = vmatpush.bf16.msra.mxu3 %v5007_v43  ;;  %v5130_v42 = vld [vmem:[%s9009_s9 + $0x70] sm:$0xf]  ;;  %v5859_v43 = vld [vmem:[%s9009_s9 + $0x74] sm:$0xf0] }
 0x59e   : > { %v5131_v44 = vor.u32 %v5859_v43, %v5130_v42  ;;  %v5386_v51 = vld [vmem:[%s9009_s9 + $0x270] sm:$0xf] }
 0x5a0   : > { %2617 = vmatpush.bf16.msra.mxu0 %v4715_v50  ;;  %2630 = vmatpush.bf16.msra.mxu1 %v4971_v53  ;;  %v5855_v50 = vld [vmem:[%s9009_s9 + $0x54] sm:$0xf0] }
 0x5a1   : > { %2643 = vmatpush.bf16.msra.mxu2 %v4719_v56  ;;  %2656 = vmatpush.bf16.msra.mxu3 %v4975_v57  ;;  %v5115_v53 = vor.u32 %v5855_v50, %v5114_v49  ;;  %v5187_v56 = vor.u32 %v5873_v55, %v5186_v54  ;;  %v5106_v57 = vld [vmem:[%s9009_s9 + $0x40] sm:$0xf] }
 0x5a2   : > { %v5107_v26 = vor.u32 %v5853_v58, %v5106_v57  ;;  %v6039_v58 = vmov -1.0  }
 0x5a4   : > { %2618 = vmatpush.bf16.msra.mxu0 %v4683_v63  ;;  %2631 = vmatpush.bf16.msra.mxu1 %v4939_v2  ;;  %v5851_v63 = vld [vmem:[%s9009_s9 + $0x34] sm:$0xf0] }
 0x5a5   : > { %2644 = vmatpush.bf16.msra.mxu2 %v4687_v6  ;;  %2657 = vmatpush.bf16.msra.mxu3 %v4943_v7  ;;  %v5099_v2 = vor.u32 %v5851_v63, %v5098_v62  ;;  %v7861_v6 = vld [vmem:[%s9008_s8] sm:$0xff]  ;;  %v5171_v7 = vor.u32 %v5869_v5, %v5170_v3 }
 0x5a6   : > { %v1802_v12 = vperm.slane %v7861_v6, 0  ;;  %v1803_v25 = vperm.slane %v7861_v6, 1  ;;  %v1804_v49 = vperm.slane %v7861_v6, 2  ;;  %v1805_v50 = vperm.slane %v7861_v6, 3  ;;  %v5378_v63 = vld [vmem:[%s9009_s9 + $0x260] sm:$0xf] }
 0x5a7   : > { %v1807_v62 = vperm.slane %v7861_v6, 5 }
 0x5a8   : > { %2619 = vmatpush.bf16.msra.mxu0 %v4651_v8  ;;  %2632 = vmatpush.bf16.msra.mxu1 %v4907_v17  ;;  %v5163_v8 = vor.u32 %v5867_v14, %v5162_v13  ;;  %v5082_v17 = vld [vmem:[%s9009_s9 + $0x10] sm:$0xf]  ;;  %v5138_v14 = vld [vmem:[%s9009_s9 + $0x80] sm:$0xf] }
 0x5a9   : > { %2645 = vmatpush.bf16.msra.mxu2 %v4655_v28  ;;  %2658 = vmatpush.bf16.msra.mxu3 %v4911_v19  ;;  %v5083_v19 = vor.u32 %v5847_v18, %v5082_v17  ;;  %v5322_v17 = vld [vmem:[%s9009_s9 + $0x1f0] sm:$0xf] }
 0x5ac   : > { %2620 = vmatpush.bf16.msra.mxu0 %v4619_v4  ;;  %2633 = vmatpush.bf16.msra.mxu1 %v4875_v29  ;;  %v5074_v4 = vld [vmem:[%s9009_s9] sm:$0xf]  ;;  %v5845_v29 = vld [vmem:[%s9009_s9 + $0x4] sm:$0xf0] }
 0x5ad   : > { %2646 = vmatpush.bf16.msra.mxu2 %v4623_v32  ;;  %2659 = vmatpush.bf16.msra.mxu3 %v4879_v15  ;;  %v5075_v32 = vor.u32 %v5845_v29, %v5074_v4  ;;  %v5891_v15 = vld [vmem:[%s9009_s9 + $0x174] sm:$0xf0] }
 0x5ae   : > { %v5259_v16 = vor.u32 %v5891_v15, %v5258_v30  ;;  %v5887_v4 = vld [vmem:[%s9009_s9 + $0x154] sm:$0xf0] }
 0x5af   : > { %v5919_v15 = vld [vmem:[%s9009_s9 + $0x254] sm:$0xf0] }
 0x5b0   : > { %2621 = vmatpush.bf16.msra.mxu0 %v4587_v39  ;;  %2634 = vmatpush.bf16.msra.mxu1 %v4843_v37  ;;  %v5387_v37 = vor.u32 %v5923_v33, %v5386_v51  ;;  %v5314_v33 = vld [vmem:[%s9009_s9 + $0x1e0] sm:$0xf] }
 0x5b1   : > { %2647 = vmatpush.bf16.msra.mxu2 %v4591_v40  ;;  %2660 = vmatpush.bf16.msra.mxu3 %v4847_v41  ;;  %v5863_v40 = vld [vmem:[%s9009_s9 + $0x94] sm:$0xf0] }
 0x5b3   : > { %2622 = vmatmul.bf16.vlgmr.msra.gmra.mxu0 %v7424_v0  ;;  %2635 = vmatmul.bf16.vlgmr.msra.gmra.mxu1 %v7426_v1 }
 0x5b4   : > { %2648 = vmatmul.bf16.vlgmr.msra.gmra.mxu2 %v7424_v0  ;;  %2661 = vmatmul.bf16.vlgmr.msra.gmra.mxu3 %v7426_v1  ;;  %v5857_v0 = vld [vmem:[%s9009_s9 + $0x64] sm:$0xf0]  ;;  %v5194_v1 = vld [vmem:[%s9009_s9 + $0xf0] sm:$0xf] }
 0x5b5   : > { %3762 = vmatpush.bf16.msrb.mxu0 %v5131_v44  ;;  %v5123_v34 = vor.u32 %v5857_v0, %v5122_v45  ;;  %v5195_v48 = vor.u32 %v5875_v47, %v5194_v1  ;;  %3788 = vmatpush.bf16.msrb.mxu2 %v5259_v16  ;;  %v5147_v44 = vor.u32 %v5863_v40, %v5146_v52 }
 0x5b7   : > { %3775 = vmatpush.bf16.msrb.mxu1 %v5195_v48  ;;  %v5250_v48 = vld [vmem:[%s9009_s9 + $0x160] sm:$0xf] }
 0x5b9   : > { %3763 = vmatpush.bf16.msrb.mxu0 %v5123_v34 }
 0x5bb   : > { %3776 = vmatpush.bf16.msrb.mxu1 %v5187_v56  ;;  %v1806_v56 = vperm.slane %v7861_v6, 4 }
 0x5bd   : > { %3764 = vmatpush.bf16.msrb.mxu0 %v5115_v53  ;;  %v5889_v53 = vld [vmem:[%s9009_s9 + $0x164] sm:$0xf0] }
 0x5be   : > { %v5251_v57 = vor.u32 %v5889_v53, %v5250_v48 }
 0x5bf   : > { %3777 = vmatpush.bf16.msrb.mxu1 %v5179_v61 }
 0x5c0   : > { %3789 = vmatpush.bf16.msrb.mxu2 %v5251_v57 }
 0x5c1   : > { %3765 = vmatpush.bf16.msrb.mxu0 %v5107_v26 }
 0x5c3   : > { %3778 = vmatpush.bf16.msrb.mxu1 %v5171_v7 }
 0x5c5   : > { %3766 = vmatpush.bf16.msrb.mxu0 %v5099_v2 }
 0x5c7   : > { %3779 = vmatpush.bf16.msrb.mxu1 %v5163_v8  ;;  %v5861_v8 = vld [vmem:[%s9009_s9 + $0x84] sm:$0xf0] }
 0x5c9   : > { %3767 = vmatpush.bf16.msrb.mxu0 %v5091_v11  ;;  %v5921_v11 = vld [vmem:[%s9009_s9 + $0x264] sm:$0xf0] }
 0x5ca   : > { %v5379_v13 = vor.u32 %v5921_v11, %v5378_v63  ;;  %v5917_v11 = vld [vmem:[%s9009_s9 + $0x244] sm:$0xf0] }
 0x5cb   : > { %3780 = vmatpush.bf16.msrb.mxu1 %v5155_v27  ;;  %v5242_v27 = vld [vmem:[%s9009_s9 + $0x150] sm:$0xf] }
 0x5cd   : > { %3768 = vmatpush.bf16.msrb.mxu0 %v5083_v19  ;;  %v5907_v19 = vld [vmem:[%s9009_s9 + $0x1f4] sm:$0xf0] }
 0x5cf   : > { %3781 = vmatpush.bf16.msrb.mxu1 %v5147_v44 }
 0x5d1   : > { %3769 = vmatpush.bf16.msrb.mxu0 %v5075_v32  ;;  %v5370_v32 = vld [vmem:[%s9009_s9 + $0x250] sm:$0xf] }
 0x5d2   : > { %v5371_v44 = vor.u32 %v5919_v15, %v5370_v32  ;;  %v5226_v32 = vld [vmem:[%s9009_s9 + $0x130] sm:$0xf] }
 0x5d5   : > { %3814 = vmatpush.bf16.msra.mxu0 %v5387_v37  ;;  %v5905_v37 = vld [vmem:[%s9009_s9 + $0x1e4] sm:$0xf0] }
 0x5d9   : > { %3815 = vmatpush.bf16.msra.mxu0 %v5379_v13 }
 0x5dd   : > { %3816 = vmatpush.bf16.msra.mxu0 %v5371_v44 }
 0x5ef   : > { %v2467_v22 = vpop.f32.mrf.mxu0  ;;  %v2480_v28 = vpop.f32.mrf.mxu1 }
 0x5f0   : > { %v2468_v20 = vadd.f32 %v2467_v22, %v1802_v12 }
 0x5f2   : > { %v2481_v24 = vadd.f32 %v2480_v28, %v2468_v20  ;;  %v5139_v28 = vor.u32 %v5861_v8, %v5138_v14  ;;  %v5450_v20 = vld [vmem:[%s9009_s9 + $0x2f0] sm:$0xf] }
 0x5f4   : > { %v2674_v31 = vmul.f32 0.70710677, %v2481_v24  ;;  %v7926_v54 = vmul.f32 0.5, %v2481_v24  ;;  %v5323_v24 = vor.u32 %v5907_v19, %v5322_v17  ;;  %3782 = vmatpush.bf16.msrb.mxu1 %v5139_v28 }
 0x5f6   : > { %v2698_v36 = vand.u32 2147483647, %v2674_v31  ;;  %v2493_v38 = vpop.f32.mrf.mxu2  ;;  %v2506_v39 = vpop.f32.mrf.mxu3  ;;  %vm2682_vm4 = vcmp.ge.f32.partialorder %v2674_v31, 0.0  ;;  %3801 = vmatpush.bf16.msrb.mxu3 %v5323_v24 }
 0x5f7   : > { %v2494_v41 = vadd.f32 %v2493_v38, %v1803_v25  ;;  %v2469_v42 = vpop.f32.mrf.mxu0  ;;  %v2482_v43 = vpop.f32.mrf.mxu1  ;;  %v7931_v26 = vsel %vm2682_vm4, 1.0, %v6039_v58  ;;  %v5939_v25 = vld [vmem:[%s9009_s9 + $0x2f4] sm:$0xf0] }
 0x5f8   : > { %v2706_v45 = vmul.f32 0.3275911, %v2698_v36  ;;  %v2914_v1 = vsub.f32 0.0, %v2698_v36  ;;  %v5451_v38 = vor.u32 %v5939_v25, %v5450_v20 }
 0x5f9   : > { %v2507_v0 = vadd.f32 %v2506_v39, %v2494_v41  ;;  %v5243_v39 = vor.u32 %v5887_v4, %v5242_v27 }
 0x5fa   : > { %v7913_v34 = vadd.f32 1.0, %v2706_v45  ;;  %v2922_v2 = vmul.f32 %v2914_v1, %v2698_v36  ;;  %v5442_v45 = vld [vmem:[%s9009_s9 + $0x2e0] sm:$0xf]  ;;  %3827 = vmatpush.bf16.msra.mxu1 %v5451_v38 }
 0x5fb   : > { %v7915_v47 = vmul.f32 0.70710677, %v2507_v0  ;;  %v7938_v3 = vmul.f32 0.5, %v2507_v0  ;;  %v5937_v0 = vld [vmem:[%s9009_s9 + $0x2e4] sm:$0xf0]  ;;  %3790 = vmatpush.bf16.msrb.mxu2 %v5243_v39 }
 0x5fc   : > { %5996 = vrcp.f32 %v7913_v34  ;;  %v2731_v59 = vand.u32 2147483647, %v7913_v34  ;;  %v2733_v18 = vand.u32 2147483648, %v7913_v34  ;;  %v7974_v30 = vmul.f32 1.442695, %v2922_v2 }
 0x5fd   : > { %v2699_v55 = vand.u32 2147483647, %v7915_v47  ;;  %vm2727_vm5 = vweird.f32 %v7913_v34  ;;  %vm2683_vm7 = vcmp.ge.f32.partialorder %v7915_v47, 0.0  ;;  %v5443_v63 = vor.u32 %v5937_v0, %v5442_v45  ;;  %v5362_v2 = vld [vmem:[%s9009_s9 + $0x240] sm:$0xf] }
 0x5fe   : > { %v2495_v60 = vpop.f32.mrf.mxu2  ;;  %v2508_v61 = vpop.f32.mrf.mxu3  ;;  %vm7984_vm6 = vcmp.eq.f32.partialorder %v2731_v59, 8.507059e+37  ;;  %v2734_v40 = vor.u32 1.1754944e-38, %v2733_v18  ;;  %v5234_v59 = vld [vmem:[%s9009_s9 + $0x140] sm:$0xf]  ;;  %v5363_v17 = vor.u32 %v5917_v11, %v5362_v2  ;;  %v5306_v18 = vld [vmem:[%s9009_s9 + $0x1d0] sm:$0xf] }
 0x5ff   : > { %v2707_v5 = vmul.f32 0.3275911, %v2699_v55  ;;  %v2915_v7 = vsub.f32 0.0, %v2699_v55  ;;  %v2519_v9 = vpop.f32.mrf.mxu0  ;;  %v2532_v10 = vpop.f32.mrf.mxu1  ;;  %v8015_v60 = vsel %vm2683_vm7, 1.0, %v6039_v58  ;;  %v5315_v61 = vor.u32 %v5905_v37, %v5314_v33  ;;  %3828 = vmatpush.bf16.msra.mxu1 %v5443_v63  ;;  %v5298_v45 = vld [vmem:[%s9009_s9 + $0x1c0] sm:$0xf] }
 0x600   : > { %v2520_v12 = vadd.f32 %v2519_v9, %v1804_v49  ;;  %3817 = vmatpush.bf16.msra.mxu0 %v5363_v17 }
 0x601   : > { %v7953_v22 = vadd.f32 1.0, %v2707_v5  ;;  %v2923_v31 = vmul.f32 %v2915_v7, %v2699_v55  ;;  %3802 = vmatpush.bf16.msrb.mxu3 %v5315_v61 }
 0x602   : > { %v7961_v21 = vpop.eup %5996  ;;  %v2533_v23 = vadd.f32 %v2532_v10, %v2520_v12 }
 0x603   : > { %v2723_v29 = vmul.f32 %v7961_v21, %v7913_v34  ;;  %5998 = vrcp.f32 %v7953_v22  ;;  %v2746_v51 = vand.u32 2147483647, %v7953_v22  ;;  %vm2728_vm8 = vweird.f32 %v7961_v21  ;;  %v5903_v34 = vld [vmem:[%s9009_s9 + $0x1d4] sm:$0xf0] }
 0x604   : > { %v2676_v36 = vmul.f32 0.70710677, %v2533_v23  ;;  %v2748_v41 = vand.u32 2147483648, %v7953_v22  ;;  %v8005_v48 = vmul.f32 1.442695, %v2923_v31  ;;  %v8026_v9 = vmul.f32 0.5, %v2533_v23  ;;  %vm2729_vm10 = vmor %vm2727_vm5, %vm2728_vm8 }
 0x605   : > { %v2724_v52 = vsub.f32 1.0, %v2723_v29  ;;  %vm8037_vm11 = vcmp.eq.f32.partialorder %v2746_v51, 8.507059e+37  ;;  %v5307_v4 = vor.u32 %v5903_v34, %v5306_v18  ;;  %v5935_v31 = vld [vmem:[%s9009_s9 + $0x2d4] sm:$0xf0]  ;;  %vm2742_vm13 = vweird.f32 %v7953_v22 }
 0x606   : > { %v2545_v42 = vpop.f32.mrf.mxu2  ;;  %v2558_v43 = vpop.f32.mrf.mxu3  ;;  %v2700_v49 = vand.u32 2147483647, %v2676_v36  ;;  %vm2684_vm9 = vcmp.ge.f32.partialorder %v2676_v36, 0.0  ;;  %v2749_v14 = vor.u32 1.1754944e-38, %v2748_v41  ;;  %v5354_v36 = vld [vmem:[%s9009_s9 + $0x230] sm:$0xf] }
 0x607   : > { %v2725_v1 = vmul.f32 %v7961_v21, %v2724_v52  ;;  %v2546_v53 = vadd.f32 %v2545_v42, %v1805_v50  ;;  %v2521_v55 = vpop.f32.mrf.mxu0  ;;  %v2534_v57 = vpop.f32.mrf.mxu1  ;;  %v5885_v50 = vld [vmem:[%s9009_s9 + $0x144] sm:$0xf0]  ;;  %v8050_v19 = vsel %vm2684_vm9, 1.0, %v6039_v58  ;;  %3803 = vmatpush.bf16.msrb.mxu3 %v5307_v4  ;;  %v5883_v52 = vld [vmem:[%s9009_s9 + $0x134] sm:$0xf0] }
 0x608   : > { %v2708_v47 = vmul.f32 0.3275911, %v2700_v49  ;;  %v5235_v8 = vor.u32 %v5885_v50, %v5234_v59  ;;  %v2916_v23 = vsub.f32 0.0, %v2700_v49  ;;  %v5227_v55 = vor.u32 %v5883_v52, %v5226_v32 }
 0x609   : > { %v8023_v5 = vpop.eup %5998  ;;  %v2726_v7 = vadd.f32 %v7961_v21, %v2725_v1  ;;  %v2559_v10 = vadd.f32 %v2558_v43, %v2546_v53 }
 0x60a   : > { %v2738_v12 = vmul.f32 %v8023_v5, %v7953_v22  ;;  %v8052_v20 = vadd.f32 1.0, %v2708_v47  ;;  %3791 = vmatpush.bf16.msrb.mxu2 %v5235_v8  ;;  %vm2743_vm12 = vweird.f32 %v8023_v5  ;;  %v2924_v39 = vmul.f32 %v2916_v23, %v2700_v49  ;;  %v5901_v22 = vld [vmem:[%s9009_s9 + $0x1c4] sm:$0xf0] }
 0x60b   : > { %v2730_v28 = vsel %vm2729_vm10, %v7961_v21, %v2726_v7  ;;  %v2677_v27 = vmul.f32 0.70710677, %v2559_v10  ;;  %v5434_v21 = vld [vmem:[%s9009_s9 + $0x2d0] sm:$0xf]  ;;  %v8084_v43 = vmul.f32 0.5, %v2559_v10  ;;  %vm2744_vm14 = vmor %vm2742_vm13, %vm2743_vm12  ;;  %v5299_v63 = vor.u32 %v5901_v22, %v5298_v45 }
 0x60c   : > { %v8056_v24 = vsel %vm7984_vm6, %v2734_v40, %v2730_v28  ;;  %v2739_v25 = vsub.f32 1.0, %v2738_v12  ;;  %6000 = vrcp.f32 %v8052_v20  ;;  %v2761_v16 = vand.u32 2147483647, %v8052_v20  ;;  %v5915_v40 = vld [vmem:[%s9009_s9 + $0x234] sm:$0xf0] }
 0x60d   : > { %v2842_v29 = vmul.f32 1.0614054, %v8056_v24  ;;  %v2701_v37 = vand.u32 2147483647, %v2677_v27  ;;  %v2763_v42 = vand.u32 2147483648, %v8052_v20  ;;  %v5435_v44 = vor.u32 %v5935_v31, %v5434_v21  ;;  %3804 = vmatpush.bf16.msrb.mxu3 %v5299_v63 }
 0x60e   : > { %v2740_v15 = vmul.f32 %v8023_v5, %v2739_v25  ;;  %v2547_v51 = vpop.f32.mrf.mxu2  ;;  %v2560_v33 = vpop.f32.mrf.mxu3  ;;  %vm2685_vm15 = vcmp.ge.f32.partialorder %v2677_v27, 0.0  ;;  %v5355_v61 = vor.u32 %v5915_v40, %v5354_v36  ;;  %v2934_v47 = vmul.f32 1.442695, %v2924_v39  ;;  %3792 = vmatpush.bf16.msrb.mxu2 %v5227_v55  ;;  %v5426_v28 = vld [vmem:[%s9009_s9 + $0x2c0] sm:$0xf] }
 0x60f   : > { %v2850_v38 = vadd.f32 -1.4531521, %v2842_v29  ;;  %v2709_v1 = vmul.f32 0.3275911, %v2701_v37  ;;  %3829 = vmatpush.bf16.msra.mxu1 %v5435_v44  ;;  %v2917_v12 = vsub.f32 0.0, %v2701_v37  ;;  %vm8109_vm0 = vcmp.eq.f32.partialorder %v2761_v16, 8.507059e+37 }
 0x610   : > { %v2741_v41 = vadd.f32 %v8023_v5, %v2740_v15  ;;  %v2571_v49 = vpop.f32.mrf.mxu0  ;;  %v2584_v53 = vpop.f32.mrf.mxu1  ;;  %3818 = vmatpush.bf16.msra.mxu0 %v5355_v61  ;;  %v8115_v13 = vsel %vm2685_vm15, 1.0, %v6039_v58  ;;  %v2764_v34 = vor.u32 1.1754944e-38, %v2763_v42  ;;  %vm2757_vm1 = vweird.f32 %v8052_v20  ;;  %v5933_v27 = vld [vmem:[%s9009_s9 + $0x2c4] sm:$0xf0] }
 0x611   : > { %v2858_v0 = vmul.f32 %v2850_v38, %v8056_v24  ;;  %v2572_v59 = vadd.f32 %v2571_v49, %v1806_v56  ;;  %v8102_v10 = vadd.f32 1.0, %v2709_v1  ;;  %v2925_v21 = vmul.f32 %v2917_v12, %v2701_v37 }
 0x612   : > { %v2745_v57 = vsel %vm2744_vm14, %v8023_v5, %v2741_v41  ;;  %v6001_v50 = vpop.eup %6000  ;;  %v5427_v38 = vor.u32 %v5933_v27, %v5426_v28 }
 0x613   : > { %v2866_v2 = vadd.f32 1.4214138, %v2858_v0  ;;  %v8100_v7 = vsel %vm8037_vm11, %v2749_v14, %v2745_v57  ;;  %v2753_v5 = vmul.f32 %v6001_v50, %v8052_v20  ;;  %v8106_v8 = vadd.f32 %v2584_v53, %v2572_v59 }
 0x614   : > { %v2843_v11 = vmul.f32 1.0614054, %v8100_v7  ;;  %6002 = vrcp.f32 %v8102_v10  ;;  %vm2758_vm2 = vweird.f32 %v6001_v50  ;;  %v2776_v36 = vand.u32 2147483647, %v8102_v10  ;;  %3830 = vmatpush.bf16.msra.mxu1 %v5427_v38 }
 0x615   : > { %v2874_v56 = vmul.f32 %v2866_v2, %v8056_v24  ;;  %6004 = vpow2.f32 %v7974_v30  ;;  %v2754_v18 = vsub.f32 1.0, %v2753_v5  ;;  %v2678_v25 = vmul.f32 0.70710677, %v8106_v8  ;;  %vm2759_vm3 = vmor %vm2757_vm1, %vm2758_vm2 }
 0x616   : > { %v2851_v14 = vadd.f32 -1.4531521, %v2843_v11  ;;  %6006 = vpow2.f32 %v8005_v48  ;;  %vm2772_vm4 = vweird.f32 %v8102_v10  ;;  %v2778_v37 = vand.u32 2147483648, %v8102_v10 }
 0x617   : > { %v2882_v23 = vadd.f32 -0.28449672, %v2874_v56  ;;  %v2755_v4 = vmul.f32 %v6001_v50, %v2754_v18  ;;  %6008 = vpow2.f32 %v2934_v47  ;;  %v2702_v15 = vand.u32 2147483647, %v2678_v25 }
 0x618   : > { %v2859_v30 = vmul.f32 %v2851_v14, %v8100_v7  ;;  %v2573_v16 = vpop.f32.mrf.mxu0  ;;  %v2586_v51 = vpop.f32.mrf.mxu1  ;;  %v2936_v22 = vmul.f32 1.442695, %v2925_v21  ;;  %vm8150_vm5 = vcmp.eq.f32.partialorder %v2776_v36, 8.507059e+37  ;;  %vm2686_vm6 = vcmp.ge.f32.partialorder %v2678_v25, 0.0 }
 0x619   : > { %v2597_v29 = vpop.f32.mrf.mxu2  ;;  %v2610_v31 = vpop.f32.mrf.mxu3  ;;  %v2890_v32 = vmul.f32 %v2882_v23, %v8056_v24  ;;  %v2756_v52 = vadd.f32 %v6001_v50, %v2755_v4  ;;  %v2710_v41 = vmul.f32 0.3275911, %v2702_v15  ;;  %v2779_v17 = vor.u32 1.1754944e-38, %v2778_v37 }
 0x61a   : > { %v2598_v48 = vadd.f32 %v2597_v29, %v1807_v62  ;;  %v2867_v33 = vadd.f32 1.4214138, %v2859_v30  ;;  %v6003_v39 = vpop.eup %6002  ;;  %v8159_v14 = vmul.f32 0.5, %v8106_v8  ;;  %v8170_v30 = vsel %vm2686_vm6, 1.0, %v6039_v58 }
 0x61b   : > { %v2898_v40 = vadd.f32 0.2548296, %v2890_v32  ;;  %v6005_v42 = vpop.eup %6004  ;;  %v2760_v44 = vsel %vm2759_vm3, %v6001_v50, %v2756_v52  ;;  %v2768_v45 = vmul.f32 %v6003_v39, %v8102_v10  ;;  %v8145_v49 = vadd.f32 1.0, %v2710_v41 }
 0x61c   : > { %v2875_v62 = vmul.f32 %v2867_v33, %v8100_v7  ;;  %v6007_v0 = vpop.eup %6006  ;;  %v8143_v20 = vsel %vm8109_vm0, %v2764_v34, %v2760_v44  ;;  %v8147_v53 = vadd.f32 %v2610_v31, %v2598_v48  ;;  %vm2773_vm7 = vweird.f32 %v6003_v39  ;;  %v5218_v33 = vld [vmem:[%s9009_s9 + $0x120] sm:$0xf] }
 0x61d   : > { %v2906_v1 = vmul.f32 %v2898_v40, %v8056_v24  ;;  %v2844_v57 = vmul.f32 1.0614054, %v8143_v20  ;;  %v2769_v59 = vsub.f32 1.0, %v2768_v45  ;;  %v8154_v63 = vpop.eup %6008  ;;  %6010 = vrcp.f32 %v8145_v49  ;;  %vm2774_vm8 = vmor %vm2772_vm4, %vm2773_vm7  ;;  %v5881_v40 = vld [vmem:[%s9009_s9 + $0x124] sm:$0xf0] }
 0x61e   : > { %v2883_v55 = vadd.f32 -0.28449672, %v2875_v62  ;;  %v2918_v24 = vsub.f32 0.0, %v2702_v15  ;;  %v8162_v18 = vmul.f32 0.70710677, %v8147_v53  ;;  %6012 = vpow2.f32 %v2936_v22 }
 0x61f   : > { %v2946_v50 = vmul.f32 %v6005_v42, %v2906_v1  ;;  %v2852_v47 = vadd.f32 -1.4531521, %v2844_v57  ;;  %v2770_v11 = vmul.f32 %v6003_v39, %v2769_v59  ;;  %vm2787_vm9 = vweird.f32 %v8145_v49  ;;  %v5346_v45 = vld [vmem:[%s9009_s9 + $0x220] sm:$0xf]  ;;  %v5290_v1 = vld [vmem:[%s9009_s9 + $0x1b0] sm:$0xf] }
 0x620   : > { %v2891_v2 = vmul.f32 %v2883_v55, %v8100_v7  ;;  %v2926_v4 = vmul.f32 %v2918_v24, %v2702_v15  ;;  %v2703_v8 = vand.u32 2147483647, %v8162_v18  ;;  %v2791_v10 = vand.u32 2147483647, %v8145_v49  ;;  %v5418_v24 = vld [vmem:[%s9009_s9 + $0x2b0] sm:$0xf] }
 0x621   : > { %v2599_v5 = vpop.f32.mrf.mxu2  ;;  %v2612_v12 = vpop.f32.mrf.mxu3  ;;  %v2954_v56 = vsub.f32 1.0, %v2946_v50  ;;  %v2860_v28 = vmul.f32 %v2852_v47, %v8143_v20  ;;  %v2771_v23 = vadd.f32 %v6003_v39, %v2770_v11  ;;  %v2793_v36 = vand.u32 2147483648, %v8145_v49  ;;  %v5899_v50 = vld [vmem:[%s9009_s9 + $0x1b4] sm:$0xf0] }
 0x622   : > { %v2899_v34 = vadd.f32 0.2548296, %v2891_v2  ;;  %v2711_v25 = vmul.f32 0.3275911, %v2703_v8  ;;  %v2938_v38 = vmul.f32 1.442695, %v2926_v4  ;;  %v5219_v11 = vor.u32 %v5881_v40, %v5218_v33 }
 0x623   : > { %v2962_v27 = vmul.f32 %v2954_v56, %v7931_v26  ;;  %v2868_v29 = vadd.f32 1.4214138, %v2860_v28  ;;  %v2775_v31 = vsel %vm2774_vm8, %v6003_v39, %v2771_v23  ;;  %v8175_v32 = vpop.eup %6010  ;;  %v2919_v22 = vsub.f32 0.0, %v2703_v8  ;;  %v5931_v2 = vld [vmem:[%s9009_s9 + $0x2b4] sm:$0xf0] }
 0x624   : > { %v2907_v21 = vmul.f32 %v2899_v34, %v8100_v7  ;;  %v8179_v26 = vsel %vm8150_vm5, %v2779_v17, %v2775_v31  ;;  %v2783_v7 = vmul.f32 %v8175_v32, %v8145_v49  ;;  %v8191_v39 = vadd.f32 1.0, %v2711_v25  ;;  %v8196_v37 = vpop.eup %6012  ;;  %v5210_v5 = vld [vmem:[%s9009_s9 + $0x110] sm:$0xf]  ;;  %v5879_v12 = vld [vmem:[%s9009_s9 + $0x114] sm:$0xf0]  ;;  %3793 = vmatpush.bf16.msrb.mxu2 %v5219_v11 }
 0x625   : > { %v2970_v48 = vadd.f32 1.0, %v2962_v27  ;;  %v2876_v15 = vmul.f32 %v2868_v29, %v8143_v20  ;;  %v2845_v51 = vmul.f32 1.0614054, %v8179_v26  ;;  %vm2788_vm10 = vweird.f32 %v8175_v32  ;;  %v5338_v23 = vld [vmem:[%s9009_s9 + $0x210] sm:$0xf] }
 0x626   : > { %v2947_v16 = vmul.f32 %v6007_v0, %v2907_v21  ;;  %v2784_v44 = vsub.f32 1.0, %v2783_v7  ;;  %6014 = vrcp.f32 %v8191_v39  ;;  %v5913_v0 = vld [vmem:[%s9009_s9 + $0x224] sm:$0xf0]  ;;  %vm8224_vm11 = vcmp.eq.f32.partialorder %v2791_v10, 8.507059e+37  ;;  %vm8243_vm12 = vmor %vm2787_vm9, %vm2788_vm10  ;;  %v5282_v10 = vld [vmem:[%s9009_s9 + $0x1a0] sm:$0xf] }
 0x627   : > { %v2978_v52 = vmul.f32 %v2970_v48, %v7926_v54  ;;  %v2884_v42 = vadd.f32 -0.28449672, %v2876_v15  ;;  %v2853_v62 = vadd.f32 -1.4531521, %v2845_v51  ;;  %v2794_v47 = vor.u32 1.1754944e-38, %v2793_v36 }
 0x628   : > { %v2955_v41 = vsub.f32 1.0, %v2947_v16  ;;  %v2785_v61 = vmul.f32 %v8175_v32, %v2784_v44  ;;  %6016 = vpow2.f32 %v2938_v38  ;;  %v2806_v4 = vand.u32 2147483647, %v8191_v39  ;;  %v5911_v48 = vld [vmem:[%s9009_s9 + $0x214] sm:$0xf0] }
 0x629   : > { %v8201_v54 = vpack.c.bf16 %v2978_v52, %v2978_v52  ;;  %v2892_v57 = vmul.f32 %v2884_v42, %v8143_v20  ;;  %v2861_v59 = vmul.f32 %v2853_v62, %v8179_v26  ;;  %v8248_v21 = vmul.f32 %v2919_v22, %v2703_v8  ;;  %v5897_v7 = vld [vmem:[%s9009_s9 + $0x1a4] sm:$0xf0]  ;;  %v5410_v33 = vld [vmem:[%s9009_s9 + $0x2a0] sm:$0xf] }
 0x62a   : > { %v2963_v55 = vmul.f32 %v2955_v41, %v8015_v60  ;;  %v2786_v28 = vadd.f32 %v8175_v32, %v2785_v61  ;;  %v5347_v29 = vor.u32 %v5913_v0, %v5346_v45  ;;  %v5291_v31 = vor.u32 %v5899_v50, %v5290_v1  ;;  %v5202_v40 = vld [vmem:[%s9009_s9 + $0x100] sm:$0xf]  ;;  %v5877_v41 = vld [vmem:[%s9009_s9 + $0x104] sm:$0xf0]  ;;  %v5514_v61 = vld [vmem:[%s9009_s9 + $0x370] sm:$0xf] }
 0x62b   : > { %3770 = vmatmul.bf16.vlgmr.msrb.gmra.mxu0 %v8201_v54  ;;  %v2900_v17 = vadd.f32 0.2548296, %v2892_v57  ;;  %v2869_v34 = vadd.f32 1.4214138, %v2861_v59  ;;  %vm2802_vm13 = vweird.f32 %v8191_v39  ;;  %v5211_v36 = vor.u32 %v5879_v12, %v5210_v5  ;;  %v5330_v22 = vld [vmem:[%s9009_s9 + $0x200] sm:$0xf] }
 0x62c   : > { %v2971_v56 = vadd.f32 1.0, %v2963_v55  ;;  %v2790_v8 = vsel %vm8243_vm12, %v8175_v32, %v2786_v28  ;;  %3819 = vmatpush.bf16.msra.mxu0 %v5347_v29  ;;  %3805 = vmatpush.bf16.msrb.mxu3 %v5291_v31  ;;  %v5419_v32 = vor.u32 %v5931_v2, %v5418_v24  ;;  %v1808_v38 = vperm.slane %v7861_v6, 6  ;;  %v5858_v31 = vld [vmem:[%s9009_s9 + $0x74] sm:$0xf] }
 0x62d   : > { %v2908_v25 = vmul.f32 %v2900_v17, %v8143_v20  ;;  %v2877_v16 = vmul.f32 %v2869_v34, %v8179_v26  ;;  %v8271_v20 = vpop.eup %6014  ;;  %v8275_v52 = vsel %vm8224_vm11, %v2794_v47, %v2790_v8  ;;  %v2808_v55 = vand.u32 2147483648, %v8191_v39  ;;  %3794 = vmatpush.bf16.msrb.mxu2 %v5211_v36  ;;  %v5955_v47 = vld [vmem:[%s9009_s9 + $0x374] sm:$0xf0]  ;;  %v5274_v17 = vld [vmem:[%s9009_s9 + $0x190] sm:$0xf] }
 0x62e   : > { %v2979_v49 = vmul.f32 %v2971_v56, %v7938_v3  ;;  %v5929_v3 = vld [vmem:[%s9009_s9 + $0x2a4] sm:$0xf0]  ;;  %v2846_v45 = vmul.f32 1.0614054, %v8275_v52  ;;  %v8292_v0 = vpop.eup %6016  ;;  %v2798_v1 = vmul.f32 %v8271_v20, %v8191_v39  ;;  %3831 = vmatpush.bf16.msra.mxu1 %v5419_v32  ;;  %v5339_v57 = vor.u32 %v5911_v48, %v5338_v23  ;;  %v5895_v34 = vld [vmem:[%s9009_s9 + $0x194] sm:$0xf0] }
 0x62f   : > { %v2948_v62 = vmul.f32 %v8154_v63, %v2908_v25  ;;  %v2885_v44 = vadd.f32 -0.28449672, %v2877_v16  ;;  %v5909_v63 = vld [vmem:[%s9009_s9 + $0x204] sm:$0xf0]  ;;  %v5283_v60 = vor.u32 %v5897_v7, %v5282_v10  ;;  %vm2687_vm14 = vcmp.ge.f32.partialorder %v8162_v18, 0.0 }
 0x630   : > { %v2623_v15 = vpop.f32.mrf.mxu0  ;;  %v2636_v51 = vpop.f32.mrf.mxu1  ;;  %v8285_v42 = vpack.c.bf16 %v2979_v49, %v2979_v49  ;;  %v2854_v2 = vadd.f32 -1.4531521, %v2846_v45  ;;  %v2799_v11 = vsub.f32 1.0, %v2798_v1  ;;  %3820 = vmatpush.bf16.msra.mxu0 %v5339_v57  ;;  %v5411_v12 = vor.u32 %v5929_v3, %v5410_v33  ;;  %v5132_v48 = vld [vmem:[%s9009_s9 + $0x78] sm:$0xf0] }
 0x631   : > { %v2624_v59 = vadd.f32 %v2623_v15, %v1808_v38  ;;  %v2956_v50 = vsub.f32 1.0, %v2948_v62  ;;  %v2893_v24 = vmul.f32 %v2885_v44, %v8179_v26  ;;  %v5203_v56 = vor.u32 %v5877_v41, %v5202_v40  ;;  %3806 = vmatpush.bf16.msrb.mxu3 %v5283_v60  ;;  %v5402_v25 = vld [vmem:[%s9009_s9 + $0x290] sm:$0xf]  ;;  %v5927_v3 = vld [vmem:[%s9009_s9 + $0x294] sm:$0xf0] }
 0x632   : > { %3783 = vmatmul.bf16.vlgmr.msrb.gmra.mxu1 %v8285_v42  ;;  %v2862_v27 = vmul.f32 %v2854_v2, %v8275_v52  ;;  %v5331_v29 = vor.u32 %v5909_v63, %v5330_v22  ;;  %v2800_v10 = vmul.f32 %v8271_v20, %v2799_v11  ;;  %vm2803_vm15 = vweird.f32 %v8271_v20  ;;  %v5506_v62 = vld [vmem:[%s9009_s9 + $0x360] sm:$0xf]  ;;  %v5953_v1 = vld [vmem:[%s9009_s9 + $0x364] sm:$0xf0]  ;;  %v5854_v18 = vld [vmem:[%s9009_s9 + $0x54] sm:$0xf] }
 0x633   : > { %v8309_v5 = vadd.f32 %v2636_v51, %v2624_v59  ;;  %v2964_v28 = vmul.f32 %v2956_v50, %v8050_v19  ;;  %v2901_v23 = vadd.f32 0.2548296, %v2893_v24  ;;  %3832 = vmatpush.bf16.msra.mxu1 %v5411_v12  ;;  %3795 = vmatpush.bf16.msrb.mxu2 %v5203_v56  ;;  %v5515_v19 = vor.u32 %v5955_v47, %v5514_v61  ;;  %vm2804_vm1 = vmor %vm2802_vm13, %vm2803_vm15  ;;  %v5266_v57 = vld [vmem:[%s9009_s9 + $0x180] sm:$0xf]  ;;  %v5893_v39 = vld [vmem:[%s9009_s9 + $0x184] sm:$0xf0] }
 0x634   : > { %v2870_v7 = vadd.f32 1.4214138, %v2862_v27  ;;  %v5275_v33 = vor.u32 %v5895_v34, %v5274_v17  ;;  %v2801_v38 = vadd.f32 %v8271_v20, %v2800_v10  ;;  %vm8344_vm0 = vcmp.eq.f32.partialorder %v2806_v4, 8.507059e+37  ;;  %3821 = vmatpush.bf16.msra.mxu0 %v5331_v29  ;;  %v5578_v27 = vld [vmem:[%s9009_s9 + $0x3f0] sm:$0xf] }
 0x635   : > { %v8328_v49 = vmul.f32 0.70710677, %v8309_v5  ;;  %v2972_v15 = vadd.f32 1.0, %v2964_v28  ;;  %v2909_v51 = vmul.f32 %v2901_v23, %v8179_v26  ;;  %v5135_v26 = vor.u32 %v5858_v31, %v5132_v48  ;;  %v5394_v28 = vld [vmem:[%s9009_s9 + $0x280] sm:$0xf] }
 0x636   : > { %v2878_v22 = vmul.f32 %v2870_v7, %v8275_v52  ;;  %v2809_v4 = vor.u32 1.1754944e-38, %v2808_v55  ;;  %3807 = vmatpush.bf16.msrb.mxu3 %v5275_v33  ;;  %v5403_v63 = vor.u32 %v5927_v3, %v5402_v25  ;;  %v1809_v11 = vperm.slane %v7861_v6, 7  ;;  %v5925_v23 = vld [vmem:[%s9009_s9 + $0x284] sm:$0xf0]  ;;  %v5971_v6 = vld [vmem:[%s9009_s9 + $0x3f4] sm:$0xf0] }
 0x637   : > { %v8333_v16 = vpop.f32.mrf.mxu2  ;;  %v8335_v8 = vpop.f32.mrf.mxu3  ;;  %v2704_v41 = vand.u32 2147483647, %v8328_v49  ;;  %3840 = vmatpush.bf16.msra.mxu2 %v5515_v19  ;;  %v2980_v44 = vmul.f32 %v2972_v15, %v8026_v9  ;;  %v2949_v45 = vmul.f32 %v8196_v37, %v2909_v51  ;;  %v2805_v9 = vsel %vm2804_vm1, %v8271_v20, %v2801_v38  ;;  %v5124_v20 = vld [vmem:[%s9009_s9 + $0x68] sm:$0xf0]  ;;  %v5874_v29 = vld [vmem:[%s9009_s9 + $0xf4] sm:$0xf] }
 0x638   : > { %v2625_v32 = vpop.f32.mrf.mxu0  ;;  %v2638_v36 = vpop.f32.mrf.mxu1  ;;  %v8367_v37 = vmul.f32 1.442695, %v8248_v21  ;;  %3866 = vmatpush.bf16.msrb.mxu0 %v5135_v26  ;;  %v2886_v50 = vadd.f32 -0.28449672, %v2878_v22  ;;  %v8376_v24 = vsel %vm8344_vm0, %v2809_v4, %v2805_v9  ;;  %v5856_v21 = vld [vmem:[%s9009_s9 + $0x64] sm:$0xf]  ;;  %3833 = vmatpush.bf16.msra.mxu1 %v5403_v63  ;;  %v5507_v17 = vor.u32 %v5953_v1, %v5506_v62 }
 0x639   : > { %v2712_v59 = vmul.f32 0.3275911, %v2704_v41  ;;  %v8372_v55 = vpack.c.bf16 %v2980_v44, %v2980_v44  ;;  %v2957_v61 = vsub.f32 1.0, %v2949_v45  ;;  %v2847_v2 = vmul.f32 1.0614054, %v8376_v24 }
 0x63a   : > { %v2920_v47 = vsub.f32 0.0, %v2704_v41  ;;  %v2894_v56 = vmul.f32 %v2886_v50, %v8275_v52  ;;  %v5267_v34 = vor.u32 %v5893_v39, %v5266_v57  ;;  %v5196_v31 = vld [vmem:[%s9009_s9 + $0xf8] sm:$0xf0]  ;;  %v8413_v15 = vsel %vm2687_vm14, 1.0, %v6039_v58  ;;  %v5498_v51 = vld [vmem:[%s9009_s9 + $0x350] sm:$0xf] }
 0x63b   : > { %v8385_v60 = vadd.f32 1.0, %v2712_v59  ;;  %v2965_v12 = vmul.f32 %v2957_v61, %v8115_v13  ;;  %3796 = vmatmul.bf16.vlgmr.msrb.gmra.mxu2 %v8372_v55  ;;  %v2855_v13 = vadd.f32 -1.4531521, %v2847_v2  ;;  %v2650_v33 = vadd.f32 %v8333_v16, %v1809_v11  ;;  %v5951_v32 = vld [vmem:[%s9009_s9 + $0x354] sm:$0xf0] }
 0x63c   : > { %v2902_v25 = vadd.f32 0.2548296, %v2894_v56  ;;  %3841 = vmatpush.bf16.msra.mxu2 %v5507_v17  ;;  %3808 = vmatpush.bf16.msrb.mxu3 %v5267_v34  ;;  %v5127_v3 = vor.u32 %v5856_v21, %v5124_v20  ;;  %v5116_v36 = vld [vmem:[%s9009_s9 + $0x58] sm:$0xf0]  ;;  %v2928_v26 = vmul.f32 %v2920_v47, %v2704_v41  ;;  %v5570_v16 = vld [vmem:[%s9009_s9 + $0x3e0] sm:$0xf]  ;;  %v5199_v9 = vor.u32 %v5874_v29, %v5196_v31 }
 0x63d   : > { %6018 = vrcp.f32 %v8385_v60  ;;  %v2973_v19 = vadd.f32 1.0, %v2965_v12  ;;  %v2863_v7 = vmul.f32 %v2855_v13, %v8376_v24  ;;  %v5969_v62 = vld [vmem:[%s9009_s9 + $0x3e4] sm:$0xf0]  ;;  %v5872_v44 = vld [vmem:[%s9009_s9 + $0xe4] sm:$0xf]  ;;  %v8441_v22 = vadd.f32 %v8335_v8, %v2650_v33 }
 0x63e   : > { %v2910_v40 = vmul.f32 %v2902_v25, %v8275_v52  ;;  %3867 = vmatpush.bf16.msrb.mxu0 %v5127_v3  ;;  %v5579_v52 = vor.u32 %v5971_v6, %v5578_v27  ;;  %v5188_v41 = vld [vmem:[%s9009_s9 + $0xe8] sm:$0xf0]  ;;  %v5490_v4 = vld [vmem:[%s9009_s9 + $0x340] sm:$0xf]  ;;  %v5499_v59 = vor.u32 %v5951_v32, %v5498_v51  ;;  %v5949_v8 = vld [vmem:[%s9009_s9 + $0x344] sm:$0xf0]  ;;  %6020 = vpow2.f32 %v8367_v37 }
 0x63f   : > { %v2651_v48 = vpop.f32.mrf.mxu2  ;;  %v2664_v10 = vpop.f32.mrf.mxu3  ;;  %v2981_v38 = vmul.f32 %v2973_v19, %v8084_v43  ;;  %v2871_v45 = vadd.f32 1.4214138, %v2863_v7  ;;  %v5395_v43 = vor.u32 %v5925_v23, %v5394_v28  ;;  %v5852_v63 = vld [vmem:[%s9009_s9 + $0x44] sm:$0xf]  ;;  %v5108_v39 = vld [vmem:[%s9009_s9 + $0x48] sm:$0xf0]  ;;  %v5119_v21 = vor.u32 %v5854_v18, %v5116_v36 }
 0x640   : > { %v2950_v57 = vmul.f32 %v8292_v0, %v2910_v40  ;;  %v8466_v0 = vmul.f32 0.70710677, %v8441_v22  ;;  %3853 = vmatpush.bf16.msra.mxu3 %v5579_v52  ;;  %v5562_v20 = vld [vmem:[%s9009_s9 + $0x3d0] sm:$0xf]  ;;  %v5967_v2 = vld [vmem:[%s9009_s9 + $0x3d4] sm:$0xf0]  ;;  %3842 = vmatpush.bf16.msra.mxu2 %v5499_v59  ;;  %v5571_v17 = vor.u32 %v5969_v62, %v5570_v16  ;;  %v5191_v13 = vor.u32 %v5872_v44, %v5188_v41 }
 0x641   : > { %v8449_v1 = vpack.c.bf16 %v2981_v38, %v2981_v38  ;;  %v2879_v50 = vmul.f32 %v2871_v45, %v8376_v24  ;;  %3834 = vmatpush.bf16.msra.mxu1 %v5395_v43  ;;  %v5870_v47 = vld [vmem:[%s9009_s9 + $0xd4] sm:$0xf]  ;;  %v5180_v37 = vld [vmem:[%s9009_s9 + $0xd8] sm:$0xf0]  ;;  %v2821_v56 = vand.u32 2147483647, %v8385_v60  ;;  %v5491_v19 = vor.u32 %v5949_v8, %v5490_v4 }
 0x642   : > { %v2958_v11 = vsub.f32 1.0, %v2950_v57  ;;  %v5482_v34 = vld [vmem:[%s9009_s9 + $0x330] sm:$0xf]  ;;  %v5947_v28 = vld [vmem:[%s9009_s9 + $0x334] sm:$0xf0]  ;;  %v2823_v27 = vand.u32 2147483648, %v8385_v60  ;;  %3868 = vmatpush.bf16.msrb.mxu0 %v5119_v21  ;;  %v5111_v33 = vor.u32 %v5852_v63, %v5108_v39  ;;  %v5563_v36 = vor.u32 %v5967_v2, %v5562_v20 }
 0x643   : > { %v8461_v61 = vpop.eup %6018  ;;  %v2887_v23 = vadd.f32 -0.28449672, %v2879_v50  ;;  %v8491_v6 = vand.u32 2147483647, %v8466_v0  ;;  %v5850_v29 = vld [vmem:[%s9009_s9 + $0x34] sm:$0xf]  ;;  %3809 = vmatmul.bf16.vlgmr.msrb.gmra.mxu3 %v8449_v1  ;;  %v5183_v38 = vor.u32 %v5870_v47, %v5180_v37  ;;  %v5483_v43 = vor.u32 %v5947_v28, %v5482_v34 }
 0x644   : > { %v2813_v12 = vmul.f32 %v8461_v61, %v8385_v60  ;;  %v2966_v31 = vmul.f32 %v2958_v11, %v8170_v30  ;;  %v8498_v10 = vmul.f32 1.442695, %v2928_v26  ;;  %v5100_v25 = vld [vmem:[%s9009_s9 + $0x38] sm:$0xf0]  ;;  %vm2818_vm2 = vweird.f32 %v8461_v61  ;;  %3854 = vmatpush.bf16.msra.mxu3 %v5571_v17  ;;  %v5554_v30 = vld [vmem:[%s9009_s9 + $0x3c0] sm:$0xf]  ;;  %3843 = vmatpush.bf16.msra.mxu2 %v5491_v19  ;;  %v6021_v16 = vpop.eup %6020 }
 0x645   : > { %3879 = vmatpush.bf16.msrb.mxu1 %v5199_v9  ;;  %v2895_v51 = vmul.f32 %v2887_v23, %v8376_v24  ;;  %v2713_v7 = vmul.f32 0.3275911, %v8491_v6  ;;  %v5965_v3 = vld [vmem:[%s9009_s9 + $0x3c4] sm:$0xf0]  ;;  %v5868_v40 = vld [vmem:[%s9009_s9 + $0xc4] sm:$0xf]  ;;  %vm2817_vm4 = vweird.f32 %v8385_v60  ;;  %v5103_v57 = vor.u32 %v5850_v29, %v5100_v25 }
 0x646   : > { %v2814_v48 = vsub.f32 1.0, %v2813_v12  ;;  %v2974_v32 = vadd.f32 1.0, %v2966_v31  ;;  %v5172_v26 = vld [vmem:[%s9009_s9 + $0xc8] sm:$0xf0]  ;;  %vm8519_vm3 = vcmp.eq.f32.partialorder %v2821_v56, 8.507059e+37  ;;  %3869 = vmatpush.bf16.msrb.mxu0 %v5111_v33  ;;  %vm8543_vm5 = vmor %vm2817_vm4, %vm2818_vm2  ;;  %v2824_v60 = vor.u32 1.1754944e-38, %v2823_v27 }
 0x647   : > { %v2903_v62 = vadd.f32 0.2548296, %v2895_v51  ;;  %v8523_v45 = vadd.f32 1.0, %v2713_v7  ;;  %v5474_v52 = vld [vmem:[%s9009_s9 + $0x320] sm:$0xf]  ;;  %v5555_v39 = vor.u32 %v5965_v3, %v5554_v30  ;;  %v2671_v44 = vmul.f32 0.5, %v8147_v53 }
 0x648   : > { %v2815_v18 = vmul.f32 %v8461_v61, %v2814_v48  ;;  %v2982_v41 = vmul.f32 %v2974_v32, %v8159_v14  ;;  %v5945_v9 = vld [vmem:[%s9009_s9 + $0x324] sm:$0xf0]  ;;  %v5848_v59 = vld [vmem:[%s9009_s9 + $0x24] sm:$0xf]  ;;  %v5092_v8 = vld [vmem:[%s9009_s9 + $0x28] sm:$0xf0]  ;;  %3855 = vmatpush.bf16.msra.mxu3 %v5563_v36  ;;  %3844 = vmatpush.bf16.msra.mxu2 %v5483_v43 }
 0x649   : > { %3880 = vmatpush.bf16.msrb.mxu1 %v5191_v13  ;;  %v2911_v63 = vmul.f32 %v2903_v62, %v8376_v24  ;;  %6022 = vrcp.f32 %v8523_v45  ;;  %v5546_v50 = vld [vmem:[%s9009_s9 + $0x3b0] sm:$0xf]  ;;  %v5963_v21 = vld [vmem:[%s9009_s9 + $0x3b4] sm:$0xf0]  ;;  %v5866_v2 = vld [vmem:[%s9009_s9 + $0xb4] sm:$0xf]  ;;  %v5475_v27 = vor.u32 %v5945_v9, %v5474_v52  ;;  %v5095_v19 = vor.u32 %v5848_v59, %v5092_v8 }
 0x64a   : > { %v2816_v4 = vadd.f32 %v8461_v61, %v2815_v18  ;;  %v8554_v24 = vpack.c.bf16 %v2982_v41, %v2982_v41  ;;  %v5164_v47 = vld [vmem:[%s9009_s9 + $0xb8] sm:$0xf0]  ;;  %v5466_v37 = vld [vmem:[%s9009_s9 + $0x310] sm:$0xf]  ;;  %3870 = vmatpush.bf16.msrb.mxu0 %v5103_v57  ;;  %v5943_v56 = vld [vmem:[%s9009_s9 + $0x314] sm:$0xf0]  ;;  %v5547_v25 = vor.u32 %v5963_v21, %v5546_v50  ;;  %vm2832_vm8 = vweird.f32 %v8523_v45 }
 0x64b   : > { %v2951_v11 = vmul.f32 %v6021_v16, %v2911_v63  ;;  %v5846_v17 = vld [vmem:[%s9009_s9 + $0x14] sm:$0xf]  ;;  %v5084_v34 = vld [vmem:[%s9009_s9 + $0x18] sm:$0xf0]  ;;  %v2836_v23 = vand.u32 2147483647, %v8523_v45  ;;  %v5167_v30 = vor.u32 %v5866_v2, %v5164_v47  ;;  %v5467_v3 = vor.u32 %v5943_v56, %v5466_v37 }
 0x64c   : > { %v2820_v20 = vsel %vm8543_vm5, %v8461_v61, %v2816_v4  ;;  %v5175_v61 = vor.u32 %v5868_v40, %v5172_v26  ;;  %v5538_v13 = vld [vmem:[%s9009_s9 + $0x3a0] sm:$0xf]  ;;  %v5961_v29 = vld [vmem:[%s9009_s9 + $0x3a4] sm:$0xf0]  ;;  %3822 = vmatmul.bf16.vlgmr.msra.gmra.mxu0 %v8554_v24  ;;  %v2838_v48 = vand.u32 2147483648, %v8523_v45  ;;  %3856 = vmatpush.bf16.msra.mxu3 %v5555_v39  ;;  %v5087_v40 = vor.u32 %v5846_v17, %v5084_v34 }
 0x64d   : > { %3881 = vmatpush.bf16.msrb.mxu1 %v5183_v38  ;;  %v8570_v12 = vsel %vm8519_vm3, %v2824_v60, %v2820_v20  ;;  %v2959_v31 = vsub.f32 1.0, %v2951_v11  ;;  %v5864_v51 = vld [vmem:[%s9009_s9 + $0xa4] sm:$0xf]  ;;  %v5156_v7 = vld [vmem:[%s9009_s9 + $0xa8] sm:$0xf0]  ;;  %3845 = vmatpush.bf16.msra.mxu2 %v5475_v27  ;;  %vm8619_vm6 = vcmp.eq.f32.partialorder %v2836_v23, 8.507059e+37  ;;  %v5539_v53 = vor.u32 %v5961_v29, %v5538_v13 }
 0x64e   : > { %v2848_v28 = vmul.f32 1.0614054, %v8570_v12  ;;  %v5458_v32 = vld [vmem:[%s9009_s9 + $0x300] sm:$0xf]  ;;  %v5941_v18 = vld [vmem:[%s9009_s9 + $0x304] sm:$0xf0]  ;;  %3871 = vmatpush.bf16.msrb.mxu0 %v5095_v19  ;;  %v5159_v60 = vor.u32 %v5864_v51, %v5156_v7  ;;  %6024 = vpow2.f32 %v8498_v10 }
 0x64f   : > { %v8603_v36 = vpop.eup %6022  ;;  %v2967_v38 = vmul.f32 %v2959_v31, %v8413_v15  ;;  %v5844_v26 = vld [vmem:[%s9009_s9 + $0x4] sm:$0xf]  ;;  %v5076_v16 = vld [vmem:[%s9009_s9 + $0x8] sm:$0xf0]  ;;  %v5890_v62 = vld [vmem:[%s9009_s9 + $0x174] sm:$0xf]  ;;  %v5459_v39 = vor.u32 %v5941_v18, %v5458_v32 }
 0x650   : > { %v2856_v33 = vadd.f32 -1.4531521, %v2848_v28  ;;  %v2828_v15 = vmul.f32 %v8603_v36, %v8523_v45  ;;  %v5260_v41 = vld [vmem:[%s9009_s9 + $0x178] sm:$0xf0]  ;;  %v5530_v4 = vld [vmem:[%s9009_s9 + $0x390] sm:$0xf]  ;;  %3857 = vmatpush.bf16.msra.mxu3 %v5547_v25  ;;  %vm2833_vm7 = vweird.f32 %v8603_v36  ;;  %v5079_v20 = vor.u32 %v5844_v26, %v5076_v16 }
 0x651   : > { %3882 = vmatpush.bf16.msrb.mxu1 %v5175_v61  ;;  %v2975_v57 = vadd.f32 1.0, %v2967_v38  ;;  %v2839_v9 = vor.u32 1.1754944e-38, %v2838_v48  ;;  %v5922_v59 = vld [vmem:[%s9009_s9 + $0x274] sm:$0xf]  ;;  %v5388_v8 = vld [vmem:[%s9009_s9 + $0x278] sm:$0xf0]  ;;  %3846 = vmatpush.bf16.msra.mxu2 %v5467_v3  ;;  %v5263_v2 = vor.u32 %v5890_v62, %v5260_v41  ;;  %vm8671_vm9 = vmor %vm2832_vm8, %vm2833_vm7 }
 0x652   : > { %v2864_v43 = vmul.f32 %v2856_v33, %v8570_v12  ;;  %v2829_v14 = vsub.f32 1.0, %v2828_v15  ;;  %v5959_v50 = vld [vmem:[%s9009_s9 + $0x394] sm:$0xf0]  ;;  %3872 = vmatpush.bf16.msrb.mxu0 %v5087_v40  ;;  %v5862_v47 = vld [vmem:[%s9009_s9 + $0x94] sm:$0xf]  ;;  %v5391_v56 = vor.u32 %v5922_v59, %v5388_v8  ;;  %vm2688_vm10 = vcmp.ge.f32.partialorder %v8328_v49, 0.0 }
 0x653   : > { %v2983_v21 = vmul.f32 %v2975_v57, %v2671_v44  ;;  %v5148_v37 = vld [vmem:[%s9009_s9 + $0x98] sm:$0xf0]  ;;  %v5888_v17 = vld [vmem:[%s9009_s9 + $0x164] sm:$0xf]  ;;  %v5252_v34 = vld [vmem:[%s9009_s9 + $0x168] sm:$0xf0]  ;;  %v5531_v27 = vor.u32 %v5959_v50, %v5530_v4 }
 0x654   : > { %v2872_v63 = vadd.f32 1.4214138, %v2864_v43  ;;  %v2830_v61 = vmul.f32 %v8603_v36, %v2829_v14  ;;  %v5522_v28 = vld [vmem:[%s9009_s9 + $0x380] sm:$0xf]  ;;  %3858 = vmatpush.bf16.msra.mxu3 %v5539_v53  ;;  %v5957_v13 = vld [vmem:[%s9009_s9 + $0x384] sm:$0xf0]  ;;  %v5151_v25 = vor.u32 %v5862_v47, %v5148_v37  ;;  %v5255_v33 = vor.u32 %v5888_v17, %v5252_v34 }
 0x655   : > { %3883 = vmatpush.bf16.msrb.mxu1 %v5167_v30  ;;  %v8656_v23 = vpack.c.bf16 %v2983_v21, %v2983_v21  ;;  %v5920_v29 = vld [vmem:[%s9009_s9 + $0x264] sm:$0xf]  ;;  %v5380_v31 = vld [vmem:[%s9009_s9 + $0x268] sm:$0xf0]  ;;  %3847 = vmatpush.bf16.msra.mxu2 %v5459_v39  ;;  %v5906_v30 = vld [vmem:[%s9009_s9 + $0x1f4] sm:$0xf]  ;;  %v5523_v44 = vor.u32 %v5957_v13, %v5522_v28 }
 0x656   : > { %v2880_v11 = vmul.f32 %v2872_v63, %v8570_v12  ;;  %v2831_v19 = vadd.f32 %v8603_v36, %v2830_v61  ;;  %v5860_v51 = vld [vmem:[%s9009_s9 + $0x84] sm:$0xf]  ;;  %v5140_v7 = vld [vmem:[%s9009_s9 + $0x88] sm:$0xf0]  ;;  %3873 = vmatpush.bf16.msrb.mxu0 %v5079_v20  ;;  %v5324_v3 = vld [vmem:[%s9009_s9 + $0x1f8] sm:$0xf0]  ;;  %v5383_v38 = vor.u32 %v5920_v29, %v5380_v31 }
 0x657   : > { %v5938_v32 = vld [vmem:[%s9009_s9 + $0x2f4] sm:$0xf]  ;;  %3835 = vmatmul.bf16.vlgmr.msra.gmra.mxu1 %v8656_v23  ;;  %v5452_v40 = vld [vmem:[%s9009_s9 + $0x2f8] sm:$0xf0]  ;;  %v5143_v57 = vor.u32 %v5860_v51, %v5140_v7  ;;  %v5327_v52 = vor.u32 %v5906_v30, %v5324_v3  ;;  %v5316_v8 = vld [vmem:[%s9009_s9 + $0x1e8] sm:$0xf0] }
 0x658   : > { %v2888_v48 = vadd.f32 -0.28449672, %v2880_v11  ;;  %v2835_v10 = vsel %vm8671_vm9, %v8603_v36, %v2831_v19  ;;  %v5886_v26 = vld [vmem:[%s9009_s9 + $0x154] sm:$0xf]  ;;  %v5244_v16 = vld [vmem:[%s9009_s9 + $0x158] sm:$0xf0]  ;;  %3859 = vmatpush.bf16.msra.mxu3 %v5531_v27  ;;  %v5455_v53 = vor.u32 %v5938_v32, %v5452_v40 }
 0x659   : > { %3884 = vmatpush.bf16.msrb.mxu1 %v5159_v60  ;;  %3892 = vmatpush.bf16.msrb.mxu2 %v5263_v2  ;;  %v8707_v62 = vsel %vm8619_vm6, %v2839_v9, %v2835_v10  ;;  %v2921_v36 = vsub.f32 0.0, %v8491_v6  ;;  %v5918_v43 = vld [vmem:[%s9009_s9 + $0x254] sm:$0xf]  ;;  %v5372_v15 = vld [vmem:[%s9009_s9 + $0x258] sm:$0xf0]  ;;  %v5247_v59 = vor.u32 %v5886_v26, %v5244_v16  ;;  %v6025_v2 = vpop.eup %6024  ;;  %v2696_v29 = vsel %vm2688_vm10, 1.0, %v6039_v58 }
 0x65a   : > { %v2896_v18 = vmul.f32 %v2888_v48, %v8570_v12  ;;  %3918 = vmatpush.bf16.msra.mxu0 %v5391_v56  ;;  %v2849_v4 = vmul.f32 1.0614054, %v8707_v62  ;;  %v5904_v9 = vld [vmem:[%s9009_s9 + $0x1e4] sm:$0xf]  ;;  %v5444_v14 = vld [vmem:[%s9009_s9 + $0x2e8] sm:$0xf0]  ;;  %v5375_v50 = vor.u32 %v5918_v43, %v5372_v15 }
 0x65b   : > { %v5936_v63 = vld [vmem:[%s9009_s9 + $0x2e4] sm:$0xf]  ;;  %v5236_v20 = vld [vmem:[%s9009_s9 + $0x148] sm:$0xf0]  ;;  %v2929_v47 = vmul.f32 %v2921_v36, %v8491_v6  ;;  %v5319_v56 = vor.u32 %v5904_v9, %v5316_v8  ;;  %v5902_v6 = vld [vmem:[%s9009_s9 + $0x1d4] sm:$0xf] }
 0x65c   : > { %v2904_v41 = vadd.f32 0.2548296, %v2896_v18  ;;  %v2857_v39 = vadd.f32 -1.4531521, %v2849_v4  ;;  %v5884_v21 = vld [vmem:[%s9009_s9 + $0x144] sm:$0xf]  ;;  %3860 = vmatpush.bf16.msra.mxu3 %v5523_v44  ;;  %3874 = vmatmul.bf16.vlgmr.msrb.gmra.mxu0 %v8201_v54  ;;  %v5447_v34 = vor.u32 %v5936_v63, %v5444_v14 }
 0x65d   : > { %3885 = vmatpush.bf16.msrb.mxu1 %v5151_v25  ;;  %3893 = vmatpush.bf16.msrb.mxu2 %v5255_v33  ;;  %v5364_v37 = vld [vmem:[%s9009_s9 + $0x248] sm:$0xf0]  ;;  %v5308_v17 = vld [vmem:[%s9009_s9 + $0x1d8] sm:$0xf0]  ;;  %v5239_v28 = vor.u32 %v5884_v21, %v5236_v20  ;;  %v5934_v54 = vld [vmem:[%s9009_s9 + $0x2d4] sm:$0xf] }
 0x65e   : > { %v2912_v60 = vmul.f32 %v2904_v41, %v8570_v12  ;;  %3919 = vmatpush.bf16.msra.mxu0 %v5383_v38  ;;  %v5916_v12 = vld [vmem:[%s9009_s9 + $0x244] sm:$0xf]  ;;  %v2865_v61 = vmul.f32 %v2857_v39, %v8707_v62  ;;  %v5436_v27 = vld [vmem:[%s9009_s9 + $0x2d8] sm:$0xf0]  ;;  %v5882_v13 = vld [vmem:[%s9009_s9 + $0x134] sm:$0xf]  ;;  %v5311_v30 = vor.u32 %v5902_v6, %v5308_v17 }
 0x65f   : > { %v5367_v19 = vor.u32 %v5916_v12, %v5364_v37  ;;  %v5228_v45 = vld [vmem:[%s9009_s9 + $0x138] sm:$0xf0]  ;;  %v2944_v25 = vmul.f32 1.442695, %v2929_v47  ;;  %v5914_v51 = vld [vmem:[%s9009_s9 + $0x234] sm:$0xf]  ;;  %v5439_v18 = vor.u32 %v5934_v54, %v5436_v27 }
 0x660   : > { %v2952_v11 = vmul.f32 %v6025_v2, %v2912_v60  ;;  %3905 = vmatpush.bf16.msrb.mxu3 %v5327_v52  ;;  %v2873_v48 = vadd.f32 1.4214138, %v2865_v61  ;;  %v5356_v7 = vld [vmem:[%s9009_s9 + $0x238] sm:$0xf0]  ;;  %v5900_v3 = vld [vmem:[%s9009_s9 + $0x1c4] sm:$0xf]  ;;  %v5231_v10 = vor.u32 %v5882_v13, %v5228_v45 }
 0x661   : > { %3886 = vmatpush.bf16.msrb.mxu1 %v5143_v57  ;;  %3894 = vmatpush.bf16.msrb.mxu2 %v5247_v59  ;;  %v5300_v32 = vld [vmem:[%s9009_s9 + $0x1c8] sm:$0xf0]  ;;  %v5932_v38 = vld [vmem:[%s9009_s9 + $0x2c4] sm:$0xf]  ;;  %v2672_v16 = vmul.f32 0.5, %v8309_v5  ;;  %v5359_v43 = vor.u32 %v5914_v51, %v5356_v7  ;;  %6026 = vpow2.f32 %v2944_v25  ;;  %vm2689_vm11 = vcmp.ge.f32.partialorder %v8466_v0, 0.0 }
 0x662   : > { %v2960_v31 = vsub.f32 1.0, %v2952_v11  ;;  %3920 = vmatpush.bf16.msra.mxu0 %v5375_v50  ;;  %v2881_v49 = vmul.f32 %v2873_v48, %v8707_v62  ;;  %v5428_v40 = vld [vmem:[%s9009_s9 + $0x2c8] sm:$0xf0]  ;;  %v5880_v26 = vld [vmem:[%s9009_s9 + $0x124] sm:$0xf]  ;;  %v5303_v52 = vor.u32 %v5900_v3, %v5300_v32  ;;  %v2697_v25 = vsel %vm2689_vm11, 1.0, %v6039_v58 }
 0x663   : > { %v5220_v15 = vld [vmem:[%s9009_s9 + $0x128] sm:$0xf0]  ;;  %v5912_v41 = vld [vmem:[%s9009_s9 + $0x224] sm:$0xf]  ;;  %v5898_v9 = vld [vmem:[%s9009_s9 + $0x1b4] sm:$0xf] }
 0x664   : > { %v2968_v33 = vmul.f32 %v2960_v31, %v2696_v29  ;;  %3906 = vmatpush.bf16.msrb.mxu3 %v5319_v56  ;;  %v2889_v44 = vadd.f32 -0.28449672, %v2881_v49  ;;  %v5348_v4 = vld [vmem:[%s9009_s9 + $0x228] sm:$0xf0]  ;;  %v5223_v59 = vor.u32 %v5880_v26, %v5220_v15  ;;  %v5292_v8 = vld [vmem:[%s9009_s9 + $0x1b8] sm:$0xf0] }
 0x665   : > { %3931 = vmatpush.bf16.msra.mxu1 %v5455_v53  ;;  %3895 = vmatpush.bf16.msrb.mxu2 %v5239_v28  ;;  %v5431_v53 = vor.u32 %v5932_v38, %v5428_v40  ;;  %v5930_v63 = vld [vmem:[%s9009_s9 + $0x2b4] sm:$0xf]  ;;  %v5420_v14 = vld [vmem:[%s9009_s9 + $0x2b8] sm:$0xf0]  ;;  %v5351_v50 = vor.u32 %v5912_v41, %v5348_v4  ;;  %v5295_v12 = vor.u32 %v5898_v9, %v5292_v8  ;;  %v5896_v37 = vld [vmem:[%s9009_s9 + $0x1a4] sm:$0xf] }
 0x666   : > { %v2976_v36 = vadd.f32 1.0, %v2968_v33  ;;  %3921 = vmatpush.bf16.msra.mxu0 %v5367_v19  ;;  %v2897_v5 = vmul.f32 %v2889_v44, %v8707_v62  ;;  %v5878_v21 = vld [vmem:[%s9009_s9 + $0x114] sm:$0xf]  ;;  %v5212_v20 = vld [vmem:[%s9009_s9 + $0x118] sm:$0xf0]  ;;  %v5423_v61 = vor.u32 %v5930_v63, %v5420_v14  ;;  %v2673_v38 = vmul.f32 0.5, %v8441_v22 }
 0x667   : > { %3887 = vmatmul.bf16.vlgmr.msrb.gmra.mxu1 %v8285_v42  ;;  %v5910_v2 = vld [vmem:[%s9009_s9 + $0x214] sm:$0xf]  ;;  %v5340_v47 = vld [vmem:[%s9009_s9 + $0x218] sm:$0xf0]  ;;  %v6027_v11 = vpop.eup %6026  ;;  %v5215_v56 = vor.u32 %v5878_v21, %v5212_v20  ;;  %v5284_v6 = vld [vmem:[%s9009_s9 + $0x1a8] sm:$0xf0] }
 0x668   : > { %v2984_v57 = vmul.f32 %v2976_v36, %v2672_v16  ;;  %3907 = vmatpush.bf16.msrb.mxu3 %v5311_v30  ;;  %v2905_v39 = vadd.f32 0.2548296, %v2897_v5  ;;  %v5412_v17 = vld [vmem:[%s9009_s9 + $0x2a8] sm:$0xf0]  ;;  %v5343_v28 = vor.u32 %v5910_v2, %v5340_v47  ;;  %v5876_v54 = vld [vmem:[%s9009_s9 + $0x104] sm:$0xf]  ;;  %v5287_v45 = vor.u32 %v5896_v37, %v5284_v6 }
 0x669   : > { %3932 = vmatpush.bf16.msra.mxu1 %v5447_v34  ;;  %3896 = vmatpush.bf16.msrb.mxu2 %v5231_v10  ;;  %v5204_v27 = vld [vmem:[%s9009_s9 + $0x108] sm:$0xf0]  ;;  %v5908_v13 = vld [vmem:[%s9009_s9 + $0x204] sm:$0xf]  ;;  %v5954_v31 = vld [vmem:[%s9009_s9 + $0x374] sm:$0xf] }
 0x66a   : > { %v8812_v60 = vpack.c.bf16 %v2984_v57, %v2984_v57  ;;  %3922 = vmatpush.bf16.msra.mxu0 %v5359_v43  ;;  %v2913_v42 = vmul.f32 %v2905_v39, %v8707_v62  ;;  %v5928_v62 = vld [vmem:[%s9009_s9 + $0x2a4] sm:$0xf]  ;;  %v5332_v29 = vld [vmem:[%s9009_s9 + $0x208] sm:$0xf0]  ;;  %v5516_v48 = vld [vmem:[%s9009_s9 + $0x378] sm:$0xf0]  ;;  %v5207_v7 = vor.u32 %v5876_v54, %v5204_v27 }
 0x66b   : > { %v5415_v51 = vor.u32 %v5928_v62, %v5412_v17  ;;  %v5894_v33 = vld [vmem:[%s9009_s9 + $0x194] sm:$0xf]  ;;  %v5276_v49 = vld [vmem:[%s9009_s9 + $0x198] sm:$0xf0]  ;;  %v5335_v3 = vor.u32 %v5908_v13, %v5332_v29  ;;  %v5519_v32 = vor.u32 %v5954_v31, %v5516_v48  ;;  %v5508_v10 = vld [vmem:[%s9009_s9 + $0x368] sm:$0xf0] }
 0x66c   : > { %3908 = vmatpush.bf16.msrb.mxu3 %v5303_v52  ;;  %3848 = vmatmul.bf16.vlgmr.msra.gmra.mxu2 %v8812_v60  ;;  %v2953_v34 = vmul.f32 %v6027_v11, %v2913_v42  ;;  %v5926_v58 = vld [vmem:[%s9009_s9 + $0x294] sm:$0xf]  ;;  %v5404_v0 = vld [vmem:[%s9009_s9 + $0x298] sm:$0xf0]  ;;  %v5279_v26 = vor.u32 %v5894_v33, %v5276_v49  ;;  %v5892_v36 = vld [vmem:[%s9009_s9 + $0x184] sm:$0xf] }
 0x66d   : > { %3933 = vmatpush.bf16.msra.mxu1 %v5439_v18  ;;  %3897 = vmatpush.bf16.msrb.mxu2 %v5223_v59  ;;  %v5952_v18 = vld [vmem:[%s9009_s9 + $0x364] sm:$0xf]  ;;  %v5407_v16 = vor.u32 %v5926_v58, %v5404_v0  ;;  %v5268_v44 = vld [vmem:[%s9009_s9 + $0x188] sm:$0xf0]  ;;  %v5970_v4 = vld [vmem:[%s9009_s9 + $0x3f4] sm:$0xf] }
 0x66e   : > { %3923 = vmatpush.bf16.msra.mxu0 %v5351_v50  ;;  %v2961_v19 = vsub.f32 1.0, %v2953_v34  ;;  %v5924_v43 = vld [vmem:[%s9009_s9 + $0x284] sm:$0xf]  ;;  %v5511_v22 = vor.u32 %v5952_v18, %v5508_v10  ;;  %v5396_v41 = vld [vmem:[%s9009_s9 + $0x288] sm:$0xf0] }
 0x66f   : > { %v5580_v57 = vld [vmem:[%s9009_s9 + $0x3f8] sm:$0xf0]  ;;  %v5950_v5 = vld [vmem:[%s9009_s9 + $0x354] sm:$0xf]  ;;  %v5399_v59 = vor.u32 %v5924_v43, %v5396_v41  ;;  %v5968_v14 = vld [vmem:[%s9009_s9 + $0x3e4] sm:$0xf] }
 0x670   : > { %3909 = vmatpush.bf16.msrb.mxu3 %v5295_v12  ;;  %v2969_v30 = vmul.f32 %v2961_v19, %v2697_v25  ;;  %v5500_v52 = vld [vmem:[%s9009_s9 + $0x358] sm:$0xf0]  ;;  %v5583_v8 = vor.u32 %v5970_v4, %v5580_v57  ;;  %v5572_v39 = vld [vmem:[%s9009_s9 + $0x3e8] sm:$0xf0]  ;;  %v5948_v50 = vld [vmem:[%s9009_s9 + $0x344] sm:$0xf] }
 0x671   : > { %3934 = vmatpush.bf16.msra.mxu1 %v5431_v53  ;;  %3898 = vmatpush.bf16.msrb.mxu2 %v5215_v56  ;;  %v5271_v53 = vor.u32 %v5892_v36, %v5268_v44  ;;  %v5503_v63 = vor.u32 %v5950_v5, %v5500_v52  ;;  %v5575_v21 = vor.u32 %v5968_v14, %v5572_v39  ;;  %v5966_v2 = vld [vmem:[%s9009_s9 + $0x3d4] sm:$0xf]  ;;  %v5564_v47 = vld [vmem:[%s9009_s9 + $0x3d8] sm:$0xf0]  ;;  %v5964_v11 = vld [vmem:[%s9009_s9 + $0x3c4] sm:$0xf] }
 0x672   : > { %3924 = vmatpush.bf16.msra.mxu0 %v5343_v28  ;;  %v2977_v40 = vadd.f32 1.0, %v2969_v30  ;;  %v5946_v42 = vld [vmem:[%s9009_s9 + $0x334] sm:$0xf]  ;;  %v5567_v12 = vor.u32 %v5966_v2, %v5564_v47  ;;  %v5944_v56 = vld [vmem:[%s9009_s9 + $0x324] sm:$0xf] }
 0x673   : > { %v5962_v17 = vld [vmem:[%s9009_s9 + $0x3b4] sm:$0xf]  ;;  %v5548_v34 = vld [vmem:[%s9009_s9 + $0x3b8] sm:$0xf0]  ;;  %v5960_v29 = vld [vmem:[%s9009_s9 + $0x3a4] sm:$0xf] }
 0x674   : > { %3910 = vmatpush.bf16.msrb.mxu3 %v5287_v45  ;;  %v2985_v15 = vmul.f32 %v2977_v40, %v2673_v38  ;;  %v5942_v28 = vld [vmem:[%s9009_s9 + $0x314] sm:$0xf]  ;;  %v5468_v54 = vld [vmem:[%s9009_s9 + $0x318] sm:$0xf0]  ;;  %v5551_v27 = vor.u32 %v5962_v17, %v5548_v34  ;;  %v5540_v31 = vld [vmem:[%s9009_s9 + $0x3a8] sm:$0xf0] }
 0x675   : > { %3935 = vmatpush.bf16.msra.mxu1 %v5423_v61  ;;  %3899 = vmatpush.bf16.msrb.mxu2 %v5207_v7  ;;  %v5556_v61 = vld [vmem:[%s9009_s9 + $0x3c8] sm:$0xf0]  ;;  %v5471_v13 = vor.u32 %v5942_v28, %v5468_v54  ;;  %v5940_v48 = vld [vmem:[%s9009_s9 + $0x304] sm:$0xf]  ;;  %v5543_v45 = vor.u32 %v5960_v29, %v5540_v31  ;;  %v5958_v25 = vld [vmem:[%s9009_s9 + $0x394] sm:$0xf] }
 0x676   : > { %3925 = vmatpush.bf16.msra.mxu0 %v5335_v3  ;;  %v8906_v9 = vpack.c.bf16 %v2985_v15, %v2985_v15  ;;  %v5559_v6 = vor.u32 %v5964_v11, %v5556_v61  ;;  %v5460_v19 = vld [vmem:[%s9009_s9 + $0x308] sm:$0xf0]  ;;  %v5956_v33 = vld [vmem:[%s9009_s9 + $0x384] sm:$0xf] }
 0x677   : > { %v5524_v49 = vld [vmem:[%s9009_s9 + $0x388] sm:$0xf0] }
 0x678   : > { %3911 = vmatpush.bf16.msrb.mxu3 %v5279_v26  ;;  %v5527_v30 = vor.u32 %v5956_v33, %v5524_v49 }
 0x679   : > { %3936 = vmatpush.bf16.msra.mxu1 %v5415_v51  ;;  %3944 = vmatpush.bf16.msra.mxu2 %v5519_v32  ;;  %v5532_v51 = vld [vmem:[%s9009_s9 + $0x398] sm:$0xf0] }
 0x67a   : > { %3926 = vmatmul.bf16.vlgmr.msra.gmra.mxu0 %v8554_v24  ;;  %3861 = vmatmul.bf16.vlgmr.msra.gmra.mxu3 %v8906_v9  ;;  %v5492_v24 = vld [vmem:[%s9009_s9 + $0x348] sm:$0xf0]  ;;  %v5535_v7 = vor.u32 %v5958_v25, %v5532_v51 }
 0x67b   : > { %v5495_v20 = vor.u32 %v5948_v50, %v5492_v24 }
 0x67c   : > { %3912 = vmatpush.bf16.msrb.mxu3 %v5271_v53  ;;  %3900 = vmatmul.bf16.vlgmr.msrb.gmra.mxu2 %v8372_v55  ;;  %v5484_v55 = vld [vmem:[%s9009_s9 + $0x338] sm:$0xf0] }
 0x67d   : > { %3937 = vmatpush.bf16.msra.mxu1 %v5407_v16  ;;  %3945 = vmatpush.bf16.msra.mxu2 %v5511_v22  ;;  %v5487_v37 = vor.u32 %v5946_v42, %v5484_v55 }
 0x680   : > { %3957 = vmatpush.bf16.msra.mxu3 %v5583_v8  ;;  %v3972_v8 = vld [vmem:[%s9010_s10] sm:$0x3] }
 0x681   : > { %3938 = vmatpush.bf16.msra.mxu1 %v5399_v59  ;;  %3946 = vmatpush.bf16.msra.mxu2 %v5503_v63  ;;  %v3974_v24 = vperm.slane %v3972_v8, 0  ;;  %v3975_v54 = vperm.slane %v3972_v8, 1 }
 0x684   : > { %3939 = vmatmul.bf16.vlgmr.msra.gmra.mxu1 %v8656_v23  ;;  %3958 = vmatpush.bf16.msra.mxu3 %v5575_v21  ;;  %v5476_v23 = vld [vmem:[%s9009_s9 + $0x328] sm:$0xf0] }
 0x685   : > { %3947 = vmatpush.bf16.msra.mxu2 %v5495_v20  ;;  %v5479_v62 = vor.u32 %v5944_v56, %v5476_v23 }
 0x688   : > { %3959 = vmatpush.bf16.msra.mxu3 %v5567_v12 }
 0x689   : > { %3948 = vmatpush.bf16.msra.mxu2 %v5487_v37 }
 0x68a   : > { %3913 = vmatmul.bf16.vlgmr.msrb.gmra.mxu3 %v8449_v1  ;;  %v5463_v1 = vor.u32 %v5940_v48, %v5460_v19 }
 0x68c   : > { %3960 = vmatpush.bf16.msra.mxu3 %v5559_v6 }
 0x68d   : > { %3949 = vmatpush.bf16.msra.mxu2 %v5479_v62 }
 0x690   : > { %3961 = vmatpush.bf16.msra.mxu3 %v5551_v27 }
 0x691   : > { %3950 = vmatpush.bf16.msra.mxu2 %v5471_v13 }
 0x694   : > { %3962 = vmatpush.bf16.msra.mxu3 %v5543_v45 }
 0x695   : > { %3951 = vmatpush.bf16.msra.mxu2 %v5463_v1 }
 0x698   : > { %3963 = vmatpush.bf16.msra.mxu3 %v5535_v7  ;;  %3952 = vmatmul.bf16.vlgmr.msra.gmra.mxu2 %v8812_v60 }
 0x69c   : > { %3964 = vmatpush.bf16.msra.mxu3 %v5527_v30 }
 0x69f   : > { %3965 = vmatmul.bf16.vlgmr.msra.gmra.mxu3 %v8906_v9 }
 0x6a8   : > { %v3771_v3 = vpop.f32.mrf.mxu0 }
 0x6af   : > { %v3784_v32 = vpop.f32.mrf.mxu1 }
 0x6b0   : > { %v3785_v58 = vadd.f32 %v3784_v32, %v3771_v3  ;;  %v3773_v0 = vpop.f32.mrf.mxu0 }
 0x6b7   : > { %v3786_v18 = vpop.f32.mrf.mxu1 }
 0x6be   : > { %v3797_v10 = vpop.f32.mrf.mxu2 }
 0x6bf   : > { %v3798_v57 = vadd.f32 %v3797_v10, %v3785_v58 }
 0x6c6   : > { %v3799_v38 = vpop.f32.mrf.mxu2  ;;  %v3810_v40 = vpop.f32.mrf.mxu3 }
 0x6c7   : > { %v3811_v5 = vadd.f32 %v3810_v40, %v3798_v57 }
 0x6c9   : > { %v3823_v26 = vpop.f32.mrf.mxu0 }
 0x6ca   : > { %v3824_v53 = vadd.f32 %v3823_v26, %v3811_v5 }
 0x6ce   : > { %v3812_v16 = vpop.f32.mrf.mxu3 }
 0x6d1   : > { %v3825_v36 = vpop.f32.mrf.mxu0 }
 0x6d4   : > { %v3836_v44 = vpop.f32.mrf.mxu1 }
 0x6d5   : > { %v3837_v59 = vadd.f32 %v3836_v44, %v3824_v53 }
 0x6d9   : > { %v3875_v43 = vpop.f32.mrf.mxu0 }
 0x6dc   : > { %v3838_v15 = vpop.f32.mrf.mxu1 }
 0x6e1   : > { %v3877_v22 = vpop.f32.mrf.mxu0 }
 0x6e4   : > { %v3888_v60 = vpop.f32.mrf.mxu1 }
 0x6e5   : > { %v3889_v11 = vadd.f32 %v3888_v60, %v3875_v43 }
 0x6ec   : > { %v3890_v41 = vpop.f32.mrf.mxu1 }
 0x6ef   : > { %v3849_v4 = vpop.f32.mrf.mxu2 }
 0x6f0   : > { %v3850_v63 = vadd.f32 %v3849_v4, %v3837_v59 }
 0x6f7   : > { %v3927_v52 = vpop.f32.mrf.mxu0  ;;  %v3851_v9 = vpop.f32.mrf.mxu2 }
 0x6fd   : > { %v3862_v39 = vpop.f32.mrf.mxu3 }
 0x6fe   : > { %v3863_v50 = vadd.f32 %v3862_v39, %v3850_v63 }
 0x6ff   : > { %v3929_v21 = vpop.f32.mrf.mxu0  ;;  %v3901_v20 = vpop.f32.mrf.mxu2 }
 0x700   : > { %v3970_v2 = vadd.f32 %v3863_v50, %v6990_v35  ;;  %v3902_v61 = vadd.f32 %v3901_v20, %v3889_v11 }
 0x701   : > { %v3940_v14 = vpop.f32.mrf.mxu1 }
 0x702   : > { %v3978_v47 = vadd.f32 %v3974_v24, %v3970_v2 }
 0x704   : > { %3980 = vst [vmem:[%s440_s28] sm:$0xff] %v3978_v47 }
 0x705   : > { %v3864_v55 = vpop.f32.mrf.mxu3 }
 0x707   : > { %v3903_v12 = vpop.f32.mrf.mxu2 }
 0x709   : > { %v3942_v42 = vpop.f32.mrf.mxu1 }
 0x70d   : > { %v3914_v37 = vpop.f32.mrf.mxu3 }
 0x70e   : > { %v3915_v56 = vadd.f32 %v3914_v37, %v3902_v61 }
 0x710   : > { %v3928_v6 = vadd.f32 %v3927_v52, %v3915_v56 }
 0x712   : > { %v3941_v17 = vadd.f32 %v3940_v14, %v3928_v6 }
 0x715   : > { %v3916_v23 = vpop.f32.mrf.mxu3 }
 0x71b   : > { %v3953_v62 = vpop.f32.mrf.mxu2 }
 0x71c   : > { %v3954_v34 = vadd.f32 %v3953_v62, %v3941_v17 }
 0x722   : > { %v3966_v35 = vpop.f32.mrf.mxu3 }
 0x723   : > { %v3967_v28 = vadd.f32 %v3966_v35, %v3954_v34  ;;  %v3955_v27 = vpop.f32.mrf.mxu2 }
 0x725   : > { %v3971_v13 = vadd.f32 %v3967_v28, %v6992_v46 }
 0x727   : > { %v3979_v29 = vadd.f32 %v3975_v54, %v3971_v13 }
 0x729   : > { %3981 = vst [vmem:[%s440_s28 + $0x8] sm:$0xff] %v3979_v29 }
 0x72a   : > { %v3968_v31 = vpop.f32.mrf.mxu3 }
 0x72b PF: > { %s23_s25 = sadd.s32 1, %s6036_s25  }
 0x72c   : > { %p20_p4 = scmp.ge.s32.totalorder %s23_s25, 4  }
 0x72e   :  { %22 = sbr.rel (!%p20_p4) target bundleno = 1 (0x1), region = 102 }

// kernel: gpt_forward.3
= control target key start
LH: loop header
LB: loop body
LE: loop exit
PB: predicated region body
PF: predicated region fallthrough
CT: control target
= control target key end

     0   :  { %s7161_s0 = inlined_call_operand.vmem [shape: f32[16,256], index: 0, kind: input, shape index: {}, may-alias: {0,13}]   ;;  %s7162_s1 = inlined_call_operand.hbm [shape: bf16[256,768], index: 1, kind: input, shape index: {}]   ;;  %s7163_s2 = inlined_call_operand.vmem [shape: f32[1,768], index: 2, kind: input, shape index: {}]   ;;  %s7164_s3 = inlined_call_operand.vmem [shape: f32[1,256], index: 3, kind: input, shape index: {}]   ;;  %s7165_s4 = inlined_call_operand.vmem [shape: f32[1,256], index: 4, kind: input, shape index: {}]   ;;  %s7166_s5 = inlined_call_operand.vmem [shape: bf16[256,256], index: 5, kind: input, shape index: {}]   ;;  %s7167_s6 = inlined_call_operand.vmem [shape: f32[1,256], index: 6, kind: input, shape index: {}]   ;;  %s7168_s7 = inlined_call_operand.hbm [shape: bf16[256,1024], index: 7, kind: input, shape index: {}]   ;;  %s7169_s8 = inlined_call_operand.vmem [shape: f32[1,1024], index: 8, kind: input, shape index: {}]   ;;  %s7170_s9 = inlined_call_operand.hbm [shape: bf16[1024,256], index: 9, kind: input, shape index: {}]   ;;  %s7171_s10 = inlined_call_operand.vmem [shape: f32[1,256], index: 10, kind: input, shape index: {}]   ;;  %s7172_s11 = inlined_call_operand.vmem [shape: f32[1,256], index: 11, kind: input, shape index: {}]   ;;  %s7173_s12 = inlined_call_operand.vmem [shape: f32[1,256], index: 12, kind: input, shape index: {}]   ;;  %s7174_s13 = inlined_call_operand.vmem [shape: f32[16,256], index: 13, kind: output, shape index: {}, may-alias: {0,13}]  }
   0x1   :  { %7176 = sst [smem:[#allocation10_spill]] %s7162_s1 }
   0x2   :  { %7177 = sst [smem:[#allocation11_spill]] %s7168_s7 }
   0x3   :  { %18 = vsyncpa [#allocation3], 0 }
   0x4   :  { %19 = vsyncpa [#allocation5], 0  ;;  %s6341_s25 = smov 0  }
   0x5 LB: > { %7178 = sst [smem:[#allocation9_spill]] %s6258_s25  ;;  %s6350_s29 = sadd.s32 4294967295, %s6258_s25   ;;  %s6258_s25 = sphi %s6341_s25, %s25_s25  }
   0x6   : > { %s7179_s7 = sld [smem:[#allocation11_spill]]  ;;  %p4120_p0 = scmp.ge.s32.totalorder %s6258_s25, 1 }
   0x7   : > { %p334_p1 = scmp.lt.s32.totalorder %s6258_s25, 3  ;;  %p6081_p2 = scmp.eq.s32.totalorder %s6350_s29, 0 }
   0x8   : > { %s6260_s14 = smov [#allocation4]   ;;  %s7181_s1 = sld [smem:[#allocation10_spill]] }
   0x9   : > { %p6355_p3 = pnand %p4120_p0, %p334_p1  ;;  %s376_s15 = sshll.u32 %s6260_s14, 4  ;;  %s377_s15 = int_to_ptr.vmem [resolvable:$true] %s376_s15 }
   0xa   : > { %s6261_s20 = smov [#allocation2]   ;;  %s6262_s22 = smov 512  }
   0xb   : > { %p6071_p4 = pneg %p6355_p3  ;;  %s347_s21 = sshll.u32 %s6261_s20, 4  ;;  %s348_s21 = int_to_ptr.vmem [resolvable:$true] %s347_s21 }
   0xc   : > { %s374_s28 = sshll.u32 %s7179_s7, 4  ;;  %s6263_s23 = smov 32   ;;  %s375_s28 = int_to_ptr.hbm [resolvable:$true] %s374_s28 }
   0xd   : > { %p6366_p5 = pnand %p6081_p2, %p6071_p4  ;;  %s391_s27 = sshll.u32 %s7170_s9, 4  ;;  %s392_s27 = int_to_ptr.hbm [resolvable:$true] %s391_s27 }
   0xe   : > { %s345_s18 = sshll.u32 %s7181_s1, 4  ;;  %s6264_s14 = smov 384   ;;  %s346_s18 = int_to_ptr.hbm [resolvable:$true] %s345_s18 }
   0xf   : > { %6077 = dma.hbm_to_vmem [thread:$0]  (!%p6366_p5), %s375_s28, 16384, %s377_s15, [#allocation5], %s6262_s22, %s6262_s22, %s6263_s23  }
  0x10   : > { %s6265_s16 = smov 24   ;;  %s6266_s17 = smov [#allocation6]  }
  0x11   : > { %6074 = dma.hbm_to_vmem [thread:$0]  (!%p6366_p5), %s346_s18, 12288, %s348_s21, [#allocation3], %s6264_s14, %s6264_s14, %s6265_s16  }
  0x12   : > { %s393_s1 = sshll.u32 %s6266_s17, 4  ;;  %s6267_s7 = smov 128   ;;  %s394_s1 = int_to_ptr.vmem [resolvable:$true] %s393_s1 }
  0x13   : > { %s6268_s25 = smov 8   ;;  %426 = sbr.rel (%p6355_p3) target bundleno = 1853 (0x73d), region = 72 }
  0x14   : > { %6080 = dma.hbm_to_vmem [thread:$0]  (!%p6366_p5), %s392_s27, 16384, %s394_s1, [#allocation5], %s6267_s7, %s6267_s7, %s6268_s25  }
  0x18   : > { %6249 = dma.done.wait (%p6081_p2), [#allocation3], 12288  }
  0x19   : > { %6251 = vsyncadd (%p6081_p2), [#allocation3], 4294955008 }
  0x1a   : > { %6253 = dma.done.wait (%p6081_p2), [#allocation5], 32768  }
  0x1b   : > { %6255 = vsyncadd (%p6081_p2), [#allocation5], 4294934528  ;;  %p481_p6 = scmp.lt.s32.totalorder %s6350_s29, 1  ;;  %v6269_v3 = vmov 256.0   ;;  %v4303_v7 = vld [vmem:[#allocation2 + $0x150] sm:$0xf] }
  0x1c   : > { %6106 = vrcp.f32 %v6269_v3  ;;  %v5720_v8 = vld [vmem:[#allocation2 + $0x164] sm:$0xf0]  ;;  %v4495_v9 = vld [vmem:[#allocation2 + $0x2d0] sm:$0xf]  ;;  %v5717_v12 = vld [vmem:[#allocation2 + $0x154] sm:$0xf] }
  0x1d   : > { %s7207_s29 = smov (!%p481_p6, %s6350_s29), 1  ;;  %v4304_v10 = vor.u32 %v5720_v8, %v4303_v7  ;;  %v5768_v11 = vld [vmem:[#allocation2 + $0x2e4] sm:$0xf0]  ;;  %v4305_v13 = vld [vmem:[#allocation2 + $0x168] sm:$0xf0]  ;;  %vm1344_vm4 = vcmask 1043456  }
  0x1e   : > { %s5673_s1 = sshll.u32 %s7207_s29, 4  ;;  %v4496_v14 = vor.u32 %v5768_v11, %v4495_v9  ;;  %v4308_v15 = vor.u32 %v5717_v12, %v4305_v13  ;;  %v5765_v16 = vld [vmem:[#allocation2 + $0x2d4] sm:$0xf]  ;;  %v4497_v17 = vld [vmem:[#allocation2 + $0x2e8] sm:$0xf0]  ;;  %vm1315_vm8 = vcmask 64512  }
  0x1f   : > { %s6399_s28 = scalar_lea.vmem %s7161_s0, %s5673_s1  ;;  %v4279_v18 = vld [vmem:[#allocation2 + $0x120] sm:$0xf]  ;;  %1134 = vmatpush.bf16.msra.mxu0 %v4304_v10  ;;  %v4500_v19 = vor.u32 %v5765_v16, %v4497_v17  ;;  %v5714_v20 = vld [vmem:[#allocation2 + $0x134] sm:$0xf0]  ;;  %v5711_v25 = vld [vmem:[#allocation2 + $0x124] sm:$0xf]  ;;  %s490_s15 = scalar_lea.vmem %s7174_s13, %s5673_s1 }
  0x20   : > { %v6402_v0 = vld [vmem:[%s6399_s28] sm:$0xff]  ;;  %v6405_v1 = vld [vmem:[%s6399_s28 + $0x8] sm:$0xff]  ;;  %v5762_v22 = vld [vmem:[#allocation2 + $0x2b4] sm:$0xf0]  ;;  %1147 = vmatpush.bf16.msra.mxu1 %v4496_v14  ;;  %1160 = vmatpush.bf16.msra.mxu2 %v4308_v15  ;;  %v4280_v23 = vor.u32 %v5714_v20, %v4279_v18 }
  0x21   : > { %v496_v2 = vadd.f32 %v6405_v1, %v6402_v0  ;;  %v4471_v21 = vld [vmem:[#allocation2 + $0x2a0] sm:$0xf]  ;;  %v4281_v26 = vld [vmem:[#allocation2 + $0x138] sm:$0xf0]  ;;  %v5759_v27 = vld [vmem:[#allocation2 + $0x2a4] sm:$0xf]  ;;  %1173 = vmatpush.bf16.msra.mxu3 %v4500_v19 }
  0x22   : > { %v6409_v4 = vpop.eup %6106  ;;  %v4472_v24 = vor.u32 %v5762_v22, %v4471_v21  ;;  %v4284_v28 = vor.u32 %v5711_v25, %v4281_v26  ;;  %v4473_v29 = vld [vmem:[#allocation2 + $0x2b8] sm:$0xf0]  ;;  %v4255_v30 = vld [vmem:[#allocation2 + $0xf0] sm:$0xf]  ;;  %v5708_v31 = vld [vmem:[#allocation2 + $0x104] sm:$0xf0] }
  0x23   : > { %497 = vadd.xlane.f32.xlu0 %v496_v2  ;;  %v6412_v5 = vmul.f32 256.0, %v6409_v4  ;;  %v4476_v32 = vor.u32 %v5759_v27, %v4473_v29  ;;  %v4447_v33 = vld [vmem:[#allocation2 + $0x270] sm:$0xf]  ;;  %v5756_v34 = vld [vmem:[#allocation2 + $0x284] sm:$0xf0]  ;;  %1135 = vmatpush.bf16.msra.mxu0 %v4280_v23  ;;  %v4256_v36 = vor.u32 %v5708_v31, %v4255_v30  ;;  %vm504_vm0 = vweird.f32 %v6409_v4 }
  0x24   : > { %v5705_v35 = vld [vmem:[#allocation2 + $0xf4] sm:$0xf]  ;;  %v4257_v37 = vld [vmem:[#allocation2 + $0x108] sm:$0xf0]  ;;  %1148 = vmatpush.bf16.msra.mxu1 %v4472_v24  ;;  %1161 = vmatpush.bf16.msra.mxu2 %v4284_v28  ;;  %v4448_v40 = vor.u32 %v5756_v34, %v4447_v33  ;;  %v4231_v42 = vld [vmem:[#allocation2 + $0xc0] sm:$0xf] }
  0x25   : > { %v501_v6 = vsub.f32 1.0, %v6412_v5  ;;  %v5753_v38 = vld [vmem:[#allocation2 + $0x274] sm:$0xf]  ;;  %v4449_v39 = vld [vmem:[#allocation2 + $0x288] sm:$0xf0]  ;;  %v4260_v41 = vor.u32 %v5705_v35, %v4257_v37  ;;  %1174 = vmatpush.bf16.msra.mxu3 %v4476_v32 }
  0x26   : > { %v5702_v43 = vld [vmem:[#allocation2 + $0xd4] sm:$0xf0]  ;;  %v4423_v44 = vld [vmem:[#allocation2 + $0x240] sm:$0xf]  ;;  %v4452_v45 = vor.u32 %v5753_v38, %v4449_v39  ;;  %v5699_v47 = vld [vmem:[#allocation2 + $0xc4] sm:$0xf] }
  0x27   : > { %v5750_v46 = vld [vmem:[#allocation2 + $0x254] sm:$0xf0]  ;;  %v4233_v48 = vld [vmem:[#allocation2 + $0xd8] sm:$0xf0]  ;;  %v5747_v49 = vld [vmem:[#allocation2 + $0x244] sm:$0xf]  ;;  %1136 = vmatpush.bf16.msra.mxu0 %v4256_v36  ;;  %v4232_v51 = vor.u32 %v5702_v43, %v4231_v42  ;;  %v502_v57 = vmul.f32 %v6409_v4, %v501_v6 }
  0x28   : > { %v4425_v50 = vld [vmem:[#allocation2 + $0x258] sm:$0xf0]  ;;  %1149 = vmatpush.bf16.msra.mxu1 %v4448_v40  ;;  %1162 = vmatpush.bf16.msra.mxu2 %v4260_v41  ;;  %v4424_v52 = vor.u32 %v5750_v46, %v4423_v44  ;;  %v4236_v53 = vor.u32 %v5699_v47, %v4233_v48  ;;  %v4207_v54 = vld [vmem:[#allocation2 + $0x90] sm:$0xf]  ;;  %v5696_v55 = vld [vmem:[#allocation2 + $0xa4] sm:$0xf0] }
  0x29   : > { %v4399_v56 = vld [vmem:[#allocation2 + $0x210] sm:$0xf]  ;;  %1175 = vmatpush.bf16.msra.mxu3 %v4452_v45  ;;  %v4428_v58 = vor.u32 %v5747_v49, %v4425_v50  ;;  %v5744_v59 = vld [vmem:[#allocation2 + $0x224] sm:$0xf0]  ;;  %v5693_v60 = vld [vmem:[#allocation2 + $0x94] sm:$0xf]  ;;  %v4208_v2 = vor.u32 %v5696_v55, %v4207_v54  ;;  %v503_v10 = vadd.f32 %v6409_v4, %v502_v57 }
  0x2a   : > { %v4209_v61 = vld [vmem:[#allocation2 + $0xa8] sm:$0xf0]  ;;  %v5741_v62 = vld [vmem:[#allocation2 + $0x214] sm:$0xf]  ;;  %v4400_v3 = vor.u32 %v5744_v59, %v4399_v56  ;;  %v4183_v7 = vld [vmem:[#allocation2 + $0x60] sm:$0xf] }
  0x2b   : > { %v4401_v63 = vld [vmem:[#allocation2 + $0x228] sm:$0xf0]  ;;  %1137 = vmatpush.bf16.msra.mxu0 %v4232_v51  ;;  %v4212_v5 = vor.u32 %v5693_v60, %v4209_v61  ;;  %v5690_v8 = vld [vmem:[#allocation2 + $0x74] sm:$0xf0]  ;;  %v4375_v9 = vld [vmem:[#allocation2 + $0x1e0] sm:$0xf]  ;;  %v6419_v22 = vsel %vm504_vm0, %v6409_v4, %v503_v10 }
  0x2c   : > { %1150 = vmatpush.bf16.msra.mxu1 %v4424_v52  ;;  %1163 = vmatpush.bf16.msra.mxu2 %v4236_v53  ;;  %v4404_v6 = vor.u32 %v5741_v62, %v4401_v63  ;;  %v5738_v11 = vld [vmem:[#allocation2 + $0x1f4] sm:$0xf0]  ;;  %v5687_v12 = vld [vmem:[#allocation2 + $0x64] sm:$0xf]  ;;  %v4185_v13 = vld [vmem:[#allocation2 + $0x78] sm:$0xf0]  ;;  %v4184_v16 = vor.u32 %v5690_v8, %v4183_v7 }
  0x2d   : > { %1176 = vmatpush.bf16.msra.mxu3 %v4428_v58  ;;  %v5735_v14 = vld [vmem:[#allocation2 + $0x1e4] sm:$0xf]  ;;  %v4377_v15 = vld [vmem:[#allocation2 + $0x1f8] sm:$0xf0]  ;;  %v4376_v17 = vor.u32 %v5738_v11, %v4375_v9  ;;  %v4188_v18 = vor.u32 %v5687_v12, %v4185_v13  ;;  %v4159_v19 = vld [vmem:[#allocation2 + $0x30] sm:$0xf] }
  0x2e   : > { %v5684_v20 = vld [vmem:[#allocation2 + $0x44] sm:$0xf0]  ;;  %v4351_v21 = vld [vmem:[#allocation2 + $0x1b0] sm:$0xf]  ;;  %v4380_v23 = vor.u32 %v5735_v14, %v4377_v15  ;;  %v5681_v25 = vld [vmem:[#allocation2 + $0x34] sm:$0xf] }
  0x2f   : > { %1138 = vmatpush.bf16.msra.mxu0 %v4208_v2  ;;  %v5732_v24 = vld [vmem:[#allocation2 + $0x1c4] sm:$0xf0]  ;;  %v4161_v26 = vld [vmem:[#allocation2 + $0x48] sm:$0xf0]  ;;  %v5729_v27 = vld [vmem:[#allocation2 + $0x1b4] sm:$0xf]  ;;  %v4160_v30 = vor.u32 %v5684_v20, %v4159_v19 }
  0x30   : > { %1151 = vmatpush.bf16.msra.mxu1 %v4400_v3  ;;  %1164 = vmatpush.bf16.msra.mxu2 %v4212_v5  ;;  %v4353_v28 = vld [vmem:[#allocation2 + $0x1c8] sm:$0xf0]  ;;  %v4352_v32 = vor.u32 %v5732_v24, %v4351_v21  ;;  %v4164_v33 = vor.u32 %v5681_v25, %v4161_v26  ;;  %v4135_v39 = vld [vmem:[#allocation2] sm:$0xf]  ;;  %v5678_v40 = vld [vmem:[#allocation2 + $0x14] sm:$0xf0] }
  0x31   : > { %1177 = vmatpush.bf16.msra.mxu3 %v4404_v6  ;;  %v4356_v34 = vor.u32 %v5729_v27, %v4353_v28  ;;  %v4327_v41 = vld [vmem:[#allocation2 + $0x180] sm:$0xf]  ;;  %v5726_v42 = vld [vmem:[#allocation2 + $0x194] sm:$0xf0]  ;;  %v5675_v43 = vld [vmem:[#allocation2 + $0x4] sm:$0xf] }
  0x32   : > { %v4328_v44 = vor.u32 %v5726_v42, %v4327_v41  ;;  %v5723_v46 = vld [vmem:[#allocation2 + $0x184] sm:$0xf]  ;;  %v4329_v47 = vld [vmem:[#allocation2 + $0x198] sm:$0xf0]  ;;  %v4311_v48 = vld [vmem:[#allocation2 + $0x158] sm:$0xf] }
  0x33   : > { %1139 = vmatpush.bf16.msra.mxu0 %v4184_v16  ;;  %v4332_v49 = vor.u32 %v5723_v46, %v4329_v47  ;;  %v5721_v50 = vld [vmem:[#allocation2 + $0x16c] sm:$0xf0]  ;;  %v4503_v51 = vld [vmem:[#allocation2 + $0x2d8] sm:$0xf]  ;;  %v5718_v55 = vld [vmem:[#allocation2 + $0x15c] sm:$0xf] }
  0x34   : > { %1152 = vmatpush.bf16.msra.mxu1 %v4376_v17  ;;  %1165 = vmatpush.bf16.msra.mxu2 %v4188_v18  ;;  %v5769_v52 = vld [vmem:[#allocation2 + $0x2ec] sm:$0xf0]  ;;  %v4312_v53 = vor.u32 %v5721_v50, %v4311_v48  ;;  %v4313_v56 = vld [vmem:[#allocation2 + $0x170] sm:$0xf0]  ;;  %v5766_v57 = vld [vmem:[#allocation2 + $0x2dc] sm:$0xf] }
  0x35   : > { %1178 = vmatpush.bf16.msra.mxu3 %v4380_v23  ;;  %v4504_v54 = vor.u32 %v5769_v52, %v4503_v51  ;;  %v4316_v58 = vor.u32 %v5718_v55, %v4313_v56  ;;  %v4505_v59 = vld [vmem:[#allocation2 + $0x2f0] sm:$0xf0]  ;;  %v4287_v60 = vld [vmem:[#allocation2 + $0x128] sm:$0xf]  ;;  %v5715_v61 = vld [vmem:[#allocation2 + $0x13c] sm:$0xf0] }
  0x36   : > { %v4508_v62 = vor.u32 %v5766_v57, %v4505_v59  ;;  %v4288_v63 = vor.u32 %v5715_v61, %v4287_v60  ;;  %v4479_v2 = vld [vmem:[#allocation2 + $0x2a8] sm:$0xf]  ;;  %v5763_v3 = vld [vmem:[#allocation2 + $0x2bc] sm:$0xf0]  ;;  %v5712_v5 = vld [vmem:[#allocation2 + $0x12c] sm:$0xf] }
  0x37   : > { %1140 = vmatpush.bf16.msra.mxu0 %v4160_v30  ;;  %v4480_v7 = vor.u32 %v5763_v3, %v4479_v2  ;;  %v4289_v8 = vld [vmem:[#allocation2 + $0x140] sm:$0xf0]  ;;  %v5760_v9 = vld [vmem:[#allocation2 + $0x2ac] sm:$0xf]  ;;  %v4263_v12 = vld [vmem:[#allocation2 + $0xf8] sm:$0xf] }
  0x38   : > { %1153 = vmatpush.bf16.msra.mxu1 %v4352_v32  ;;  %1166 = vmatpush.bf16.msra.mxu2 %v4164_v33  ;;  %v4481_v10 = vld [vmem:[#allocation2 + $0x2c0] sm:$0xf0]  ;;  %v4292_v6 = vor.u32 %v5712_v5, %v4289_v8  ;;  %v5709_v13 = vld [vmem:[#allocation2 + $0x10c] sm:$0xf0]  ;;  %v4455_v14 = vld [vmem:[#allocation2 + $0x278] sm:$0xf] }
  0x39   : > { %1179 = vmatpush.bf16.msra.mxu3 %v4356_v34  ;;  %v4484_v11 = vor.u32 %v5760_v9, %v4481_v10  ;;  %v4264_v15 = vor.u32 %v5709_v13, %v4263_v12  ;;  %v5757_v16 = vld [vmem:[#allocation2 + $0x28c] sm:$0xf0]  ;;  %v5706_v17 = vld [vmem:[#allocation2 + $0xfc] sm:$0xf]  ;;  %v4265_v18 = vld [vmem:[#allocation2 + $0x110] sm:$0xf0] }
  0x3a   : > { %v4456_v19 = vor.u32 %v5757_v16, %v4455_v14  ;;  %v4268_v20 = vor.u32 %v5706_v17, %v4265_v18  ;;  %v5754_v21 = vld [vmem:[#allocation2 + $0x27c] sm:$0xf]  ;;  %v4457_v23 = vld [vmem:[#allocation2 + $0x290] sm:$0xf0]  ;;  %v4239_v25 = vld [vmem:[#allocation2 + $0xc8] sm:$0xf] }
  0x3b   : > { %v4460_v24 = vor.u32 %v5754_v21, %v4457_v23  ;;  %v5703_v26 = vld [vmem:[#allocation2 + $0xdc] sm:$0xf0]  ;;  %v4431_v27 = vld [vmem:[#allocation2 + $0x248] sm:$0xf]  ;;  %v5700_v30 = vld [vmem:[#allocation2 + $0xcc] sm:$0xf] }
  0x3c   : > { %1154 = vmatpush.bf16.msra.mxu1 %v4328_v44  ;;  %v4240_v28 = vor.u32 %v5703_v26, %v4239_v25  ;;  %v5748_v34 = vld [vmem:[#allocation2 + $0x24c] sm:$0xf]  ;;  %v5694_v42 = vld [vmem:[#allocation2 + $0x9c] sm:$0xf]  ;;  %v4409_v46 = vld [vmem:[#allocation2 + $0x230] sm:$0xf0] }
  0x3d   : > { %1180 = vmatpush.bf16.msra.mxu3 %v4332_v49  ;;  %v4191_v48 = vld [vmem:[#allocation2 + $0x68] sm:$0xf]  ;;  %v5691_v49 = vld [vmem:[#allocation2 + $0x7c] sm:$0xf0]  ;;  %v5736_v57 = vld [vmem:[#allocation2 + $0x1ec] sm:$0xf] }
  0x3e   : > { %v4383_v50 = vld [vmem:[#allocation2 + $0x1e8] sm:$0xf]  ;;  %v4192_v51 = vor.u32 %v5691_v49, %v4191_v48  ;;  %v5739_v52 = vld [vmem:[#allocation2 + $0x1fc] sm:$0xf0]  ;;  %v4167_v60 = vld [vmem:[#allocation2 + $0x38] sm:$0xf] }
  0x3f   : > { %v4384_v55 = vor.u32 %v5739_v52, %v4383_v50  ;;  %v5685_v61 = vld [vmem:[#allocation2 + $0x4c] sm:$0xf0]  ;;  %v5682_v3 = vld [vmem:[#allocation2 + $0x3c] sm:$0xf]  ;;  %v4169_v5 = vld [vmem:[#allocation2 + $0x50] sm:$0xf0] }
  0x40   : > { %1199 = vmatpush.bf16.msrb.mxu1 %v4504_v54  ;;  %v4193_v54 = vld [vmem:[#allocation2 + $0x80] sm:$0xf0]  ;;  %v5733_v2 = vld [vmem:[#allocation2 + $0x1cc] sm:$0xf0]  ;;  %v4172_v8 = vor.u32 %v5682_v3, %v4169_v5  ;;  %v5730_v9 = vld [vmem:[#allocation2 + $0x1bc] sm:$0xf] }
  0x41   : > { %1225 = vmatpush.bf16.msrb.mxu3 %v4508_v62  ;;  %v4359_v62 = vld [vmem:[#allocation2 + $0x1b8] sm:$0xf]  ;;  %v4361_v10 = vld [vmem:[#allocation2 + $0x1d0] sm:$0xf0]  ;;  %v5679_v12 = vld [vmem:[#allocation2 + $0x1c] sm:$0xf0] }
  0x42   : > { %v4335_v13 = vld [vmem:[#allocation2 + $0x188] sm:$0xf]  ;;  %v5676_v16 = vld [vmem:[#allocation2 + $0xc] sm:$0xf]  ;;  %v4145_v17 = vld [vmem:[#allocation2 + $0x20] sm:$0xf0] }
  0x43   : > { %v4337_v21 = vld [vmem:[#allocation2 + $0x1a0] sm:$0xf0]  ;;  %v4321_v50 = vld [vmem:[#allocation2 + $0x178] sm:$0xf0] }
  0x44   : > { %1200 = vmatpush.bf16.msrb.mxu1 %v4480_v7  ;;  %v4360_v7 = vor.u32 %v5733_v2, %v4359_v62  ;;  %v4513_v52 = vld [vmem:[#allocation2 + $0x2f8] sm:$0xf0]  ;;  %v4297_v62 = vld [vmem:[#allocation2 + $0x148] sm:$0xf0] }
  0x45   : > { %1226 = vmatpush.bf16.msrb.mxu3 %v4484_v11  ;;  %v4143_v11 = vld [vmem:[#allocation2 + $0x8] sm:$0xf]  ;;  %v4489_v2 = vld [vmem:[#allocation2 + $0x2c8] sm:$0xf0] }
  0x46   : > { %v4144_v14 = vor.u32 %v5679_v12, %v4143_v11  ;;  %v5758_v11 = vld [vmem:[#allocation2 + $0x294] sm:$0xf0]  ;;  %v5707_v12 = vld [vmem:[#allocation2 + $0x104] sm:$0xf] }
  0x48   : > { %1201 = vmatpush.bf16.msrb.mxu1 %v4456_v19  ;;  %v4148_v19 = vor.u32 %v5676_v16, %v4145_v17 }
  0x49   : > { %1227 = vmatpush.bf16.msrb.mxu3 %v4460_v24 }
  0x96   : > { %v498_v29 = vpop.xlane.xlu0 %497 }
  0x97   : > { %v506_v31 = vmul.f32 %v6419_v22, %v498_v29  ;;  %v5751_v29 = vld [vmem:[#allocation2 + $0x25c] sm:$0xf0] }
  0x98   : > { %v4432_v32 = vor.u32 %v5751_v29, %v4431_v27 }
  0x99   : > { %v6423_v4 = vsub.f32 %v6402_v0, %v506_v31  ;;  %v6426_v35 = vsub.f32 %v6405_v1, %v506_v31  ;;  %v4136_v0 = vor.u32 %v5678_v40, %v4135_v39  ;;  %v4137_v1 = vld [vmem:[#allocation2 + $0x18] sm:$0xf0]  ;;  %v4241_v31 = vld [vmem:[#allocation2 + $0xe0] sm:$0xf0]  ;;  %v5697_v39 = vld [vmem:[#allocation2 + $0xac] sm:$0xf0] }
  0x9a   : > { %v4140_v45 = vor.u32 %v5675_v43, %v4137_v1  ;;  %v4244_v33 = vor.u32 %v5700_v30, %v4241_v31  ;;  %v4407_v40 = vld [vmem:[#allocation2 + $0x218] sm:$0xf]  ;;  %1202 = vmatpush.bf16.msrb.mxu1 %v4432_v32  ;;  %v4217_v43 = vld [vmem:[#allocation2 + $0xb0] sm:$0xf0]  ;;  %v494_v31 = vld [vmem:[%s7164_s3] sm:$0x3] }
  0x9b   : > { %v509_v36 = vmul.f32 %v6423_v4, %v6423_v4  ;;  %v510_v37 = vmul.f32 %v6426_v35, %v6426_v35  ;;  %1141 = vmatpush.bf16.msra.mxu0 %v4136_v0  ;;  %v5745_v0 = vld [vmem:[#allocation2 + $0x22c] sm:$0xf0]  ;;  %v4220_v44 = vor.u32 %v5694_v42, %v4217_v43 }
  0x9c   : > { %1167 = vmatpush.bf16.msra.mxu2 %v4140_v45  ;;  %v4408_v1 = vor.u32 %v5745_v0, %v4407_v40  ;;  %v5742_v45 = vld [vmem:[#allocation2 + $0x21c] sm:$0xf] }
  0x9d   : > { %v511_v38 = vadd.f32 %v510_v37, %v509_v36  ;;  %v4433_v36 = vld [vmem:[#allocation2 + $0x260] sm:$0xf0]  ;;  %v4412_v47 = vor.u32 %v5742_v45, %v4409_v46  ;;  %v4511_v45 = vld [vmem:[#allocation2 + $0x2e0] sm:$0xf]  ;;  %v5770_v46 = vld [vmem:[#allocation2 + $0x2f4] sm:$0xf0] }
  0x9e   : > { %v4436_v37 = vor.u32 %v5748_v34, %v4433_v36  ;;  %1203 = vmatpush.bf16.msrb.mxu1 %v4408_v1  ;;  %v529_v36 = vperm.slane %v494_v31, 0  ;;  %v4319_v1 = vld [vmem:[#allocation2 + $0x160] sm:$0xf] }
  0x9f   : > { %512 = vadd.xlane.f32.xlu0 %v511_v38  ;;  %1186 = vmatpush.bf16.msrb.mxu0 %v4312_v53  ;;  %v4215_v38 = vld [vmem:[#allocation2 + $0x98] sm:$0xf]  ;;  %v5688_v53 = vld [vmem:[#allocation2 + $0x6c] sm:$0xf] }
  0xa0   : > { %1212 = vmatpush.bf16.msrb.mxu2 %v4316_v58  ;;  %v4216_v41 = vor.u32 %v5697_v39, %v4215_v38  ;;  %1228 = vmatpush.bf16.msrb.mxu3 %v4436_v37  ;;  %v4196_v56 = vor.u32 %v5688_v53, %v4193_v54  ;;  %v4385_v58 = vld [vmem:[#allocation2 + $0x200] sm:$0xf0]  ;;  %v530_v37 = vperm.slane %v494_v31, 1  ;;  %v4223_v31 = vld [vmem:[#allocation2 + $0xa0] sm:$0xf] }
  0xa1   : > { %v4388_v59 = vor.u32 %v5736_v57, %v4385_v58 }
  0xa2   : > { %1204 = vmatpush.bf16.msrb.mxu1 %v4384_v55 }
  0xa3   : > { %1187 = vmatpush.bf16.msrb.mxu0 %v4288_v63  ;;  %v4168_v63 = vor.u32 %v5685_v61, %v4167_v60  ;;  %v5764_v60 = vld [vmem:[#allocation2 + $0x2c4] sm:$0xf0]  ;;  %v5713_v61 = vld [vmem:[#allocation2 + $0x134] sm:$0xf] }
  0xa4   : > { %1213 = vmatpush.bf16.msrb.mxu2 %v4292_v6  ;;  %1229 = vmatpush.bf16.msrb.mxu3 %v4412_v47  ;;  %v4364_v6 = vor.u32 %v5730_v9, %v4361_v10  ;;  %v5719_v47 = vld [vmem:[#allocation2 + $0x164] sm:$0xf]  ;;  %v4300_v9 = vor.u32 %v5713_v61, %v4297_v62  ;;  %v4177_v61 = vld [vmem:[#allocation2 + $0x58] sm:$0xf0] }
  0xa5   : > { %v4324_v57 = vor.u32 %v5719_v47, %v4321_v50  ;;  %v5740_v47 = vld [vmem:[#allocation2 + $0x204] sm:$0xf0]  ;;  %v5737_v50 = vld [vmem:[#allocation2 + $0x1f4] sm:$0xf]  ;;  %v5731_v62 = vld [vmem:[#allocation2 + $0x1c4] sm:$0xf] }
  0xa6   : > { %1205 = vmatpush.bf16.msrb.mxu1 %v4360_v7  ;;  %v4271_v7 = vld [vmem:[#allocation2 + $0x100] sm:$0xf] }
  0xa7   : > { %1188 = vmatpush.bf16.msrb.mxu0 %v4264_v15  ;;  %v5727_v15 = vld [vmem:[#allocation2 + $0x19c] sm:$0xf0] }
  0xa8   : > { %1214 = vmatpush.bf16.msrb.mxu2 %v4268_v20  ;;  %1230 = vmatpush.bf16.msrb.mxu3 %v4388_v59  ;;  %v4336_v18 = vor.u32 %v5727_v15, %v4335_v13  ;;  %v5724_v20 = vld [vmem:[#allocation2 + $0x18c] sm:$0xf]  ;;  %v4487_v59 = vld [vmem:[#allocation2 + $0x2b0] sm:$0xf]  ;;  %v4273_v13 = vld [vmem:[#allocation2 + $0x118] sm:$0xf0] }
  0xa9   : > { %v4340_v24 = vor.u32 %v5724_v20, %v4337_v21  ;;  %v4488_v5 = vor.u32 %v5764_v60, %v4487_v59  ;;  %v4465_v15 = vld [vmem:[#allocation2 + $0x298] sm:$0xf0]  ;;  %v4276_v20 = vor.u32 %v5707_v12, %v4273_v13  ;;  %v5734_v59 = vld [vmem:[#allocation2 + $0x1d4] sm:$0xf0]  ;;  %v5683_v60 = vld [vmem:[#allocation2 + $0x44] sm:$0xf] }
  0xaa   : > { %1206 = vmatpush.bf16.msrb.mxu1 %v4336_v18  ;;  %v4247_v18 = vld [vmem:[#allocation2 + $0xd0] sm:$0xf]  ;;  %v4153_v12 = vld [vmem:[#allocation2 + $0x28] sm:$0xf0]  ;;  %v5725_v13 = vld [vmem:[#allocation2 + $0x194] sm:$0xf] }
  0xab   : > { %1189 = vmatpush.bf16.msrb.mxu0 %v4240_v28 }
  0xac   : > { %1215 = vmatpush.bf16.msrb.mxu2 %v4244_v33  ;;  %1231 = vmatpush.bf16.msrb.mxu3 %v4364_v6  ;;  %v495_v33 = vld [vmem:[%s7165_s4] sm:$0x3] }
  0xad   : > { %v536_v39 = vperm.slane %v495_v33, 0  ;;  %v537_v40 = vperm.slane %v495_v33, 1  ;;  %v4463_v6 = vld [vmem:[#allocation2 + $0x280] sm:$0xf] }
  0xae   : > { %v4464_v17 = vor.u32 %v5758_v11, %v4463_v6  ;;  %v5728_v6 = vld [vmem:[#allocation2 + $0x1a4] sm:$0xf0]  ;;  %v5677_v11 = vld [vmem:[#allocation2 + $0x14] sm:$0xf] }
  0xaf   : > { %1190 = vmatpush.bf16.msrb.mxu0 %v4216_v41 }
  0xb0   : > { %1216 = vmatpush.bf16.msrb.mxu2 %v4220_v44  ;;  %1232 = vmatpush.bf16.msrb.mxu3 %v4340_v24  ;;  %v5722_v44 = vld [vmem:[#allocation2 + $0x174] sm:$0xf0]  ;;  %v5752_v24 = vld [vmem:[#allocation2 + $0x264] sm:$0xf0] }
  0xb1   : > { %v4320_v55 = vor.u32 %v5722_v44, %v4319_v1  ;;  %v5692_v1 = vld [vmem:[#allocation2 + $0x84] sm:$0xf0] }
  0xb3   : > { %1191 = vmatpush.bf16.msrb.mxu0 %v4192_v51  ;;  %v5767_v51 = vld [vmem:[#allocation2 + $0x2e4] sm:$0xf] }
  0xb4   : > { %1217 = vmatpush.bf16.msrb.mxu2 %v4196_v56  ;;  %v4295_v56 = vld [vmem:[#allocation2 + $0x130] sm:$0xf]  ;;  %v4516_v58 = vor.u32 %v5767_v51, %v4513_v52  ;;  %v4393_v51 = vld [vmem:[#allocation2 + $0x208] sm:$0xf0] }
  0xb7   : > { %1192 = vmatpush.bf16.msrb.mxu0 %v4168_v63  ;;  %v5761_v63 = vld [vmem:[#allocation2 + $0x2b4] sm:$0xf] }
  0xb8   : > { %1218 = vmatpush.bf16.msrb.mxu2 %v4172_v8  ;;  %v5710_v8 = vld [vmem:[#allocation2 + $0x114] sm:$0xf0]  ;;  %v4492_v10 = vor.u32 %v5761_v63, %v4489_v2  ;;  %v4369_v63 = vld [vmem:[#allocation2 + $0x1d8] sm:$0xf0] }
  0xb9   : > { %v4272_v16 = vor.u32 %v5710_v8, %v4271_v7  ;;  %v5680_v7 = vld [vmem:[#allocation2 + $0x24] sm:$0xf0]  ;;  %v4180_v8 = vor.u32 %v5683_v60, %v4177_v61 }
  0xbb   : > { %1193 = vmatpush.bf16.msrb.mxu0 %v4144_v14  ;;  %v5755_v14 = vld [vmem:[#allocation2 + $0x284] sm:$0xf] }
  0xbc   : > { %1219 = vmatpush.bf16.msrb.mxu2 %v4148_v19  ;;  %v5704_v19 = vld [vmem:[#allocation2 + $0xe4] sm:$0xf0]  ;;  %v4468_v21 = vor.u32 %v5755_v14, %v4465_v15  ;;  %v4345_v14 = vld [vmem:[#allocation2 + $0x1a8] sm:$0xf0] }
 0x112   : > { %v513_v23 = vpop.xlane.xlu0 %512 }
 0x113   : > { %v514_v25 = vmul.f32 %v513_v23, %v6419_v22  ;;  %v4439_v23 = vld [vmem:[#allocation2 + $0x250] sm:$0xf] }
 0x115   : > { %v515_v26 = vadd.f32 1e-05, %v514_v25  ;;  %v5701_v25 = vld [vmem:[#allocation2 + $0xd4] sm:$0xf] }
 0x117   : > { %6108 = vrsqrt.f32 %v515_v26  ;;  %vm522_vm2 = vweird.f32 %v515_v26 }
 0x11d   : > { %v6109_v27 = vpop.eup %6108 }
 0x11e   : > { %v517_v28 = vmul.f32 %v6109_v27, %v515_v26  ;;  %vm523_vm1 = vweird.f32 %v6109_v27  ;;  %v4249_v26 = vld [vmem:[#allocation2 + $0xe8] sm:$0xf0] }
 0x11f   : > { %vm524_vm3 = vmor %vm522_vm2, %vm523_vm1  ;;  %v4252_v33 = vor.u32 %v5701_v25, %v4249_v26  ;;  %v640_v26 = vld [vmem:[%s7163_s2] sm:$0x3f] }
 0x120   : > { %v518_v29 = vmul.f32 %v6109_v27, %v517_v28  ;;  %v4441_v28 = vld [vmem:[#allocation2 + $0x268] sm:$0xf0] }
 0x122   : > { %v519_v30 = vmul.f32 0.5, %v518_v29  ;;  %v4248_v29 = vor.u32 %v5704_v19, %v4247_v18  ;;  %v4348_v18 = vor.u32 %v5725_v13, %v4345_v14 }
 0x124   : > { %v520_v32 = vsub.f32 1.5, %v519_v30  ;;  %v4440_v30 = vor.u32 %v5752_v24, %v4439_v23 }
 0x126   : > { %v521_v34 = vmul.f32 %v6109_v27, %v520_v32  ;;  %v5698_v32 = vld [vmem:[#allocation2 + $0xb4] sm:$0xf0] }
 0x128   : > { %v525_v38 = vsel %vm524_vm3, %v6109_v27, %v521_v34  ;;  %v5749_v27 = vld [vmem:[#allocation2 + $0x254] sm:$0xf] }
 0x129   : > { %v526_v41 = vmul.f32 %v525_v38, %v6423_v4  ;;  %v527_v0 = vmul.f32 %v525_v38, %v6426_v35  ;;  %v4512_v4 = vor.u32 %v5770_v46, %v4511_v45  ;;  %v5716_v35 = vld [vmem:[#allocation2 + $0x144] sm:$0xf0]  ;;  %v4444_v34 = vor.u32 %v5749_v27, %v4441_v28  ;;  %v5695_v38 = vld [vmem:[#allocation2 + $0xa4] sm:$0xf]  ;;  %v4391_v46 = vld [vmem:[#allocation2 + $0x1f0] sm:$0xf] }
 0x12a   : > { %v4296_v3 = vor.u32 %v5716_v35, %v4295_v56  ;;  %v5686_v56 = vld [vmem:[#allocation2 + $0x54] sm:$0xf0]  ;;  %v642_v27 = vperm.slane %v640_v26, 0  ;;  %v644_v28 = vperm.slane %v640_v26, 2 }
 0x12b   : > { %v533_v42 = vmul.f32 %v529_v36, %v526_v41  ;;  %v534_v43 = vmul.f32 %v530_v37, %v527_v0  ;;  %v4415_v36 = vld [vmem:[#allocation2 + $0x220] sm:$0xf]  ;;  %v5746_v37 = vld [vmem:[#allocation2 + $0x234] sm:$0xf0]  ;;  %v4417_v41 = vld [vmem:[#allocation2 + $0x238] sm:$0xf0]  ;;  %v4224_v0 = vor.u32 %v5698_v32, %v4223_v31 }
 0x12d   : > { %v540_v48 = vadd.f32 %v536_v39, %v533_v42  ;;  %v541_v49 = vadd.f32 %v537_v40, %v534_v43  ;;  %v4225_v39 = vld [vmem:[#allocation2 + $0xb8] sm:$0xf0]  ;;  %v5743_v40 = vld [vmem:[#allocation2 + $0x224] sm:$0xf]  ;;  %v4416_v42 = vor.u32 %v5746_v37, %v4415_v36  ;;  %v4199_v43 = vld [vmem:[#allocation2 + $0x70] sm:$0xf] }
 0x12e   : > { %v4228_v44 = vor.u32 %v5695_v38, %v4225_v39  ;;  %v4420_v45 = vor.u32 %v5743_v40, %v4417_v41  ;;  %v4200_v52 = vor.u32 %v5692_v1, %v4199_v43  ;;  %v645_v37 = vperm.slane %v640_v26, 3 }
 0x12f   : > { %v6441_v53 = vpack.c.bf16 %v540_v48, %v540_v48  ;;  %v6443_v54 = vpack.c.bf16 %v541_v49, %v541_v49  ;;  %v5689_v48 = vld [vmem:[#allocation2 + $0x74] sm:$0xf]  ;;  %v4201_v49 = vld [vmem:[#allocation2 + $0x88] sm:$0xf0] }
 0x130   : > { %v4204_v35 = vor.u32 %v5689_v48, %v4201_v49  ;;  %v646_v48 = vperm.slane %v640_v26, 4 }
 0x131   : > { %1142 = vmatmul.bf16.vlgmr.msra.gmra.mxu0 %v6441_v53  ;;  %1155 = vmatmul.bf16.vlgmr.msra.gmra.mxu1 %v6443_v54 }
 0x132   : > { %1168 = vmatmul.bf16.vlgmr.msra.gmra.mxu2 %v6441_v53  ;;  %1181 = vmatmul.bf16.vlgmr.msra.gmra.mxu3 %v6443_v54 }
 0x133   : > { %1238 = vmatpush.bf16.msra.mxu0 %v4320_v55  ;;  %1251 = vmatpush.bf16.msra.mxu1 %v4512_v4  ;;  %v4392_v55 = vor.u32 %v5740_v47, %v4391_v46  ;;  %v4175_v4 = vld [vmem:[#allocation2 + $0x40] sm:$0xf] }
 0x134   : > { %1264 = vmatpush.bf16.msra.mxu2 %v4324_v57  ;;  %1277 = vmatpush.bf16.msra.mxu3 %v4516_v58  ;;  %v4396_v57 = vor.u32 %v5737_v50, %v4393_v51  ;;  %v4367_v58 = vld [vmem:[#allocation2 + $0x1c0] sm:$0xf]  ;;  %v4176_v2 = vor.u32 %v5686_v56, %v4175_v4 }
 0x137   : > { %1239 = vmatpush.bf16.msra.mxu0 %v4296_v3  ;;  %1252 = vmatpush.bf16.msra.mxu1 %v4488_v5  ;;  %v4368_v3 = vor.u32 %v5734_v59, %v4367_v58  ;;  %v4151_v5 = vld [vmem:[#allocation2 + $0x10] sm:$0xf] }
 0x138   : > { %1265 = vmatpush.bf16.msra.mxu2 %v4300_v9  ;;  %1278 = vmatpush.bf16.msra.mxu3 %v4492_v10  ;;  %v4372_v9 = vor.u32 %v5731_v62, %v4369_v63  ;;  %v4343_v10 = vld [vmem:[#allocation2 + $0x190] sm:$0xf]  ;;  %v4152_v15 = vor.u32 %v5680_v7, %v4151_v5 }
 0x13b   : > { %1240 = vmatpush.bf16.msra.mxu0 %v4272_v16  ;;  %1253 = vmatpush.bf16.msra.mxu1 %v4464_v17  ;;  %v4344_v16 = vor.u32 %v5728_v6, %v4343_v10  ;;  %v4156_v17 = vor.u32 %v5677_v11, %v4153_v12  ;;  %v1290_v6 = vlaneseq }
 0x13c   : > { %1266 = vmatpush.bf16.msra.mxu2 %v4276_v20  ;;  %1279 = vmatpush.bf16.msra.mxu3 %v4468_v21 }
 0x13d   : > { %v1291_v11 = vshrl.u32 %v1290_v6, 7  ;;  %v1293_v12 = vand.u32 127, %v1290_v6  ;;  %v4619_v6 = vld [vmem:[%s7166_s5 + $0xc8] sm:$0xf0] }
 0x13f   : > { %1241 = vmatpush.bf16.msra.mxu0 %v4248_v29  ;;  %1254 = vmatpush.bf16.msra.mxu1 %v4440_v30  ;;  %vm1294_vm5 = vcmp.le.s32.totalorder %v1293_v12, %v1291_v11  ;;  %vm1295_vm6 = vcmp.lt.s32.totalorder %v1293_v12, 5  ;;  %v4553_v11 = vld [vmem:[%s7166_s5 + $0x40] sm:$0xf]  ;;  %v5780_v12 = vld [vmem:[%s7166_s5 + $0x44] sm:$0xf0] }
 0x140   : > { %1267 = vmatpush.bf16.msra.mxu2 %v4252_v33  ;;  %1280 = vmatpush.bf16.msra.mxu3 %v4444_v34  ;;  %v643_v34 = vperm.slane %v640_v26, 1  ;;  %vm1296_vm7 = vmor %vm1294_vm5, %vm1295_vm6 }
 0x141   : > { %1194 = vmatmul.bf16.vlgmr.msrb.gmra.mxu0 %v6441_v53  ;;  %1207 = vmatmul.bf16.vlgmr.msrb.gmra.mxu1 %v6443_v54 }
 0x142   : > { %1220 = vmatmul.bf16.vlgmr.msrb.gmra.mxu2 %v6441_v53  ;;  %1233 = vmatmul.bf16.vlgmr.msrb.gmra.mxu3 %v6443_v54 }
 0x143   : > { %1242 = vmatpush.bf16.msra.mxu0 %v4224_v0  ;;  %1255 = vmatpush.bf16.msra.mxu1 %v4416_v42 }
 0x144   : > { %1268 = vmatpush.bf16.msra.mxu2 %v4228_v44  ;;  %1281 = vmatpush.bf16.msra.mxu3 %v4420_v45 }
 0x147   : > { %1243 = vmatpush.bf16.msra.mxu0 %v4200_v52  ;;  %1256 = vmatpush.bf16.msra.mxu1 %v4392_v55 }
 0x148   : > { %1269 = vmatpush.bf16.msra.mxu2 %v4204_v35  ;;  %1282 = vmatpush.bf16.msra.mxu3 %v4396_v57  ;;  %v647_v57 = vperm.slane %v640_v26, 5 }
 0x14b   : > { %1244 = vmatpush.bf16.msra.mxu0 %v4176_v2  ;;  %1257 = vmatpush.bf16.msra.mxu1 %v4368_v3 }
 0x14c   : > { %1270 = vmatpush.bf16.msra.mxu2 %v4180_v8  ;;  %1283 = vmatpush.bf16.msra.mxu3 %v4372_v9 }
 0x14f   : > { %1245 = vmatpush.bf16.msra.mxu0 %v4152_v15  ;;  %1258 = vmatpush.bf16.msra.mxu1 %v4344_v16 }
 0x150   : > { %1271 = vmatpush.bf16.msra.mxu2 %v4156_v17  ;;  %1284 = vmatpush.bf16.msra.mxu3 %v4348_v18 }
 0x152   : > { %1246 = vmatmul.bf16.vlgmr.msra.gmra.mxu0 %v6441_v53  ;;  %1259 = vmatmul.bf16.vlgmr.msra.gmra.mxu1 %v6443_v54 }
 0x153   : > { %1272 = vmatmul.bf16.vlgmr.msra.gmra.mxu2 %v6441_v53  ;;  %1285 = vmatmul.bf16.vlgmr.msra.gmra.mxu3 %v6443_v54 }
 0x1ae   : > { %v1143_v19 = vpop.f32.mrf.mxu0  ;;  %v1156_v20 = vpop.f32.mrf.mxu1 }
 0x1af   : > { %v1144_v31 = vadd.f32 %v1143_v19, %v642_v27 }
 0x1b1   : > { %v1157_v36 = vadd.f32 %v1156_v20, %v1144_v31  ;;  %v4641_v31 = vld [vmem:[%s7166_s5 + $0xf0] sm:$0xf] }
 0x1b3   : > { %v1297_v0 = vmul.f32 0.088388346, %v1157_v36  ;;  %v5786_v36 = vld [vmem:[%s7166_s5 + $0x74] sm:$0xf0] }
 0x1b5   : > { %v1169_v21 = vpop.f32.mrf.mxu2  ;;  %v1182_v23 = vpop.f32.mrf.mxu3  ;;  %v1298_v46 = vpack.c.bf16 %v1297_v0, %v1297_v0  ;;  %v4633_v0 = vld [vmem:[%s7166_s5 + $0xe0] sm:$0xf] }
 0x1b6   : > { %v1145_v24 = vpop.f32.mrf.mxu0  ;;  %v1158_v25 = vpop.f32.mrf.mxu1  ;;  %v1170_v39 = vadd.f32 %v1169_v21, %v643_v34  ;;  %v4643_v34 = vld [vmem:[%s7166_s5 + $0xf8] sm:$0xf0] }
 0x1b8   : > { %v1183_v45 = vadd.f32 %v1182_v23, %v1170_v39 }
 0x1ba   : > { %v1361_v49 = vmul.f32 0.088388346, %v1183_v45  ;;  %v4635_v45 = vld [vmem:[%s7166_s5 + $0xe8] sm:$0xf0] }
 0x1bc   : > { %v1362_v56 = vpack.c.bf16 %v1361_v49, %v1361_v49  ;;  %v5783_v49 = vld [vmem:[%s7166_s5 + $0x64] sm:$0xf] }
 0x1bd   : > { %v1171_v29 = vpop.f32.mrf.mxu2  ;;  %v1184_v30 = vpop.f32.mrf.mxu3 }
 0x1be   : > { %v1195_v32 = vpop.f32.mrf.mxu0  ;;  %v1208_v33 = vpop.f32.mrf.mxu1 }
 0x1bf   : > { %v1196_v53 = vadd.f32 %v1195_v32, %v644_v28  ;;  %v5802_v32 = vld [vmem:[%s7166_s5 + $0xf4] sm:$0xf0] }
 0x1c1   : > { %v1209_v54 = vadd.f32 %v1208_v33, %v1196_v53  ;;  %v5801_v33 = vld [vmem:[%s7166_s5 + $0xf4] sm:$0xf]  ;;  %v4642_v53 = vor.u32 %v5802_v32, %v4641_v31  ;;  %v5778_v31 = vld [vmem:[%s7166_s5 + $0x34] sm:$0xf0] }
 0x1c3   : > { %v1299_v38 = vpack.c.bf16 %v1209_v54, %v1209_v54  ;;  %v4577_v54 = vld [vmem:[%s7166_s5 + $0x70] sm:$0xf] }
 0x1c4   : > { %v4578_v39 = vor.u32 %v5786_v36, %v4577_v54 }
 0x1c5   : > { %v1221_v40 = vpop.f32.mrf.mxu2  ;;  %v1234_v41 = vpop.f32.mrf.mxu3  ;;  %1308 = vmatpush.bf16.xpose.msrb.mxu0 %v1299_v38  ;;  %v4646_v38 = vor.u32 %v5801_v33, %v4643_v34  ;;  %v5777_v33 = vld [vmem:[%s7166_s5 + $0x34] sm:$0xf] }
 0x1c6   : > { %v1222_v42 = vadd.f32 %v1221_v40, %v645_v37  ;;  %v1197_v43 = vpop.f32.mrf.mxu0  ;;  %v1210_v1 = vpop.f32.mrf.mxu1  ;;  %v5785_v40 = vld [vmem:[%s7166_s5 + $0x74] sm:$0xf] }
 0x1c8   : > { %v1235_v44 = vadd.f32 %v1234_v41, %v1222_v42  ;;  %v4579_v41 = vld [vmem:[%s7166_s5 + $0x78] sm:$0xf0]  ;;  %v5800_v42 = vld [vmem:[%s7166_s5 + $0xe4] sm:$0xf0] }
 0x1c9   : > { %v4582_v43 = vor.u32 %v5785_v40, %v4579_v41  ;;  %v4634_v1 = vor.u32 %v5800_v42, %v4633_v0  ;;  %v5776_v0 = vld [vmem:[%s7166_s5 + $0x24] sm:$0xf0] }
 0x1ca   : > { %v1363_v47 = vpack.c.bf16 %v1235_v44, %v1235_v44  ;;  %v5799_v44 = vld [vmem:[%s7166_s5 + $0xe4] sm:$0xf] }
 0x1cc   : > { %1372 = vmatpush.bf16.xpose.msrb.mxu2 %v1363_v47  ;;  %1309 = vmatmul.bf16.vlgmr.msrb.gmra.mxu0 %v1298_v46  ;;  %v4569_v46 = vld [vmem:[%s7166_s5 + $0x60] sm:$0xf]  ;;  %v4638_v47 = vor.u32 %v5799_v44, %v4635_v45  ;;  %v5791_v44 = vld [vmem:[%s7166_s5 + $0xa4] sm:$0xf]  ;;  %v4603_v45 = vld [vmem:[%s7166_s5 + $0xa8] sm:$0xf0] }
 0x1cd   : > { %v1223_v50 = vpop.f32.mrf.mxu2  ;;  %v1236_v51 = vpop.f32.mrf.mxu3  ;;  %1617 = vmatpush.bf16.msra.mxu0 %v4578_v39  ;;  %v5792_v39 = vld [vmem:[%s7166_s5 + $0xa4] sm:$0xf0] }
 0x1ce   : > { %v4571_v51 = vld [vmem:[%s7166_s5 + $0x68] sm:$0xf0] }
 0x1cf   : > { %v1247_v52 = vpop.f32.mrf.mxu0  ;;  %v1260_v55 = vpop.f32.mrf.mxu1 }
 0x1d0   : > { %v1248_v4 = vadd.f32 %v1247_v52, %v646_v48  ;;  %v5784_v48 = vld [vmem:[%s7166_s5 + $0x64] sm:$0xf0]  ;;  %v4625_v52 = vld [vmem:[%s7166_s5 + $0xd0] sm:$0xf] }
 0x1d1   : > { %v4570_v50 = vor.u32 %v5784_v48, %v4569_v46 }
 0x1d2   : > { %v1261_v35 = vadd.f32 %v1260_v55, %v1248_v4  ;;  %v5798_v55 = vld [vmem:[%s7166_s5 + $0xd4] sm:$0xf0]  ;;  %v4574_v4 = vor.u32 %v5783_v49, %v4571_v51  ;;  %v5775_v49 = vld [vmem:[%s7166_s5 + $0x24] sm:$0xf] }
 0x1d3   : > { %1373 = vmatmul.bf16.vlgmr.msrb.gmra.mxu2 %v1362_v56  ;;  %v4626_v56 = vor.u32 %v5798_v55, %v4625_v52  ;;  %1618 = vmatpush.bf16.msra.mxu0 %v4570_v50  ;;  %v4539_v50 = vld [vmem:[%s7166_s5 + $0x28] sm:$0xf0] }
 0x1d4   : > { %v1300_v58 = vpack.c.bf16 %v1261_v35, %v1261_v35  ;;  %1643 = vmatpush.bf16.msra.mxu2 %v4582_v43  ;;  %v5797_v35 = vld [vmem:[%s7166_s5 + $0xd4] sm:$0xf] }
 0x1d6   : > { %v1346_v59 = vsel %vm1344_vm4, %v1300_v58, 0  ;;  %v1273_v60 = vpop.f32.mrf.mxu2  ;;  %v1286_v61 = vpop.f32.mrf.mxu3  ;;  %v4561_v58 = vld [vmem:[%s7166_s5 + $0x50] sm:$0xf] }
 0x1d7   : > { %v1274_v62 = vadd.f32 %v1273_v60, %v647_v57  ;;  %v1249_v63 = vpop.f32.mrf.mxu0  ;;  %v1262_v2 = vpop.f32.mrf.mxu1  ;;  %1355 = vmatpush.bf16.msrb.mxu1 %v1346_v59  ;;  %v4627_v57 = vld [vmem:[%s7166_s5 + $0xd8] sm:$0xf0]  ;;  %v5782_v60 = vld [vmem:[%s7166_s5 + $0x54] sm:$0xf0] }
 0x1d8   : > { %v4630_v59 = vor.u32 %v5797_v35, %v4627_v57  ;;  %v4562_v2 = vor.u32 %v5782_v60, %v4561_v58  ;;  %1644 = vmatpush.bf16.msra.mxu2 %v4574_v4  ;;  %v4593_v4 = vld [vmem:[%s7166_s5 + $0x90] sm:$0xf]  ;;  %v4606_v57 = vor.u32 %v5791_v44, %v4603_v45  ;;  %v6153_v45 = vld [vmem:[%s6399_s28 + $0x8] sm:$0xff] }
 0x1d9   : > { %v1287_v3 = vadd.f32 %v1286_v61, %v1274_v62  ;;  %v5781_v61 = vld [vmem:[%s7166_s5 + $0x54] sm:$0xf]  ;;  %v4563_v62 = vld [vmem:[%s7166_s5 + $0x58] sm:$0xf0]  ;;  %v4529_v58 = vld [vmem:[%s7166_s5 + $0x10] sm:$0xf] }
 0x1da   : > { %1619 = vmatpush.bf16.msra.mxu0 %v4562_v2 }
 0x1db   : > { %v1364_v5 = vpack.c.bf16 %v1287_v3, %v1287_v3  ;;  %1630 = vmatpush.bf16.msra.mxu1 %v4642_v53  ;;  %v4617_v3 = vld [vmem:[%s7166_s5 + $0xc0] sm:$0xf]  ;;  %v4547_v53 = vld [vmem:[%s7166_s5 + $0x38] sm:$0xf0] }
 0x1dd   : > { %v1408_v7 = vsel %vm1344_vm4, %v1364_v5, 0  ;;  %v5796_v5 = vld [vmem:[%s7166_s5 + $0xc4] sm:$0xf0] }
 0x1de   : > { %v1275_v8 = vpop.f32.mrf.mxu2  ;;  %v1288_v9 = vpop.f32.mrf.mxu3  ;;  %1417 = vmatpush.bf16.msrb.mxu3 %v1408_v7  ;;  %v5795_v7 = vld [vmem:[%s7166_s5 + $0xc4] sm:$0xf] }
 0x1df   : > { %1631 = vmatpush.bf16.msra.mxu1 %v4634_v1  ;;  %v4550_v1 = vor.u32 %v5777_v33, %v4547_v53 }
 0x1e2   : > { %1656 = vmatpush.bf16.msra.mxu3 %v4646_v38  ;;  %v4601_v38 = vld [vmem:[%s7166_s5 + $0xa0] sm:$0xf] }
 0x1e3   : > { %1632 = vmatpush.bf16.msra.mxu1 %v4626_v56  ;;  %v4602_v48 = vor.u32 %v5792_v39, %v4601_v38  ;;  %v5790_v56 = vld [vmem:[%s7166_s5 + $0x94] sm:$0xf0]  ;;  %v1671_v38 = vld [vmem:[%s7167_s6] sm:$0x3] }
 0x1e4   : > { %v4594_v2 = vor.u32 %v5790_v56, %v4593_v4  ;;  %v5129_v4 = vld [vmem:[#allocation4 + $0x3c0] sm:$0xf] }
 0x1e6   : > { %1657 = vmatpush.bf16.msra.mxu3 %v4638_v47 }
 0x1ea   : > { %1658 = vmatpush.bf16.msra.mxu3 %v4630_v59 }
 0x249   : > { %v1310_v10 = vpop.f32.mrf.mxu0 }
 0x24a   : > { %v1314_v17 = vsel %vm1296_vm7, %v1310_v10, -1e+30  ;;  %v4566_v10 = vor.u32 %v5781_v61, %v4563_v62  ;;  %v4542_v61 = vor.u32 %v5775_v49, %v4539_v50  ;;  %v5789_v62 = vld [vmem:[%s7166_s5 + $0x94] sm:$0xf] }
 0x24b   : > { %v1316_v19 = vsel %vm1315_vm8, %v1314_v17, -inf }
 0x24c   : > { %1645 = vmatpush.bf16.msra.mxu2 %v4566_v10 }
 0x251   : > { %v1312_v13 = vpop.f32.mrf.mxu0 }
 0x256   : > { %v1374_v14 = vpop.f32.mrf.mxu2 }
 0x257   : > { %v1378_v15 = vsel %vm1296_vm7, %v1374_v14, -1e+30  ;;  %v4618_v14 = vor.u32 %v5796_v5, %v4617_v3  ;;  %v5773_v3 = vld [vmem:[%s7166_s5 + $0x14] sm:$0xf]  ;;  %v4531_v5 = vld [vmem:[%s7166_s5 + $0x18] sm:$0xf0] }
 0x258   : > { %v1379_v16 = vsel %vm1315_vm8, %v1378_v15, -inf }
 0x259   : > { %1380 = vmax.xlane.f32.xlu1 %v1379_v16  ;;  %1633 = vmatpush.bf16.msra.mxu1 %v4618_v14 }
 0x25e   : > { %v1376_v18 = vpop.f32.mrf.mxu2 }
 0x25f   : > { %v4554_v18 = vor.u32 %v5780_v12, %v4553_v11  ;;  %v4534_v12 = vor.u32 %v5773_v3, %v4531_v5  ;;  %v5097_v3 = vld [vmem:[#allocation4 + $0x380] sm:$0xf] }
 0x260   : > { %v5919_v5 = vld [vmem:[#allocation4 + $0x39c] sm:$0xf0] }
 0x261   : > { %1317 = vmax.xlane.f32.xlu1 %v1316_v19  ;;  %v4555_v19 = vld [vmem:[%s7166_s5 + $0x48] sm:$0xf0]  ;;  %1620 = vmatpush.bf16.msra.mxu0 %v4554_v18 }
 0x2cc   : > { %v1381_v20 = vpop.xlane.xlu1 %1380 }
 0x2cd   : > { %v1382_v21 = vsub.f32 %v1378_v15, %v1381_v20  ;;  %v5779_v15 = vld [vmem:[%s7166_s5 + $0x44] sm:$0xf]  ;;  %v4609_v20 = vld [vmem:[%s7166_s5 + $0xb0] sm:$0xf] }
 0x2cf   : > { %v1383_v23 = vmul.f32 1.442695, %v1382_v21 }
 0x2d1   : > { %6110 = vpow2.f32 %v1383_v23  ;;  %v5794_v23 = vld [vmem:[%s7166_s5 + $0xb4] sm:$0xf0] }
 0x2d2   : > { %v4610_v32 = vor.u32 %v5794_v23, %v4609_v20  ;;  %v4521_v20 = vld [vmem:[%s7166_s5] sm:$0xf]  ;;  %v5771_v23 = vld [vmem:[%s7166_s5 + $0x4] sm:$0xf] }
 0x2d4   : > { %v1318_v24 = vpop.xlane.xlu1 %1317  ;;  %1634 = vmatpush.bf16.msra.mxu1 %v4610_v32 }
 0x2d5   : > { %v1319_v25 = vsub.f32 %v1314_v17, %v1318_v24  ;;  %v4622_v17 = vor.u32 %v5795_v7, %v4619_v6  ;;  %v5793_v24 = vld [vmem:[%s7166_s5 + $0xb4] sm:$0xf] }
 0x2d7   : > { %v6462_v26 = vpop.eup %6110  ;;  %v1320_v27 = vmul.f32 1.442695, %v1319_v25  ;;  %1659 = vmatpush.bf16.msra.mxu3 %v4622_v17  ;;  %v5787_v17 = vld [vmem:[%s7166_s5 + $0x84] sm:$0xf] }
 0x2d8   : > { %v1385_v28 = vsel %vm1315_vm8, %v6462_v26, 0.0  ;;  %1635 = vmatpush.bf16.msra.mxu1 %v4602_v48 }
 0x2d9   : > { %6112 = vpow2.f32 %v1320_v27  ;;  %1386 = vadd.xlane.f32.xlu2 %v1385_v28  ;;  %v4558_v27 = vor.u32 %v5779_v15, %v4555_v19  ;;  %v4611_v28 = vld [vmem:[%s7166_s5 + $0xb8] sm:$0xf0]  ;;  %v4585_v15 = vld [vmem:[%s7166_s5 + $0x80] sm:$0xf] }
 0x2da   : > { %v4614_v54 = vor.u32 %v5793_v24, %v4611_v28 }
 0x2db   : > { %1646 = vmatpush.bf16.msra.mxu2 %v4558_v27 }
 0x2dc   : > { %1660 = vmatpush.bf16.msra.mxu3 %v4614_v54  ;;  %1636 = vmatpush.bf16.msra.mxu1 %v4594_v2  ;;  %v5855_v2 = vld [vmem:[#allocation4 + $0x19c] sm:$0xf0] }
 0x2df   : > { %v6466_v29 = vpop.eup %6112  ;;  %1647 = vmatpush.bf16.msra.mxu2 %v4550_v1  ;;  %v1674_v1 = vperm.slane %v1671_v38, 1 }
 0x2e0   : > { %v1322_v30 = vsel %vm1315_vm8, %v6466_v29, 0.0  ;;  %1661 = vmatpush.bf16.msra.mxu3 %v4606_v57  ;;  %v5859_v57 = vld [vmem:[#allocation4 + $0x1c4] sm:$0xf] }
 0x2e1   : > { %1323 = vadd.xlane.f32.xlu2 %v1322_v30  ;;  %v4545_v30 = vld [vmem:[%s7166_s5 + $0x30] sm:$0xf] }
 0x2e2   : > { %v4546_v36 = vor.u32 %v5778_v31, %v4545_v30 }
 0x2e3   : > { %1648 = vmatpush.bf16.msra.mxu2 %v4542_v61  ;;  %v5131_v61 = vld [vmem:[#allocation4 + $0x3e0] sm:$0xf0] }
 0x2e4   : > { %1621 = vmatpush.bf16.msra.mxu0 %v4546_v36 }
 0x2e7   : > { %1649 = vmatpush.bf16.msra.mxu2 %v4534_v12 }
 0x34c   : > { %v6488_v37 = vpop.xlane.xlu2 %1386 }
 0x34d   : > { %6114 = vrcp.f32 %v6488_v37  ;;  %v1397_v13 = vand.u32 2147483647, %v6488_v37  ;;  %v1399_v21 = vand.u32 2147483648, %v6488_v37  ;;  %vm1393_vm10 = vweird.f32 %v6488_v37 }
 0x34f   : > { %v1400_v41 = vor.u32 1.1754944e-38, %v1399_v21  ;;  %vm1398_vm12 = vcmp.eq.f32.partialorder %v1397_v13, 8.507059e+37  ;;  %v5772_v21 = vld [vmem:[%s7166_s5 + $0x4] sm:$0xf0] }
 0x350   : > { %v4522_v24 = vor.u32 %v5772_v21, %v4521_v20  ;;  %v5907_v20 = vld [vmem:[#allocation4 + $0x344] sm:$0xf] }
 0x351   : > { %v5067_v21 = vld [vmem:[#allocation4 + $0x360] sm:$0xf0] }
 0x353   : > { %v6115_v63 = vpop.eup %6114 }
 0x354   : > { %v1389_v8 = vmul.f32 %v6115_v63, %v6488_v37  ;;  %v6555_v9 = vpop.xlane.xlu2 %1323  ;;  %vm1394_vm9 = vweird.f32 %v6115_v63  ;;  %v4537_v37 = vld [vmem:[%s7166_s5 + $0x20] sm:$0xf] }
 0x355   : > { %6116 = vrcp.f32 %v6555_v9  ;;  %vm1395_vm11 = vmor %vm1393_vm10, %vm1394_vm9  ;;  %v1334_v47 = vand.u32 2147483647, %v6555_v9  ;;  %v4538_v55 = vor.u32 %v5776_v0, %v4537_v37  ;;  %v1336_v35 = vand.u32 2147483648, %v6555_v9  ;;  %v6152_v37 = vld [vmem:[%s6399_s28] sm:$0xff] }
 0x356   : > { %v1390_v16 = vsub.f32 1.0, %v1389_v8  ;;  %vm1330_vm14 = vweird.f32 %v6555_v9 }
 0x357   : > { %1622 = vmatpush.bf16.msra.mxu0 %v4538_v55  ;;  %v1337_v10 = vor.u32 1.1754944e-38, %v1336_v35  ;;  %vm1335_vm0 = vcmp.eq.f32.partialorder %v1334_v47, 8.507059e+37  ;;  %v5863_v55 = vld [vmem:[#allocation4 + $0x1dc] sm:$0xf0] }
 0x358   : > { %v1391_v25 = vmul.f32 %v6115_v63, %v1390_v16  ;;  %v5788_v16 = vld [vmem:[%s7166_s5 + $0x84] sm:$0xf0]  ;;  %v5927_v35 = vld [vmem:[#allocation4 + $0x3dc] sm:$0xf0] }
 0x359   : > { %v4586_v18 = vor.u32 %v5788_v16, %v4585_v15  ;;  %v5065_v16 = vld [vmem:[#allocation4 + $0x340] sm:$0xf] }
 0x35a   : > { %v1392_v34 = vadd.f32 %v6115_v63, %v1391_v25  ;;  %v4523_v25 = vld [vmem:[%s7166_s5 + $0x8] sm:$0xf0] }
 0x35b   : > { %v6117_v40 = vpop.eup %6116  ;;  %1637 = vmatpush.bf16.msra.mxu1 %v4586_v18  ;;  %v4526_v27 = vor.u32 %v5771_v23, %v4523_v25  ;;  %v5843_v18 = vld [vmem:[#allocation4 + $0x144] sm:$0xf]  ;;  %v4777_v25 = vld [vmem:[#allocation4 + $0x100] sm:$0xf] }
 0x35c   : > { %v1396_v42 = vsel %vm1395_vm11, %v6115_v63, %v1392_v34  ;;  %v1326_v43 = vmul.f32 %v6117_v40, %v6555_v9  ;;  %vm1331_vm13 = vweird.f32 %v6117_v40  ;;  %v4595_v63 = vld [vmem:[%s7166_s5 + $0x98] sm:$0xf0] }
 0x35d   : > { %v1401_v46 = vsel %vm1398_vm12, %v1400_v41, %v1396_v42  ;;  %vm1332_vm15 = vmor %vm1330_vm14, %vm1331_vm13  ;;  %v4598_v6 = vor.u32 %v5789_v62, %v4595_v63  ;;  %1650 = vmatpush.bf16.msra.mxu2 %v4526_v27  ;;  %v1673_v42 = vperm.slane %v1671_v38, 0  ;;  %v4841_v62 = vld [vmem:[#allocation4 + $0x180] sm:$0xf] }
 0x35e   : > { %v1402_v51 = vmul.f32 %v6462_v26, %v1401_v46  ;;  %v1327_v52 = vsub.f32 1.0, %v1326_v43  ;;  %v5774_v26 = vld [vmem:[%s7166_s5 + $0x14] sm:$0xf0]  ;;  %v5839_v27 = vld [vmem:[#allocation4 + $0x11c] sm:$0xf0] }
 0x35f   : > { %v4530_v8 = vor.u32 %v5774_v26, %v4529_v58  ;;  %1662 = vmatpush.bf16.msra.mxu3 %v4598_v6  ;;  %v4875_v58 = vld [vmem:[#allocation4 + $0x1e0] sm:$0xf0]  ;;  %v5130_v26 = vor.u32 %v5927_v35, %v5129_v4  ;;  %v5887_v4 = vld [vmem:[#allocation4 + $0x29c] sm:$0xf0] }
 0x360   : > { %v1328_v59 = vmul.f32 %v6117_v40, %v1327_v52  ;;  %v1403_v60 = vpack.c.bf16 %v1402_v51, %v1402_v51  ;;  %v4873_v52 = vld [vmem:[#allocation4 + $0x1c0] sm:$0xf]  ;;  %v4843_v6 = vld [vmem:[#allocation4 + $0x1a0] sm:$0xf0] }
 0x361   : > { %1623 = vmatpush.bf16.msra.mxu0 %v4530_v8  ;;  %v4874_v56 = vor.u32 %v5863_v55, %v4873_v52  ;;  %v5098_v8 = vor.u32 %v5919_v5, %v5097_v3  ;;  %v4969_v52 = vld [vmem:[#allocation4 + $0x280] sm:$0xf]  ;;  %v4715_v35 = vld [vmem:[#allocation4 + $0xa0] sm:$0xf0] }
 0x362   : > { %v1329_v7 = vadd.f32 %v6117_v40, %v1328_v59  ;;  %4518 = vmatmul.msk.bf16.vlgmr.msrb.gmra.mxu3 %vm1315_vm8, %v1403_v60  ;;  %v4878_v59 = vor.u32 %v5859_v57, %v4875_v58  ;;  %v5923_v60 = vld [vmem:[#allocation4 + $0x3c4] sm:$0xf]  ;;  %v5879_v3 = vld [vmem:[#allocation4 + $0x25c] sm:$0xf0] }
 0x363   : > { %v5134_v63 = vor.u32 %v5923_v60, %v5131_v61  ;;  %v5883_v57 = vld [vmem:[#allocation4 + $0x284] sm:$0xf]  ;;  %v4681_v61 = vld [vmem:[#allocation4 + $0x40] sm:$0xf] }
 0x364   : > { %v1333_v11 = vsel %vm1332_vm15, %v6117_v40, %v1329_v7  ;;  %2534 = vmatpush.bf16.msrb.mxu2 %v4878_v59  ;;  %v4842_v7 = vor.u32 %v5855_v2, %v4841_v62  ;;  %v4971_v58 = vld [vmem:[#allocation4 + $0x2a0] sm:$0xf0]  ;;  %v4970_v59 = vor.u32 %v5887_v4, %v4969_v52  ;;  %v5815_v62 = vld [vmem:[#allocation4 + $0x5c] sm:$0xf0]  ;;  %v4851_v52 = vld [vmem:[#allocation4 + $0x1a8] sm:$0xf0] }
 0x365   : > { %v1338_v13 = vsel %vm1335_vm0, %v1337_v10, %v1333_v11  ;;  %1624 = vmatpush.bf16.msra.mxu0 %v4522_v24  ;;  %v5851_v10 = vld [vmem:[#allocation4 + $0x184] sm:$0xf]  ;;  %v4974_v2 = vor.u32 %v5883_v57, %v4971_v58  ;;  %v5107_v4 = vld [vmem:[#allocation4 + $0x3a8] sm:$0xf0]  ;;  %v4817_v57 = vld [vmem:[#allocation4 + $0x148] sm:$0xf] }
 0x366   : > { %v1339_v14 = vmul.f32 %v6466_v29, %v1338_v13  ;;  %v4587_v29 = vld [vmem:[%s7166_s5 + $0x88] sm:$0xf0]  ;;  %v5915_v11 = vld [vmem:[#allocation4 + $0x384] sm:$0xf]  ;;  %v4846_v12 = vor.u32 %v5851_v10, %v4843_v6  ;;  %v5848_v58 = vld [vmem:[#allocation4 + $0x164] sm:$0xf0] }
 0x367   : > { %v4590_v19 = vor.u32 %v5787_v17, %v4587_v29  ;;  %v5099_v13 = vld [vmem:[#allocation4 + $0x3a0] sm:$0xf0]  ;;  %v5911_v17 = vld [vmem:[#allocation4 + $0x35c] sm:$0xf0] }
 0x368   : > { %v1340_v9 = vpack.c.bf16 %v1339_v14, %v1339_v14  ;;  %v4809_v14 = vld [vmem:[#allocation4 + $0x140] sm:$0xf]  ;;  %v5102_v15 = vor.u32 %v5915_v11, %v5099_v13  ;;  %2535 = vmatpush.bf16.msrb.mxu2 %v4846_v12  ;;  %v5066_v23 = vor.u32 %v5911_v17, %v5065_v16  ;;  %v5811_v5 = vld [vmem:[#allocation4 + $0x44] sm:$0xf]  ;;  %v4682_v11 = vor.u32 %v5815_v62, %v4681_v61  ;;  %v5844_v61 = vld [vmem:[#allocation4 + $0x14c] sm:$0xf] }
 0x369   : > { %1663 = vmatpush.bf16.msra.mxu3 %v4590_v19  ;;  %2508 = vmatpush.bf16.msrb.mxu0 %v4874_v56  ;;  %v4811_v19 = vld [vmem:[#allocation4 + $0x160] sm:$0xf0]  ;;  %v4819_v62 = vld [vmem:[#allocation4 + $0x168] sm:$0xf0] }
 0x36a   : > { %4517 = vmatmul.msk.bf16.vlgmr.msrb.gmra.mxu1 %vm1315_vm8, %v1340_v9  ;;  %v5847_v9 = vld [vmem:[#allocation4 + $0x15c] sm:$0xf0]  ;;  %v4814_v24 = vor.u32 %v5843_v18, %v4811_v19  ;;  %v5819_v56 = vld [vmem:[#allocation4 + $0x84] sm:$0xf] }
 0x36b   : > { %2521 = vmatpush.bf16.msrb.mxu1 %v5130_v26  ;;  %v4810_v29 = vor.u32 %v5847_v9, %v4809_v14  ;;  %v4718_v60 = vor.u32 %v5819_v56, %v4715_v35  ;;  %v4939_v10 = vld [vmem:[#allocation4 + $0x260] sm:$0xf0]  ;;  %v4649_v19 = vld [vmem:[#allocation4] sm:$0xf] }
 0x36c   : > { %2536 = vmatpush.bf16.msrb.mxu2 %v4814_v24  ;;  %v5871_v24 = vld [vmem:[#allocation4 + $0x21c] sm:$0xf0] }
 0x36d   : > { %2547 = vmatpush.bf16.msrb.mxu3 %v5134_v63  ;;  %2509 = vmatpush.bf16.msrb.mxu0 %v4842_v7  ;;  %v4937_v63 = vld [vmem:[#allocation4 + $0x240] sm:$0xf]  ;;  %v4683_v7 = vld [vmem:[#allocation4 + $0x60] sm:$0xf0] }
 0x36e   : > { %v4938_v13 = vor.u32 %v5879_v3, %v4937_v63  ;;  %v4686_v14 = vor.u32 %v5811_v5, %v4683_v7  ;;  %v5908_v3 = vld [vmem:[#allocation4 + $0x34c] sm:$0xf] }
 0x36f   : > { %2522 = vmatpush.bf16.msrb.mxu1 %v5098_v8  ;;  %v5875_v8 = vld [vmem:[#allocation4 + $0x244] sm:$0xf]  ;;  %v5075_v5 = vld [vmem:[#allocation4 + $0x368] sm:$0xf0] }
 0x370   : > { %v4942_v9 = vor.u32 %v5875_v8, %v4939_v10  ;;  %v5078_v7 = vor.u32 %v5908_v3, %v5075_v5  ;;  %v4785_v8 = vld [vmem:[#allocation4 + $0x108] sm:$0xf]  ;;  %v5868_v5 = vld [vmem:[#allocation4 + $0x20c] sm:$0xf] }
 0x371   : > { %2548 = vmatpush.bf16.msrb.mxu3 %v5102_v15  ;;  %2510 = vmatpush.bf16.msrb.mxu0 %v4810_v29  ;;  %v5840_v10 = vld [vmem:[#allocation4 + $0x124] sm:$0xf0] }
 0x373   : > { %2523 = vmatpush.bf16.msrb.mxu1 %v5066_v23 }
 0x3e5   : > { %v1419_v28 = vpop.f32.mrf.mxu3 }
 0x3e6   : > { %v1424_v30 = vpack.c.bf16 %v1419_v28, %v1419_v28  ;;  %v5033_v28 = vld [vmem:[#allocation4 + $0x300] sm:$0xf] }
 0x3e7   : > { %v1357_v31 = vpop.f32.mrf.mxu1 }
 0x3e8   : > { %v1423_v32 = vpack.c.bf16 %v1357_v31, %v1357_v31  ;;  %1638 = vmatmul.bf16.vlgmr.msra.gmra.mxu1 %v1424_v30  ;;  %1664 = vmatmul.bf16.vlgmr.msra.gmra.mxu3 %v1424_v30  ;;  %v5070_v30 = vor.u32 %v5907_v20, %v5067_v21  ;;  %v5903_v31 = vld [vmem:[#allocation4 + $0x31c] sm:$0xf0] }
 0x3e9   : > { %v5807_v20 = vld [vmem:[#allocation4 + $0x1c] sm:$0xf0] }
 0x3ea   : > { %1625 = vmatmul.bf16.vlgmr.msra.gmra.mxu0 %v1423_v32  ;;  %1651 = vmatmul.bf16.vlgmr.msra.gmra.mxu2 %v1423_v32  ;;  %v5835_v32 = vld [vmem:[#allocation4 + $0x104] sm:$0xf]  ;;  %v4905_v21 = vld [vmem:[#allocation4 + $0x200] sm:$0xf]  ;;  %v4650_v23 = vor.u32 %v5807_v20, %v4649_v19  ;;  %v4753_v20 = vld [vmem:[#allocation4 + $0xc8] sm:$0xf] }
 0x3eb   : > { %2549 = vmatpush.bf16.msrb.mxu3 %v5070_v30 }
 0x3ed   : > { %v1421_v33 = vpop.f32.mrf.mxu3 }
 0x3ee   : > { %v4779_v33 = vld [vmem:[#allocation4 + $0x120] sm:$0xf0] }
 0x3ef   : > { %v1359_v53 = vpop.f32.mrf.mxu1  ;;  %v4782_v38 = vor.u32 %v5835_v32, %v4779_v33  ;;  %v4907_v32 = vld [vmem:[#allocation4 + $0x220] sm:$0xf0]  ;;  %v4881_v33 = vld [vmem:[#allocation4 + $0x1c8] sm:$0xf] }
 0x3f0   : > { %v5899_v53 = vld [vmem:[#allocation4 + $0x304] sm:$0xf] }
 0x3f1   : > { %2537 = vmatpush.bf16.msrb.mxu2 %v4782_v38 }
 0x465   : > { %v1639_v34 = vpop.f32.mrf.mxu1 }
 0x467   : > { %v1626_v54 = vpop.f32.mrf.mxu0 }
 0x468   : > { %v1640_v36 = vadd.f32 %v1639_v34, %v1626_v54  ;;  %v5035_v34 = vld [vmem:[#allocation4 + $0x320] sm:$0xf0]  ;;  %v4778_v54 = vor.u32 %v5839_v27, %v4777_v25 }
 0x469   : > { %v5803_v25 = vld [vmem:[#allocation4 + $0x4] sm:$0xf] }
 0x46a   : > { %v1669_v0 = vadd.f32 %v6152_v37, %v1640_v36  ;;  %v5034_v36 = vor.u32 %v5903_v31, %v5033_v28  ;;  %v5038_v37 = vor.u32 %v5899_v53, %v5035_v34  ;;  %2511 = vmatpush.bf16.msrb.mxu0 %v4778_v54  ;;  %v4651_v27 = vld [vmem:[#allocation4 + $0x20] sm:$0xf0]  ;;  %v4906_v28 = vor.u32 %v5871_v24, %v4905_v21  ;;  %v5864_v34 = vld [vmem:[#allocation4 + $0x1e4] sm:$0xf0] }
 0x46b   : > { %v1665_v39 = vpop.f32.mrf.mxu3  ;;  %v4654_v30 = vor.u32 %v5803_v25, %v4651_v27  ;;  %v5867_v31 = vld [vmem:[#allocation4 + $0x204] sm:$0xf]  ;;  %v5137_v54 = vld [vmem:[#allocation4 + $0x3c8] sm:$0xf]  ;;  %v4882_v38 = vor.u32 %v5864_v34, %v4881_v33  ;;  %v5828_v27 = vld [vmem:[#allocation4 + $0xcc] sm:$0xf] }
 0x46c   : > { %v6687_v47 = vadd.f32 %v1673_v42, %v1669_v0  ;;  %v5895_v0 = vld [vmem:[#allocation4 + $0x2dc] sm:$0xf0]  ;;  %v5827_v42 = vld [vmem:[#allocation4 + $0xc4] sm:$0xf]  ;;  %2524 = vmatpush.bf16.msrb.mxu1 %v5034_v36  ;;  %2550 = vmatpush.bf16.msrb.mxu3 %v5038_v37  ;;  %v4910_v53 = vor.u32 %v5867_v31, %v4907_v32  ;;  %v5928_v36 = vld [vmem:[#allocation4 + $0x3e4] sm:$0xf0] }
 0x46d   : > { %v1641_v40 = vpop.f32.mrf.mxu1  ;;  %v1652_v41 = vpop.f32.mrf.mxu2  ;;  %v5924_v37 = vld [vmem:[#allocation4 + $0x3cc] sm:$0xf]  ;;  %v5832_v21 = vld [vmem:[#allocation4 + $0xe4] sm:$0xf0] }
 0x46e   : > { %v1666_v43 = vadd.f32 %v1665_v39, %v1652_v41  ;;  %v4745_v39 = vld [vmem:[#allocation4 + $0xc0] sm:$0xf]  ;;  %v4754_v24 = vor.u32 %v5832_v21, %v4753_v20  ;;  %v5896_v25 = vld [vmem:[#allocation4 + $0x2e4] sm:$0xf0]  ;;  %v5892_v32 = vld [vmem:[#allocation4 + $0x2cc] sm:$0xf] }
 0x46f   : > { %v1628_v44 = vpop.f32.mrf.mxu0  ;;  %v5831_v40 = vld [vmem:[#allocation4 + $0xdc] sm:$0xf0]  ;;  %v5011_v33 = vld [vmem:[#allocation4 + $0x2e8] sm:$0xf0]  ;;  %v4721_v34 = vld [vmem:[#allocation4 + $0x88] sm:$0xf] }
 0x470   : > { %v1670_v46 = vadd.f32 %v6153_v45, %v1666_v43  ;;  %v5001_v41 = vld [vmem:[#allocation4 + $0x2c0] sm:$0xf]  ;;  %v4747_v43 = vld [vmem:[#allocation4 + $0xe0] sm:$0xf0]  ;;  %v4746_v45 = vor.u32 %v5831_v40, %v4745_v39  ;;  %v5138_v39 = vor.u32 %v5928_v36, %v5137_v54  ;;  %v5860_v40 = vld [vmem:[#allocation4 + $0x1cc] sm:$0xf] }
 0x471   : > { %v5003_v44 = vld [vmem:[#allocation4 + $0x2e0] sm:$0xf0]  ;;  %v5824_v54 = vld [vmem:[#allocation4 + $0xa4] sm:$0xf0] }
 0x472   : > { %v6689_v48 = vadd.f32 %v1674_v1, %v1670_v46  ;;  %v5891_v1 = vld [vmem:[#allocation4 + $0x2c4] sm:$0xf]  ;;  %v5002_v46 = vor.u32 %v5895_v0, %v5001_v41  ;;  %2512 = vmatpush.bf16.msrb.mxu0 %v4746_v45  ;;  %v4883_v41 = vld [vmem:[#allocation4 + $0x1e8] sm:$0xf0]  ;;  %v4977_v36 = vld [vmem:[#allocation4 + $0x288] sm:$0xf] }
 0x473   : > { %v1667_v49 = vpop.f32.mrf.mxu3  ;;  %v5006_v55 = vor.u32 %v5891_v1, %v5003_v44  ;;  %v4886_v0 = vor.u32 %v5860_v40, %v4883_v41  ;;  %v5856_v1 = vld [vmem:[#allocation4 + $0x1a4] sm:$0xf0]  ;;  %v5820_v40 = vld [vmem:[#allocation4 + $0x8c] sm:$0xf] }
 0x474   : > { %v1681_v50 = vadd.f32 %v6689_v48, %v6687_v47  ;;  %v4750_v49 = vor.u32 %v5827_v42, %v4747_v43  ;;  %2525 = vmatpush.bf16.msrb.mxu1 %v5002_v46  ;;  %v5139_v42 = vld [vmem:[#allocation4 + $0x3e8] sm:$0xf0]  ;;  %v4849_v43 = vld [vmem:[#allocation4 + $0x188] sm:$0xf] }
 0x475   : > { %v1654_v51 = vpop.f32.mrf.mxu2  ;;  %2551 = vmatpush.bf16.msrb.mxu3 %v5006_v55  ;;  %v5142_v44 = vor.u32 %v5924_v37, %v5139_v42  ;;  %v4850_v45 = vor.u32 %v5856_v1, %v4849_v43  ;;  %v5105_v46 = vld [vmem:[#allocation4 + $0x388] sm:$0xf]  ;;  %v5916_v55 = vld [vmem:[#allocation4 + $0x38c] sm:$0xf] }
 0x476   : > { %1682 = vadd.xlane.f32.xlu0 %v1681_v50  ;;  %v4713_v50 = vld [vmem:[#allocation4 + $0x80] sm:$0xf]  ;;  %2538 = vmatpush.bf16.msrb.mxu2 %v4750_v49  ;;  %v5920_v49 = vld [vmem:[#allocation4 + $0x3a4] sm:$0xf0]  ;;  %v5110_v35 = vor.u32 %v5916_v55, %v5107_v4  ;;  %v4723_v41 = vld [vmem:[#allocation4 + $0xa8] sm:$0xf0] }
 0x477   : > { %v5823_v51 = vld [vmem:[#allocation4 + $0x9c] sm:$0xf0]  ;;  %v5884_v42 = vld [vmem:[#allocation4 + $0x28c] sm:$0xf] }
 0x478   : > { %v4714_v26 = vor.u32 %v5823_v51, %v4713_v50  ;;  %2526 = vmatpush.bf16.msrb.mxu1 %v4970_v59  ;;  %v5852_v50 = vld [vmem:[#allocation4 + $0x18c] sm:$0xf]  ;;  %v5106_v51 = vor.u32 %v5920_v49, %v5105_v46  ;;  %v4818_v59 = vor.u32 %v5848_v58, %v4817_v57  ;;  %v4945_v46 = vld [vmem:[#allocation4 + $0x248] sm:$0xf] }
 0x479   : > { %2552 = vmatpush.bf16.msrb.mxu3 %v4974_v2  ;;  %v4854_v56 = vor.u32 %v5852_v50, %v4851_v52  ;;  %v4822_v2 = vor.u32 %v5844_v61, %v4819_v62  ;;  %v4979_v43 = vld [vmem:[#allocation4 + $0x2a8] sm:$0xf0]  ;;  %v5880_v50 = vld [vmem:[#allocation4 + $0x264] sm:$0xf0] }
 0x47a   : > { %2513 = vmatpush.bf16.msrb.mxu0 %v4714_v26  ;;  %2539 = vmatpush.bf16.msrb.mxu2 %v4718_v60  ;;  %v5073_v26 = vld [vmem:[#allocation4 + $0x348] sm:$0xf]  ;;  %v4982_v1 = vor.u32 %v5884_v42, %v4979_v43  ;;  %v4691_v52 = vld [vmem:[#allocation4 + $0x68] sm:$0xf0]  ;;  %v4946_v55 = vor.u32 %v5880_v50, %v4945_v46  ;;  %v4857_v42 = vld [vmem:[#allocation4 + $0x190] sm:$0xf] }
 0x47b   : > { %v5912_v60 = vld [vmem:[#allocation4 + $0x364] sm:$0xf0]  ;;  %v5804_v62 = vld [vmem:[#allocation4 + $0xc] sm:$0xf]  ;;  %v5853_v46 = vld [vmem:[#allocation4 + $0x194] sm:$0xf] }
 0x47c   : > { %2527 = vmatpush.bf16.msrb.mxu1 %v4938_v13  ;;  %v5074_v63 = vor.u32 %v5912_v60, %v5073_v26  ;;  %v5836_v13 = vld [vmem:[#allocation4 + $0x10c] sm:$0xf]  ;;  %v4657_v58 = vld [vmem:[#allocation4 + $0x8] sm:$0xf]  ;;  %v5917_v50 = vld [vmem:[#allocation4 + $0x394] sm:$0xf] }
 0x47d   : > { %2553 = vmatpush.bf16.msrb.mxu3 %v4942_v9  ;;  %v5808_v26 = vld [vmem:[#allocation4 + $0x24] sm:$0xf0] }
 0x47e   : > { %2514 = vmatpush.bf16.msrb.mxu0 %v4682_v11  ;;  %2540 = vmatpush.bf16.msrb.mxu2 %v4686_v14  ;;  %v4786_v11 = vor.u32 %v5840_v10, %v4785_v8  ;;  %v4787_v14 = vld [vmem:[#allocation4 + $0x128] sm:$0xf0]  ;;  %v4658_v60 = vor.u32 %v5808_v26, %v4657_v58  ;;  %v5872_v61 = vld [vmem:[#allocation4 + $0x224] sm:$0xf0]  ;;  %v5081_v58 = vld [vmem:[#allocation4 + $0x350] sm:$0xf] }
 0x47f   : > { %v5913_v26 = vld [vmem:[#allocation4 + $0x36c] sm:$0xf0] }
 0x480   : > { %2528 = vmatpush.bf16.msrb.mxu1 %v4906_v28  ;;  %v4755_v28 = vld [vmem:[#allocation4 + $0xe8] sm:$0xf0] }
 0x481   : > { %2554 = vmatpush.bf16.msrb.mxu3 %v4910_v53  ;;  %v4758_v31 = vor.u32 %v5828_v27, %v4755_v28  ;;  %v5014_v53 = vor.u32 %v5892_v32, %v5011_v33  ;;  %v5865_v32 = vld [vmem:[#allocation4 + $0x1ec] sm:$0xf0] }
 0x482   : > { %2515 = vmatpush.bf16.msrb.mxu0 %v4650_v23  ;;  %2541 = vmatpush.bf16.msrb.mxu2 %v4654_v30  ;;  %v5009_v23 = vld [vmem:[#allocation4 + $0x2c8] sm:$0xf]  ;;  %v5145_v33 = vld [vmem:[#allocation4 + $0x3d0] sm:$0xf] }
 0x483   : > { %v5010_v30 = vor.u32 %v5896_v25, %v5009_v23 }
 0x484   : > { %2573 = vmatpush.bf16.msra.mxu1 %v5138_v39  ;;  %v5888_v39 = vld [vmem:[#allocation4 + $0x2a4] sm:$0xf0] }
 0x485   : > { %2599 = vmatpush.bf16.msra.mxu3 %v5142_v44  ;;  %v4978_v37 = vor.u32 %v5888_v39, %v4977_v36  ;;  %v4689_v44 = vld [vmem:[#allocation4 + $0x48] sm:$0xf]  ;;  %v5925_v39 = vld [vmem:[#allocation4 + $0x3d4] sm:$0xf] }
 0x486   : > { %2560 = vmatpush.bf16.msra.mxu0 %v4882_v38  ;;  %2586 = vmatpush.bf16.msra.mxu2 %v4886_v0  ;;  %v4722_v38 = vor.u32 %v5824_v54, %v4721_v34  ;;  %v4726_v0 = vor.u32 %v5820_v40, %v4723_v41  ;;  %v5861_v34 = vld [vmem:[#allocation4 + $0x1d4] sm:$0xf] }
 0x487   : > { %v5147_v40 = vld [vmem:[#allocation4 + $0x3f0] sm:$0xf0] }
 0x488   : > { %2574 = vmatpush.bf16.msra.mxu1 %v5106_v51  ;;  %v5812_v51 = vld [vmem:[#allocation4 + $0x4c] sm:$0xf] }
 0x489   : > { %2600 = vmatpush.bf16.msra.mxu3 %v5110_v35  ;;  %v4694_v4 = vor.u32 %v5812_v51, %v4691_v52  ;;  %v4947_v35 = vld [vmem:[#allocation4 + $0x268] sm:$0xf0]  ;;  %v5115_v51 = vld [vmem:[#allocation4 + $0x3b0] sm:$0xf0] }
 0x48a   : > { %2561 = vmatpush.bf16.msra.mxu0 %v4850_v45  ;;  %2587 = vmatpush.bf16.msra.mxu2 %v4854_v56  ;;  %v5816_v45 = vld [vmem:[#allocation4 + $0x64] sm:$0xf0]  ;;  %v5876_v56 = vld [vmem:[#allocation4 + $0x24c] sm:$0xf] }
 0x48b   : > { %v4690_v49 = vor.u32 %v5816_v45, %v4689_v44  ;;  %v4950_v57 = vor.u32 %v5876_v56, %v4947_v35  ;;  %v5113_v44 = vld [vmem:[#allocation4 + $0x390] sm:$0xf] }
 0x48c   : > { %2575 = vmatpush.bf16.msra.mxu1 %v5074_v63  ;;  %v4659_v63 = vld [vmem:[#allocation4 + $0x28] sm:$0xf0]  ;;  %v5921_v45 = vld [vmem:[#allocation4 + $0x3ac] sm:$0xf0] }
 0x48d   : > { %2601 = vmatpush.bf16.msra.mxu3 %v5078_v7  ;;  %v4662_v3 = vor.u32 %v5804_v62, %v4659_v63  ;;  %v4915_v7 = vld [vmem:[#allocation4 + $0x228] sm:$0xf0]  ;;  %v5849_v56 = vld [vmem:[#allocation4 + $0x16c] sm:$0xf0]  ;;  %v5083_v62 = vld [vmem:[#allocation4 + $0x370] sm:$0xf0] }
 0x48e   : > { %2562 = vmatpush.bf16.msra.mxu0 %v4818_v59  ;;  %2588 = vmatpush.bf16.msra.mxu2 %v4822_v2  ;;  %v4913_v59 = vld [vmem:[#allocation4 + $0x208] sm:$0xf]  ;;  %v4918_v8 = vor.u32 %v5868_v5, %v4915_v7  ;;  %v5841_v5 = vld [vmem:[#allocation4 + $0x12c] sm:$0xf0] }
 0x48f   : > { %v4914_v2 = vor.u32 %v5872_v61, %v4913_v59  ;;  %v5845_v59 = vld [vmem:[#allocation4 + $0x154] sm:$0xf] }
 0x490   : > { %v5909_v61 = vld [vmem:[#allocation4 + $0x354] sm:$0xf] }
 0x492   : > { %2563 = vmatpush.bf16.msra.mxu0 %v4786_v11 }
 0x496   : > { %2564 = vmatpush.bf16.msra.mxu0 %v4754_v24 }
 0x49a   : > { %2565 = vmatpush.bf16.msra.mxu0 %v4722_v38  ;;  %v4891_v38 = vld [vmem:[#allocation4 + $0x1f0] sm:$0xf0] }
 0x49b   : > { %v4894_v43 = vor.u32 %v5861_v34, %v4891_v38  ;;  %v4985_v34 = vld [vmem:[#allocation4 + $0x290] sm:$0xf]  ;;  %v4731_v38 = vld [vmem:[#allocation4 + $0xb0] sm:$0xf0] }
 0x49e   : > { %2566 = vmatpush.bf16.msra.mxu0 %v4690_v49  ;;  %v4859_v49 = vld [vmem:[#allocation4 + $0x1b0] sm:$0xf0] }
 0x49f   : > { %v4862_v35 = vor.u32 %v5853_v46, %v4859_v49  ;;  %v5813_v46 = vld [vmem:[#allocation4 + $0x54] sm:$0xf] }
 0x4a0   : > { %v4699_v49 = vld [vmem:[#allocation4 + $0x70] sm:$0xf0] }
 0x4a2   : > { %2567 = vmatpush.bf16.msra.mxu0 %v4658_v60  ;;  %v4827_v60 = vld [vmem:[#allocation4 + $0x170] sm:$0xf0] }
 0x4a3   : > { %v4830_v7 = vor.u32 %v5845_v59, %v4827_v60  ;;  %v5805_v59 = vld [vmem:[#allocation4 + $0x14] sm:$0xf] }
 0x4a4   : > { %v4667_v60 = vld [vmem:[#allocation4 + $0x30] sm:$0xf0] }
 0x4e9   : > { %v1683_v6 = vpop.xlane.xlu0 %1682 }
 0x4ea   : > { %v1684_v12 = vmul.f32 %v1683_v6, %v6419_v22  ;;  %v5041_v6 = vld [vmem:[#allocation4 + $0x308] sm:$0xf] }
 0x4ec   : > { %v6695_v15 = vsub.f32 %v6687_v47, %v1684_v12  ;;  %v6698_v16 = vsub.f32 %v6689_v48, %v1684_v12  ;;  %v5904_v12 = vld [vmem:[#allocation4 + $0x324] sm:$0xf0] }
 0x4ed   : > { %v5042_v9 = vor.u32 %v5904_v12, %v5041_v6 }
 0x4ee   : > { %v1687_v17 = vmul.f32 %v6695_v15, %v6695_v15  ;;  %v1688_v18 = vmul.f32 %v6698_v16, %v6698_v16 }
 0x4ef   : > { %2576 = vmatpush.bf16.msra.mxu1 %v5042_v9 }
 0x4f0   : > { %v1689_v29 = vadd.f32 %v1688_v18, %v1687_v17  ;;  %v4790_v17 = vor.u32 %v5836_v13, %v4787_v14  ;;  %v5900_v18 = vld [vmem:[#allocation4 + $0x30c] sm:$0xf] }
 0x4f2   : > { %1690 = vadd.xlane.f32.xlu1 %v1689_v29  ;;  %v5043_v29 = vld [vmem:[#allocation4 + $0x328] sm:$0xf0]  ;;  %2589 = vmatpush.bf16.msra.mxu2 %v4790_v17  ;;  %v1679_v17 = vld [vmem:[%s7172_s11] sm:$0x3] }
 0x4f3   : > { %v5046_v19 = vor.u32 %v5900_v18, %v5043_v29  ;;  %2577 = vmatpush.bf16.msra.mxu1 %v5010_v30  ;;  %v1708_v20 = vperm.slane %v1679_v17, 1 }
 0x4f5   : > { %2602 = vmatpush.bf16.msra.mxu3 %v5046_v19  ;;  %v1707_v19 = vperm.slane %v1679_v17, 0 }
 0x4f6   : > { %2590 = vmatpush.bf16.msra.mxu2 %v4758_v31  ;;  %v4889_v31 = vld [vmem:[#allocation4 + $0x1d0] sm:$0xf] }
 0x4f7   : > { %2578 = vmatpush.bf16.msra.mxu1 %v4978_v37 }
 0x4f9   : > { %2603 = vmatpush.bf16.msra.mxu3 %v5014_v53  ;;  %v5929_v53 = vld [vmem:[#allocation4 + $0x3ec] sm:$0xf0] }
 0x4fa   : > { %2591 = vmatpush.bf16.msra.mxu2 %v4726_v0  ;;  %v4890_v0 = vor.u32 %v5865_v32, %v4889_v31  ;;  %v4729_v31 = vld [vmem:[#allocation4 + $0x90] sm:$0xf] }
 0x4fb   : > { %2579 = vmatpush.bf16.msra.mxu1 %v4946_v55  ;;  %v5114_v55 = vor.u32 %v5921_v45, %v5113_v44  ;;  %v5825_v32 = vld [vmem:[#allocation4 + $0xac] sm:$0xf0] }
 0x4fc   : > { %v4953_v44 = vld [vmem:[#allocation4 + $0x250] sm:$0xf] }
 0x4fd   : > { %2604 = vmatpush.bf16.msra.mxu3 %v4982_v1  ;;  %v5150_v1 = vor.u32 %v5925_v39, %v5147_v40  ;;  %v5885_v39 = vld [vmem:[#allocation4 + $0x294] sm:$0xf]  ;;  %v5881_v45 = vld [vmem:[#allocation4 + $0x26c] sm:$0xf0] }
 0x4fe   : > { %2592 = vmatpush.bf16.msra.mxu2 %v4694_v4  ;;  %v4825_v4 = vld [vmem:[#allocation4 + $0x150] sm:$0xf]  ;;  %v4987_v40 = vld [vmem:[#allocation4 + $0x2b0] sm:$0xf0] }
 0x4ff   : > { %2580 = vmatpush.bf16.msra.mxu1 %v4914_v2  ;;  %v4826_v63 = vor.u32 %v5849_v56, %v4825_v4  ;;  %v5082_v2 = vor.u32 %v5913_v26, %v5081_v58  ;;  %v4954_v4 = vor.u32 %v5881_v45, %v4953_v44  ;;  %v5809_v56 = vld [vmem:[#allocation4 + $0x2c] sm:$0xf0]  ;;  %v4702_v58 = vor.u32 %v5813_v46, %v4699_v49  ;;  %v5057_v44 = vld [vmem:[#allocation4 + $0x318] sm:$0xf]  ;;  %v5838_v46 = vld [vmem:[#allocation4 + $0x11c] sm:$0xf] }
 0x500   : > { %v5906_v45 = vld [vmem:[#allocation4 + $0x334] sm:$0xf0]  ;;  %v4803_v49 = vld [vmem:[#allocation4 + $0x138] sm:$0xf0] }
 0x501   : > { %2605 = vmatpush.bf16.msra.mxu3 %v4950_v57  ;;  %v5118_v57 = vor.u32 %v5917_v50, %v5115_v51  ;;  %v5877_v50 = vld [vmem:[#allocation4 + $0x254] sm:$0xf] }
 0x502   : > { %2593 = vmatpush.bf16.msra.mxu2 %v4662_v3  ;;  %v4793_v3 = vld [vmem:[#allocation4 + $0x110] sm:$0xf]  ;;  %v4955_v51 = vld [vmem:[#allocation4 + $0x270] sm:$0xf0] }
 0x503   : > { %v4958_v26 = vor.u32 %v5877_v50, %v4955_v51  ;;  %v5902_v50 = vld [vmem:[#allocation4 + $0x31c] sm:$0xf] }
 0x504   : > { %v5059_v51 = vld [vmem:[#allocation4 + $0x338] sm:$0xf0] }
 0x505   : > { %2606 = vmatpush.bf16.msra.mxu3 %v4918_v8  ;;  %v5086_v8 = vor.u32 %v5909_v61, %v5083_v62  ;;  %v5869_v61 = vld [vmem:[#allocation4 + $0x214] sm:$0xf] }
 0x506   : > { %v4923_v62 = vld [vmem:[#allocation4 + $0x230] sm:$0xf0] }
 0x565   : > { %v1691_v10 = vpop.xlane.xlu1 %1690 }
 0x566   : > { %v1692_v6 = vmul.f32 %v1691_v10, %v6419_v22  ;;  %v1680_v22 = vld [vmem:[%s7173_s12] sm:$0x3]  ;;  %v5049_v10 = vld [vmem:[#allocation4 + $0x310] sm:$0xf] }
 0x567   : > { %v1714_v23 = vperm.slane %v1680_v22, 0  ;;  %v1715_v24 = vperm.slane %v1680_v22, 1  ;;  %v5833_v22 = vld [vmem:[#allocation4 + $0xec] sm:$0xf0] }
 0x568   : > { %v1693_v11 = vadd.f32 1e-05, %v1692_v6  ;;  %v5905_v6 = vld [vmem:[#allocation4 + $0x32c] sm:$0xf0] }
 0x569   : > { %v5050_v17 = vor.u32 %v5905_v6, %v5049_v10  ;;  %v4899_v6 = vld [vmem:[#allocation4 + $0x1f8] sm:$0xf0] }
 0x56a   : > { %6118 = vrsqrt.f32 %v1693_v11  ;;  %vm1700_vm2 = vweird.f32 %v1693_v11 }
 0x570   : > { %v6119_v12 = vpop.eup %6118 }
 0x571   : > { %v1695_v13 = vmul.f32 %v6119_v12, %v1693_v11  ;;  %vm1701_vm1 = vweird.f32 %v6119_v12  ;;  %v5837_v11 = vld [vmem:[#allocation4 + $0x114] sm:$0xf] }
 0x572   : > { %vm1702_vm3 = vmor %vm1700_vm2, %vm1701_vm1 }
 0x573   : > { %v1696_v14 = vmul.f32 %v6119_v12, %v1695_v13  ;;  %v5901_v13 = vld [vmem:[#allocation4 + $0x314] sm:$0xf] }
 0x575   : > { %v1697_v9 = vmul.f32 0.5, %v1696_v14  ;;  %v5051_v14 = vld [vmem:[#allocation4 + $0x330] sm:$0xf0] }
 0x577   : > { %v1698_v18 = vsub.f32 1.5, %v1697_v9  ;;  %v4794_v9 = vor.u32 %v5841_v5, %v4793_v3  ;;  %v5153_v3 = vld [vmem:[#allocation4 + $0x3d8] sm:$0xf] }
 0x578   : > { %v5930_v5 = vld [vmem:[#allocation4 + $0x3f4] sm:$0xf0] }
 0x579   : > { %v1699_v29 = vmul.f32 %v6119_v12, %v1698_v18  ;;  %v4761_v18 = vld [vmem:[#allocation4 + $0xd0] sm:$0xf] }
 0x57b   : > { %v1703_v21 = vsel %vm1702_vm3, %v6119_v12, %v1699_v29  ;;  %v4795_v12 = vld [vmem:[#allocation4 + $0x130] sm:$0xf0] }
 0x57c   : > { %v1704_v25 = vmul.f32 %v1703_v21, %v6695_v15  ;;  %v1705_v27 = vmul.f32 %v1703_v21, %v6698_v16  ;;  %v5146_v15 = vor.u32 %v5929_v53, %v5145_v33  ;;  %v5857_v16 = vld [vmem:[#allocation4 + $0x1ac] sm:$0xf0]  ;;  %v4798_v29 = vor.u32 %v5837_v11, %v4795_v12  ;;  %v5926_v11 = vld [vmem:[#allocation4 + $0x3dc] sm:$0xf] }
 0x57d   : > { %v4858_v52 = vor.u32 %v5857_v16, %v4857_v42  ;;  %v5897_v21 = vld [vmem:[#allocation4 + $0x2ec] sm:$0xf0]  ;;  %v5155_v12 = vld [vmem:[#allocation4 + $0x3f8] sm:$0xf0] }
 0x57e   : > { %v1711_v28 = vmul.f32 %v1707_v19, %v1704_v25  ;;  %v1712_v30 = vmul.f32 %v1708_v20, %v1705_v27  ;;  %v5054_v19 = vor.u32 %v5901_v13, %v5051_v14  ;;  %v5017_v20 = vld [vmem:[#allocation4 + $0x2d0] sm:$0xf]  ;;  %v5893_v25 = vld [vmem:[#allocation4 + $0x2d4] sm:$0xf]  ;;  %v4670_v13 = vor.u32 %v5805_v59, %v4667_v60  ;;  %v5830_v59 = vld [vmem:[#allocation4 + $0xdc] sm:$0xf] }
 0x57f   : > { %v5019_v27 = vld [vmem:[#allocation4 + $0x2f0] sm:$0xf0]  ;;  %v4697_v42 = vld [vmem:[#allocation4 + $0x50] sm:$0xf]  ;;  %v4926_v14 = vor.u32 %v5869_v61, %v4923_v62  ;;  %v4771_v60 = vld [vmem:[#allocation4 + $0xf8] sm:$0xf0] }
 0x580   : > { %v1718_v54 = vadd.f32 %v1714_v23, %v1711_v28  ;;  %v1719_v36 = vadd.f32 %v1715_v24, %v1712_v30  ;;  %v5829_v23 = vld [vmem:[#allocation4 + $0xd4] sm:$0xf]  ;;  %v4762_v28 = vor.u32 %v5833_v22, %v4761_v18  ;;  %v5018_v30 = vor.u32 %v5897_v21, %v5017_v20  ;;  %v5817_v16 = vld [vmem:[#allocation4 + $0x6c] sm:$0xf0]  ;;  %v4865_v18 = vld [vmem:[#allocation4 + $0x198] sm:$0xf] }
 0x581   : > { %v4763_v24 = vld [vmem:[#allocation4 + $0xf0] sm:$0xf0]  ;;  %v5022_v53 = vor.u32 %v5893_v25, %v5019_v27  ;;  %v5858_v22 = vld [vmem:[#allocation4 + $0x1b4] sm:$0xf0]  ;;  %v5918_v25 = vld [vmem:[#allocation4 + $0x39c] sm:$0xf] }
 0x582   : > { %v6713_v41 = vpack.c.bf16 %v1718_v54, %v1718_v54  ;;  %v6715_v37 = vpack.c.bf16 %v1719_v36, %v1719_v36  ;;  %v4766_v33 = vor.u32 %v5829_v23, %v4763_v24  ;;  %v5889_v54 = vld [vmem:[#allocation4 + $0x2ac] sm:$0xf0]  ;;  %v5821_v36 = vld [vmem:[#allocation4 + $0x94] sm:$0xf]  ;;  %v5121_v20 = vld [vmem:[#allocation4 + $0x398] sm:$0xf] }
 0x583   : > { %v5922_v21 = vld [vmem:[#allocation4 + $0x3b4] sm:$0xf0]  ;;  %v5854_v23 = vld [vmem:[#allocation4 + $0x19c] sm:$0xf] }
 0x584   : > { %2516 = vmatmul.bf16.vlgmr.msrb.gmra.mxu0 %v6713_v41  ;;  %2529 = vmatmul.bf16.vlgmr.msrb.gmra.mxu1 %v6715_v37  ;;  %v4867_v24 = vld [vmem:[#allocation4 + $0x1b8] sm:$0xf0] }
 0x585   : > { %2542 = vmatmul.bf16.vlgmr.msrb.gmra.mxu2 %v6713_v41  ;;  %2555 = vmatmul.bf16.vlgmr.msrb.gmra.mxu3 %v6715_v37  ;;  %v5123_v27 = vld [vmem:[#allocation4 + $0x3b8] sm:$0xf0] }
 0x586   : > { %2612 = vmatpush.bf16.msrb.mxu0 %v4890_v0  ;;  %2625 = vmatpush.bf16.msrb.mxu1 %v5146_v15  ;;  %v4730_v0 = vor.u32 %v5825_v32, %v4729_v31  ;;  %v4986_v15 = vor.u32 %v5889_v54, %v4985_v34  ;;  %v4833_v31 = vld [vmem:[#allocation4 + $0x158] sm:$0xf]  ;;  %v5894_v61 = vld [vmem:[#allocation4 + $0x2dc] sm:$0xf] }
 0x587   : > { %2638 = vmatpush.bf16.msrb.mxu2 %v4894_v43  ;;  %2651 = vmatpush.bf16.msrb.mxu3 %v5150_v1  ;;  %v4734_v43 = vor.u32 %v5821_v36, %v4731_v38  ;;  %v4990_v1 = vor.u32 %v5885_v39, %v4987_v40  ;;  %v5850_v32 = vld [vmem:[#allocation4 + $0x174] sm:$0xf0]  ;;  %v5846_v36 = vld [vmem:[#allocation4 + $0x15c] sm:$0xf] }
 0x588   : > { %v5089_v34 = vld [vmem:[#allocation4 + $0x358] sm:$0xf]  ;;  %v4835_v38 = vld [vmem:[#allocation4 + $0x178] sm:$0xf0] }
 0x589   : > { %v5914_v54 = vld [vmem:[#allocation4 + $0x374] sm:$0xf0]  ;;  %v5910_v39 = vld [vmem:[#allocation4 + $0x35c] sm:$0xf] }
 0x58a   : > { %2613 = vmatpush.bf16.msrb.mxu0 %v4858_v52  ;;  %2626 = vmatpush.bf16.msrb.mxu1 %v5114_v55  ;;  %v4665_v52 = vld [vmem:[#allocation4 + $0x10] sm:$0xf]  ;;  %v4698_v55 = vor.u32 %v5817_v16, %v4697_v42  ;;  %v5091_v40 = vld [vmem:[#allocation4 + $0x378] sm:$0xf0]  ;;  %v4801_v42 = vld [vmem:[#allocation4 + $0x118] sm:$0xf] }
 0x58b   : > { %2639 = vmatpush.bf16.msrb.mxu2 %v4862_v35  ;;  %2652 = vmatpush.bf16.msrb.mxu3 %v5118_v57  ;;  %v4921_v35 = vld [vmem:[#allocation4 + $0x210] sm:$0xf]  ;;  %v5842_v16 = vld [vmem:[#allocation4 + $0x134] sm:$0xf0]  ;;  %v5027_v62 = vld [vmem:[#allocation4 + $0x2f8] sm:$0xf0] }
 0x58c   : > { %v5873_v57 = vld [vmem:[#allocation4 + $0x22c] sm:$0xf0] }
 0x58d   : > { %v4922_v10 = vor.u32 %v5873_v57, %v4921_v35  ;;  %v4806_v35 = vor.u32 %v5838_v46, %v4803_v49  ;;  %v5062_v57 = vor.u32 %v5902_v50, %v5059_v51  ;;  %v5944_v46 = vld [vmem:[#allocation6 + $0x64] sm:$0xf0]  ;;  %v5281_v50 = vld [vmem:[#allocation6 + $0xf0] sm:$0xf]  ;;  %v5962_v51 = vld [vmem:[#allocation6 + $0xf4] sm:$0xf0] }
 0x58e   : > { %2614 = vmatpush.bf16.msrb.mxu0 %v4826_v63  ;;  %2627 = vmatpush.bf16.msrb.mxu1 %v5082_v2  ;;  %v4897_v63 = vld [vmem:[#allocation4 + $0x1d8] sm:$0xf] }
 0x58f   : > { %2640 = vmatpush.bf16.msrb.mxu2 %v4830_v7  ;;  %2653 = vmatpush.bf16.msrb.mxu3 %v5086_v8  ;;  %v5866_v2 = vld [vmem:[#allocation4 + $0x1f4] sm:$0xf0]  ;;  %v5862_v7 = vld [vmem:[#allocation4 + $0x1dc] sm:$0xf]  ;;  %v4666_v8 = vor.u32 %v5809_v56, %v4665_v52  ;;  %v4802_v52 = vor.u32 %v5842_v16, %v4801_v42 }
 0x590   : > { %v5834_v56 = vld [vmem:[#allocation4 + $0xf4] sm:$0xf0] }
 0x592   : > { %2615 = vmatpush.bf16.msrb.mxu0 %v4794_v9  ;;  %2628 = vmatpush.bf16.msrb.mxu1 %v5050_v17  ;;  %v4898_v9 = vor.u32 %v5866_v2, %v4897_v63  ;;  %v5154_v17 = vor.u32 %v5930_v5, %v5153_v3  ;;  %v4737_v3 = vld [vmem:[#allocation4 + $0x98] sm:$0xf] }
 0x593   : > { %2641 = vmatpush.bf16.msrb.mxu2 %v4798_v29  ;;  %2654 = vmatpush.bf16.msrb.mxu3 %v5054_v19  ;;  %v4902_v29 = vor.u32 %v5862_v7, %v4899_v6  ;;  %v5158_v19 = vor.u32 %v5926_v11, %v5155_v12  ;;  %v5826_v5 = vld [vmem:[#allocation4 + $0xb4] sm:$0xf0]  ;;  %v4774_v7 = vor.u32 %v5830_v59, %v4771_v60  ;;  %v5822_v11 = vld [vmem:[#allocation4 + $0x9c] sm:$0xf]  ;;  %v5265_v59 = vld [vmem:[#allocation6 + $0xd0] sm:$0xf] }
 0x594   : > { %2568 = vmatmul.bf16.vlgmr.msra.gmra.mxu0 %v6713_v41  ;;  %2581 = vmatmul.bf16.vlgmr.msra.gmra.mxu1 %v6715_v37  ;;  %v5890_v6 = vld [vmem:[#allocation4 + $0x2b4] sm:$0xf0]  ;;  %v4739_v12 = vld [vmem:[#allocation4 + $0xb8] sm:$0xf0] }
 0x595   : > { %2594 = vmatmul.bf16.vlgmr.msra.gmra.mxu2 %v6713_v41  ;;  %2607 = vmatmul.bf16.vlgmr.msra.gmra.mxu3 %v6715_v37  ;;  %v5958_v60 = vld [vmem:[#allocation6 + $0xd4] sm:$0xf0] }
 0x596   : > { %2616 = vmatpush.bf16.msrb.mxu0 %v4762_v28  ;;  %2629 = vmatpush.bf16.msrb.mxu1 %v5018_v30  ;;  %v4866_v28 = vor.u32 %v5858_v22, %v4865_v18  ;;  %v5122_v30 = vor.u32 %v5922_v21, %v5121_v20  ;;  %v4705_v18 = vld [vmem:[#allocation4 + $0x58] sm:$0xf] }
 0x597   : > { %2642 = vmatpush.bf16.msrb.mxu2 %v4766_v33  ;;  %2655 = vmatpush.bf16.msrb.mxu3 %v5022_v53  ;;  %v4870_v33 = vor.u32 %v5854_v23, %v4867_v24  ;;  %v5126_v53 = vor.u32 %v5918_v25, %v5123_v27  ;;  %v5818_v22 = vld [vmem:[#allocation4 + $0x74] sm:$0xf0]  ;;  %v5814_v23 = vld [vmem:[#allocation4 + $0x5c] sm:$0xf] }
 0x598   : > { %v4961_v20 = vld [vmem:[#allocation4 + $0x258] sm:$0xf]  ;;  %v4707_v24 = vld [vmem:[#allocation4 + $0x78] sm:$0xf0] }
 0x599   : > { %v5882_v21 = vld [vmem:[#allocation4 + $0x274] sm:$0xf0]  ;;  %v5878_v25 = vld [vmem:[#allocation4 + $0x25c] sm:$0xf] }
 0x59a   : > { %2617 = vmatpush.bf16.msrb.mxu0 %v4730_v0  ;;  %2630 = vmatpush.bf16.msrb.mxu1 %v4986_v15  ;;  %v4834_v0 = vor.u32 %v5850_v32, %v4833_v31  ;;  %v5090_v15 = vor.u32 %v5914_v54, %v5089_v34  ;;  %v4963_v27 = vld [vmem:[#allocation4 + $0x278] sm:$0xf0]  ;;  %v4673_v31 = vld [vmem:[#allocation4 + $0x18] sm:$0xf] }
 0x59b   : > { %2643 = vmatpush.bf16.msrb.mxu2 %v4734_v43  ;;  %2656 = vmatpush.bf16.msrb.mxu3 %v4990_v1  ;;  %v4838_v43 = vor.u32 %v5846_v36, %v4835_v38  ;;  %v5094_v1 = vor.u32 %v5910_v39, %v5091_v40  ;;  %v5810_v32 = vld [vmem:[#allocation4 + $0x34] sm:$0xf0]  ;;  %v5806_v36 = vld [vmem:[#allocation4 + $0x1c] sm:$0xf] }
 0x59c   : > { %v4929_v34 = vld [vmem:[#allocation4 + $0x218] sm:$0xf]  ;;  %v4675_v38 = vld [vmem:[#allocation4 + $0x38] sm:$0xf0] }
 0x59d   : > { %v5874_v54 = vld [vmem:[#allocation4 + $0x234] sm:$0xf0]  ;;  %v5870_v39 = vld [vmem:[#allocation4 + $0x21c] sm:$0xf]  ;;  %v4678_v42 = vor.u32 %v5806_v36, %v4675_v38  ;;  %v5233_v38 = vld [vmem:[#allocation6 + $0x90] sm:$0xf] }
 0x59e   : > { %2618 = vmatpush.bf16.msrb.mxu0 %v4698_v55  ;;  %2631 = vmatpush.bf16.msrb.mxu1 %v4954_v4  ;;  %v5058_v55 = vor.u32 %v5906_v45, %v5057_v44  ;;  %v4769_v4 = vld [vmem:[#allocation4 + $0xd8] sm:$0xf]  ;;  %v4931_v40 = vld [vmem:[#allocation4 + $0x238] sm:$0xf0]  ;;  %v5209_v45 = vld [vmem:[#allocation6 + $0x60] sm:$0xf] }
 0x59f   : > { %2644 = vmatpush.bf16.msrb.mxu2 %v4702_v58  ;;  %2657 = vmatpush.bf16.msrb.mxu3 %v4958_v26  ;;  %v5025_v58 = vld [vmem:[#allocation4 + $0x2d8] sm:$0xf]  ;;  %v4770_v63 = vor.u32 %v5834_v56, %v4769_v4  ;;  %v4934_v16 = vor.u32 %v5870_v39, %v4931_v40  ;;  %v5210_v49 = vor.u32 %v5944_v46, %v5209_v45 }
 0x5a0   : > { %v5898_v26 = vld [vmem:[#allocation4 + $0x2f4] sm:$0xf0] }
 0x5a1   : > { %v5026_v2 = vor.u32 %v5898_v26, %v5025_v58  ;;  %v5942_v4 = vld [vmem:[#allocation6 + $0x54] sm:$0xf0]  ;;  %v5940_v58 = vld [vmem:[#allocation6 + $0x44] sm:$0xf0] }
 0x5a2   : > { %2619 = vmatpush.bf16.msrb.mxu0 %v4666_v8  ;;  %2632 = vmatpush.bf16.msrb.mxu1 %v4922_v10  ;;  %v5030_v8 = vor.u32 %v5894_v61, %v5027_v62  ;;  %v4993_v10 = vld [vmem:[#allocation4 + $0x298] sm:$0xf]  ;;  %v5266_v61 = vor.u32 %v5958_v60, %v5265_v59  ;;  %v5185_v62 = vld [vmem:[#allocation6 + $0x30] sm:$0xf] }
 0x5a3   : > { %2645 = vmatpush.bf16.msrb.mxu2 %v4670_v13  ;;  %2658 = vmatpush.bf16.msrb.mxu3 %v4926_v14  ;;  %v5886_v13 = vld [vmem:[#allocation4 + $0x29c] sm:$0xf]  ;;  %v6010_v36 = vld [vmem:[#allocation6 + $0x274] sm:$0xf0] }
 0x5a4   : > { %v4995_v14 = vld [vmem:[#allocation4 + $0x2b8] sm:$0xf0] }
 0x5a5   : > { %2620 = vmatmul.bf16.vlgmr.msrb.gmra.mxu0 %v6713_v41  ;;  %2633 = vmatmul.bf16.vlgmr.msrb.gmra.mxu1 %v6715_v37 }
 0x5a6   : > { %2664 = vmatpush.bf16.msra.mxu0 %v4898_v9  ;;  %2677 = vmatpush.bf16.msra.mxu1 %v5154_v17  ;;  %v4738_v9 = vor.u32 %v5826_v5, %v4737_v3  ;;  %v4994_v17 = vor.u32 %v5890_v6, %v4993_v10  ;;  %v5257_v3 = vld [vmem:[#allocation6 + $0xc0] sm:$0xf]  ;;  %v5956_v5 = vld [vmem:[#allocation6 + $0xc4] sm:$0xf0] }
 0x5a7   : > { %2690 = vmatpush.bf16.msra.mxu2 %v4902_v29  ;;  %2703 = vmatpush.bf16.msra.mxu3 %v5158_v19  ;;  %v4742_v29 = vor.u32 %v5822_v11, %v4739_v12  ;;  %v4998_v19 = vor.u32 %v5886_v13, %v4995_v14  ;;  %v5177_v10 = vld [vmem:[#allocation6 + $0x20] sm:$0xf]  ;;  %v5936_v6 = vld [vmem:[#allocation6 + $0x24] sm:$0xf0]  ;;  %v5249_v13 = vld [vmem:[#allocation6 + $0xb0] sm:$0xf] }
 0x5a8   : > { %2646 = vmatmul.bf16.vlgmr.msrb.gmra.mxu2 %v6713_v41  ;;  %2659 = vmatmul.bf16.vlgmr.msrb.gmra.mxu3 %v6715_v37  ;;  %v5178_v11 = vor.u32 %v5936_v6, %v5177_v10  ;;  %v5954_v14 = vld [vmem:[#allocation6 + $0xb4] sm:$0xf0] }
 0x5aa   : > { %2665 = vmatpush.bf16.msra.mxu0 %v4866_v28  ;;  %2678 = vmatpush.bf16.msra.mxu1 %v5122_v30  ;;  %v4706_v28 = vor.u32 %v5818_v22, %v4705_v18  ;;  %v4962_v30 = vor.u32 %v5882_v21, %v4961_v20  ;;  %v5934_v18 = vld [vmem:[#allocation6 + $0x14] sm:$0xf0]  ;;  %v5241_v21 = vld [vmem:[#allocation6 + $0xa0] sm:$0xf] }
 0x5ab   : > { %2691 = vmatpush.bf16.msra.mxu2 %v4870_v33  ;;  %2704 = vmatpush.bf16.msra.mxu3 %v5126_v53  ;;  %v4710_v33 = vor.u32 %v5814_v23, %v4707_v24  ;;  %v4966_v53 = vor.u32 %v5878_v25, %v4963_v27  ;;  %v5952_v23 = vld [vmem:[#allocation6 + $0xa4] sm:$0xf0] }
 0x5ac   : > { %v5242_v27 = vor.u32 %v5952_v23, %v5241_v21 }
 0x5ae   : > { %2666 = vmatpush.bf16.msra.mxu0 %v4834_v0  ;;  %2679 = vmatpush.bf16.msra.mxu1 %v5090_v15  ;;  %v4674_v0 = vor.u32 %v5810_v32, %v4673_v31  ;;  %v4930_v15 = vor.u32 %v5874_v54, %v4929_v34  ;;  %v5345_v31 = vld [vmem:[#allocation6 + $0x170] sm:$0xf] }
 0x5af   : > { %2692 = vmatpush.bf16.msra.mxu2 %v4838_v43  ;;  %2705 = vmatpush.bf16.msra.mxu3 %v5094_v1  ;;  %v5217_v43 = vld [vmem:[#allocation6 + $0x70] sm:$0xf]  ;;  %v5946_v1 = vld [vmem:[#allocation6 + $0x74] sm:$0xf0] }
 0x5b0   : > { %v5218_v44 = vor.u32 %v5946_v1, %v5217_v43  ;;  %v5473_v54 = vld [vmem:[#allocation6 + $0x270] sm:$0xf] }
 0x5b2   : > { %2667 = vmatpush.bf16.msra.mxu0 %v4802_v52  ;;  %2680 = vmatpush.bf16.msra.mxu1 %v5058_v55  ;;  %v5282_v52 = vor.u32 %v5962_v51, %v5281_v50  ;;  %v5201_v55 = vld [vmem:[#allocation6 + $0x50] sm:$0xf] }
 0x5b3   : > { %2693 = vmatpush.bf16.msra.mxu2 %v4806_v35  ;;  %2706 = vmatpush.bf16.msra.mxu3 %v5062_v57  ;;  %v5202_v56 = vor.u32 %v5942_v4, %v5201_v55  ;;  %v5273_v35 = vld [vmem:[#allocation6 + $0xe0] sm:$0xf]  ;;  %v5960_v57 = vld [vmem:[#allocation6 + $0xe4] sm:$0xf0] }
 0x5b6   : > { %2668 = vmatpush.bf16.msra.mxu0 %v4770_v63  ;;  %2681 = vmatpush.bf16.msra.mxu1 %v5026_v2  ;;  %v5938_v63 = vld [vmem:[#allocation6 + $0x34] sm:$0xf0] }
 0x5b7   : > { %2694 = vmatpush.bf16.msra.mxu2 %v4774_v7  ;;  %2707 = vmatpush.bf16.msra.mxu3 %v5030_v8  ;;  %v5186_v2 = vor.u32 %v5938_v63, %v5185_v62  ;;  %v6736_v7 = vld [vmem:[%s7169_s8] sm:$0xff]  ;;  %v5258_v8 = vor.u32 %v5956_v5, %v5257_v3 }
 0x5b8   : > { %v1852_v12 = vperm.slane %v6736_v7, 0  ;;  %v1853_v25 = vperm.slane %v6736_v7, 1  ;;  %v1854_v55 = vperm.slane %v6736_v7, 2  ;;  %v1855_v4 = vperm.slane %v6736_v7, 3  ;;  %v5465_v63 = vld [vmem:[#allocation6 + $0x260] sm:$0xf] }
 0x5b9   : > { %v1857_v62 = vperm.slane %v6736_v7, 5 }
 0x5ba   : > { %2669 = vmatpush.bf16.msra.mxu0 %v4738_v9  ;;  %2682 = vmatpush.bf16.msra.mxu1 %v4994_v17  ;;  %v5250_v9 = vor.u32 %v5954_v14, %v5249_v13  ;;  %v5169_v17 = vld [vmem:[#allocation6 + $0x10] sm:$0xf]  ;;  %v5225_v14 = vld [vmem:[#allocation6 + $0x80] sm:$0xf] }
 0x5bb   : > { %2695 = vmatpush.bf16.msra.mxu2 %v4742_v29  ;;  %2708 = vmatpush.bf16.msra.mxu3 %v4998_v19  ;;  %v5170_v19 = vor.u32 %v5934_v18, %v5169_v17  ;;  %v5409_v17 = vld [vmem:[#allocation6 + $0x1f0] sm:$0xf] }
 0x5be   : > { %2670 = vmatpush.bf16.msra.mxu0 %v4706_v28  ;;  %2683 = vmatpush.bf16.msra.mxu1 %v4962_v30  ;;  %v5161_v28 = vld [vmem:[#allocation6] sm:$0xf]  ;;  %v5932_v30 = vld [vmem:[#allocation6 + $0x4] sm:$0xf0] }
 0x5bf   : > { %2696 = vmatpush.bf16.msra.mxu2 %v4710_v33  ;;  %2709 = vmatpush.bf16.msra.mxu3 %v4966_v53  ;;  %v5162_v33 = vor.u32 %v5932_v30, %v5161_v28  ;;  %v5978_v53 = vld [vmem:[#allocation6 + $0x174] sm:$0xf0] }
 0x5c0   : > { %v5346_v34 = vor.u32 %v5978_v53, %v5345_v31  ;;  %v5974_v28 = vld [vmem:[#allocation6 + $0x154] sm:$0xf0] }
 0x5c1   : > { %v6006_v53 = vld [vmem:[#allocation6 + $0x254] sm:$0xf0] }
 0x5c2   : > { %2671 = vmatpush.bf16.msra.mxu0 %v4674_v0  ;;  %2684 = vmatpush.bf16.msra.mxu1 %v4930_v15  ;;  %v5474_v15 = vor.u32 %v6010_v36, %v5473_v54  ;;  %v5401_v36 = vld [vmem:[#allocation6 + $0x1e0] sm:$0xf] }
 0x5c3   : > { %2697 = vmatpush.bf16.msra.mxu2 %v4678_v42  ;;  %2710 = vmatpush.bf16.msra.mxu3 %v4934_v16  ;;  %v5950_v42 = vld [vmem:[#allocation6 + $0x94] sm:$0xf0] }
 0x5c5   : > { %2672 = vmatmul.bf16.vlgmr.msra.gmra.mxu0 %v6713_v41  ;;  %2685 = vmatmul.bf16.vlgmr.msra.gmra.mxu1 %v6715_v37 }
 0x5c6   : > { %2698 = vmatmul.bf16.vlgmr.msra.gmra.mxu2 %v6713_v41  ;;  %2711 = vmatmul.bf16.vlgmr.msra.gmra.mxu3 %v6715_v37  ;;  %v5274_v41 = vor.u32 %v5960_v57, %v5273_v35  ;;  %v5193_v37 = vld [vmem:[#allocation6 + $0x40] sm:$0xf] }
 0x5c7   : > { %3812 = vmatpush.bf16.msrb.mxu0 %v5218_v44  ;;  %3825 = vmatpush.bf16.msrb.mxu1 %v5282_v52  ;;  %v5194_v26 = vor.u32 %v5940_v58, %v5193_v37  ;;  %v5234_v44 = vor.u32 %v5950_v42, %v5233_v38  ;;  %v5337_v52 = vld [vmem:[#allocation6 + $0x160] sm:$0xf]  ;;  %v6270_v58 = vmov -1.0  }
 0x5c8   : > { %3838 = vmatpush.bf16.msrb.mxu2 %v5346_v34 }
 0x5cb   : > { %3813 = vmatpush.bf16.msrb.mxu0 %v5210_v49  ;;  %3826 = vmatpush.bf16.msrb.mxu1 %v5274_v41  ;;  %v1856_v41 = vperm.slane %v6736_v7, 4 }
 0x5cf   : > { %3814 = vmatpush.bf16.msrb.mxu0 %v5202_v56  ;;  %3827 = vmatpush.bf16.msrb.mxu1 %v5266_v61  ;;  %v5976_v56 = vld [vmem:[#allocation6 + $0x164] sm:$0xf0] }
 0x5d0   : > { %v5338_v37 = vor.u32 %v5976_v56, %v5337_v52 }
 0x5d2   : > { %3839 = vmatpush.bf16.msrb.mxu2 %v5338_v37 }
 0x5d3   : > { %3815 = vmatpush.bf16.msrb.mxu0 %v5194_v26  ;;  %3828 = vmatpush.bf16.msrb.mxu1 %v5258_v8 }
 0x5d7   : > { %3816 = vmatpush.bf16.msrb.mxu0 %v5186_v2  ;;  %3829 = vmatpush.bf16.msrb.mxu1 %v5250_v9  ;;  %v5948_v9 = vld [vmem:[#allocation6 + $0x84] sm:$0xf0] }
 0x5db   : > { %3817 = vmatpush.bf16.msrb.mxu0 %v5178_v11  ;;  %3830 = vmatpush.bf16.msrb.mxu1 %v5242_v27  ;;  %v6008_v11 = vld [vmem:[#allocation6 + $0x264] sm:$0xf0]  ;;  %v5329_v27 = vld [vmem:[#allocation6 + $0x150] sm:$0xf] }
 0x5dc   : > { %v5466_v13 = vor.u32 %v6008_v11, %v5465_v63 }
 0x5df   : > { %3818 = vmatpush.bf16.msrb.mxu0 %v5170_v19  ;;  %3831 = vmatpush.bf16.msrb.mxu1 %v5234_v44  ;;  %v5994_v19 = vld [vmem:[#allocation6 + $0x1f4] sm:$0xf0] }
 0x5e3   : > { %3819 = vmatpush.bf16.msrb.mxu0 %v5162_v33  ;;  %v5457_v33 = vld [vmem:[#allocation6 + $0x250] sm:$0xf] }
 0x5e4   : > { %v5458_v44 = vor.u32 %v6006_v53, %v5457_v33  ;;  %v5313_v33 = vld [vmem:[#allocation6 + $0x130] sm:$0xf] }
 0x5e7   : > { %3864 = vmatpush.bf16.msra.mxu0 %v5474_v15  ;;  %v5992_v15 = vld [vmem:[#allocation6 + $0x1e4] sm:$0xf0] }
 0x5eb   : > { %3865 = vmatpush.bf16.msra.mxu0 %v5466_v13 }
 0x5ef   : > { %3866 = vmatpush.bf16.msra.mxu0 %v5458_v44 }
 0x601   : > { %v2517_v22 = vpop.f32.mrf.mxu0  ;;  %v2530_v29 = vpop.f32.mrf.mxu1 }
 0x602   : > { %v2518_v20 = vadd.f32 %v2517_v22, %v1852_v12 }
 0x604   : > { %v2531_v24 = vadd.f32 %v2530_v29, %v2518_v20  ;;  %v5226_v29 = vor.u32 %v5948_v9, %v5225_v14  ;;  %v5537_v20 = vld [vmem:[#allocation6 + $0x2f0] sm:$0xf] }
 0x606   : > { %v2724_v32 = vmul.f32 0.70710677, %v2531_v24  ;;  %v6747_v35 = vmul.f32 0.5, %v2531_v24  ;;  %v5410_v24 = vor.u32 %v5994_v19, %v5409_v17  ;;  %3832 = vmatpush.bf16.msrb.mxu1 %v5226_v29  ;;  %v5990_v29 = vld [vmem:[#allocation6 + $0x1d4] sm:$0xf0] }
 0x608   : > { %v2748_v39 = vand.u32 2147483647, %v2724_v32  ;;  %v2543_v40 = vpop.f32.mrf.mxu2  ;;  %v2556_v0 = vpop.f32.mrf.mxu3  ;;  %vm2732_vm4 = vcmp.ge.f32.partialorder %v2724_v32, 0.0  ;;  %3851 = vmatpush.bf16.msrb.mxu3 %v5410_v24 }
 0x609   : > { %v2544_v16 = vadd.f32 %v2543_v40, %v1853_v25  ;;  %v2519_v43 = vpop.f32.mrf.mxu0  ;;  %v2532_v1 = vpop.f32.mrf.mxu1  ;;  %v6752_v26 = vsel %vm2732_vm4, 1.0, %v6270_v58  ;;  %v6026_v25 = vld [vmem:[#allocation6 + $0x2f4] sm:$0xf0] }
 0x60a   : > { %v2756_v45 = vmul.f32 0.3275911, %v2748_v39  ;;  %v2964_v50 = vsub.f32 0.0, %v2748_v39  ;;  %v5538_v40 = vor.u32 %v6026_v25, %v5537_v20 }
 0x60b   : > { %v2557_v46 = vadd.f32 %v2556_v0, %v2544_v16  ;;  %v5330_v0 = vor.u32 %v5974_v28, %v5329_v27 }
 0x60c   : > { %v6740_v49 = vadd.f32 1.0, %v2756_v45  ;;  %v2972_v2 = vmul.f32 %v2964_v50, %v2748_v39  ;;  %v5529_v45 = vld [vmem:[#allocation6 + $0x2e0] sm:$0xf]  ;;  %3877 = vmatpush.bf16.msra.mxu1 %v5538_v40 }
 0x60d   : > { %v6742_v51 = vmul.f32 0.70710677, %v2557_v46  ;;  %v6756_v3 = vmul.f32 0.5, %v2557_v46  ;;  %v6024_v46 = vld [vmem:[#allocation6 + $0x2e4] sm:$0xf0]  ;;  %3840 = vmatpush.bf16.msrb.mxu2 %v5330_v0 }
 0x60e   : > { %6120 = vrcp.f32 %v6740_v49  ;;  %v2781_v59 = vand.u32 2147483647, %v6740_v49  ;;  %v2783_v18 = vand.u32 2147483648, %v6740_v49  ;;  %v6765_v31 = vmul.f32 1.442695, %v2972_v2 }
 0x60f   : > { %v2749_v57 = vand.u32 2147483647, %v6742_v51  ;;  %vm2777_vm5 = vweird.f32 %v6740_v49  ;;  %vm2733_vm7 = vcmp.ge.f32.partialorder %v6742_v51, 0.0  ;;  %v5530_v63 = vor.u32 %v6024_v46, %v5529_v45  ;;  %v5972_v2 = vld [vmem:[#allocation6 + $0x144] sm:$0xf0] }
 0x610   : > { %v2545_v60 = vpop.f32.mrf.mxu2  ;;  %v2558_v61 = vpop.f32.mrf.mxu3  ;;  %vm6769_vm6 = vcmp.eq.f32.partialorder %v2781_v59, 8.507059e+37  ;;  %v2784_v42 = vor.u32 1.1754944e-38, %v2783_v18  ;;  %v5321_v59 = vld [vmem:[#allocation6 + $0x140] sm:$0xf]  ;;  %v5393_v18 = vld [vmem:[#allocation6 + $0x1d0] sm:$0xf] }
 0x611   : > { %v2757_v5 = vmul.f32 0.3275911, %v2749_v57  ;;  %v2965_v8 = vsub.f32 0.0, %v2749_v57  ;;  %v2569_v10 = vpop.f32.mrf.mxu0  ;;  %v2582_v6 = vpop.f32.mrf.mxu1  ;;  %v6785_v60 = vsel %vm2733_vm7, 1.0, %v6270_v58  ;;  %v5402_v61 = vor.u32 %v5992_v15, %v5401_v36  ;;  %3878 = vmatpush.bf16.msra.mxu1 %v5530_v63  ;;  %v5385_v45 = vld [vmem:[#allocation6 + $0x1c0] sm:$0xf] }
 0x612   : > { %v2570_v12 = vadd.f32 %v2569_v10, %v1854_v55  ;;  %v5322_v9 = vor.u32 %v5972_v2, %v5321_v59  ;;  %v5394_v28 = vor.u32 %v5990_v29, %v5393_v18  ;;  %v5988_v46 = vld [vmem:[#allocation6 + $0x1c4] sm:$0xf0] }
 0x613   : > { %v6759_v22 = vadd.f32 1.0, %v2757_v5  ;;  %v2973_v32 = vmul.f32 %v2965_v8, %v2749_v57  ;;  %v5449_v5 = vld [vmem:[#allocation6 + $0x240] sm:$0xf]  ;;  %3852 = vmatpush.bf16.msrb.mxu3 %v5402_v61  ;;  %v5386_v63 = vor.u32 %v5988_v46, %v5385_v45 }
 0x614   : > { %v6761_v21 = vpop.eup %6120  ;;  %v2583_v23 = vadd.f32 %v2582_v6, %v2570_v12  ;;  %v6004_v12 = vld [vmem:[#allocation6 + $0x244] sm:$0xf0]  ;;  %3841 = vmatpush.bf16.msrb.mxu2 %v5322_v9 }
 0x615   : > { %v2773_v30 = vmul.f32 %v6761_v21, %v6740_v49  ;;  %6122 = vrcp.f32 %v6759_v22  ;;  %v2796_v54 = vand.u32 2147483647, %v6759_v22  ;;  %vm2778_vm8 = vweird.f32 %v6761_v21 }
 0x616   : > { %v2726_v39 = vmul.f32 0.70710677, %v2583_v23  ;;  %v2798_v16 = vand.u32 2147483648, %v6759_v22  ;;  %v6778_v52 = vmul.f32 1.442695, %v2973_v32  ;;  %v6790_v10 = vmul.f32 0.5, %v2583_v23  ;;  %vm2779_vm10 = vmor %vm2777_vm5, %vm2778_vm8 }
 0x617   : > { %v2774_v38 = vsub.f32 1.0, %v2773_v30  ;;  %vm6798_vm11 = vcmp.eq.f32.partialorder %v2796_v54, 8.507059e+37  ;;  %v5450_v17 = vor.u32 %v6004_v12, %v5449_v5  ;;  %v5521_v30 = vld [vmem:[#allocation6 + $0x2d0] sm:$0xf]  ;;  %v6022_v32 = vld [vmem:[#allocation6 + $0x2d4] sm:$0xf0]  ;;  %3853 = vmatpush.bf16.msrb.mxu3 %v5394_v28  ;;  %vm2792_vm13 = vweird.f32 %v6759_v22 }
 0x618   : > { %v2595_v43 = vpop.f32.mrf.mxu2  ;;  %v2608_v1 = vpop.f32.mrf.mxu3  ;;  %v2750_v55 = vand.u32 2147483647, %v2726_v39  ;;  %vm2734_vm9 = vcmp.ge.f32.partialorder %v2726_v39, 0.0  ;;  %v2799_v14 = vor.u32 1.1754944e-38, %v2798_v16  ;;  %v5441_v39 = vld [vmem:[#allocation6 + $0x230] sm:$0xf]  ;;  %v5522_v44 = vor.u32 %v6022_v32, %v5521_v30 }
 0x619   : > { %v2775_v50 = vmul.f32 %v6761_v21, %v2774_v38  ;;  %v2596_v56 = vadd.f32 %v2595_v43, %v1855_v4  ;;  %v2571_v57 = vpop.f32.mrf.mxu0  ;;  %v2584_v37 = vpop.f32.mrf.mxu1  ;;  %v6805_v20 = vsel %vm2734_vm9, 1.0, %v6270_v58  ;;  %3867 = vmatpush.bf16.msra.mxu0 %v5450_v17  ;;  %v5970_v38 = vld [vmem:[#allocation6 + $0x134] sm:$0xf0]  ;;  %v6020_v28 = vld [vmem:[#allocation6 + $0x2c4] sm:$0xf0] }
 0x61a   : > { %v2758_v6 = vmul.f32 0.3275911, %v2750_v55  ;;  %v2966_v23 = vsub.f32 0.0, %v2750_v55  ;;  %v5314_v57 = vor.u32 %v5970_v38, %v5313_v33  ;;  %3879 = vmatpush.bf16.msra.mxu1 %v5522_v44 }
 0x61b   : > { %v6787_v8 = vpop.eup %6122  ;;  %v2776_v4 = vadd.f32 %v6761_v21, %v2775_v50  ;;  %v2609_v11 = vadd.f32 %v2608_v1, %v2596_v56  ;;  %3854 = vmatpush.bf16.msrb.mxu3 %v5386_v63 }
 0x61c   : > { %v2788_v51 = vmul.f32 %v6787_v8, %v6759_v22  ;;  %v6807_v49 = vadd.f32 1.0, %v2758_v6  ;;  %vm2793_vm12 = vweird.f32 %v6787_v8  ;;  %v2974_v0 = vmul.f32 %v2966_v23, %v2750_v55  ;;  %3842 = vmatpush.bf16.msrb.mxu2 %v5314_v57 }
 0x61d   : > { %v2780_v19 = vsel %vm2779_vm10, %v6761_v21, %v2776_v4  ;;  %v2727_v27 = vmul.f32 0.70710677, %v2609_v11  ;;  %v6821_v1 = vmul.f32 0.5, %v2609_v11  ;;  %vm2794_vm14 = vmor %vm2792_vm13, %vm2793_vm12 }
 0x61e   : > { %v6811_v24 = vsel %vm6769_vm6, %v2784_v42, %v2780_v19  ;;  %v2789_v25 = vsub.f32 1.0, %v2788_v51  ;;  %6124 = vrcp.f32 %v6807_v49  ;;  %v2811_v34 = vand.u32 2147483647, %v6807_v49  ;;  %v6002_v42 = vld [vmem:[#allocation6 + $0x234] sm:$0xf0] }
 0x61f   : > { %v2892_v21 = vmul.f32 1.0614054, %v6811_v24  ;;  %v2751_v15 = vand.u32 2147483647, %v2727_v27  ;;  %v2813_v43 = vand.u32 2147483648, %v6807_v49  ;;  %vm2735_vm15 = vcmp.ge.f32.partialorder %v2727_v27, 0.0 }
 0x620   : > { %v2790_v53 = vmul.f32 %v6787_v8, %v2789_v25  ;;  %v2597_v54 = vpop.f32.mrf.mxu2  ;;  %v2610_v36 = vpop.f32.mrf.mxu3  ;;  %v5442_v61 = vor.u32 %v6002_v42, %v5441_v39  ;;  %v2984_v6 = vmul.f32 1.442695, %v2974_v0  ;;  %vm6840_vm0 = vcmp.eq.f32.partialorder %v2811_v34, 8.507059e+37  ;;  %v5513_v19 = vld [vmem:[#allocation6 + $0x2c0] sm:$0xf] }
 0x621   : > { %v2900_v40 = vadd.f32 -1.4531521, %v2892_v21  ;;  %v2759_v56 = vmul.f32 0.3275911, %v2751_v15  ;;  %v2967_v51 = vsub.f32 0.0, %v2751_v15  ;;  %v6846_v13 = vsel %vm2735_vm15, 1.0, %v6270_v58 }
 0x622   : > { %v2791_v16 = vadd.f32 %v6787_v8, %v2790_v53  ;;  %v2621_v22 = vpop.f32.mrf.mxu0  ;;  %v2634_v55 = vpop.f32.mrf.mxu1  ;;  %3868 = vmatpush.bf16.msra.mxu0 %v5442_v61  ;;  %v2814_v29 = vor.u32 1.1754944e-38, %v2813_v43  ;;  %vm2807_vm1 = vweird.f32 %v6807_v49 }
 0x623   : > { %v2908_v50 = vmul.f32 %v2900_v40, %v6811_v24  ;;  %v2622_v59 = vadd.f32 %v2621_v22, %v1856_v41  ;;  %v6833_v11 = vadd.f32 1.0, %v2759_v56  ;;  %v2975_v21 = vmul.f32 %v2967_v51, %v2751_v15 }
 0x624   : > { %v2795_v37 = vsel %vm2794_vm14, %v6787_v8, %v2791_v16  ;;  %v6125_v2 = vpop.eup %6124  ;;  %v5514_v40 = vor.u32 %v6020_v28, %v5513_v19 }
 0x625   : > { %v2916_v5 = vadd.f32 1.4214138, %v2908_v50  ;;  %v6831_v4 = vsel %vm6798_vm11, %v2799_v14, %v2795_v37  ;;  %v2803_v8 = vmul.f32 %v6125_v2, %v6807_v49  ;;  %v6837_v9 = vadd.f32 %v2634_v55, %v2622_v59 }
 0x626   : > { %v2893_v12 = vmul.f32 1.0614054, %v6831_v4  ;;  %6126 = vrcp.f32 %v6833_v11  ;;  %vm2808_vm2 = vweird.f32 %v6125_v2  ;;  %v2826_v39 = vand.u32 2147483647, %v6833_v11  ;;  %3880 = vmatpush.bf16.msra.mxu1 %v5514_v40 }
 0x627   : > { %v2924_v41 = vmul.f32 %v2916_v5, %v6811_v24  ;;  %6128 = vpow2.f32 %v6765_v31  ;;  %v2804_v18 = vsub.f32 1.0, %v2803_v8  ;;  %v2728_v25 = vmul.f32 0.70710677, %v6837_v9  ;;  %vm2809_vm3 = vmor %vm2807_vm1, %vm2808_vm2 }
 0x628   : > { %v2901_v14 = vadd.f32 -1.4531521, %v2893_v12  ;;  %6130 = vpow2.f32 %v6778_v52  ;;  %vm2822_vm4 = vweird.f32 %v6833_v11  ;;  %v2828_v15 = vand.u32 2147483648, %v6833_v11 }
 0x629   : > { %v2932_v23 = vadd.f32 -0.28449672, %v2924_v41  ;;  %v2805_v30 = vmul.f32 %v6125_v2, %v2804_v18  ;;  %6132 = vpow2.f32 %v2984_v6  ;;  %v2752_v53 = vand.u32 2147483647, %v2728_v25 }
 0x62a   : > { %v2909_v27 = vmul.f32 %v2901_v14, %v6831_v4  ;;  %v2623_v52 = vpop.f32.mrf.mxu0  ;;  %v2636_v54 = vpop.f32.mrf.mxu1  ;;  %v2986_v46 = vmul.f32 1.442695, %v2975_v21  ;;  %vm6875_vm5 = vcmp.eq.f32.partialorder %v2826_v39, 8.507059e+37  ;;  %vm2736_vm6 = vcmp.ge.f32.partialorder %v2728_v25, 0.0 }
 0x62b   : > { %v2647_v32 = vpop.f32.mrf.mxu2  ;;  %v2660_v33 = vpop.f32.mrf.mxu3  ;;  %v2940_v31 = vmul.f32 %v2932_v23, %v6811_v24  ;;  %v2806_v38 = vadd.f32 %v6125_v2, %v2805_v30  ;;  %v2760_v16 = vmul.f32 0.3275911, %v2752_v53  ;;  %v2829_v17 = vor.u32 1.1754944e-38, %v2828_v15 }
 0x62c   : > { %v2648_v34 = vadd.f32 %v2647_v32, %v1857_v62  ;;  %v2917_v36 = vadd.f32 1.4214138, %v2909_v27  ;;  %v6127_v0 = vpop.eup %6126  ;;  %v6884_v14 = vmul.f32 0.5, %v6837_v9  ;;  %v6895_v27 = vsel %vm2736_vm6, 1.0, %v6270_v58 }
 0x62d   : > { %v2948_v42 = vadd.f32 0.2548296, %v2940_v31  ;;  %v6129_v43 = vpop.eup %6128  ;;  %v2810_v44 = vsel %vm2809_vm3, %v6125_v2, %v2806_v38  ;;  %v2818_v45 = vmul.f32 %v6127_v0, %v6833_v11  ;;  %v6870_v22 = vadd.f32 1.0, %v2760_v16 }
 0x62e   : > { %v2925_v62 = vmul.f32 %v2917_v36, %v6831_v4  ;;  %v6131_v50 = vpop.eup %6130  ;;  %v6868_v49 = vsel %vm6840_vm0, %v2814_v29, %v2810_v44  ;;  %v6872_v55 = vadd.f32 %v2660_v33, %v2648_v34  ;;  %vm2823_vm7 = vweird.f32 %v6127_v0  ;;  %v5305_v36 = vld [vmem:[#allocation6 + $0x120] sm:$0xf] }
 0x62f   : > { %v2956_v56 = vmul.f32 %v2948_v42, %v6811_v24  ;;  %v2894_v37 = vmul.f32 1.0614054, %v6868_v49  ;;  %v2819_v59 = vsub.f32 1.0, %v2818_v45  ;;  %v6879_v63 = vpop.eup %6132  ;;  %6134 = vrcp.f32 %v6870_v22  ;;  %vm2824_vm8 = vmor %vm2822_vm4, %vm2823_vm7  ;;  %v5968_v42 = vld [vmem:[#allocation6 + $0x124] sm:$0xf0] }
 0x630   : > { %v2933_v57 = vadd.f32 -0.28449672, %v2925_v62  ;;  %v2968_v24 = vsub.f32 0.0, %v2752_v53  ;;  %v6887_v18 = vmul.f32 0.70710677, %v6872_v55  ;;  %6136 = vpow2.f32 %v2986_v46 }
 0x631   : > { %v2996_v2 = vmul.f32 %v6129_v43, %v2956_v56  ;;  %v2902_v6 = vadd.f32 -1.4531521, %v2894_v37  ;;  %v2820_v12 = vmul.f32 %v6127_v0, %v2819_v59  ;;  %vm2837_vm9 = vweird.f32 %v6870_v22  ;;  %v5433_v45 = vld [vmem:[#allocation6 + $0x220] sm:$0xf]  ;;  %v5377_v56 = vld [vmem:[#allocation6 + $0x1b0] sm:$0xf] }
 0x632   : > { %v2941_v5 = vmul.f32 %v2933_v57, %v6831_v4  ;;  %v2976_v30 = vmul.f32 %v2968_v24, %v2752_v53  ;;  %v2753_v9 = vand.u32 2147483647, %v6887_v18  ;;  %v2841_v11 = vand.u32 2147483647, %v6870_v22  ;;  %v5505_v24 = vld [vmem:[#allocation6 + $0x2b0] sm:$0xf] }
 0x633   : > { %v2649_v8 = vpop.f32.mrf.mxu2  ;;  %v2662_v51 = vpop.f32.mrf.mxu3  ;;  %v3004_v41 = vsub.f32 1.0, %v2996_v2  ;;  %v2910_v19 = vmul.f32 %v2902_v6, %v6868_v49  ;;  %v2821_v23 = vadd.f32 %v6127_v0, %v2820_v12  ;;  %v2843_v39 = vand.u32 2147483648, %v6870_v22  ;;  %v5986_v2 = vld [vmem:[#allocation6 + $0x1b4] sm:$0xf0] }
 0x634   : > { %v2949_v29 = vadd.f32 0.2548296, %v2941_v5  ;;  %v2761_v25 = vmul.f32 0.3275911, %v2753_v9  ;;  %v2988_v40 = vmul.f32 1.442695, %v2976_v30  ;;  %v5306_v8 = vor.u32 %v5968_v42, %v5305_v36 }
 0x635   : > { %v3012_v28 = vmul.f32 %v3004_v41, %v6752_v26  ;;  %v2918_v32 = vadd.f32 1.4214138, %v2910_v19  ;;  %v2825_v33 = vsel %vm2824_vm8, %v6127_v0, %v2821_v23  ;;  %v6900_v31 = vpop.eup %6134  ;;  %v6018_v5 = vld [vmem:[#allocation6 + $0x2b4] sm:$0xf0]  ;;  %vm6925_vm11 = vcmp.eq.f32.partialorder %v2841_v11, 8.507059e+37 }
 0x636   : > { %v2957_v21 = vmul.f32 %v2949_v29, %v6831_v4  ;;  %v6904_v26 = vsel %vm6875_vm5, %v2829_v17, %v2825_v33  ;;  %v2833_v4 = vmul.f32 %v6900_v31, %v6870_v22  ;;  %v6913_v0 = vadd.f32 1.0, %v2761_v25  ;;  %v6915_v15 = vpop.eup %6136  ;;  %v5297_v51 = vld [vmem:[#allocation6 + $0x110] sm:$0xf]  ;;  %v5966_v41 = vld [vmem:[#allocation6 + $0x114] sm:$0xf0]  ;;  %3843 = vmatpush.bf16.msrb.mxu2 %v5306_v8 }
 0x637   : > { %v3020_v34 = vadd.f32 1.0, %v3012_v28  ;;  %v2926_v53 = vmul.f32 %v2918_v32, %v6868_v49  ;;  %v2895_v54 = vmul.f32 1.0614054, %v6904_v26  ;;  %vm2838_vm10 = vweird.f32 %v6900_v31  ;;  %v5425_v23 = vld [vmem:[#allocation6 + $0x210] sm:$0xf] }
 0x638   : > { %v2997_v52 = vmul.f32 %v6131_v50, %v2957_v21  ;;  %v2834_v44 = vsub.f32 1.0, %v2833_v4  ;;  %6138 = vrcp.f32 %v6913_v0  ;;  %v6000_v50 = vld [vmem:[#allocation6 + $0x224] sm:$0xf0]  ;;  %v2844_v12 = vor.u32 1.1754944e-38, %v2843_v39  ;;  %vm6935_vm12 = vmor %vm2837_vm9, %vm2838_vm10  ;;  %v5369_v11 = vld [vmem:[#allocation6 + $0x1a0] sm:$0xf] }
 0x639   : > { %v3028_v38 = vmul.f32 %v3020_v34, %v6747_v35  ;;  %v2934_v43 = vadd.f32 -0.28449672, %v2926_v53  ;;  %v2903_v62 = vadd.f32 -1.4531521, %v2895_v54  ;;  %v2969_v35 = vsub.f32 0.0, %v2753_v9 }
 0x63a   : > { %v3005_v16 = vsub.f32 1.0, %v2997_v52  ;;  %v2835_v61 = vmul.f32 %v6900_v31, %v2834_v44  ;;  %6140 = vpow2.f32 %v2988_v40  ;;  %v2856_v30 = vand.u32 2147483647, %v6913_v0  ;;  %v5998_v34 = vld [vmem:[#allocation6 + $0x214] sm:$0xf0] }
 0x63b   : > { %v6917_v46 = vpack.c.bf16 %v3028_v38, %v3028_v38  ;;  %v2942_v37 = vmul.f32 %v2934_v43, %v6868_v49  ;;  %v2911_v59 = vmul.f32 %v2903_v62, %v6904_v26  ;;  %v6940_v21 = vmul.f32 %v2969_v35, %v2753_v9  ;;  %v5984_v36 = vld [vmem:[#allocation6 + $0x1a4] sm:$0xf0]  ;;  %v5497_v9 = vld [vmem:[#allocation6 + $0x2a0] sm:$0xf] }
 0x63c   : > { %v3013_v57 = vmul.f32 %v3005_v16, %v6785_v60  ;;  %v2836_v19 = vadd.f32 %v6900_v31, %v2835_v61  ;;  %v5434_v32 = vor.u32 %v6000_v50, %v5433_v45  ;;  %v5378_v33 = vor.u32 %v5986_v2, %v5377_v56  ;;  %v6016_v38 = vld [vmem:[#allocation6 + $0x2a4] sm:$0xf0]  ;;  %v5417_v35 = vld [vmem:[#allocation6 + $0x200] sm:$0xf]  ;;  %v5601_v2 = vld [vmem:[#allocation6 + $0x370] sm:$0xf] }
 0x63d   : > { %3820 = vmatmul.bf16.vlgmr.msrb.gmra.mxu0 %v6917_v46  ;;  %v2950_v17 = vadd.f32 0.2548296, %v2942_v37  ;;  %v2919_v29 = vadd.f32 1.4214138, %v2911_v59  ;;  %vm2852_vm13 = vweird.f32 %v6913_v0  ;;  %v1858_v42 = vperm.slane %v6736_v7, 6 }
 0x63e   : > { %v3021_v60 = vadd.f32 1.0, %v3013_v57  ;;  %v2840_v22 = vsel %vm6935_vm12, %v6900_v31, %v2836_v19  ;;  %v6948_v39 = vpop.eup %6138  ;;  %3869 = vmatpush.bf16.msra.mxu0 %v5434_v32  ;;  %3855 = vmatpush.bf16.msrb.mxu3 %v5378_v33  ;;  %v5289_v31 = vld [vmem:[#allocation6 + $0x100] sm:$0xf]  ;;  %v5964_v16 = vld [vmem:[#allocation6 + $0x104] sm:$0xf0]  ;;  %v2858_v57 = vand.u32 2147483648, %v6913_v0  ;;  %v5426_v37 = vor.u32 %v5998_v34, %v5425_v23 }
 0x63f   : > { %v2958_v52 = vmul.f32 %v2950_v17, %v6868_v49  ;;  %v2927_v53 = vmul.f32 %v2919_v29, %v6904_v26  ;;  %v6952_v40 = vsel %vm6925_vm11, %v2844_v12, %v2840_v22  ;;  %v5298_v49 = vor.u32 %v5966_v41, %v5297_v51  ;;  %v5996_v61 = vld [vmem:[#allocation6 + $0x204] sm:$0xf0]  ;;  %v6042_v12 = vld [vmem:[#allocation6 + $0x374] sm:$0xf0]  ;;  %v5361_v17 = vld [vmem:[#allocation6 + $0x190] sm:$0xf] }
 0x640   : > { %v3029_v25 = vmul.f32 %v3021_v60, %v6756_v3  ;;  %v5506_v3 = vor.u32 %v6018_v5, %v5505_v24  ;;  %v2896_v45 = vmul.f32 1.0614054, %v6952_v40  ;;  %v6960_v50 = vpop.eup %6140  ;;  %v2848_v56 = vmul.f32 %v6948_v39, %v6913_v0  ;;  %v5982_v29 = vld [vmem:[#allocation6 + $0x194] sm:$0xf0]  ;;  %v5945_v33 = vld [vmem:[#allocation6 + $0x74] sm:$0xf] }
 0x641   : > { %v2998_v62 = vmul.f32 %v6879_v63, %v2958_v52  ;;  %v2935_v44 = vadd.f32 -0.28449672, %v2927_v53  ;;  %3844 = vmatpush.bf16.msrb.mxu2 %v5298_v49  ;;  %v5370_v6 = vor.u32 %v5984_v36, %v5369_v11  ;;  %vm2737_vm14 = vcmp.ge.f32.partialorder %v6887_v18, 0.0  ;;  %v5219_v34 = vld [vmem:[#allocation6 + $0x78] sm:$0xf0] }
 0x642   : > { %v2673_v54 = vpop.f32.mrf.mxu0  ;;  %v2686_v4 = vpop.f32.mrf.mxu1  ;;  %v6956_v43 = vpack.c.bf16 %v3029_v25, %v3029_v25  ;;  %3881 = vmatpush.bf16.msra.mxu1 %v5506_v3  ;;  %v2904_v5 = vadd.f32 -1.4531521, %v2896_v45  ;;  %v2849_v8 = vsub.f32 1.0, %v2848_v56  ;;  %3870 = vmatpush.bf16.msra.mxu0 %v5426_v37  ;;  %v5498_v41 = vor.u32 %v6016_v38, %v5497_v9  ;;  %v5489_v53 = vld [vmem:[#allocation6 + $0x290] sm:$0xf] }
 0x643   : > { %v2674_v59 = vadd.f32 %v2673_v54, %v1858_v42  ;;  %v3006_v24 = vsub.f32 1.0, %v2998_v62  ;;  %v2943_v63 = vmul.f32 %v2935_v44, %v6904_v26  ;;  %v5290_v60 = vor.u32 %v5964_v16, %v5289_v31  ;;  %3856 = vmatpush.bf16.msrb.mxu3 %v5370_v6  ;;  %v6014_v38 = vld [vmem:[#allocation6 + $0x294] sm:$0xf0]  ;;  %v5593_v44 = vld [vmem:[#allocation6 + $0x360] sm:$0xf] }
 0x644   : > { %3833 = vmatmul.bf16.vlgmr.msrb.gmra.mxu1 %v6956_v43  ;;  %v2912_v28 = vmul.f32 %v2904_v5, %v6952_v40  ;;  %v5418_v32 = vor.u32 %v5996_v61, %v5417_v35  ;;  %v2850_v11 = vmul.f32 %v6948_v39, %v2849_v8  ;;  %vm2853_vm15 = vweird.f32 %v6948_v39  ;;  %v6040_v56 = vld [vmem:[#allocation6 + $0x364] sm:$0xf0]  ;;  %v5353_v37 = vld [vmem:[#allocation6 + $0x180] sm:$0xf]  ;;  %v5211_v6 = vld [vmem:[#allocation6 + $0x68] sm:$0xf0] }
 0x645   : > { %v6968_v51 = vadd.f32 %v2686_v4, %v2674_v59  ;;  %v3014_v19 = vmul.f32 %v3006_v24, %v6805_v20  ;;  %v2951_v23 = vadd.f32 0.2548296, %v2943_v63  ;;  %3845 = vmatpush.bf16.msrb.mxu2 %v5290_v60  ;;  %v5602_v52 = vor.u32 %v6042_v12, %v5601_v2  ;;  %vm2854_vm1 = vmor %vm2852_vm13, %vm2853_vm15  ;;  %v6056_v18 = vld [vmem:[#allocation6 + $0x3e4] sm:$0xf0] }
 0x646   : > { %3882 = vmatpush.bf16.msra.mxu1 %v5498_v41  ;;  %v2920_v36 = vadd.f32 1.4214138, %v2912_v28  ;;  %v5362_v9 = vor.u32 %v5982_v29, %v5361_v17  ;;  %v2851_v42 = vadd.f32 %v6948_v39, %v2850_v11  ;;  %vm6985_vm0 = vcmp.eq.f32.partialorder %v2856_v30, 8.507059e+37  ;;  %3871 = vmatpush.bf16.msra.mxu0 %v5418_v32  ;;  %v5665_v28 = vld [vmem:[#allocation6 + $0x3f0] sm:$0xf] }
 0x647   : > { %v6975_v25 = vmul.f32 0.70710677, %v6968_v51  ;;  %v3022_v54 = vadd.f32 1.0, %v3014_v19  ;;  %v2959_v4 = vmul.f32 %v2951_v23, %v6904_v26  ;;  %v5222_v62 = vor.u32 %v5945_v33, %v5219_v34  ;;  %v5481_v19 = vld [vmem:[#allocation6 + $0x280] sm:$0xf] }
 0x648   : > { %v2928_v35 = vmul.f32 %v2920_v36, %v6952_v40  ;;  %v2859_v30 = vor.u32 1.1754944e-38, %v2858_v57  ;;  %3857 = vmatpush.bf16.msrb.mxu3 %v5362_v9  ;;  %v2855_v59 = vsel %vm2854_vm1, %v6948_v39, %v2851_v42  ;;  %v6999_v61 = vmul.f32 1.442695, %v6940_v21  ;;  %v5943_v57 = vld [vmem:[#allocation6 + $0x64] sm:$0xf] }
 0x649   : > { %v6977_v22 = vpop.f32.mrf.mxu2  ;;  %v6979_v20 = vpop.f32.mrf.mxu3  ;;  %v2754_v16 = vand.u32 2147483647, %v6975_v25  ;;  %3890 = vmatpush.bf16.msra.mxu2 %v5602_v52  ;;  %v3030_v26 = vmul.f32 %v3022_v54, %v6790_v10  ;;  %v2999_v45 = vmul.f32 %v6915_v15, %v2959_v4  ;;  %v5490_v10 = vor.u32 %v6014_v38, %v5489_v53  ;;  %v5980_v15 = vld [vmem:[#allocation6 + $0x184] sm:$0xf0]  ;;  %v6058_v32 = vld [vmem:[#allocation6 + $0x3f4] sm:$0xf0] }
 0x64a   : > { %v2675_v3 = vpop.f32.mrf.mxu0  ;;  %v2688_v49 = vpop.f32.mrf.mxu1  ;;  %3916 = vmatpush.bf16.msrb.mxu0 %v5222_v62  ;;  %v2936_v5 = vadd.f32 -0.28449672, %v2928_v35  ;;  %v7005_v0 = vsel %vm6985_vm0, %v2859_v30, %v2855_v59  ;;  %v1859_v8 = vperm.slane %v6736_v7, 7  ;;  %v5594_v17 = vor.u32 %v6040_v56, %v5593_v44  ;;  %v6012_v23 = vld [vmem:[#allocation6 + $0x284] sm:$0xf0] }
 0x64b   : > { %v2762_v2 = vmul.f32 0.3275911, %v2754_v16  ;;  %v7001_v24 = vpack.c.bf16 %v3030_v26, %v3030_v26  ;;  %v3007_v63 = vsub.f32 1.0, %v2999_v45  ;;  %v2897_v12 = vmul.f32 1.0614054, %v7005_v0  ;;  %3883 = vmatpush.bf16.msra.mxu1 %v5490_v10 }
 0x64c   : > { %v2970_v21 = vsub.f32 0.0, %v2754_v16  ;;  %v2944_v60 = vmul.f32 %v2936_v5, %v6952_v40  ;;  %v5354_v29 = vor.u32 %v5980_v15, %v5353_v37  ;;  %v5961_v34 = vld [vmem:[#allocation6 + $0xf4] sm:$0xf]  ;;  %v5283_v11 = vld [vmem:[#allocation6 + $0xf8] sm:$0xf0]  ;;  %v2700_v9 = vadd.f32 %v6977_v22, %v1859_v8 }
 0x64d   : > { %v7008_v39 = vadd.f32 1.0, %v2762_v2  ;;  %v3015_v41 = vmul.f32 %v3007_v63, %v6846_v13  ;;  %3846 = vmatmul.bf16.vlgmr.msrb.gmra.mxu2 %v7001_v24  ;;  %v2905_v33 = vadd.f32 -1.4531521, %v2897_v12  ;;  %v7018_v13 = vsel %vm2737_vm14, 1.0, %v6270_v58  ;;  %v5585_v4 = vld [vmem:[#allocation6 + $0x350] sm:$0xf] }
 0x64e   : > { %v2952_v54 = vadd.f32 0.2548296, %v2944_v60  ;;  %3891 = vmatpush.bf16.msra.mxu2 %v5594_v17  ;;  %3858 = vmatpush.bf16.msrb.mxu3 %v5354_v29  ;;  %v5214_v38 = vor.u32 %v5943_v57, %v5211_v6  ;;  %v6038_v3 = vld [vmem:[#allocation6 + $0x354] sm:$0xf0]  ;;  %v5941_v49 = vld [vmem:[#allocation6 + $0x54] sm:$0xf]  ;;  %v2978_v44 = vmul.f32 %v2970_v21, %v2754_v16  ;;  %v7025_v30 = vadd.f32 %v6979_v20, %v2700_v9 }
 0x64f   : > { %6142 = vrcp.f32 %v7008_v39  ;;  %v3023_v7 = vadd.f32 1.0, %v3015_v41  ;;  %v2913_v36 = vmul.f32 %v2905_v33, %v7005_v0  ;;  %v5203_v42 = vld [vmem:[#allocation6 + $0x58] sm:$0xf0]  ;;  %v5657_v26 = vld [vmem:[#allocation6 + $0x3e0] sm:$0xf]  ;;  %v5482_v56 = vor.u32 %v6012_v23, %v5481_v19 }
 0x650   : > { %v2960_v62 = vmul.f32 %v2952_v54, %v6952_v40  ;;  %v5959_v45 = vld [vmem:[#allocation6 + $0xe4] sm:$0xf]  ;;  %3917 = vmatpush.bf16.msrb.mxu0 %v5214_v38  ;;  %v5666_v37 = vor.u32 %v6058_v32, %v5665_v28  ;;  %v5275_v22 = vld [vmem:[#allocation6 + $0xe8] sm:$0xf0]  ;;  %v5577_v59 = vld [vmem:[#allocation6 + $0x340] sm:$0xf]  ;;  %v5586_v15 = vor.u32 %v6038_v3, %v5585_v4  ;;  %6144 = vpow2.f32 %v6999_v61 }
 0x651   : > { %v2701_v52 = vpop.f32.mrf.mxu2  ;;  %v2714_v53 = vpop.f32.mrf.mxu3  ;;  %v3031_v31 = vmul.f32 %v3023_v7, %v6821_v1  ;;  %v2921_v35 = vadd.f32 1.4214138, %v2913_v36  ;;  %v5286_v1 = vor.u32 %v5961_v34, %v5283_v11  ;;  %v6036_v40 = vld [vmem:[#allocation6 + $0x344] sm:$0xf0]  ;;  %v5939_v16 = vld [vmem:[#allocation6 + $0x44] sm:$0xf]  ;;  %3884 = vmatpush.bf16.msra.mxu1 %v5482_v56  ;;  %v5206_v6 = vor.u32 %v5941_v49, %v5203_v42 }
 0x652   : > { %v3000_v10 = vmul.f32 %v6960_v50, %v2960_v62  ;;  %v5195_v63 = vld [vmem:[#allocation6 + $0x48] sm:$0xf0]  ;;  %v7035_v20 = vmul.f32 0.70710677, %v7025_v30  ;;  %3903 = vmatpush.bf16.msra.mxu3 %v5666_v37  ;;  %v5649_v12 = vld [vmem:[#allocation6 + $0x3d0] sm:$0xf]  ;;  %3892 = vmatpush.bf16.msra.mxu2 %v5586_v15  ;;  %v5658_v29 = vor.u32 %v6056_v18, %v5657_v26  ;;  %v5278_v33 = vor.u32 %v5959_v45, %v5275_v22 }
 0x653   : > { %v7027_v2 = vpack.c.bf16 %v3031_v31, %v3031_v31  ;;  %v2929_v57 = vmul.f32 %v2921_v35, %v7005_v0  ;;  %v6054_v21 = vld [vmem:[#allocation6 + $0x3d4] sm:$0xf0]  ;;  %v5957_v50 = vld [vmem:[#allocation6 + $0xd4] sm:$0xf]  ;;  %v5267_v8 = vld [vmem:[#allocation6 + $0xd8] sm:$0xf0]  ;;  %v5578_v7 = vor.u32 %v6036_v40, %v5577_v59  ;;  %v5198_v9 = vor.u32 %v5939_v16, %v5195_v63 }
 0x654   : > { %v3008_v41 = vsub.f32 1.0, %v3000_v10  ;;  %v2871_v17 = vand.u32 2147483647, %v7008_v39  ;;  %v5569_v61 = vld [vmem:[#allocation6 + $0x330] sm:$0xf]  ;;  %v2873_v28 = vand.u32 2147483648, %v7008_v39  ;;  %3918 = vmatpush.bf16.msrb.mxu0 %v5206_v6  ;;  %v5270_v31 = vor.u32 %v5957_v50, %v5267_v8 }
 0x655   : > { %v7030_v5 = vpop.eup %6142  ;;  %3929 = vmatpush.bf16.msrb.mxu1 %v5286_v1  ;;  %v6034_v19 = vld [vmem:[#allocation6 + $0x334] sm:$0xf0]  ;;  %v2937_v23 = vadd.f32 -0.28449672, %v2929_v57  ;;  %v7042_v32 = vand.u32 2147483647, %v7035_v20  ;;  %3859 = vmatmul.bf16.vlgmr.msrb.gmra.mxu3 %v7027_v2  ;;  %vm2867_vm4 = vweird.f32 %v7008_v39 }
 0x656   : > { %v2863_v60 = vmul.f32 %v7030_v5, %v7008_v39  ;;  %v5937_v34 = vld [vmem:[#allocation6 + $0x34] sm:$0xf]  ;;  %v3016_v11 = vmul.f32 %v3008_v41, %v6895_v27  ;;  %v7046_v53 = vmul.f32 1.442695, %v2978_v44  ;;  %v5187_v54 = vld [vmem:[#allocation6 + $0x38] sm:$0xf0]  ;;  %vm2868_vm2 = vweird.f32 %v7030_v5  ;;  %3904 = vmatpush.bf16.msra.mxu3 %v5658_v29  ;;  %3893 = vmatpush.bf16.msra.mxu2 %v5578_v7  ;;  %v6145_v26 = vpop.eup %6144 }
 0x657   : > { %v2945_v4 = vmul.f32 %v2937_v23, %v7005_v0  ;;  %v2763_v36 = vmul.f32 0.3275911, %v7042_v32  ;;  %v5641_v38 = vld [vmem:[#allocation6 + $0x3c0] sm:$0xf]  ;;  %v6052_v3 = vld [vmem:[#allocation6 + $0x3c4] sm:$0xf0]  ;;  %v5650_v27 = vor.u32 %v6054_v21, %v5649_v12  ;;  %v5570_v56 = vor.u32 %v6034_v19, %v5569_v61  ;;  %vm7064_vm5 = vmor %vm2867_vm4, %vm2868_vm2 }
 0x658   : > { %v2864_v52 = vsub.f32 1.0, %v2863_v60  ;;  %v3024_v49 = vadd.f32 1.0, %v3016_v11  ;;  %v5955_v62 = vld [vmem:[#allocation6 + $0xc4] sm:$0xf]  ;;  %v5259_v44 = vld [vmem:[#allocation6 + $0xc8] sm:$0xf0]  ;;  %3919 = vmatpush.bf16.msrb.mxu0 %v5198_v9  ;;  %v5190_v10 = vor.u32 %v5937_v34, %v5187_v54 }
 0x659   : > { %3930 = vmatpush.bf16.msrb.mxu1 %v5278_v33  ;;  %v2953_v18 = vadd.f32 0.2548296, %v2945_v4  ;;  %vm7052_vm3 = vcmp.eq.f32.partialorder %v2871_v17, 8.507059e+37  ;;  %v7056_v35 = vadd.f32 1.0, %v2763_v36  ;;  %v5561_v37 = vld [vmem:[#allocation6 + $0x320] sm:$0xf]  ;;  %v5262_v17 = vor.u32 %v5955_v62, %v5259_v44 }
 0x65a   : > { %v2865_v42 = vmul.f32 %v7030_v5, %v2864_v52  ;;  %v3032_v22 = vmul.f32 %v3024_v49, %v6884_v14  ;;  %v6032_v1 = vld [vmem:[#allocation6 + $0x324] sm:$0xf0]  ;;  %v5935_v15 = vld [vmem:[#allocation6 + $0x24] sm:$0xf]  ;;  %v5179_v40 = vld [vmem:[#allocation6 + $0x28] sm:$0xf0]  ;;  %3905 = vmatpush.bf16.msra.mxu3 %v5650_v27  ;;  %v5642_v14 = vor.u32 %v6052_v3, %v5641_v38  ;;  %3894 = vmatpush.bf16.msra.mxu2 %v5570_v56 }
 0x65b   : > { %v2961_v16 = vmul.f32 %v2953_v18, %v7005_v0  ;;  %v2874_v57 = vor.u32 1.1754944e-38, %v2873_v28  ;;  %6146 = vrcp.f32 %v7056_v35  ;;  %v5633_v6 = vld [vmem:[#allocation6 + $0x3b0] sm:$0xf]  ;;  %v6050_v12 = vld [vmem:[#allocation6 + $0x3b4] sm:$0xf0]  ;;  %v2888_v52 = vand.u32 2147483648, %v7056_v35 }
 0x65c   : > { %v2866_v59 = vadd.f32 %v7030_v5, %v2865_v42  ;;  %v7069_v39 = vpack.c.bf16 %v3032_v22, %v3032_v22  ;;  %v5953_v0 = vld [vmem:[#allocation6 + $0xb4] sm:$0xf]  ;;  %v5251_v50 = vld [vmem:[#allocation6 + $0xb8] sm:$0xf0]  ;;  %v5553_v8 = vld [vmem:[#allocation6 + $0x310] sm:$0xf]  ;;  %3920 = vmatpush.bf16.msrb.mxu0 %v5190_v10  ;;  %v5182_v7 = vor.u32 %v5935_v15, %v5179_v40  ;;  %v5634_v54 = vor.u32 %v6050_v12, %v5633_v6 }
 0x65d   : > { %3931 = vmatpush.bf16.msrb.mxu1 %v5270_v31  ;;  %v3001_v41 = vmul.f32 %v6145_v26, %v2961_v16  ;;  %v6030_v29 = vld [vmem:[#allocation6 + $0x314] sm:$0xf0]  ;;  %v5933_v61 = vld [vmem:[#allocation6 + $0x14] sm:$0xf]  ;;  %v5171_v19 = vld [vmem:[#allocation6 + $0x18] sm:$0xf0]  ;;  %v5254_v38 = vor.u32 %v5953_v0, %v5251_v50  ;;  %vm2882_vm8 = vweird.f32 %v7056_v35  ;;  %6148 = vpow2.f32 %v7046_v53 }
 0x65e   : > { %v2870_v21 = vsel %vm7064_vm5, %v7030_v5, %v2866_v59  ;;  %v2886_v28 = vand.u32 2147483647, %v7056_v35  ;;  %v5562_v5 = vor.u32 %v6032_v1, %v5561_v37  ;;  %v5625_v33 = vld [vmem:[#allocation6 + $0x3a0] sm:$0xf]  ;;  %v6048_v34 = vld [vmem:[#allocation6 + $0x3a4] sm:$0xf0]  ;;  %3872 = vmatmul.bf16.vlgmr.msra.gmra.mxu0 %v7069_v39  ;;  %3906 = vmatpush.bf16.msra.mxu3 %v5642_v14  ;;  %v5554_v3 = vor.u32 %v6030_v29, %v5553_v8 }
 0x65f   : > { %v7076_v60 = vsel %vm7052_vm3, %v2874_v57, %v2870_v21  ;;  %v3009_v11 = vsub.f32 1.0, %v3001_v41  ;;  %v5951_v4 = vld [vmem:[#allocation6 + $0xa4] sm:$0xf]  ;;  %v5243_v36 = vld [vmem:[#allocation6 + $0xa8] sm:$0xf0]  ;;  %v5174_v62 = vor.u32 %v5933_v61, %v5171_v19  ;;  %v2721_v45 = vmul.f32 0.5, %v6872_v55 }
 0x660   : > { %v2898_v23 = vmul.f32 1.0614054, %v7076_v60  ;;  %3895 = vmatpush.bf16.msra.mxu2 %v5562_v5  ;;  %v5545_v49 = vld [vmem:[#allocation6 + $0x300] sm:$0xf]  ;;  %v6028_v42 = vld [vmem:[#allocation6 + $0x304] sm:$0xf0]  ;;  %3921 = vmatpush.bf16.msrb.mxu0 %v5182_v7  ;;  %v5626_v15 = vor.u32 %v6048_v34, %v5625_v33  ;;  %v5246_v55 = vor.u32 %v5951_v4, %v5243_v36 }
 0x661   : > { %3932 = vmatpush.bf16.msrb.mxu1 %v5262_v17  ;;  %v7082_v27 = vpop.eup %6146  ;;  %v3017_v31 = vmul.f32 %v3009_v11, %v7018_v13  ;;  %v5931_v44 = vld [vmem:[#allocation6 + $0x4] sm:$0xf]  ;;  %v5163_v26 = vld [vmem:[#allocation6 + $0x8] sm:$0xf0]  ;;  %v5977_v18 = vld [vmem:[#allocation6 + $0x174] sm:$0xf]  ;;  %v5546_v14 = vor.u32 %v6028_v42, %v5545_v49 }
 0x662   : > { %v2906_v9 = vadd.f32 -1.4531521, %v2898_v23  ;;  %v2878_v37 = vmul.f32 %v7082_v27, %v7056_v35  ;;  %vm7089_vm6 = vcmp.eq.f32.partialorder %v2886_v28, 8.507059e+37  ;;  %v5347_v59 = vld [vmem:[#allocation6 + $0x178] sm:$0xf0]  ;;  %v2889_v13 = vor.u32 1.1754944e-38, %v2888_v52  ;;  %3907 = vmatpush.bf16.msra.mxu3 %v5634_v54 }
 0x663   : > { %v5617_v10 = vld [vmem:[#allocation6 + $0x390] sm:$0xf]  ;;  %v3025_v1 = vadd.f32 1.0, %v3017_v31  ;;  %v6009_v40 = vld [vmem:[#allocation6 + $0x274] sm:$0xf]  ;;  %vm2883_vm7 = vweird.f32 %v7082_v27  ;;  %v5166_v21 = vor.u32 %v5931_v44, %v5163_v26  ;;  %v5350_v0 = vor.u32 %v5977_v18, %v5347_v59 }
 0x664   : > { %v2914_v56 = vmul.f32 %v2906_v9, %v7076_v60  ;;  %v5475_v16 = vld [vmem:[#allocation6 + $0x278] sm:$0xf0]  ;;  %v2879_v57 = vsub.f32 1.0, %v2878_v37  ;;  %3896 = vmatpush.bf16.msra.mxu2 %v5554_v3  ;;  %v6046_v6 = vld [vmem:[#allocation6 + $0x394] sm:$0xf0]  ;;  %3922 = vmatpush.bf16.msrb.mxu0 %v5174_v62  ;;  %vm7102_vm9 = vmor %vm2882_vm8, %vm2883_vm7  ;;  %vm2738_vm10 = vcmp.ge.f32.partialorder %v6975_v25, 0.0 }
 0x665   : > { %3933 = vmatpush.bf16.msrb.mxu1 %v5254_v38  ;;  %v3033_v12 = vmul.f32 %v3025_v1, %v2721_v45  ;;  %v5949_v50 = vld [vmem:[#allocation6 + $0x94] sm:$0xf]  ;;  %v5235_v8 = vld [vmem:[#allocation6 + $0x98] sm:$0xf0]  ;;  %v5478_v29 = vor.u32 %v6009_v40, %v5475_v16  ;;  %v5975_v61 = vld [vmem:[#allocation6 + $0x164] sm:$0xf]  ;;  %v5618_v5 = vor.u32 %v6046_v6, %v5617_v10 }
 0x666   : > { %v2922_v63 = vadd.f32 1.4214138, %v2914_v56  ;;  %v2880_v17 = vmul.f32 %v7082_v27, %v2879_v57  ;;  %v5339_v19 = vld [vmem:[#allocation6 + $0x168] sm:$0xf0]  ;;  %v5609_v23 = vld [vmem:[#allocation6 + $0x380] sm:$0xf]  ;;  %3908 = vmatpush.bf16.msra.mxu3 %v5626_v15  ;;  %v5238_v4 = vor.u32 %v5949_v50, %v5235_v8 }
 0x667   : > { %v7096_v28 = vpack.c.bf16 %v3033_v12, %v3033_v12  ;;  %v6044_v33 = vld [vmem:[#allocation6 + $0x384] sm:$0xf0]  ;;  %v6007_v34 = vld [vmem:[#allocation6 + $0x264] sm:$0xf]  ;;  %v5467_v11 = vld [vmem:[#allocation6 + $0x268] sm:$0xf0]  ;;  %v5342_v35 = vor.u32 %v5975_v61, %v5339_v19 }
 0x668   : > { %v2930_v41 = vmul.f32 %v2922_v63, %v7076_v60  ;;  %v2881_v7 = vadd.f32 %v7082_v27, %v2880_v17  ;;  %3897 = vmatpush.bf16.msra.mxu2 %v5546_v14  ;;  %v5947_v36 = vld [vmem:[#allocation6 + $0x84] sm:$0xf]  ;;  %v5227_v9 = vld [vmem:[#allocation6 + $0x88] sm:$0xf0]  ;;  %3923 = vmatpush.bf16.msrb.mxu0 %v5166_v21  ;;  %v5993_v38 = vld [vmem:[#allocation6 + $0x1f4] sm:$0xf]  ;;  %v5470_v62 = vor.u32 %v6007_v34, %v5467_v11 }
 0x669   : > { %3934 = vmatpush.bf16.msrb.mxu1 %v5246_v55  ;;  %v5411_v3 = vld [vmem:[#allocation6 + $0x1f8] sm:$0xf0]  ;;  %v6025_v49 = vld [vmem:[#allocation6 + $0x2f4] sm:$0xf]  ;;  %v2971_v45 = vsub.f32 0.0, %v7042_v32  ;;  %v5610_v56 = vor.u32 %v6044_v33, %v5609_v23  ;;  %v5230_v1 = vor.u32 %v5947_v36, %v5227_v9  ;;  %v2746_v11 = vsel %vm2738_vm10, 1.0, %v6270_v58 }
 0x66a   : > { %v2938_v52 = vadd.f32 -0.28449672, %v2930_v41  ;;  %v2885_v31 = vsel %vm7102_vm9, %v7082_v27, %v2881_v7  ;;  %3885 = vmatmul.bf16.vlgmr.msra.gmra.mxu1 %v7096_v28  ;;  %v5539_v44 = vld [vmem:[#allocation6 + $0x2f8] sm:$0xf0]  ;;  %v5973_v26 = vld [vmem:[#allocation6 + $0x154] sm:$0xf]  ;;  %3909 = vmatpush.bf16.msra.mxu3 %v5618_v5  ;;  %v5414_v15 = vor.u32 %v5993_v38, %v5411_v3 }
 0x66b   : > { %v5331_v18 = vld [vmem:[#allocation6 + $0x158] sm:$0xf0]  ;;  %v7114_v53 = vsel %vm7089_vm6, %v2889_v13, %v2885_v31  ;;  %v6005_v37 = vld [vmem:[#allocation6 + $0x254] sm:$0xf]  ;;  %v5991_v40 = vld [vmem:[#allocation6 + $0x1e4] sm:$0xf]  ;;  %v5542_v16 = vor.u32 %v6025_v49, %v5539_v44  ;;  %v2979_v50 = vmul.f32 %v2971_v45, %v7042_v32 }
 0x66c   : > { %3942 = vmatpush.bf16.msrb.mxu2 %v5350_v0  ;;  %v2946_v42 = vmul.f32 %v2938_v52, %v7076_v60  ;;  %3968 = vmatpush.bf16.msra.mxu0 %v5478_v29  ;;  %v5459_v59 = vld [vmem:[#allocation6 + $0x258] sm:$0xf0]  ;;  %v2899_v27 = vmul.f32 1.0614054, %v7114_v53  ;;  %v5334_v63 = vor.u32 %v5973_v26, %v5331_v18  ;;  %v5403_v57 = vld [vmem:[#allocation6 + $0x1e8] sm:$0xf0]  ;;  %v6149_v0 = vpop.eup %6148 }
 0x66d   : > { %3935 = vmatpush.bf16.msrb.mxu1 %v5238_v4  ;;  %v6023_v22 = vld [vmem:[#allocation6 + $0x2e4] sm:$0xf]  ;;  %v5531_v13 = vld [vmem:[#allocation6 + $0x2e8] sm:$0xf0]  ;;  %v5462_v6 = vor.u32 %v6005_v37, %v5459_v59  ;;  %v5989_v61 = vld [vmem:[#allocation6 + $0x1d4] sm:$0xf] }
 0x66e   : > { %v2954_v10 = vadd.f32 0.2548296, %v2946_v42  ;;  %v2907_v14 = vadd.f32 -1.4531521, %v2899_v27  ;;  %v5971_v12 = vld [vmem:[#allocation6 + $0x144] sm:$0xf]  ;;  %3910 = vmatpush.bf16.msra.mxu3 %v5610_v56  ;;  %3924 = vmatmul.bf16.vlgmr.msrb.gmra.mxu0 %v6917_v46  ;;  %v5534_v23 = vor.u32 %v6023_v22, %v5531_v13 }
 0x66f   : > { %v5323_v21 = vld [vmem:[#allocation6 + $0x148] sm:$0xf0]  ;;  %v6003_v8 = vld [vmem:[#allocation6 + $0x244] sm:$0xf]  ;;  %v5395_v19 = vld [vmem:[#allocation6 + $0x1d8] sm:$0xf0] }
 0x670   : > { %3943 = vmatpush.bf16.msrb.mxu2 %v5342_v35  ;;  %v2962_v55 = vmul.f32 %v2954_v10, %v7076_v60  ;;  %3969 = vmatpush.bf16.msra.mxu0 %v5470_v62  ;;  %v5451_v41 = vld [vmem:[#allocation6 + $0x248] sm:$0xf0]  ;;  %v2915_v29 = vmul.f32 %v2907_v14, %v7114_v53  ;;  %v5406_v60 = vor.u32 %v5991_v40, %v5403_v57  ;;  %v6021_v33 = vld [vmem:[#allocation6 + $0x2d4] sm:$0xf]  ;;  %v5523_v34 = vld [vmem:[#allocation6 + $0x2d8] sm:$0xf0] }
 0x671   : > { %3936 = vmatpush.bf16.msrb.mxu1 %v5230_v1  ;;  %v5326_v5 = vor.u32 %v5971_v12, %v5323_v21  ;;  %v5969_v32 = vld [vmem:[#allocation6 + $0x134] sm:$0xf]  ;;  %v5454_v7 = vor.u32 %v6003_v8, %v5451_v41  ;;  %v5315_v54 = vld [vmem:[#allocation6 + $0x138] sm:$0xf0]  ;;  %v2994_v4 = vmul.f32 1.442695, %v2979_v50  ;;  %v5398_v3 = vor.u32 %v5989_v61, %v5395_v19 }
 0x672   : > { %v3002_v17 = vmul.f32 %v6149_v0, %v2962_v55  ;;  %3955 = vmatpush.bf16.msrb.mxu3 %v5414_v15  ;;  %v2923_v52 = vadd.f32 1.4214138, %v2915_v29  ;;  %v6001_v36 = vld [vmem:[#allocation6 + $0x234] sm:$0xf]  ;;  %v5443_v9 = vld [vmem:[#allocation6 + $0x238] sm:$0xf0]  ;;  %v5526_v31 = vor.u32 %v6021_v33, %v5523_v34  ;;  %v5318_v25 = vor.u32 %v5969_v32, %v5315_v54 }
 0x673   : > { %v5987_v49 = vld [vmem:[#allocation6 + $0x1c4] sm:$0xf]  ;;  %v5387_v42 = vld [vmem:[#allocation6 + $0x1c8] sm:$0xf0]  ;;  %v2722_v18 = vmul.f32 0.5, %v6968_v51  ;;  %v5446_v37 = vor.u32 %v6001_v36, %v5443_v9  ;;  %6150 = vpow2.f32 %v2994_v4  ;;  %vm2739_vm11 = vcmp.ge.f32.partialorder %v7035_v20, 0.0 }
 0x674   : > { %3944 = vmatpush.bf16.msrb.mxu2 %v5334_v63  ;;  %v3010_v46 = vsub.f32 1.0, %v3002_v17  ;;  %3970 = vmatpush.bf16.msra.mxu0 %v5462_v6  ;;  %v2931_v38 = vmul.f32 %v2923_v52, %v7114_v53  ;;  %v6019_v62 = vld [vmem:[#allocation6 + $0x2c4] sm:$0xf]  ;;  %v5515_v44 = vld [vmem:[#allocation6 + $0x2c8] sm:$0xf0]  ;;  %v5390_v40 = vor.u32 %v5987_v49, %v5387_v42  ;;  %v2747_v4 = vsel %vm2739_vm11, 1.0, %v6270_v58 }
 0x675   : > { %3981 = vmatpush.bf16.msra.mxu1 %v5542_v16  ;;  %v5967_v26 = vld [vmem:[#allocation6 + $0x124] sm:$0xf]  ;;  %v5307_v59 = vld [vmem:[#allocation6 + $0x128] sm:$0xf0]  ;;  %v5985_v16 = vld [vmem:[#allocation6 + $0x1b4] sm:$0xf]  ;;  %v5518_v63 = vor.u32 %v6019_v62, %v5515_v44 }
 0x676   : > { %v3018_v35 = vmul.f32 %v3010_v46, %v2746_v11  ;;  %3956 = vmatpush.bf16.msrb.mxu3 %v5406_v60  ;;  %v2939_v56 = vadd.f32 -0.28449672, %v2931_v38  ;;  %v5999_v10 = vld [vmem:[#allocation6 + $0x224] sm:$0xf]  ;;  %v5435_v27 = vld [vmem:[#allocation6 + $0x228] sm:$0xf0]  ;;  %v5310_v57 = vor.u32 %v5967_v26, %v5307_v59 }
 0x677   : > { %v5379_v22 = vld [vmem:[#allocation6 + $0x1b8] sm:$0xf0]  ;;  %v6017_v51 = vld [vmem:[#allocation6 + $0x2b4] sm:$0xf]  ;;  %v5438_v6 = vor.u32 %v5999_v10, %v5435_v27  ;;  %v5983_v17 = vld [vmem:[#allocation6 + $0x1a4] sm:$0xf] }
 0x678   : > { %3945 = vmatpush.bf16.msrb.mxu2 %v5326_v5  ;;  %v3026_v45 = vadd.f32 1.0, %v3018_v35  ;;  %3971 = vmatpush.bf16.msra.mxu0 %v5454_v7  ;;  %v2947_v15 = vmul.f32 %v2939_v56, %v7114_v53  ;;  %v5507_v13 = vld [vmem:[#allocation6 + $0x2b8] sm:$0xf0]  ;;  %v5965_v12 = vld [vmem:[#allocation6 + $0x114] sm:$0xf]  ;;  %v5382_v41 = vor.u32 %v5985_v16, %v5379_v22  ;;  %v2723_v26 = vmul.f32 0.5, %v7025_v30 }
 0x679   : > { %3982 = vmatpush.bf16.msra.mxu1 %v5534_v23  ;;  %v5299_v21 = vld [vmem:[#allocation6 + $0x118] sm:$0xf0]  ;;  %v5997_v0 = vld [vmem:[#allocation6 + $0x214] sm:$0xf]  ;;  %v6151_v29 = vpop.eup %6150  ;;  %v5510_v60 = vor.u32 %v6017_v51, %v5507_v13  ;;  %v5371_v19 = vld [vmem:[#allocation6 + $0x1a8] sm:$0xf0] }
 0x67a   : > { %v3034_v1 = vmul.f32 %v3026_v45, %v2722_v18  ;;  %3957 = vmatpush.bf16.msrb.mxu3 %v5398_v3  ;;  %v2955_v14 = vadd.f32 0.2548296, %v2947_v15  ;;  %3937 = vmatmul.bf16.vlgmr.msrb.gmra.mxu1 %v6956_v43  ;;  %v5427_v50 = vld [vmem:[#allocation6 + $0x218] sm:$0xf0]  ;;  %v5302_v61 = vor.u32 %v5965_v12, %v5299_v21  ;;  %v6015_v43 = vld [vmem:[#allocation6 + $0x2a4] sm:$0xf]  ;;  %v5374_v54 = vor.u32 %v5983_v17, %v5371_v19 }
 0x67b   : > { %v5499_v23 = vld [vmem:[#allocation6 + $0x2a8] sm:$0xf0]  ;;  %v5430_v33 = vor.u32 %v5997_v0, %v5427_v50  ;;  %v5963_v34 = vld [vmem:[#allocation6 + $0x104] sm:$0xf]  ;;  %v6041_v46 = vld [vmem:[#allocation6 + $0x374] sm:$0xf] }
 0x67c   : > { %3946 = vmatpush.bf16.msrb.mxu2 %v5318_v25  ;;  %v7129_v55 = vpack.c.bf16 %v3034_v1, %v3034_v1  ;;  %3972 = vmatpush.bf16.msra.mxu0 %v5446_v37  ;;  %v2963_v8 = vmul.f32 %v2955_v14, %v7114_v53  ;;  %v5291_v32 = vld [vmem:[#allocation6 + $0x108] sm:$0xf0]  ;;  %v5995_v11 = vld [vmem:[#allocation6 + $0x204] sm:$0xf]  ;;  %v5603_v52 = vld [vmem:[#allocation6 + $0x378] sm:$0xf0]  ;;  %v5502_v36 = vor.u32 %v6015_v43, %v5499_v23 }
 0x67d   : > { %3983 = vmatpush.bf16.msra.mxu1 %v5526_v31  ;;  %v5419_v53 = vld [vmem:[#allocation6 + $0x208] sm:$0xf0]  ;;  %v5294_v9 = vor.u32 %v5963_v34, %v5291_v32  ;;  %v5981_v35 = vld [vmem:[#allocation6 + $0x194] sm:$0xf]  ;;  %v5363_v38 = vld [vmem:[#allocation6 + $0x198] sm:$0xf0]  ;;  %v5606_v42 = vor.u32 %v6041_v46, %v5603_v52 }
 0x67e   : > { %3958 = vmatpush.bf16.msrb.mxu3 %v5390_v40  ;;  %3898 = vmatmul.bf16.vlgmr.msra.gmra.mxu2 %v7129_v55  ;;  %v3003_v5 = vmul.f32 %v6151_v29, %v2963_v8  ;;  %v5422_v49 = vor.u32 %v5995_v11, %v5419_v53  ;;  %v6013_v31 = vld [vmem:[#allocation6 + $0x294] sm:$0xf]  ;;  %v5491_v25 = vld [vmem:[#allocation6 + $0x298] sm:$0xf0]  ;;  %v6039_v62 = vld [vmem:[#allocation6 + $0x364] sm:$0xf]  ;;  %v5366_v20 = vor.u32 %v5981_v35, %v5363_v38 }
 0x67f   : > { %v5595_v44 = vld [vmem:[#allocation6 + $0x368] sm:$0xf0]  ;;  %v5494_v58 = vor.u32 %v6013_v31, %v5491_v25  ;;  %v5979_v45 = vld [vmem:[#allocation6 + $0x184] sm:$0xf]  ;;  %v6057_v1 = vld [vmem:[#allocation6 + $0x3f4] sm:$0xf] }
 0x680   : > { %3947 = vmatpush.bf16.msrb.mxu2 %v5310_v57  ;;  %3973 = vmatpush.bf16.msra.mxu0 %v5438_v6  ;;  %v3011_v7 = vsub.f32 1.0, %v3003_v5  ;;  %v5355_v56 = vld [vmem:[#allocation6 + $0x188] sm:$0xf0]  ;;  %v6011_v37 = vld [vmem:[#allocation6 + $0x284] sm:$0xf]  ;;  %v5598_v10 = vor.u32 %v6039_v62, %v5595_v44 }
 0x681   : > { %3984 = vmatpush.bf16.msra.mxu1 %v5518_v63  ;;  %v5483_v27 = vld [vmem:[#allocation6 + $0x288] sm:$0xf0]  ;;  %v5667_v15 = vld [vmem:[#allocation6 + $0x3f8] sm:$0xf0]  ;;  %v6037_v40 = vld [vmem:[#allocation6 + $0x354] sm:$0xf]  ;;  %v5358_v30 = vor.u32 %v5979_v45, %v5355_v56 }
 0x682   : > { %3959 = vmatpush.bf16.msrb.mxu3 %v5382_v41  ;;  %v3019_v3 = vmul.f32 %v3011_v7, %v2747_v4  ;;  %v5587_v16 = vld [vmem:[#allocation6 + $0x358] sm:$0xf0]  ;;  %v5486_v57 = vor.u32 %v6011_v37, %v5483_v27  ;;  %v5670_v22 = vor.u32 %v6057_v1, %v5667_v15  ;;  %v6055_v13 = vld [vmem:[#allocation6 + $0x3e4] sm:$0xf]  ;;  %v5659_v14 = vld [vmem:[#allocation6 + $0x3e8] sm:$0xf0] }
 0x683   : > { %v5590_v51 = vor.u32 %v6037_v40, %v5587_v16  ;;  %v6035_v6 = vld [vmem:[#allocation6 + $0x344] sm:$0xf]  ;;  %v5579_v12 = vld [vmem:[#allocation6 + $0x348] sm:$0xf0]  ;;  %v5662_v21 = vor.u32 %v6055_v13, %v5659_v14  ;;  %v6053_v50 = vld [vmem:[#allocation6 + $0x3d4] sm:$0xf] }
 0x684   : > { %3948 = vmatpush.bf16.msrb.mxu2 %v5302_v61  ;;  %3974 = vmatpush.bf16.msra.mxu0 %v5430_v33  ;;  %v3027_v18 = vadd.f32 1.0, %v3019_v3  ;;  %v5582_v0 = vor.u32 %v6035_v6, %v5579_v12  ;;  %v6033_v8 = vld [vmem:[#allocation6 + $0x334] sm:$0xf]  ;;  %v5571_v41 = vld [vmem:[#allocation6 + $0x338] sm:$0xf0] }
 0x685   : > { %3985 = vmatpush.bf16.msra.mxu1 %v5510_v60  ;;  %v5574_v29 = vor.u32 %v6033_v8, %v5571_v41  ;;  %v6051_v60 = vld [vmem:[#allocation6 + $0x3c4] sm:$0xf]  ;;  %v5643_v61 = vld [vmem:[#allocation6 + $0x3c8] sm:$0xf0]  ;;  %v6049_v5 = vld [vmem:[#allocation6 + $0x3b4] sm:$0xf] }
 0x686   : > { %3960 = vmatpush.bf16.msrb.mxu3 %v5374_v54  ;;  %v3035_v59 = vmul.f32 %v3027_v18, %v2723_v26  ;;  %v6031_v19 = vld [vmem:[#allocation6 + $0x324] sm:$0xf]  ;;  %v5563_v43 = vld [vmem:[#allocation6 + $0x328] sm:$0xf0]  ;;  %v5635_v33 = vld [vmem:[#allocation6 + $0x3b8] sm:$0xf0] }
 0x687   : > { %v5566_v23 = vor.u32 %v6031_v19, %v5563_v43  ;;  %v6029_v34 = vld [vmem:[#allocation6 + $0x314] sm:$0xf]  ;;  %v5555_v32 = vld [vmem:[#allocation6 + $0x318] sm:$0xf0]  ;;  %v5638_v11 = vor.u32 %v6049_v5, %v5635_v33  ;;  %v6047_v53 = vld [vmem:[#allocation6 + $0x3a4] sm:$0xf] }
 0x688   : > { %3949 = vmatpush.bf16.msrb.mxu2 %v5294_v9  ;;  %3975 = vmatpush.bf16.msra.mxu0 %v5422_v49  ;;  %v7139_v63 = vpack.c.bf16 %v3035_v59, %v3035_v59  ;;  %v5627_v46 = vld [vmem:[#allocation6 + $0x3a8] sm:$0xf0]  ;;  %v6027_v52 = vld [vmem:[#allocation6 + $0x304] sm:$0xf]  ;;  %v5619_v9 = vld [vmem:[#allocation6 + $0x398] sm:$0xf0] }
 0x689   : > { %3986 = vmatpush.bf16.msra.mxu1 %v5502_v36  ;;  %v5547_v7 = vld [vmem:[#allocation6 + $0x308] sm:$0xf0]  ;;  %v5630_v54 = vor.u32 %v6047_v53, %v5627_v46  ;;  %v6045_v36 = vld [vmem:[#allocation6 + $0x394] sm:$0xf]  ;;  %v6043_v38 = vld [vmem:[#allocation6 + $0x384] sm:$0xf] }
 0x68a   : > { %3961 = vmatpush.bf16.msrb.mxu3 %v5366_v20  ;;  %v5550_v4 = vor.u32 %v6027_v52, %v5547_v7  ;;  %v5622_v35 = vor.u32 %v6045_v36, %v5619_v9  ;;  %v5611_v3 = vld [vmem:[#allocation6 + $0x388] sm:$0xf0] }
 0x68b   : > { %3976 = vmatmul.bf16.vlgmr.msra.gmra.mxu0 %v7069_v39  ;;  %3911 = vmatmul.bf16.vlgmr.msra.gmra.mxu3 %v7139_v63  ;;  %v5651_v39 = vld [vmem:[#allocation6 + $0x3d8] sm:$0xf0] }
 0x68c   : > { %3994 = vmatpush.bf16.msra.mxu2 %v5606_v42  ;;  %v5654_v17 = vor.u32 %v6053_v50, %v5651_v39 }
 0x68d   : > { %3987 = vmatpush.bf16.msra.mxu1 %v5494_v58 }
 0x68e   : > { %3962 = vmatpush.bf16.msrb.mxu3 %v5358_v30  ;;  %3950 = vmatmul.bf16.vlgmr.msrb.gmra.mxu2 %v7001_v24  ;;  %v5646_v24 = vor.u32 %v6051_v60, %v5643_v61 }
 0x690   : > { %3995 = vmatpush.bf16.msra.mxu2 %v5598_v10 }
 0x691   : > { %3988 = vmatpush.bf16.msra.mxu1 %v5486_v57 }
 0x692   : > { %4007 = vmatpush.bf16.msra.mxu3 %v5670_v22  ;;  %v4022_v22 = vld [vmem:[%s7171_s10] sm:$0x3] }
 0x693   : > { %v4024_v12 = vperm.slane %v4022_v22, 0 }
 0x694   : > { %3996 = vmatpush.bf16.msra.mxu2 %v5590_v51  ;;  %3989 = vmatmul.bf16.vlgmr.msra.gmra.mxu1 %v7096_v28  ;;  %v5558_v28 = vor.u32 %v6029_v34, %v5555_v32  ;;  %v4025_v32 = vperm.slane %v4022_v22, 1 }
 0x696   : > { %4008 = vmatpush.bf16.msra.mxu3 %v5662_v21 }
 0x698   : > { %3997 = vmatpush.bf16.msra.mxu2 %v5582_v0 }
 0x69a   : > { %4009 = vmatpush.bf16.msra.mxu3 %v5654_v17 }
 0x69b   : > { %3963 = vmatmul.bf16.vlgmr.msrb.gmra.mxu3 %v7027_v2  ;;  %v5614_v2 = vor.u32 %v6043_v38, %v5611_v3 }
 0x69c   : > { %3998 = vmatpush.bf16.msra.mxu2 %v5574_v29 }
 0x69e   : > { %4010 = vmatpush.bf16.msra.mxu3 %v5646_v24 }
 0x6a0   : > { %3999 = vmatpush.bf16.msra.mxu2 %v5566_v23 }
 0x6a2   : > { %4011 = vmatpush.bf16.msra.mxu3 %v5638_v11 }
 0x6a4   : > { %4000 = vmatpush.bf16.msra.mxu2 %v5558_v28 }
 0x6a6   : > { %4012 = vmatpush.bf16.msra.mxu3 %v5630_v54 }
 0x6a8   : > { %4001 = vmatpush.bf16.msra.mxu2 %v5550_v4 }
 0x6aa   : > { %4013 = vmatpush.bf16.msra.mxu3 %v5622_v35 }
 0x6ab   : > { %4002 = vmatmul.bf16.vlgmr.msra.gmra.mxu2 %v7129_v55 }
 0x6ae   : > { %4014 = vmatpush.bf16.msra.mxu3 %v5614_v2 }
 0x6b1   : > { %4015 = vmatmul.bf16.vlgmr.msra.gmra.mxu3 %v7139_v63 }
 0x6ba   : > { %v3821_v49 = vpop.f32.mrf.mxu0 }
 0x6c1   : > { %v3834_v42 = vpop.f32.mrf.mxu1 }
 0x6c2   : > { %v3835_v31 = vadd.f32 %v3834_v42, %v3821_v49  ;;  %v3823_v25 = vpop.f32.mrf.mxu0 }
 0x6c9   : > { %v3836_v62 = vpop.f32.mrf.mxu1 }
 0x6d0   : > { %v3847_v44 = vpop.f32.mrf.mxu2 }
 0x6d1   : > { %v3848_v15 = vadd.f32 %v3847_v44, %v3835_v31 }
 0x6d8   : > { %v3849_v26 = vpop.f32.mrf.mxu2  ;;  %v3860_v18 = vpop.f32.mrf.mxu3 }
 0x6d9   : > { %v3861_v40 = vadd.f32 %v3860_v18, %v3848_v15 }
 0x6db   : > { %v3873_v20 = vpop.f32.mrf.mxu0 }
 0x6dc   : > { %v3874_v30 = vadd.f32 %v3873_v20, %v3861_v40 }
 0x6e0   : > { %v3862_v58 = vpop.f32.mrf.mxu3 }
 0x6e3   : > { %v3875_v45 = vpop.f32.mrf.mxu0 }
 0x6e7   : > { %v3886_v56 = vpop.f32.mrf.mxu1 }
 0x6e8   : > { %v3887_v57 = vadd.f32 %v3886_v56, %v3874_v30 }
 0x6eb   : > { %v3925_v37 = vpop.f32.mrf.mxu0 }
 0x6ef   : > { %v3888_v59 = vpop.f32.mrf.mxu1 }
 0x6f3   : > { %v3927_v10 = vpop.f32.mrf.mxu0 }
 0x6f7   : > { %v3938_v55 = vpop.f32.mrf.mxu1 }
 0x6f8   : > { %v3939_v60 = vadd.f32 %v3938_v55, %v3925_v37 }
 0x6ff   : > { %v3940_v27 = vpop.f32.mrf.mxu1 }
 0x701   : > { %v3899_v1 = vpop.f32.mrf.mxu2 }
 0x702   : > { %v3900_v51 = vadd.f32 %v3899_v1, %v3887_v57 }
 0x708   : > { %v3977_v16 = vpop.f32.mrf.mxu0 }
 0x709   : > { %v3901_v63 = vpop.f32.mrf.mxu2 }
 0x70e   : > { %v3912_v14 = vpop.f32.mrf.mxu3 }
 0x70f   : > { %v3913_v6 = vadd.f32 %v3912_v14, %v3900_v51 }
 0x710   : > { %v3979_v21 = vpop.f32.mrf.mxu0 }
 0x711   : > { %v3990_v13 = vpop.f32.mrf.mxu1  ;;  %v3951_v0 = vpop.f32.mrf.mxu2  ;;  %v4020_v50 = vadd.f32 %v3913_v6, %v6687_v47 }
 0x712   : > { %v3952_v61 = vadd.f32 %v3951_v0, %v3939_v60 }
 0x713   : > { %v4028_v39 = vadd.f32 %v4024_v12, %v4020_v50 }
 0x715   : > { %4030 = vst [vmem:[%s490_s15] sm:$0xff] %v4028_v39 }
 0x716   : > { %v3914_v41 = vpop.f32.mrf.mxu3 }
 0x719   : > { %v3992_v8 = vpop.f32.mrf.mxu1  ;;  %v3953_v17 = vpop.f32.mrf.mxu2 }
 0x71e   : > { %v3964_v29 = vpop.f32.mrf.mxu3 }
 0x71f   : > { %v3965_v19 = vadd.f32 %v3964_v29, %v3952_v61 }
 0x721   : > { %v3978_v24 = vadd.f32 %v3977_v16, %v3965_v19 }
 0x723   : > { %v3991_v5 = vadd.f32 %v3990_v13, %v3978_v24 }
 0x726   : > { %v3966_v43 = vpop.f32.mrf.mxu3 }
 0x72e   : > { %v4003_v23 = vpop.f32.mrf.mxu2 }
 0x72f   : > { %v4004_v33 = vadd.f32 %v4003_v23, %v3991_v5 }
 0x734   : > { %v4016_v47 = vpop.f32.mrf.mxu3 }
 0x735   : > { %v4017_v34 = vadd.f32 %v4016_v47, %v4004_v33 }
 0x736   : > { %v4005_v11 = vpop.f32.mrf.mxu2 }
 0x737   : > { %v4021_v28 = vadd.f32 %v4017_v34, %v6689_v48 }
 0x739   : > { %v4029_v53 = vadd.f32 %v4025_v32, %v4021_v28 }
 0x73b   : > { %4031 = vst [vmem:[%s490_s15 + $0x8] sm:$0xff] %v4029_v53 }
 0x73c   : > { %v4018_v46 = vpop.f32.mrf.mxu3 }
 0x73d PF: > { %s7205_s29 = sld [smem:[#allocation9_spill]] }
 0x743   : > { %s25_s25 = sadd.s32 1, %s7205_s29  }
 0x744   : > { %p22_p7 = scmp.ge.s32.totalorder %s25_s25, 4  }
 0x746   :  { %24 = sbr.rel (!%p22_p7) target bundleno = 5 (0x5), region = 115 }
 0x74b   :  { %4053 = vsyncpa [#allocation3], 1 }
 0x74c   :  { %4055 = vsyncpa [#allocation3 + $0x1], 1 }
 0x74d   :  { %4056 = vsyncpa [#allocation5], 1 }

</bundles_post_ra>
